<compile_context>
chip_gen: v7x
topology: tpu7x:2x2x1
jax: 0.10.0
libtpu: 0.0.40
codegen_flags: <defaults>
</compile_context>

<pallas_src>
import math
import functools

import jax
import jax.numpy as jnp
from jax import lax
from jax.experimental import pallas as pl
from jax.experimental.pallas import tpu as pltpu


def _mqa_kernel(x_ref, wq_ref, bq_ref, wk_ref, bk_ref, wv_ref, bv_ref,
                wo_ref, bo_ref, o_ref, *, nh, h_dim, b_tile, compute_dtype,
                fuse_output_proj):
    """One grid step = b_tile batch elements; everything resident in VMEM."""
    sl = x_ref.shape[1]
    dim = x_ref.shape[2]
    cd = compute_dtype

    # ---- projections on the flattened (b_tile*sl, dim) slab ----
    # x and the weights already arrive in bf16 (cast once in the wrapper);
    # MXU accumulates in f32 and biases are added once in f32.
    xf = x_ref[...].reshape(b_tile * sl, dim)
    q = jnp.dot(xf, wq_ref[...], preferred_element_type=jnp.float32) + bq_ref[...]
    k = jnp.dot(xf, wk_ref[...], preferred_element_type=jnp.float32) + bk_ref[...]
    v = jnp.dot(xf, wv_ref[...], preferred_element_type=jnp.float32) + bv_ref[...]

    scale = 1.0 / math.sqrt(h_dim)
    wo = wo_ref[...]

    # TODO(synk): at realistic shapes (sl in the thousands) the (nh*sl, sl)
    # score block must be tiled flash-style along an "arbitrary" KV grid axis
    # with online softmax (m/l/acc in VMEM scratch) instead of being fully
    # resident — especially on v7x (64 MiB VMEM).
    # TODO(synk): if b_tile > 1 is ever used, convert this static unroll to
    # lax.fori_loop (pl.ds/pl.multiple_of slab slices) to bound live ranges.
    for b in range(b_tile):                              # b_tile == 1 default
        q_b = q[b * sl:(b + 1) * sl, :]                  # (sl, nh*h_dim) f32
        k_b = k[b * sl:(b + 1) * sl, :].astype(cd)       # (sl, h_dim)
        v_b = v[b * sl:(b + 1) * sl, :].astype(cd)       # (sl, h_dim)

        # Head-batched Q: (nh*sl, h_dim).  h_dim % 128 == 0 keeps the lane
        # slices vreg-aligned so the axis-0 (sublane) concat is cheap.  If
        # MLIR ever shows a materialized copy here, write per-head rows into
        # a (nh*sl, h_dim) VMEM scratch instead.
        q2 = jnp.concatenate(
            [q_b[:, h * h_dim:(h + 1) * h_dim] for h in range(nh)], axis=0)
        q2 = (q2 * scale).astype(cd)

        # ONE score matmul for all heads (shared K head); contract the last
        # dim of both operands -> no materialized k.T (XLU handles layout).
        s = lax.dot_general(q2, k_b, (((1,), (1,)), ((), ())),
                            preferred_element_type=jnp.float32)   # (nh*sl, sl)

        # ONE numerically-stable softmax over keys, all in f32.
        # pl.reciprocal(approx=True): rows sum to 1 only to ~1e-3 relative —
        # covered by the test tolerance; use approx=False if tighter needed.
        s_max = jnp.max(s, axis=-1, keepdims=True)
        p = jnp.exp(s - s_max)
        denom = jnp.sum(p, axis=-1, keepdims=True)
        p = p * pl.reciprocal(denom, approx=True)        # EUP vrcp, ~free

        # ONE PV matmul for all heads.
        ctx = jnp.dot(p.astype(cd), v_b,
                      preferred_element_type=jnp.float32)         # (nh*sl, h_dim)

        # Output projection.
        if fuse_output_proj:
            # v6e/v7x flavour: one lane-axis head concat + single K=dim
            # contraction keeps accumulation inside the MXU path.
            ctx_cat = jnp.concatenate(
                [ctx[h * sl:(h + 1) * sl, :] for h in range(nh)],
                axis=1).astype(cd)                                # (sl, dim)
            out = jnp.dot(ctx_cat, wo, preferred_element_type=jnp.float32)
        else:
            # v5e flavour (default): per-head K=128 dots accumulated against
            # sublane row-blocks of Wo — no lane-axis concat of heads.
            out = None
            for h in range(nh):
                ctx_h = ctx[h * sl:(h + 1) * sl, :].astype(cd)    # (sl, h_dim)
                wo_h = wo[h * h_dim:(h + 1) * h_dim, :]           # (h_dim, dim)
                d = jnp.dot(ctx_h, wo_h, preferred_element_type=jnp.float32)
                out = d if out is None else out + d
        out = out + bo_ref[...]
        o_ref[b] = out.astype(o_ref.dtype)


def mqa_forward(x, params, *, nh, b_tile=1, compute_dtype=jnp.bfloat16,
                out_dtype=None, fuse_output_proj=False):
    bs, sl, dim = x.shape
    h_dim = dim // nh
    # Fail loudly on off-spec shapes instead of silently relayouting.
    assert dim % nh == 0, "dim must be divisible by num heads"
    assert h_dim % 128 == 0, "head dim must be lane-aligned (multiple of 128)"
    assert sl % 8 == 0, "seq_len must be a multiple of the sublane count (8)"
    assert bs % b_tile == 0, "batch must be divisible by b_tile"
    if out_dtype is None:
        out_dtype = compute_dtype      # halves output writeback DMA

    wq, bq, wk, bk, wv, bv, wo, bo = params
    # Stream x and the weight matrices in bf16; halves their HBM DMA bytes
    # and their VMEM residency.  Biases stay f32 (added post-accumulation).
    cd = compute_dtype
    x_cd = x.astype(cd)
    args = (x_cd, wq.astype(cd), bq, wk.astype(cd), bk,
            wv.astype(cd), bv, wo.astype(cd), bo)

    kernel = functools.partial(_mqa_kernel, nh=nh, h_dim=h_dim,
                               b_tile=b_tile, compute_dtype=cd,
                               fuse_output_proj=fuse_output_proj)

    def build(single_buffer_consts):
        def const_spec(shape):
            idx = lambda b: (0,) * len(shape)
            if single_buffer_consts:
                # Constant index map -> DMA'd once; single buffer frees the
                # redundant 2nd VMEM copy the default pipelining allocates.
                return pl.BlockSpec(shape, idx, pipeline_mode=pl.Buffered(1))
            return pl.BlockSpec(shape, idx)

        return pl.pallas_call(
            kernel,
            out_shape=jax.ShapeDtypeStruct((bs, sl, dim), out_dtype),
            grid_spec=pltpu.PrefetchScalarGridSpec(
                num_scalar_prefetch=0,
                # Keep the grid >= 2 (a multiple of the v7x core count) —
                # don't grow b_tile at the cost of collapsing the grid to 1.
                grid=(bs // b_tile,),
                in_specs=[
                    pl.BlockSpec((b_tile, sl, dim), lambda b: (b, 0, 0)),  # x
                    const_spec((dim, dim)),      # wq
                    const_spec((1, dim)),        # bq
                    const_spec((dim, h_dim)),    # wk
                    const_spec((1, h_dim)),      # bk
                    const_spec((dim, h_dim)),    # wv
                    const_spec((1, h_dim)),      # bv
                    const_spec((dim, dim)),      # wo
                    const_spec((1, dim)),        # bo
                ],
                out_specs=pl.BlockSpec((b_tile, sl, dim), lambda b: (b, 0, 0)),
            ),
            # vmem_limit_bytes left at default: total residency here is a few
            # MiB; set it explicitly only if tiles grow (esp. on v5e/v7x).
            compiler_params=pltpu.CompilerParams(
                dimension_semantics=("parallel",)),
        )

    try:
        return build(True)(*args)
    except Exception:
        # Compatibility fallback for Pallas versions that reject
        # pipeline_mode=pl.Buffered(1) on top-level BlockSpecs; identical
        # semantics, just double-buffered constant blocks.
        return build(False)(*args)


def mqa_reference(x, params, *, nh, compute_dtype=jnp.bfloat16):
    """Pure-JAX reference mirroring the PyTorch forward (and the kernel's
    bf16-operand / f32-accumulate numerics)."""
    bs, sl, dim = x.shape
    h_dim = dim // nh
    wq, bq, wk, bk, wv, bv, wo, bo = params
    cd = compute_dtype
    xc = x.astype(cd)
    q = jnp.einsum("bsd,de->bse", xc, wq.astype(cd),
                   preferred_element_type=jnp.float32) + bq
    k = jnp.einsum("bsd,de->bse", xc, wk.astype(cd),
                   preferred_element_type=jnp.float32) + bk
    v = jnp.einsum("bsd,de->bse", xc, wv.astype(cd),
                   preferred_element_type=jnp.float32) + bv
    scale = 1.0 / math.sqrt(h_dim)
    qh = (q.reshape(bs, sl, nh, h_dim).transpose(0, 2, 1, 3) * scale).astype(cd)
    s = jnp.einsum("bhqd,bkd->bhqk", qh, k.astype(cd),
                   preferred_element_type=jnp.float32)
    p = jax.nn.softmax(s, axis=-1)
    ctx = jnp.einsum("bhqk,bkd->bhqd", p.astype(cd), v.astype(cd),
                     preferred_element_type=jnp.float32)
    ctx = ctx.transpose(0, 2, 1, 3).reshape(bs, sl, dim).astype(cd)
    return jnp.einsum("bsd,de->bse", ctx, wo.astype(cd),
                      preferred_element_type=jnp.float32) + bo


if __name__ == "__main__":
    # Small, TPU-friendly shapes consistent with the module (the spec also
    # has h_dim = 128): batch=2, seq=128, nh=4, dim=512.
    batch, seq, nh, h_dim = 2, 128, 4, 128
    dim = nh * h_dim

    key = jax.random.PRNGKey(0)
    kx, kq, kbq, kk, kbk, kv, kbv, ko, kbo = jax.random.split(key, 9)

    x = jax.random.normal(kx, (batch, seq, dim), dtype=jnp.float32)

    def init_w(k, fan_in, fan_out):
        bound = 1.0 / math.sqrt(fan_in)
        return jax.random.uniform(k, (fan_in, fan_out), jnp.float32, -bound, bound)

    def init_b(k, fan_in, fan_out):
        bound = 1.0 / math.sqrt(fan_in)
        return jax.random.uniform(k, (1, fan_out), jnp.float32, -bound, bound)

    params = (
        init_w(kq, dim, dim),   init_b(kbq, dim, dim),     # wq, bq
        init_w(kk, dim, h_dim), init_b(kbk, dim, h_dim),   # wk, bk
        init_w(kv, dim, h_dim), init_b(kbv, dim, h_dim),   # wv, bv
        init_w(ko, dim, dim),   init_b(kbo, dim, dim),     # wo, bo
    )

    out = mqa_forward(x, params, nh=nh, b_tile=1)
    out = jax.block_until_ready(out)

    ref = mqa_reference(x, params, nh=nh)
    assert out.shape == (batch, seq, dim)
    out_f32 = out.astype(jnp.float32)
    assert bool(jnp.all(jnp.isfinite(out_f32)))
    # bf16 MXU operands (mirrored in the reference) + approx reciprocal +
    # bf16 output writeback -> mixed-precision tolerance.
    assert jnp.allclose(out_f32, ref, atol=2e-2, rtol=2e-2), (
        "mismatch vs JAX reference, max abs err = "
        + str(float(jnp.max(jnp.abs(out_f32 - ref)))))

    print("KERNEL_OK")
</pallas_src>

<mosaic_0001>
module attributes {stable_mosaic.version = 11 : i64} {
  func.func @_mqa_kernel(%arg0: i32, %arg1: memref<1x128x512xbf16, #tpu.memory_space<vmem>>, %arg2: memref<512x512xbf16, #tpu.memory_space<vmem>>, %arg3: memref<1x512xf32, #tpu.memory_space<vmem>>, %arg4: memref<512x128xbf16, #tpu.memory_space<vmem>>, %arg5: memref<1x128xf32, #tpu.memory_space<vmem>>, %arg6: memref<512x128xbf16, #tpu.memory_space<vmem>>, %arg7: memref<1x128xf32, #tpu.memory_space<vmem>>, %arg8: memref<512x512xbf16, #tpu.memory_space<vmem>>, %arg9: memref<1x512xf32, #tpu.memory_space<vmem>>, %arg10: memref<1x128x512xbf16, #tpu.memory_space<vmem>>) attributes {dimension_semantics = [#tpu.dimension_semantics<parallel>], iteration_bounds = array<i64: 2>, scalar_prefetch = 0 : i64, scratch_operands = 0 : i64, tpu.core_type = #tpu.core_type<tc>, window_params = [{transform_indices = @transform_0, window_bounds = array<i64: 1, 128, 512>}, {pipeline_mode = #tpu.pipeline_mode<synchronous>, transform_indices = @transform_1, window_bounds = array<i64: 512, 512>}, {pipeline_mode = #tpu.pipeline_mode<synchronous>, transform_indices = @transform_2, window_bounds = array<i64: 1, 512>}, {pipeline_mode = #tpu.pipeline_mode<synchronous>, transform_indices = @transform_3, window_bounds = array<i64: 512, 128>}, {pipeline_mode = #tpu.pipeline_mode<synchronous>, transform_indices = @transform_4, window_bounds = array<i64: 1, 128>}, {pipeline_mode = #tpu.pipeline_mode<synchronous>, transform_indices = @transform_5, window_bounds = array<i64: 512, 128>}, {pipeline_mode = #tpu.pipeline_mode<synchronous>, transform_indices = @transform_6, window_bounds = array<i64: 1, 128>}, {pipeline_mode = #tpu.pipeline_mode<synchronous>, transform_indices = @transform_7, window_bounds = array<i64: 512, 512>}, {pipeline_mode = #tpu.pipeline_mode<synchronous>, transform_indices = @transform_8, window_bounds = array<i64: 1, 512>}, {transform_indices = @transform_9, window_bounds = array<i64: 1, 128, 512>}]} {
    %c0 = arith.constant 0 : index
    %c0_0 = arith.constant 0 : index
    %c0_1 = arith.constant 0 : index
    %0 = vector.load %arg1[%c0, %c0_0, %c0_1] : memref<1x128x512xbf16, #tpu.memory_space<vmem>>, vector<1x128x512xbf16>
    %1 = vector.shape_cast %0 : vector<1x128x512xbf16> to vector<128x512xbf16>
    %c0_2 = arith.constant 0 : index
    %c0_3 = arith.constant 0 : index
    %2 = vector.load %arg2[%c0_2, %c0_3] : memref<512x512xbf16, #tpu.memory_space<vmem>>, vector<512x512xbf16>
    %cst = arith.constant dense<0.000000e+00> : vector<128x512xf32>
    %3 = tpu.matmul %1, %2, %cst {dimension_numbers = #tpu.dot_dimension_numbers<[1], [0], [0], [1], [0, 0, 1, 1], [], []>} : vector<128x512xbf16>, vector<512x512xbf16>, vector<128x512xf32> -> vector<128x512xf32>
    %c0_4 = arith.constant 0 : index
    %c0_5 = arith.constant 0 : index
    %4 = vector.load %arg3[%c0_4, %c0_5] : memref<1x512xf32, #tpu.memory_space<vmem>>, vector<1x512xf32>
    %5 = vector.broadcast %4 : vector<1x512xf32> to vector<128x512xf32>
    %6 = arith.addf %3, %5 : vector<128x512xf32>
    %c0_6 = arith.constant 0 : index
    %c0_7 = arith.constant 0 : index
    %7 = vector.load %arg4[%c0_6, %c0_7] : memref<512x128xbf16, #tpu.memory_space<vmem>>, vector<512x128xbf16>
    %cst_8 = arith.constant dense<0.000000e+00> : vector<128x128xf32>
    %8 = tpu.matmul %1, %7, %cst_8 {dimension_numbers = #tpu.dot_dimension_numbers<[1], [0], [0], [1], [0, 0, 1, 1], [], []>} : vector<128x512xbf16>, vector<512x128xbf16>, vector<128x128xf32> -> vector<128x128xf32>
    %c0_9 = arith.constant 0 : index
    %c0_10 = arith.constant 0 : index
    %9 = vector.load %arg5[%c0_9, %c0_10] : memref<1x128xf32, #tpu.memory_space<vmem>>, vector<1x128xf32>
    %10 = vector.broadcast %9 : vector<1x128xf32> to vector<128x128xf32>
    %11 = arith.addf %8, %10 : vector<128x128xf32>
    %c0_11 = arith.constant 0 : index
    %c0_12 = arith.constant 0 : index
    %12 = vector.load %arg6[%c0_11, %c0_12] : memref<512x128xbf16, #tpu.memory_space<vmem>>, vector<512x128xbf16>
    %cst_13 = arith.constant dense<0.000000e+00> : vector<128x128xf32>
    %13 = tpu.matmul %1, %12, %cst_13 {dimension_numbers = #tpu.dot_dimension_numbers<[1], [0], [0], [1], [0, 0, 1, 1], [], []>} : vector<128x512xbf16>, vector<512x128xbf16>, vector<128x128xf32> -> vector<128x128xf32>
    %c0_14 = arith.constant 0 : index
    %c0_15 = arith.constant 0 : index
    %14 = vector.load %arg7[%c0_14, %c0_15] : memref<1x128xf32, #tpu.memory_space<vmem>>, vector<1x128xf32>
    %15 = vector.broadcast %14 : vector<1x128xf32> to vector<128x128xf32>
    %16 = arith.addf %13, %15 : vector<128x128xf32>
    %c0_16 = arith.constant 0 : index
    %c0_17 = arith.constant 0 : index
    %17 = vector.load %arg8[%c0_16, %c0_17] : memref<512x512xbf16, #tpu.memory_space<vmem>>, vector<512x512xbf16>
    %18 = arith.truncf %11 : vector<128x128xf32> to vector<128x128xbf16>
    %19 = arith.truncf %16 : vector<128x128xf32> to vector<128x128xbf16>
    %20 = vector.extract_strided_slice %6 {offsets = [0, 0], sizes = [128, 128], strides = [1, 1]} : vector<128x512xf32> to vector<128x128xf32>
    %21 = vector.extract_strided_slice %6 {offsets = [0, 128], sizes = [128, 128], strides = [1, 1]} : vector<128x512xf32> to vector<128x128xf32>
    %22 = vector.extract_strided_slice %6 {offsets = [0, 256], sizes = [128, 128], strides = [1, 1]} : vector<128x512xf32> to vector<128x128xf32>
    %23 = vector.extract_strided_slice %6 {offsets = [0, 384], sizes = [128, 128], strides = [1, 1]} : vector<128x512xf32> to vector<128x128xf32>
    %24 = tpu.concatenate %20, %21, %22, %23 in 0 : vector<128x128xf32>, vector<128x128xf32>, vector<128x128xf32>, vector<128x128xf32> -> vector<512x128xf32>
    %cst_18 = arith.constant 0.0883883461 : f32
    %25 = vector.broadcast %cst_18 : f32 to vector<512x128xf32>
    %26 = arith.mulf %24, %25 : vector<512x128xf32>
    %27 = arith.truncf %26 : vector<512x128xf32> to vector<512x128xbf16>
    %cst_19 = arith.constant dense<0.000000e+00> : vector<512x128xf32>
    %28 = tpu.matmul %27, %18, %cst_19 {dimension_numbers = #tpu.dot_dimension_numbers<[1], [1], [0], [0], [0, 0, 1, 0], [], []>} : vector<512x128xbf16>, vector<128x128xbf16>, vector<512x128xf32> -> vector<512x128xf32>
    %cst_20 = arith.constant dense<0xFF800000> : vector<512xf32>
    %29 = vector.multi_reduction <maximumf>, %28, %cst_20 [1] : vector<512x128xf32> to vector<512xf32>
    %30 = vector.shape_cast %29 : vector<512xf32> to vector<512x1xf32>
    %31 = vector.broadcast %30 : vector<512x1xf32> to vector<512x128xf32>
    %32 = arith.subf %28, %31 : vector<512x128xf32>
    %33 = math.exp %32 : vector<512x128xf32>
    %cst_21 = arith.constant dense<0.000000e+00> : vector<512xf32>
    %34 = vector.multi_reduction <add>, %33, %cst_21 [1] : vector<512x128xf32> to vector<512xf32>
    %35 = vector.shape_cast %34 : vector<512xf32> to vector<512x1xf32>
    %36 = tpu.reciprocal %35 {approx = true} : vector<512x1xf32> -> vector<512x1xf32>
    %37 = vector.broadcast %36 : vector<512x1xf32> to vector<512x128xf32>
    %38 = arith.mulf %33, %37 : vector<512x128xf32>
    %39 = arith.truncf %38 : vector<512x128xf32> to vector<512x128xbf16>
    %cst_22 = arith.constant dense<0.000000e+00> : vector<512x128xf32>
    %40 = tpu.matmul %39, %19, %cst_22 {dimension_numbers = #tpu.dot_dimension_numbers<[1], [0], [0], [1], [0, 0, 1, 1], [], []>} : vector<512x128xbf16>, vector<128x128xbf16>, vector<512x128xf32> -> vector<512x128xf32>
    %41 = vector.extract_strided_slice %40 {offsets = [0, 0], sizes = [128, 128], strides = [1, 1]} : vector<512x128xf32> to vector<128x128xf32>
    %42 = arith.truncf %41 : vector<128x128xf32> to vector<128x128xbf16>
    %43 = vector.extract_strided_slice %17 {offsets = [0, 0], sizes = [128, 512], strides = [1, 1]} : vector<512x512xbf16> to vector<128x512xbf16>
    %cst_23 = arith.constant dense<0.000000e+00> : vector<128x512xf32>
    %44 = tpu.matmul %42, %43, %cst_23 {dimension_numbers = #tpu.dot_dimension_numbers<[1], [0], [0], [1], [0, 0, 1, 1], [], []>} : vector<128x128xbf16>, vector<128x512xbf16>, vector<128x512xf32> -> vector<128x512xf32>
    %45 = vector.extract_strided_slice %40 {offsets = [128, 0], sizes = [128, 128], strides = [1, 1]} : vector<512x128xf32> to vector<128x128xf32>
    %46 = arith.truncf %45 : vector<128x128xf32> to vector<128x128xbf16>
    %47 = vector.extract_strided_slice %17 {offsets = [128, 0], sizes = [128, 512], strides = [1, 1]} : vector<512x512xbf16> to vector<128x512xbf16>
    %cst_24 = arith.constant dense<0.000000e+00> : vector<128x512xf32>
    %48 = tpu.matmul %46, %47, %cst_24 {dimension_numbers = #tpu.dot_dimension_numbers<[1], [0], [0], [1], [0, 0, 1, 1], [], []>} : vector<128x128xbf16>, vector<128x512xbf16>, vector<128x512xf32> -> vector<128x512xf32>
    %49 = arith.addf %44, %48 : vector<128x512xf32>
    %50 = vector.extract_strided_slice %40 {offsets = [256, 0], sizes = [128, 128], strides = [1, 1]} : vector<512x128xf32> to vector<128x128xf32>
    %51 = arith.truncf %50 : vector<128x128xf32> to vector<128x128xbf16>
    %52 = vector.extract_strided_slice %17 {offsets = [256, 0], sizes = [128, 512], strides = [1, 1]} : vector<512x512xbf16> to vector<128x512xbf16>
    %cst_25 = arith.constant dense<0.000000e+00> : vector<128x512xf32>
    %53 = tpu.matmul %51, %52, %cst_25 {dimension_numbers = #tpu.dot_dimension_numbers<[1], [0], [0], [1], [0, 0, 1, 1], [], []>} : vector<128x128xbf16>, vector<128x512xbf16>, vector<128x512xf32> -> vector<128x512xf32>
    %54 = arith.addf %49, %53 : vector<128x512xf32>
    %55 = vector.extract_strided_slice %40 {offsets = [384, 0], sizes = [128, 128], strides = [1, 1]} : vector<512x128xf32> to vector<128x128xf32>
    %56 = arith.truncf %55 : vector<128x128xf32> to vector<128x128xbf16>
    %57 = vector.extract_strided_slice %17 {offsets = [384, 0], sizes = [128, 512], strides = [1, 1]} : vector<512x512xbf16> to vector<128x512xbf16>
    %cst_26 = arith.constant dense<0.000000e+00> : vector<128x512xf32>
    %58 = tpu.matmul %56, %57, %cst_26 {dimension_numbers = #tpu.dot_dimension_numbers<[1], [0], [0], [1], [0, 0, 1, 1], [], []>} : vector<128x128xbf16>, vector<128x512xbf16>, vector<128x512xf32> -> vector<128x512xf32>
    %59 = arith.addf %54, %58 : vector<128x512xf32>
    %c0_27 = arith.constant 0 : index
    %c0_28 = arith.constant 0 : index
    %60 = vector.load %arg9[%c0_27, %c0_28] : memref<1x512xf32, #tpu.memory_space<vmem>>, vector<1x512xf32>
    %61 = vector.broadcast %60 : vector<1x512xf32> to vector<128x512xf32>
    %62 = arith.addf %59, %61 : vector<128x512xf32>
    %63 = arith.truncf %62 : vector<128x512xf32> to vector<128x512xbf16>
    %c0_29 = arith.constant 0 : index
    %c0_30 = arith.constant 0 : index
    %c0_31 = arith.constant 0 : index
    %64 = vector.load %arg10[%c0_29, %c0_30, %c0_31] : memref<1x128x512xbf16, #tpu.memory_space<vmem>>, vector<1x128x512xbf16>
    %65 = vector.shape_cast %64 : vector<1x128x512xbf16> to vector<128x512xbf16>
    %66 = vector.shape_cast %63 : vector<128x512xbf16> to vector<1x128x512xbf16>
    tpu.vector_store %arg10[%c0_29, %c0_30, %c0_31], %66 {strides = array<i32>} : memref<1x128x512xbf16, #tpu.memory_space<vmem>>, vector<1x128x512xbf16>,
    return
  }
  func.func @transform_0(%arg0: i32) -> (i32, i32, i32) {
    %c0_i32 = arith.constant 0 : i32
    %c0_i32_0 = arith.constant 0 : i32
    %c0_i32_1 = arith.constant 0 : i32
    return %arg0, %c0_i32, %c0_i32_0 : i32, i32, i32
  }
  func.func @transform_1(%arg0: i32) -> (i32, i32) {
    %c0_i32 = arith.constant 0 : i32
    %c0_i32_0 = arith.constant 0 : i32
    %c0_i32_1 = arith.constant 0 : i32
    return %c0_i32, %c0_i32_0 : i32, i32
  }
  func.func @transform_2(%arg0: i32) -> (i32, i32) {
    %c0_i32 = arith.constant 0 : i32
    %c0_i32_0 = arith.constant 0 : i32
    %c0_i32_1 = arith.constant 0 : i32
    return %c0_i32, %c0_i32_0 : i32, i32
  }
  func.func @transform_3(%arg0: i32) -> (i32, i32) {
    %c0_i32 = arith.constant 0 : i32
    %c0_i32_0 = arith.constant 0 : i32
    %c0_i32_1 = arith.constant 0 : i32
    return %c0_i32, %c0_i32_0 : i32, i32
  }
  func.func @transform_4(%arg0: i32) -> (i32, i32) {
    %c0_i32 = arith.constant 0 : i32
    %c0_i32_0 = arith.constant 0 : i32
    %c0_i32_1 = arith.constant 0 : i32
    return %c0_i32, %c0_i32_0 : i32, i32
  }
  func.func @transform_5(%arg0: i32) -> (i32, i32) {
    %c0_i32 = arith.constant 0 : i32
    %c0_i32_0 = arith.constant 0 : i32
    %c0_i32_1 = arith.constant 0 : i32
    return %c0_i32, %c0_i32_0 : i32, i32
  }
  func.func @transform_6(%arg0: i32) -> (i32, i32) {
    %c0_i32 = arith.constant 0 : i32
    %c0_i32_0 = arith.constant 0 : i32
    %c0_i32_1 = arith.constant 0 : i32
    return %c0_i32, %c0_i32_0 : i32, i32
  }
  func.func @transform_7(%arg0: i32) -> (i32, i32) {
    %c0_i32 = arith.constant 0 : i32
    %c0_i32_0 = arith.constant 0 : i32
    %c0_i32_1 = arith.constant 0 : i32
    return %c0_i32, %c0_i32_0 : i32, i32
  }
  func.func @transform_8(%arg0: i32) -> (i32, i32) {
    %c0_i32 = arith.constant 0 : i32
    %c0_i32_0 = arith.constant 0 : i32
    %c0_i32_1 = arith.constant 0 : i32
    return %c0_i32, %c0_i32_0 : i32, i32
  }
  func.func @transform_9(%arg0: i32) -> (i32, i32, i32) {
    %c0_i32 = arith.constant 0 : i32
    %c0_i32_0 = arith.constant 0 : i32
    %c0_i32_1 = arith.constant 0 : i32
    return %arg0, %c0_i32, %c0_i32_0 : i32, i32, i32
  }
}

module attributes {stable_mosaic.version = 11 : i64} {
  func.func @_mqa_kernel(%arg0: i32, %arg1: memref<1x128x512xbf16, #tpu.memory_space<vmem>>, %arg2: memref<512x512xbf16, #tpu.memory_space<vmem>>, %arg3: memref<1x512xf32, #tpu.memory_space<vmem>>, %arg4: memref<512x128xbf16, #tpu.memory_space<vmem>>, %arg5: memref<1x128xf32, #tpu.memory_space<vmem>>, %arg6: memref<512x128xbf16, #tpu.memory_space<vmem>>, %arg7: memref<1x128xf32, #tpu.memory_space<vmem>>, %arg8: memref<512x512xbf16, #tpu.memory_space<vmem>>, %arg9: memref<1x512xf32, #tpu.memory_space<vmem>>, %arg10: memref<1x128x512xbf16, #tpu.memory_space<vmem>>) attributes {dimension_semantics = [#tpu.dimension_semantics<parallel>], iteration_bounds = array<i64: 2>, scalar_prefetch = 0 : i64, scratch_operands = 0 : i64, tpu.core_type = #tpu.core_type<tc>, window_params = [{transform_indices = @transform_0, window_bounds = array<i64: 1, 128, 512>}, {pipeline_mode = #tpu.pipeline_mode<synchronous>, transform_indices = @transform_1, window_bounds = array<i64: 512, 512>}, {pipeline_mode = #tpu.pipeline_mode<synchronous>, transform_indices = @transform_2, window_bounds = array<i64: 1, 512>}, {pipeline_mode = #tpu.pipeline_mode<synchronous>, transform_indices = @transform_3, window_bounds = array<i64: 512, 128>}, {pipeline_mode = #tpu.pipeline_mode<synchronous>, transform_indices = @transform_4, window_bounds = array<i64: 1, 128>}, {pipeline_mode = #tpu.pipeline_mode<synchronous>, transform_indices = @transform_5, window_bounds = array<i64: 512, 128>}, {pipeline_mode = #tpu.pipeline_mode<synchronous>, transform_indices = @transform_6, window_bounds = array<i64: 1, 128>}, {pipeline_mode = #tpu.pipeline_mode<synchronous>, transform_indices = @transform_7, window_bounds = array<i64: 512, 512>}, {pipeline_mode = #tpu.pipeline_mode<synchronous>, transform_indices = @transform_8, window_bounds = array<i64: 1, 512>}, {transform_indices = @transform_9, window_bounds = array<i64: 1, 128, 512>}]} {
    %c0 = arith.constant 0 : index
    %c0_0 = arith.constant 0 : index
    %c0_1 = arith.constant 0 : index
    %0 = vector.load %arg1[%c0, %c0_0, %c0_1] : memref<1x128x512xbf16, #tpu.memory_space<vmem>>, vector<1x128x512xbf16>
    %1 = vector.shape_cast %0 : vector<1x128x512xbf16> to vector<128x512xbf16>
    %c0_2 = arith.constant 0 : index
    %c0_3 = arith.constant 0 : index
    %2 = vector.load %arg2[%c0_2, %c0_3] : memref<512x512xbf16, #tpu.memory_space<vmem>>, vector<512x512xbf16>
    %cst = arith.constant dense<0.000000e+00> : vector<128x512xf32>
    %3 = tpu.matmul %1, %2, %cst {dimension_numbers = #tpu.dot_dimension_numbers<[1], [0], [0], [1], [0, 0, 1, 1], [], []>} : vector<128x512xbf16>, vector<512x512xbf16>, vector<128x512xf32> -> vector<128x512xf32>
    %c0_4 = arith.constant 0 : index
    %c0_5 = arith.constant 0 : index
    %4 = vector.load %arg3[%c0_4, %c0_5] : memref<1x512xf32, #tpu.memory_space<vmem>>, vector<1x512xf32>
    %5 = vector.broadcast %4 : vector<1x512xf32> to vector<128x512xf32>
    %6 = arith.addf %3, %5 : vector<128x512xf32>
    %c0_6 = arith.constant 0 : index
    %c0_7 = arith.constant 0 : index
    %7 = vector.load %arg4[%c0_6, %c0_7] : memref<512x128xbf16, #tpu.memory_space<vmem>>, vector<512x128xbf16>
    %cst_8 = arith.constant dense<0.000000e+00> : vector<128x128xf32>
    %8 = tpu.matmul %1, %7, %cst_8 {dimension_numbers = #tpu.dot_dimension_numbers<[1], [0], [0], [1], [0, 0, 1, 1], [], []>} : vector<128x512xbf16>, vector<512x128xbf16>, vector<128x128xf32> -> vector<128x128xf32>
    %c0_9 = arith.constant 0 : index
    %c0_10 = arith.constant 0 : index
    %9 = vector.load %arg5[%c0_9, %c0_10] : memref<1x128xf32, #tpu.memory_space<vmem>>, vector<1x128xf32>
    %10 = vector.broadcast %9 : vector<1x128xf32> to vector<128x128xf32>
    %11 = arith.addf %8, %10 : vector<128x128xf32>
    %c0_11 = arith.constant 0 : index
    %c0_12 = arith.constant 0 : index
    %12 = vector.load %arg6[%c0_11, %c0_12] : memref<512x128xbf16, #tpu.memory_space<vmem>>, vector<512x128xbf16>
    %cst_13 = arith.constant dense<0.000000e+00> : vector<128x128xf32>
    %13 = tpu.matmul %1, %12, %cst_13 {dimension_numbers = #tpu.dot_dimension_numbers<[1], [0], [0], [1], [0, 0, 1, 1], [], []>} : vector<128x512xbf16>, vector<512x128xbf16>, vector<128x128xf32> -> vector<128x128xf32>
    %c0_14 = arith.constant 0 : index
    %c0_15 = arith.constant 0 : index
    %14 = vector.load %arg7[%c0_14, %c0_15] : memref<1x128xf32, #tpu.memory_space<vmem>>, vector<1x128xf32>
    %15 = vector.broadcast %14 : vector<1x128xf32> to vector<128x128xf32>
    %16 = arith.addf %13, %15 : vector<128x128xf32>
    %c0_16 = arith.constant 0 : index
    %c0_17 = arith.constant 0 : index
    %17 = vector.load %arg8[%c0_16, %c0_17] : memref<512x512xbf16, #tpu.memory_space<vmem>>, vector<512x512xbf16>
    %18 = arith.truncf %11 : vector<128x128xf32> to vector<128x128xbf16>
    %19 = arith.truncf %16 : vector<128x128xf32> to vector<128x128xbf16>
    %20 = vector.extract_strided_slice %6 {offsets = [0, 0], sizes = [128, 128], strides = [1, 1]} : vector<128x512xf32> to vector<128x128xf32>
    %21 = vector.extract_strided_slice %6 {offsets = [0, 128], sizes = [128, 128], strides = [1, 1]} : vector<128x512xf32> to vector<128x128xf32>
    %22 = vector.extract_strided_slice %6 {offsets = [0, 256], sizes = [128, 128], strides = [1, 1]} : vector<128x512xf32> to vector<128x128xf32>
    %23 = vector.extract_strided_slice %6 {offsets = [0, 384], sizes = [128, 128], strides = [1, 1]} : vector<128x512xf32> to vector<128x128xf32>
    %24 = tpu.concatenate %20, %21, %22, %23 in 0 : vector<128x128xf32>, vector<128x128xf32>, vector<128x128xf32>, vector<128x128xf32> -> vector<512x128xf32>
    %cst_18 = arith.constant 0.0883883461 : f32
    %25 = vector.broadcast %cst_18 : f32 to vector<512x128xf32>
    %26 = arith.mulf %24, %25 : vector<512x128xf32>
    %27 = arith.truncf %26 : vector<512x128xf32> to vector<512x128xbf16>
    %cst_19 = arith.constant dense<0.000000e+00> : vector<512x128xf32>
    %28 = tpu.matmul %27, %18, %cst_19 {dimension_numbers = #tpu.dot_dimension_numbers<[1], [1], [0], [0], [0, 0, 1, 0], [], []>} : vector<512x128xbf16>, vector<128x128xbf16>, vector<512x128xf32> -> vector<512x128xf32>
    %cst_20 = arith.constant dense<0xFF800000> : vector<512xf32>
    %29 = vector.multi_reduction <maximumf>, %28, %cst_20 [1] : vector<512x128xf32> to vector<512xf32>
    %30 = vector.shape_cast %29 : vector<512xf32> to vector<512x1xf32>
    %31 = vector.broadcast %30 : vector<512x1xf32> to vector<512x128xf32>
    %32 = arith.subf %28, %31 : vector<512x128xf32>
    %33 = math.exp %32 : vector<512x128xf32>
    %cst_21 = arith.constant dense<0.000000e+00> : vector<512xf32>
    %34 = vector.multi_reduction <add>, %33, %cst_21 [1] : vector<512x128xf32> to vector<512xf32>
    %35 = vector.shape_cast %34 : vector<512xf32> to vector<512x1xf32>
    %36 = tpu.reciprocal %35 {approx = true} : vector<512x1xf32> -> vector<512x1xf32>
    %37 = vector.broadcast %36 : vector<512x1xf32> to vector<512x128xf32>
    %38 = arith.mulf %33, %37 : vector<512x128xf32>
    %39 = arith.truncf %38 : vector<512x128xf32> to vector<512x128xbf16>
    %cst_22 = arith.constant dense<0.000000e+00> : vector<512x128xf32>
    %40 = tpu.matmul %39, %19, %cst_22 {dimension_numbers = #tpu.dot_dimension_numbers<[1], [0], [0], [1], [0, 0, 1, 1], [], []>} : vector<512x128xbf16>, vector<128x128xbf16>, vector<512x128xf32> -> vector<512x128xf32>
    %41 = vector.extract_strided_slice %40 {offsets = [0, 0], sizes = [128, 128], strides = [1, 1]} : vector<512x128xf32> to vector<128x128xf32>
    %42 = arith.truncf %41 : vector<128x128xf32> to vector<128x128xbf16>
    %43 = vector.extract_strided_slice %17 {offsets = [0, 0], sizes = [128, 512], strides = [1, 1]} : vector<512x512xbf16> to vector<128x512xbf16>
    %cst_23 = arith.constant dense<0.000000e+00> : vector<128x512xf32>
    %44 = tpu.matmul %42, %43, %cst_23 {dimension_numbers = #tpu.dot_dimension_numbers<[1], [0], [0], [1], [0, 0, 1, 1], [], []>} : vector<128x128xbf16>, vector<128x512xbf16>, vector<128x512xf32> -> vector<128x512xf32>
    %45 = vector.extract_strided_slice %40 {offsets = [128, 0], sizes = [128, 128], strides = [1, 1]} : vector<512x128xf32> to vector<128x128xf32>
    %46 = arith.truncf %45 : vector<128x128xf32> to vector<128x128xbf16>
    %47 = vector.extract_strided_slice %17 {offsets = [128, 0], sizes = [128, 512], strides = [1, 1]} : vector<512x512xbf16> to vector<128x512xbf16>
    %cst_24 = arith.constant dense<0.000000e+00> : vector<128x512xf32>
    %48 = tpu.matmul %46, %47, %cst_24 {dimension_numbers = #tpu.dot_dimension_numbers<[1], [0], [0], [1], [0, 0, 1, 1], [], []>} : vector<128x128xbf16>, vector<128x512xbf16>, vector<128x512xf32> -> vector<128x512xf32>
    %49 = arith.addf %44, %48 : vector<128x512xf32>
    %50 = vector.extract_strided_slice %40 {offsets = [256, 0], sizes = [128, 128], strides = [1, 1]} : vector<512x128xf32> to vector<128x128xf32>
    %51 = arith.truncf %50 : vector<128x128xf32> to vector<128x128xbf16>
    %52 = vector.extract_strided_slice %17 {offsets = [256, 0], sizes = [128, 512], strides = [1, 1]} : vector<512x512xbf16> to vector<128x512xbf16>
    %cst_25 = arith.constant dense<0.000000e+00> : vector<128x512xf32>
    %53 = tpu.matmul %51, %52, %cst_25 {dimension_numbers = #tpu.dot_dimension_numbers<[1], [0], [0], [1], [0, 0, 1, 1], [], []>} : vector<128x128xbf16>, vector<128x512xbf16>, vector<128x512xf32> -> vector<128x512xf32>
    %54 = arith.addf %49, %53 : vector<128x512xf32>
    %55 = vector.extract_strided_slice %40 {offsets = [384, 0], sizes = [128, 128], strides = [1, 1]} : vector<512x128xf32> to vector<128x128xf32>
    %56 = arith.truncf %55 : vector<128x128xf32> to vector<128x128xbf16>
    %57 = vector.extract_strided_slice %17 {offsets = [384, 0], sizes = [128, 512], strides = [1, 1]} : vector<512x512xbf16> to vector<128x512xbf16>
    %cst_26 = arith.constant dense<0.000000e+00> : vector<128x512xf32>
    %58 = tpu.matmul %56, %57, %cst_26 {dimension_numbers = #tpu.dot_dimension_numbers<[1], [0], [0], [1], [0, 0, 1, 1], [], []>} : vector<128x128xbf16>, vector<128x512xbf16>, vector<128x512xf32> -> vector<128x512xf32>
    %59 = arith.addf %54, %58 : vector<128x512xf32>
    %c0_27 = arith.constant 0 : index
    %c0_28 = arith.constant 0 : index
    %60 = vector.load %arg9[%c0_27, %c0_28] : memref<1x512xf32, #tpu.memory_space<vmem>>, vector<1x512xf32>
    %61 = vector.broadcast %60 : vector<1x512xf32> to vector<128x512xf32>
    %62 = arith.addf %59, %61 : vector<128x512xf32>
    %63 = arith.truncf %62 : vector<128x512xf32> to vector<128x512xbf16>
    %c0_29 = arith.constant 0 : index
    %c0_30 = arith.constant 0 : index
    %c0_31 = arith.constant 0 : index
    %64 = vector.load %arg10[%c0_29, %c0_30, %c0_31] : memref<1x128x512xbf16, #tpu.memory_space<vmem>>, vector<1x128x512xbf16>
    %65 = vector.shape_cast %64 : vector<1x128x512xbf16> to vector<128x512xbf16>
    %66 = vector.shape_cast %63 : vector<128x512xbf16> to vector<1x128x512xbf16>
    tpu.vector_store %arg10[%c0_29, %c0_30, %c0_31], %66 {strides = array<i32>} : memref<1x128x512xbf16, #tpu.memory_space<vmem>>, vector<1x128x512xbf16>,
    return
  }
  func.func @transform_0(%arg0: i32) -> (i32, i32, i32) {
    %c0_i32 = arith.constant 0 : i32
    %c0_i32_0 = arith.constant 0 : i32
    %c0_i32_1 = arith.constant 0 : i32
    return %arg0, %c0_i32, %c0_i32_0 : i32, i32, i32
  }
  func.func @transform_1(%arg0: i32) -> (i32, i32) {
    %c0_i32 = arith.constant 0 : i32
    %c0_i32_0 = arith.constant 0 : i32
    %c0_i32_1 = arith.constant 0 : i32
    return %c0_i32, %c0_i32_0 : i32, i32
  }
  func.func @transform_2(%arg0: i32) -> (i32, i32) {
    %c0_i32 = arith.constant 0 : i32
    %c0_i32_0 = arith.constant 0 : i32
    %c0_i32_1 = arith.constant 0 : i32
    return %c0_i32, %c0_i32_0 : i32, i32
  }
  func.func @transform_3(%arg0: i32) -> (i32, i32) {
    %c0_i32 = arith.constant 0 : i32
    %c0_i32_0 = arith.constant 0 : i32
    %c0_i32_1 = arith.constant 0 : i32
    return %c0_i32, %c0_i32_0 : i32, i32
  }
  func.func @transform_4(%arg0: i32) -> (i32, i32) {
    %c0_i32 = arith.constant 0 : i32
    %c0_i32_0 = arith.constant 0 : i32
    %c0_i32_1 = arith.constant 0 : i32
    return %c0_i32, %c0_i32_0 : i32, i32
  }
  func.func @transform_5(%arg0: i32) -> (i32, i32) {
    %c0_i32 = arith.constant 0 : i32
    %c0_i32_0 = arith.constant 0 : i32
    %c0_i32_1 = arith.constant 0 : i32
    return %c0_i32, %c0_i32_0 : i32, i32
  }
  func.func @transform_6(%arg0: i32) -> (i32, i32) {
    %c0_i32 = arith.constant 0 : i32
    %c0_i32_0 = arith.constant 0 : i32
    %c0_i32_1 = arith.constant 0 : i32
    return %c0_i32, %c0_i32_0 : i32, i32
  }
  func.func @transform_7(%arg0: i32) -> (i32, i32) {
    %c0_i32 = arith.constant 0 : i32
    %c0_i32_0 = arith.constant 0 : i32
    %c0_i32_1 = arith.constant 0 : i32
    return %c0_i32, %c0_i32_0 : i32, i32
  }
  func.func @transform_8(%arg0: i32) -> (i32, i32) {
    %c0_i32 = arith.constant 0 : i32
    %c0_i32_0 = arith.constant 0 : i32
    %c0_i32_1 = arith.constant 0 : i32
    return %c0_i32, %c0_i32_0 : i32, i32
  }
  func.func @transform_9(%arg0: i32) -> (i32, i32, i32) {
    %c0_i32 = arith.constant 0 : i32
    %c0_i32_0 = arith.constant 0 : i32
    %c0_i32_1 = arith.constant 0 : i32
    return %arg0, %c0_i32, %c0_i32_0 : i32, i32, i32
  }
}

</mosaic_0001>

<bundles_post_ra>
// kernel: tpu_custom_call.1
= control target key start
LH: loop header
LB: loop body
LE: loop exit
PB: predicated region body
PF: predicated region fallthrough
CT: control target
= control target key end

     0   :  { %s10385_s0 = inlined_call_operand.hbm [shape: bf16[2,128,512], index: 0, kind: input, shape index: {}]   ;;  %s10386_s1 = inlined_call_operand.hbm [shape: bf16[512,512], index: 1, kind: input, shape index: {}]   ;;  %s10387_s2 = inlined_call_operand.vmem [shape: f32[1,512], index: 2, kind: input, shape index: {}]   ;;  %s10388_s3 = inlined_call_operand.hbm [shape: bf16[512,128], index: 3, kind: input, shape index: {}]   ;;  %s10389_s4 = inlined_call_operand.vmem [shape: f32[1,128], index: 4, kind: input, shape index: {}]   ;;  %s10390_s5 = inlined_call_operand.hbm [shape: bf16[512,128], index: 5, kind: input, shape index: {}]   ;;  %s10391_s6 = inlined_call_operand.vmem [shape: f32[1,128], index: 6, kind: input, shape index: {}]   ;;  %s10392_s7 = inlined_call_operand.hbm [shape: bf16[512,512], index: 7, kind: input, shape index: {}]   ;;  %s10393_s8 = inlined_call_operand.vmem [shape: f32[1,512], index: 8, kind: input, shape index: {}]   ;;  %s10394_s9 = inlined_call_operand.hbm [shape: bf16[2,128,512], index: 9, kind: output, shape index: {}]  }
   0x1   :  { %10448 = sst [smem:[#allocation42_spill]] %s10393_s8 }
   0x2   :  { %10449 = sst [smem:[#allocation43_spill]] %s10394_s9 }
   0x3   :  { %14 = vsyncpa [#allocation3], 0 }
   0x4   :  { %16 = vsyncpa [#allocation3 + $0x1], 0 }
   0x5   :  { %17 = vsyncpa [#allocation6], 0 }
   0x6   :  { %18 = vsyncpa [#allocation9], 0 }
   0x7   :  { %19 = vsyncpa [#allocation4], 0 }
   0x8   :  { %21 = vsyncpa [#allocation4 + $0x1], 0  ;;  %s8722_s30 = smov 0   ;;  %s8724_s10 = smov 0  }
   0x9   :  { %s8726_s11 = smov 0   ;;  %s8728_s12 = smov 0  }
   0xa LB: > { %10450 = sst [smem:[#allocation16_spill]] %s8645_s30  ;;  %s8743_s13 = sadd.s32 4294967295, %s8657_s12   ;;  %s8657_s12 = sphi %s8728_s12, %s10605_s12   ;;  %s8653_s11 = sphi %s8726_s11, %s10604_s11   ;;  %s8649_s10 = sphi %s8724_s10, %s10603_s10   ;;  %s8645_s30 = sphi %s8722_s30, %s10602_s30  }
   0xb   : > { %s6323_s14 = sadd.s32 4294967294, %s8657_s12   ;;  %p47_p0 = scmp.ne.s32.totalorder %s8649_s10, %s8645_s30 }
   0xc   : > { %p10395_p1 = scmp.eq.s32.totalorder %s8743_s13, 0  ;;  %p245_p3 = scmp.eq.s32.totalorder %s6323_s14, 1 }
   0xd   : > { %p6324_p5 = scmp.ge.s32.totalorder %s8657_s12, 1  ;;  %p252_p7 = scmp.lt.s32.totalorder %s8657_s12, 3 }
   0xe   : > { %p8752_p4 = por %p10395_p1, %p47_p0  ;;  %p8757_p6 = por %p245_p3, %p47_p0 }
   0xf   : > { %p8762_p8 = pnand %p6324_p5, %p252_p7  ;;  %s8659_s18 = smov [#allocation5]  }
  0x10   : > { %s10451_s15 = scalar_select %p8752_p4, 1, 0 }
  0x11   : > { %s10452_s16 = scalar_select %p8757_p6, 1, 0 }
  0x12   : > { %s10454_s17 = scalar_select %p8762_p8, 1, 0 }
  0x13   : > { %10453 = sst [smem:[#allocation17_spill]] %s10452_s16  ;;  %s264_s19 = sshll.u32 %s8659_s18, 4  ;;  %s265_s19 = int_to_ptr.vmem [resolvable:$true] %s264_s19 }
  0x14   : > { %p7601_p9 = pneg %p8762_p8  ;;  %s8660_s21 = smov [#allocation8]  }
  0x15   : > { %s296_s22 = sshll.u32 %s8660_s21, 4  ;;  %s8441_s25 = scalar_lea.hbm %s10386_s1, 16384  ;;  %s297_s22 = int_to_ptr.vmem [resolvable:$true] %s296_s22 }
  0x16   : > { %p8771_p11 = pnand %p7601_p9, %p10395_p1  ;;  %p8442_p12 = scmp.ne.s32.totalorder %s10386_s1, %s8441_s25 }
  0x17   : > { %p8448_p5 = scmp.lt.u32.totalorder %s8441_s25, %s10386_s1 }
  0x18   : > { %p8783_p13 = pneg %p8771_p11 }
  0x1a   : > { %p8444_p0 = pnand %p8783_p13, %p8442_p12 }
  0x1c   : > { %p8445_p3 = pneg %p8444_p0 }
  0x1e   : > { %p8450_p7 = pnand %p8448_p5, %p8445_p3 }
  0x20   : > { %8453 = shalt.err (!%p8450_p7)
}
  0x21   : > { %s8454_s18 = scalar_lea.vmem %s265_s19, 16384  ;;  %p8462_p2 = scmp.lt.s32.totalorder %s265_s19, %s265_s19 }
  0x22   : > { %p8455_p9 = scmp.ne.s32.totalorder %s265_s19, %s8454_s18  ;;  %p8463_p6 = scmp.lt.s32.totalorder %s8454_s18, %s8454_s18 }
  0x24   : > { %p8457_p10 = pnand %p8455_p9, %p8783_p13  ;;  %p8464_p4 = por %p8463_p6, %p8462_p2 }
  0x26   : > { %p8458_p1 = pneg %p8457_p10 }
  0x28   : > { %p8465_p8 = pnand %p8464_p4, %p8458_p1 }
  0x2a   : > { %8468 = shalt.err (!%p8465_p8)
}
  0x2b   : > { %s10401_s21 = smov 256   ;;  %s8662_s23 = smov 16  }
  0x2c   : > { %7604 = dma.hbm_to_vmem [thread:$0]  (!%p8771_p11), %s10386_s1, 16384, %s265_s19, [#allocation6], %s10401_s21, %s10401_s21, %s8662_s23  }
  0x2d   : > { %s8663_s26 = smov [#allocation7]   ;;  %s8469_s18 = scalar_lea.hbm %s10390_s5, 4096 }
  0x2e   : > { %s280_s27 = sshll.u32 %s8663_s26, 4  ;;  %p8470_p1 = scmp.ne.s32.totalorder %s10390_s5, %s8469_s18  ;;  %s281_s27 = int_to_ptr.vmem [resolvable:$true] %s280_s27 }
  0x2f   : > { %p8476_p6 = scmp.lt.u32.totalorder %s8469_s18, %s10390_s5 }
  0x30   : > { %p8472_p2 = pnand %p8470_p1, %p8783_p13 }
  0x32   : > { %p8473_p4 = pneg %p8472_p2 }
  0x34   : > { %p8478_p8 = pnand %p8476_p6, %p8473_p4 }
  0x36   : > { %8481 = shalt.err (!%p8478_p8)
}
  0x37   : > { %s8482_s19 = scalar_lea.vmem %s297_s22, 4096  ;;  %p8490_p3 = scmp.lt.s32.totalorder %s297_s22, %s297_s22 }
  0x38   : > { %p8483_p10 = scmp.ne.s32.totalorder %s297_s22, %s8482_s19  ;;  %p8491_p5 = scmp.lt.s32.totalorder %s8482_s19, %s8482_s19 }
  0x3a   : > { %p8485_p12 = pnand %p8483_p10, %p8783_p13  ;;  %p8492_p7 = por %p8491_p5, %p8490_p3 }
  0x3c   : > { %p8486_p0 = pneg %p8485_p12 }
  0x3e   : > { %p8493_p9 = pnand %p8492_p7, %p8486_p0 }
  0x40   : > { %8496 = shalt.err (!%p8493_p9)
}
  0x41   : > { %s8664_s30 = smov 64   ;;  %s8665_s16 = smov 4  }
  0x42   : > { %7610 = dma.hbm_to_vmem [thread:$0]  (!%p8771_p11), %s10390_s5, 4096, %s297_s22, [#allocation9], %s8664_s30, %s8664_s30, %s8665_s16  }
  0x43   : > { %s8497_s26 = scalar_lea.hbm %s10388_s3, 4096 }
  0x44   : > { %p8498_p1 = scmp.ne.s32.totalorder %s10388_s3, %s8497_s26  ;;  %p8504_p6 = scmp.lt.u32.totalorder %s8497_s26, %s10388_s3 }
  0x46   : > { %p8500_p2 = pnand %p8498_p1, %p8783_p13 }
  0x48   : > { %p8501_p4 = pneg %p8500_p2 }
  0x4a   : > { %p8506_p8 = pnand %p8504_p6, %p8501_p4 }
  0x4c   : > { %8509 = shalt.err (!%p8506_p8)
}
  0x4d   : > { %s8510_s8 = scalar_lea.vmem %s281_s27, 4096  ;;  %p8518_p3 = scmp.lt.s32.totalorder %s281_s27, %s281_s27 }
  0x4e   : > { %p8511_p10 = scmp.ne.s32.totalorder %s281_s27, %s8510_s8  ;;  %p8519_p5 = scmp.lt.s32.totalorder %s8510_s8, %s8510_s8 }
  0x50   : > { %p8513_p12 = pnand %p8511_p10, %p8783_p13  ;;  %p8520_p7 = por %p8519_p5, %p8518_p3 }
  0x52   : > { %p8514_p0 = pneg %p8513_p12 }
  0x54   : > { %p8521_p9 = pnand %p8520_p7, %p8514_p0 }
  0x56   : > { %8524 = shalt.err (!%p8521_p9)
}
  0x57   : > { %7607 = dma.hbm_to_vmem [thread:$0]  (!%p8771_p11), %s10388_s3, 4096, %s281_s27, [#allocation6], %s8664_s30, %s8664_s30, %s8665_s16  }
  0x58   : > { %s8666_s24 = smov [#allocation10]   ;;  %s8525_s14 = scalar_lea.hbm %s10392_s7, 16384 }
  0x59   : > { %s312_s25 = sshll.u32 %s8666_s24, 4  ;;  %p8526_p1 = scmp.ne.s32.totalorder %s10392_s7, %s8525_s14  ;;  %s313_s25 = int_to_ptr.vmem [resolvable:$true] %s312_s25 }
  0x5a   : > { %p8532_p6 = scmp.lt.u32.totalorder %s8525_s14, %s10392_s7 }
  0x5b   : > { %p8528_p2 = pnand %p8526_p1, %p8783_p13 }
  0x5d   : > { %p8529_p4 = pneg %p8528_p2 }
  0x5f   : > { %p8534_p8 = pnand %p8532_p6, %p8529_p4 }
  0x61   : > { %8537 = shalt.err (!%p8534_p8)
}
  0x62   : > { %s8538_s27 = scalar_lea.vmem %s313_s25, 16384  ;;  %p8546_p3 = scmp.lt.s32.totalorder %s313_s25, %s313_s25 }
  0x63   : > { %p8539_p10 = scmp.ne.s32.totalorder %s313_s25, %s8538_s27  ;;  %p8547_p5 = scmp.lt.s32.totalorder %s8538_s27, %s8538_s27 }
  0x65   : > { %p8541_p12 = pnand %p8539_p10, %p8783_p13  ;;  %p8548_p7 = por %p8547_p5, %p8546_p3 }
  0x67   : > { %p8542_p0 = pneg %p8541_p12 }
  0x69   : > { %p8549_p9 = pnand %p8548_p7, %p8542_p0 }
  0x6b   : > { %8552 = shalt.err (!%p8549_p9)
}
  0x6c   : > { %s10457_s30 = smov 256   ;;  %s8860_s28 = sadd.s32 1, %s8657_s12  }
  0x6d   : > { %7613 = dma.hbm_to_vmem [thread:$0]  (!%p8771_p11), %s10392_s7, 16384, %s313_s25, [#allocation9], %s10457_s30, %s10457_s30, %s8662_s23  }
  0x6e   : > { %s34_s20 = sadd.s32 1, %s8653_s11  ;;  %s31_s22 = ssub.s32 %s8657_s12, %s8860_s28 }
  0x6f   : > { %p41_p13 = scmp.ne.s32.totalorder %s8653_s11, %s8649_s10  ;;  %p32_p1 = scmp.eq.s32.totalorder %s31_s22, 0 }
  0x70   : > { %p42_p2 = scmp.eq.s32.totalorder %s8657_s12, 0  ;;  %p10458_p4 = scmp.eq.s32.totalorder %s8743_s13, 1 }
  0x71   : > { %p7626_p8 = scmp.lt.s32.totalorder %s8657_s12, 2  ;;  %s329_s26 = sand.u32 1, %s8653_s11  }
  0x72   : > { %p8870_p6 = por %p10458_p4, %p41_p13  ;;  %p43_p10 = por %p42_p2, %p41_p13 }
  0x73   : > { %s8876_s24 = scalar_select %p32_p1, %s8653_s11, %s34_s20  }
  0x74   : > { %s6330_s29 = sshll.u32 %s329_s26, 8  ;;  %s6731_s25 = sshll.u32 %s8657_s12, 12 }
  0x75   : > { %s8883_s19 = scalar_lea.hbm %s10385_s0, %s6731_s25  ;;  %s333_s8 = scalar_lea.vmem [#allocation2], %s6330_s29 }
  0x76   : > { %s340_s27 = sshll.u32 %s333_s8, 4  ;;  %p8887_p11 = pnand %p7626_p8, %p43_p10  ;;  %s8885_s27 = int_to_ptr.vmem [resolvable:$true] %s340_s27 }
  0x77   : > { %s8891_s16 = scalar_lea.sflag [#allocation3], %s329_s26  ;;  %s8553_s20 = scalar_lea.hbm %s8883_s19, 4096 }
  0x78   : > { %p8554_p12 = scmp.ne.s32.totalorder %s8883_s19, %s8553_s20  ;;  %p8555_p0 = pneg %p8887_p11 }
  0x79   : > { %s8558_s25 = scalar_lea.hbm %s10385_s0, 8192  ;;  %p8559_p7 = scmp.lt.u32.totalorder %s8883_s19, %s10385_s0 }
  0x7a   : > { %p8556_p3 = pnand %p8555_p0, %p8554_p12  ;;  %p8560_p9 = scmp.lt.u32.totalorder %s8558_s25, %s8553_s20 }
  0x7b   : > { %p8562_p1 = scmp.lt.u32.totalorder %s8553_s20, %s8883_s19 }
  0x7c   : > { %p8557_p5 = pneg %p8556_p3  ;;  %p8561_p13 = por %p8560_p9, %p8559_p7 }
  0x7e   : > { %p8563_p2 = por %p8562_p1, %p8561_p13 }
  0x80   : > { %p8564_p4 = pnand %p8563_p2, %p8557_p5 }
  0x82   : > { %8567 = shalt.err (!%p8564_p4)
}
  0x83   : > { %s8568_s26 = scalar_lea.vmem %s8885_s27, 4096  ;;  %s8667_s8 = smov [#allocation2]  }
  0x84   : > { %p8569_p8 = scmp.ne.s32.totalorder %s8885_s27, %s8568_s26  ;;  %s8573_s22 = sshll.u32 %s8667_s8, 4  ;;  %s8574_s22 = int_to_ptr.vmem [resolvable:$false] %s8573_s22 }
  0x85   : > { %s8575_s29 = scalar_lea.vmem %s8574_s22, 8192  ;;  %p8576_p3 = scmp.lt.s32.totalorder %s8885_s27, %s8574_s22 }
  0x86   : > { %p8571_p10 = pnand %p8569_p8, %p8555_p0  ;;  %p8577_p7 = scmp.lt.s32.totalorder %s8575_s29, %s8568_s26 }
  0x88   : > { %p8572_p12 = pneg %p8571_p10  ;;  %p8578_p9 = por %p8577_p7, %p8576_p3 }
  0x8a   : > { %p8579_p13 = pnand %p8578_p9, %p8572_p12 }
  0x8c   : > { %8582 = shalt.err (!%p8579_p13)
}
  0x8d   : > { %7617 = dma.hbm_to_vmem [thread:$0]  (!%p8887_p11), %s8883_s19, 4096, %s8885_s27, %s8891_s16, %s10457_s30, %s10457_s30, %s8662_s23  }
  0x8e   : > { %p10461_p0 = scmp.ne.s32.totalorder %s10454_s17, 0 }
  0x90   : > { %352 = sbr.rel (%p10461_p0) target bundleno = 1962 (0x7aa), region = 56 }
  0x97   : > { %s8925_s20 = sand.u32 1, %s8649_s10   ;;  %p10462_p5 = scmp.ne.s32.totalorder %s10451_s15, 0 }
  0x98   : > { %s6334_s25 = sshll.u32 %s8925_s20, 8  ;;  %s355_s14 = scalar_lea.sflag [#allocation3], %s8925_s20 }
  0x99   : > { %s8931_s21 = scalar_lea.vmem [#allocation2], %s6334_s25 }
  0x9a   : > { %8628 = dma.done.wait (%p10462_p5), %s355_s14, 4096  }
  0x9b   : > { %8630 = vsyncadd (%p10462_p5), %s355_s14, 4294963200  ;;  %p10463_p11 = scmp.eq.s32.totalorder %s8743_s13, 0 }
  0x9d   : > { %8632 = dma.done.wait (%p10463_p11), [#allocation6], 20480   ;;  %p10464_p1 = pmov %p10463_p11 }
  0x9f   : > { %8634 = vsyncadd (%p10464_p1), [#allocation6], 4294946816  ;;  %p10465_p2 = pmov %p10464_p1 }
  0xa0   : > { %p10466_p4 = pmov %p10464_p1 }
  0xa1   : > { %8636 = dma.done.wait (%p10465_p2), [#allocation9], 20480  }
  0xa2   : > { %8638 = vsyncadd (%p10466_p4), [#allocation9], 4294946816  ;;  %v7675_v0 = vld [vmem:[#allocation5 + $0x4] ss:$16 sps:$4 sm:$0xff]   ;;  %v7677_v1 = vld [vmem:[#allocation5 + $0xc] ss:$16 sps:$4 sm:$0xff]  }
  0xa3   : > { %1392 = vmatprep.subr.bf16.mxu0 %v7675_v0  ;;  %v7679_v2 = vld [vmem:[#allocation5] ss:$16 sps:$4 sm:$0xff]   ;;  %v7680_v3 = vld [vmem:[#allocation5 + $0x8] ss:$16 sps:$4 sm:$0xff]   ;;  %1618 = vmatprep.subr.bf16.mxu1 %v7677_v1  ;;  %v7681_v4 = vld [vmem:[#allocation5 + $0x24] ss:$16 sps:$4 sm:$0xff]  }
  0xa4   : > { %1393 = vmatpush1.bf16.msra.mxu0 %v7679_v2  ;;  %1619 = vmatpush1.bf16.msra.mxu1 %v7680_v3  ;;  %v7683_v5 = vld [vmem:[#allocation5 + $0x2c] ss:$16 sps:$4 sm:$0xff]   ;;  %v7685_v6 = vld [vmem:[#allocation5 + $0x20] ss:$16 sps:$4 sm:$0xff]   ;;  %v7686_v7 = vld [vmem:[#allocation5 + $0x28] ss:$16 sps:$4 sm:$0xff]  }
  0xa5   : > { %1394 = vmatprep.subr.bf16.mxu0 %v7681_v4  ;;  %1620 = vmatprep.subr.bf16.mxu1 %v7683_v5  ;;  %v7687_v8 = vld [vmem:[#allocation5 + $0x44] ss:$16 sps:$4 sm:$0xff]   ;;  %v7689_v9 = vld [vmem:[#allocation5 + $0x4c] ss:$16 sps:$4 sm:$0xff]   ;;  %v7691_v10 = vld [vmem:[#allocation5 + $0x40] ss:$16 sps:$4 sm:$0xff]  }
  0xa6   : > { %v7692_v11 = vld [vmem:[#allocation5 + $0x48] ss:$16 sps:$4 sm:$0xff]   ;;  %v7693_v12 = vld [vmem:[#allocation5 + $0x64] ss:$16 sps:$4 sm:$0xff]   ;;  %v7695_v13 = vld [vmem:[#allocation5 + $0x6c] ss:$16 sps:$4 sm:$0xff]  }
  0xa7   : > { %v7697_v14 = vld [vmem:[#allocation5 + $0x60] ss:$16 sps:$4 sm:$0xff]   ;;  %v7698_v15 = vld [vmem:[#allocation5 + $0x68] ss:$16 sps:$4 sm:$0xff]   ;;  %v7699_v16 = vld [vmem:[#allocation5 + $0x84] ss:$16 sps:$4 sm:$0xff]  }
  0xa8   : > { %1395 = vmatpush1.bf16.msra.mxu0 %v7685_v6  ;;  %1621 = vmatpush1.bf16.msra.mxu1 %v7686_v7  ;;  %v7701_v17 = vld [vmem:[#allocation5 + $0x8c] ss:$16 sps:$4 sm:$0xff]   ;;  %v7703_v18 = vld [vmem:[#allocation5 + $0x80] ss:$16 sps:$4 sm:$0xff]   ;;  %v7704_v19 = vld [vmem:[#allocation5 + $0x88] ss:$16 sps:$4 sm:$0xff]  }
  0xa9   : > { %1396 = vmatprep.subr.bf16.mxu0 %v7687_v8  ;;  %1622 = vmatprep.subr.bf16.mxu1 %v7689_v9  ;;  %v7705_v20 = vld [vmem:[#allocation5 + $0xa4] ss:$16 sps:$4 sm:$0xff]   ;;  %v7707_v21 = vld [vmem:[#allocation5 + $0xac] ss:$16 sps:$4 sm:$0xff]   ;;  %v7709_v22 = vld [vmem:[#allocation5 + $0xa0] ss:$16 sps:$4 sm:$0xff]  }
  0xaa   : > { %v7710_v23 = vld [vmem:[#allocation5 + $0xa8] ss:$16 sps:$4 sm:$0xff]   ;;  %v7711_v24 = vld [vmem:[#allocation5 + $0xc4] ss:$16 sps:$4 sm:$0xff]   ;;  %v7713_v25 = vld [vmem:[#allocation5 + $0xcc] ss:$16 sps:$4 sm:$0xff]  }
  0xab   : > { %v7715_v26 = vld [vmem:[#allocation5 + $0xc0] ss:$16 sps:$4 sm:$0xff]   ;;  %v7716_v27 = vld [vmem:[#allocation5 + $0xc8] ss:$16 sps:$4 sm:$0xff]   ;;  %v7717_v28 = vld [vmem:[#allocation5 + $0xe4] ss:$16 sps:$4 sm:$0xff]  }
  0xac   : > { %1397 = vmatpush1.bf16.msra.mxu0 %v7691_v10  ;;  %1623 = vmatpush1.bf16.msra.mxu1 %v7692_v11  ;;  %v7719_v29 = vld [vmem:[#allocation5 + $0xec] ss:$16 sps:$4 sm:$0xff]   ;;  %v7721_v30 = vld [vmem:[#allocation5 + $0xe0] ss:$16 sps:$4 sm:$0xff]   ;;  %v7722_v31 = vld [vmem:[#allocation5 + $0xe8] ss:$16 sps:$4 sm:$0xff]  }
  0xad   : > { %1398 = vmatprep.subr.bf16.mxu0 %v7693_v12  ;;  %1624 = vmatprep.subr.bf16.mxu1 %v7695_v13  ;;  %v7723_v32 = vld [vmem:[#allocation5 + $0x104] ss:$16 sps:$4 sm:$0xff]   ;;  %v7725_v33 = vld [vmem:[#allocation5 + $0x10c] ss:$16 sps:$4 sm:$0xff]   ;;  %v7727_v34 = vld [vmem:[#allocation5 + $0x100] ss:$16 sps:$4 sm:$0xff]  }
  0xae   : > { %v7728_v35 = vld [vmem:[#allocation5 + $0x108] ss:$16 sps:$4 sm:$0xff]   ;;  %v7729_v36 = vld [vmem:[#allocation5 + $0x124] ss:$16 sps:$4 sm:$0xff]   ;;  %v7731_v37 = vld [vmem:[#allocation5 + $0x12c] ss:$16 sps:$4 sm:$0xff]  }
  0xaf   : > { %v7733_v38 = vld [vmem:[#allocation5 + $0x120] ss:$16 sps:$4 sm:$0xff]   ;;  %v7734_v39 = vld [vmem:[#allocation5 + $0x128] ss:$16 sps:$4 sm:$0xff]   ;;  %v7735_v40 = vld [vmem:[#allocation5 + $0x144] ss:$16 sps:$4 sm:$0xff]  }
  0xb0   : > { %1399 = vmatpush1.bf16.msra.mxu0 %v7697_v14  ;;  %1625 = vmatpush1.bf16.msra.mxu1 %v7698_v15  ;;  %v7737_v41 = vld [vmem:[#allocation5 + $0x14c] ss:$16 sps:$4 sm:$0xff]   ;;  %v7739_v42 = vld [vmem:[#allocation5 + $0x140] ss:$16 sps:$4 sm:$0xff]   ;;  %v7740_v43 = vld [vmem:[#allocation5 + $0x148] ss:$16 sps:$4 sm:$0xff]  }
  0xb1   : > { %1400 = vmatprep.subr.bf16.mxu0 %v7699_v16  ;;  %1626 = vmatprep.subr.bf16.mxu1 %v7701_v17  ;;  %v7741_v44 = vld [vmem:[#allocation5 + $0x164] ss:$16 sps:$4 sm:$0xff]   ;;  %v7743_v45 = vld [vmem:[#allocation5 + $0x16c] ss:$16 sps:$4 sm:$0xff]   ;;  %v7745_v46 = vld [vmem:[#allocation5 + $0x160] ss:$16 sps:$4 sm:$0xff]  }
  0xb2   : > { %v7746_v47 = vld [vmem:[#allocation5 + $0x168] ss:$16 sps:$4 sm:$0xff]   ;;  %v7771_v48 = vld [vmem:[%s8931_s21 + $0x4] ss:$16 sps:$4 sm:$0xff]   ;;  %v7749_v50 = vld [vmem:[#allocation5 + $0x18c] ss:$16 sps:$4 sm:$0xff]  }
  0xb3   : > { %v7747_v49 = vld [vmem:[#allocation5 + $0x184] ss:$16 sps:$4 sm:$0xff]   ;;  %1424 = vmatprep.mubr.bf16.mxu0 %v7771_v48  ;;  %1650 = vmatprep.mubr.bf16.mxu1 %v7771_v48  ;;  %v7751_v51 = vld [vmem:[#allocation5 + $0x180] ss:$16 sps:$4 sm:$0xff]   ;;  %v7752_v52 = vld [vmem:[#allocation5 + $0x188] ss:$16 sps:$4 sm:$0xff]  }
  0xb4   : > { %1401 = vmatpush1.bf16.msra.mxu0 %v7703_v18  ;;  %1627 = vmatpush1.bf16.msra.mxu1 %v7704_v19  ;;  %v7753_v53 = vld [vmem:[#allocation5 + $0x1a4] ss:$16 sps:$4 sm:$0xff]   ;;  %v7755_v54 = vld [vmem:[#allocation5 + $0x1ac] ss:$16 sps:$4 sm:$0xff]   ;;  %v7757_v55 = vld [vmem:[#allocation5 + $0x1a0] ss:$16 sps:$4 sm:$0xff]  }
  0xb5   : > { %1402 = vmatprep.subr.bf16.mxu0 %v7705_v20  ;;  %1628 = vmatprep.subr.bf16.mxu1 %v7707_v21  ;;  %v7758_v56 = vld [vmem:[#allocation5 + $0x1a8] ss:$16 sps:$4 sm:$0xff]   ;;  %v7759_v57 = vld [vmem:[#allocation5 + $0x1c4] ss:$16 sps:$4 sm:$0xff]   ;;  %v7761_v58 = vld [vmem:[#allocation5 + $0x1cc] ss:$16 sps:$4 sm:$0xff]  }
  0xb6   : > { %v7763_v59 = vld [vmem:[#allocation5 + $0x1c0] ss:$16 sps:$4 sm:$0xff]   ;;  %v7764_v60 = vld [vmem:[#allocation5 + $0x1c8] ss:$16 sps:$4 sm:$0xff]   ;;  %v7765_v61 = vld [vmem:[#allocation5 + $0x1e4] ss:$16 sps:$4 sm:$0xff]  }
  0xb7   : > { %v7767_v62 = vld [vmem:[#allocation5 + $0x1ec] ss:$16 sps:$4 sm:$0xff]   ;;  %v7769_v63 = vld [vmem:[#allocation5 + $0x1e0] ss:$16 sps:$4 sm:$0xff]   ;;  %v7770_v0 = vld [vmem:[#allocation5 + $0x1e8] ss:$16 sps:$4 sm:$0xff]  }
  0xb8   : > { %1403 = vmatpush1.bf16.msra.mxu0 %v7709_v22  ;;  %1629 = vmatpush1.bf16.msra.mxu1 %v7710_v23  ;;  %v7776_v1 = vld [vmem:[#allocation5 + $0x204] ss:$16 sps:$4 sm:$0xff]   ;;  %v7779_v2 = vld [vmem:[#allocation5 + $0x20c] ss:$16 sps:$4 sm:$0xff]   ;;  %v7773_v3 = vld [vmem:[%s8931_s21] ss:$16 sps:$4 sm:$0xff]  }
  0xb9   : > { %1404 = vmatprep.subr.bf16.mxu0 %v7711_v24  ;;  %1630 = vmatprep.subr.bf16.mxu1 %v7713_v25  ;;  %v7774_v4 = vld [vmem:[#allocation5 + $0x200] ss:$16 sps:$4 sm:$0xff]   ;;  %v7777_v5 = vld [vmem:[#allocation5 + $0x208] ss:$16 sps:$4 sm:$0xff]   ;;  %v7782_v6 = vld [vmem:[#allocation5 + $0x224] ss:$16 sps:$4 sm:$0xff]  }
  0xba   : > { %v7785_v7 = vld [vmem:[#allocation5 + $0x22c] ss:$16 sps:$4 sm:$0xff]   ;;  %v7786_v8 = vld [vmem:[%s8931_s21 + $0x24] ss:$16 sps:$4 sm:$0xff]   ;;  %v7780_v9 = vld [vmem:[#allocation5 + $0x220] ss:$16 sps:$4 sm:$0xff]  }
  0xbb   : > { %v7783_v10 = vld [vmem:[#allocation5 + $0x228] ss:$16 sps:$4 sm:$0xff]   ;;  %v7791_v11 = vld [vmem:[#allocation5 + $0x244] ss:$16 sps:$4 sm:$0xff]   ;;  %v7794_v12 = vld [vmem:[#allocation5 + $0x24c] ss:$16 sps:$4 sm:$0xff]  }
  0xbc   : > { %1405 = vmatpush1.bf16.msra.mxu0 %v7715_v26  ;;  %1631 = vmatpush1.bf16.msra.mxu1 %v7716_v27  ;;  %v7788_v13 = vld [vmem:[%s8931_s21 + $0x20] ss:$16 sps:$4 sm:$0xff]   ;;  %v7792_v15 = vld [vmem:[#allocation5 + $0x248] ss:$16 sps:$4 sm:$0xff]   ;;  %v7797_v16 = vld [vmem:[#allocation5 + $0x264] ss:$16 sps:$4 sm:$0xff]  }
  0xbd   : > { %1406 = vmatprep.subr.bf16.mxu0 %v7717_v28  ;;  %1632 = vmatprep.subr.bf16.mxu1 %v7719_v29  ;;  %v7789_v14 = vld [vmem:[#allocation5 + $0x240] ss:$16 sps:$4 sm:$0xff]   ;;  %v7800_v17 = vld [vmem:[#allocation5 + $0x26c] ss:$16 sps:$4 sm:$0xff]   ;;  %v7801_v18 = vld [vmem:[%s8931_s21 + $0x44] ss:$16 sps:$4 sm:$0xff]  }
  0xbe   : > { %v7795_v19 = vld [vmem:[#allocation5 + $0x260] ss:$16 sps:$4 sm:$0xff]   ;;  %v7798_v20 = vld [vmem:[#allocation5 + $0x268] ss:$16 sps:$4 sm:$0xff]   ;;  %v7806_v21 = vld [vmem:[#allocation5 + $0x284] ss:$16 sps:$4 sm:$0xff]  }
  0xbf   : > { %v7809_v22 = vld [vmem:[#allocation5 + $0x28c] ss:$16 sps:$4 sm:$0xff]   ;;  %v7803_v23 = vld [vmem:[%s8931_s21 + $0x40] ss:$16 sps:$4 sm:$0xff]   ;;  %v7807_v25 = vld [vmem:[#allocation5 + $0x288] ss:$16 sps:$4 sm:$0xff]  }
  0xc0   : > { %1407 = vmatpush1.bf16.msra.mxu0 %v7721_v30  ;;  %1633 = vmatpush1.bf16.msra.mxu1 %v7722_v31  ;;  %v7804_v24 = vld [vmem:[#allocation5 + $0x280] ss:$16 sps:$4 sm:$0xff]   ;;  %v7812_v26 = vld [vmem:[#allocation5 + $0x2a4] ss:$16 sps:$4 sm:$0xff]   ;;  %v7815_v27 = vld [vmem:[#allocation5 + $0x2ac] ss:$16 sps:$4 sm:$0xff]  }
  0xc1   : > { %1408 = vmatprep.subr.bf16.mxu0 %v7723_v32  ;;  %1634 = vmatprep.subr.bf16.mxu1 %v7725_v33  ;;  %v7816_v28 = vld [vmem:[%s8931_s21 + $0x64] ss:$16 sps:$4 sm:$0xff]   ;;  %v7810_v29 = vld [vmem:[#allocation5 + $0x2a0] ss:$16 sps:$4 sm:$0xff]   ;;  %v7813_v30 = vld [vmem:[#allocation5 + $0x2a8] ss:$16 sps:$4 sm:$0xff]  }
  0xc2   : > { %v7821_v31 = vld [vmem:[#allocation5 + $0x2c4] ss:$16 sps:$4 sm:$0xff]   ;;  %v7824_v32 = vld [vmem:[#allocation5 + $0x2cc] ss:$16 sps:$4 sm:$0xff]   ;;  %v7818_v33 = vld [vmem:[%s8931_s21 + $0x60] ss:$16 sps:$4 sm:$0xff]  }
  0xc3   : > { %v7840_v48 = vld [vmem:[#allocation5 + $0x320] ss:$16 sps:$4 sm:$0xff]   ;;  %s10591_s26 = sld [smem:[#allocation42_spill]]  ;;  %s10244_s8 = scalar_lea.vmem [#allocation11], %s6334_s25 }
  0xc4   : > { %1409 = vmatpush1.bf16.msra.mxu0 %v7727_v34  ;;  %1635 = vmatpush1.bf16.msra.mxu1 %v7728_v35  ;;  %v7819_v34 = vld [vmem:[#allocation5 + $0x2c0] ss:$16 sps:$4 sm:$0xff]   ;;  %v7822_v35 = vld [vmem:[#allocation5 + $0x2c8] ss:$16 sps:$4 sm:$0xff]   ;;  %s6764_s22 = sshll.u32 %s8743_s13, 12  ;;  %s6212_s29 = sshll.u32 %s10244_s8, 4  ;;  %s10337_s29 = int_to_ptr.vmem [resolvable:$true] %s6212_s29 }
  0xc5   : > { %1410 = vmatprep.subr.bf16.mxu0 %v7729_v36  ;;  %1636 = vmatprep.subr.bf16.mxu1 %v7731_v37  ;;  %v7827_v36 = vld [vmem:[#allocation5 + $0x2e4] ss:$16 sps:$4 sm:$0xff]   ;;  %v7830_v37 = vld [vmem:[#allocation5 + $0x2ec] ss:$16 sps:$4 sm:$0xff]   ;;  %s10597_s13 = sld [smem:[#allocation43_spill]]  ;;  %s6199_s15 = scalar_lea.sflag [#allocation4], %s8925_s20 }
  0xc6   : > { %s8583_s17 = scalar_lea.vmem %s10337_s29, 4096  ;;  %s8669_s23 = smov [#allocation11]  }
  0xc7   : > { %p8584_p8 = scmp.ne.s32.totalorder %s10337_s29, %s8583_s17  ;;  %s8587_s30 = sshll.u32 %s8669_s23, 4  ;;  %s8588_s30 = int_to_ptr.vmem [resolvable:$false] %s8587_s30 }
  0xc8   : > { %1411 = vmatpush1.bf16.msra.mxu0 %v7733_v38  ;;  %1637 = vmatpush1.bf16.msra.mxu1 %v7734_v39  ;;  %v7831_v38 = vld [vmem:[%s8931_s21 + $0x84] ss:$16 sps:$4 sm:$0xff]   ;;  %v7825_v39 = vld [vmem:[#allocation5 + $0x2e0] ss:$16 sps:$4 sm:$0xff]   ;;  %s8589_s19 = scalar_lea.vmem %s8588_s30, 8192  ;;  %p8590_p3 = scmp.lt.s32.totalorder %s10337_s29, %s8588_s30 }
  0xc9   : > { %1412 = vmatprep.subr.bf16.mxu0 %v7735_v40  ;;  %1638 = vmatprep.subr.bf16.mxu1 %v7737_v41  ;;  %v7828_v40 = vld [vmem:[#allocation5 + $0x2e8] ss:$16 sps:$4 sm:$0xff]   ;;  %v7836_v41 = vld [vmem:[#allocation5 + $0x304] ss:$16 sps:$4 sm:$0xff]   ;;  %p8585_p10 = pnand %p8584_p8, %p8870_p6  ;;  %p8591_p7 = scmp.lt.s32.totalorder %s8589_s19, %s8583_s17 }
  0xcb   : > { %p8586_p12 = pneg %p8585_p10  ;;  %p8592_p9 = por %p8591_p7, %p8590_p3 }
  0xcc   : > { %1413 = vmatpush1.bf16.msra.mxu0 %v7739_v42  ;;  %1639 = vmatpush1.bf16.msra.mxu1 %v7740_v43  ;;  %v7839_v42 = vld [vmem:[#allocation5 + $0x30c] ss:$16 sps:$4 sm:$0xff]   ;;  %v7833_v43 = vld [vmem:[%s8931_s21 + $0x80] ss:$16 sps:$4 sm:$0xff]  }
  0xcd   : > { %1414 = vmatprep.subr.bf16.mxu0 %v7741_v44  ;;  %1640 = vmatprep.subr.bf16.mxu1 %v7743_v45  ;;  %v7834_v44 = vld [vmem:[#allocation5 + $0x300] ss:$16 sps:$4 sm:$0xff]   ;;  %v7837_v45 = vld [vmem:[#allocation5 + $0x308] ss:$16 sps:$4 sm:$0xff]   ;;  %p8593_p13 = pnand %p8592_p9, %p8586_p12 }
  0xd0   : > { %1415 = vmatpush1.bf16.msra.mxu0 %v7745_v46  ;;  %1641 = vmatpush1.bf16.msra.mxu1 %v7746_v47  ;;  %v7842_v46 = vld [vmem:[#allocation5 + $0x324] ss:$16 sps:$4 sm:$0xff]   ;;  %v7845_v47 = vld [vmem:[#allocation5 + $0x32c] ss:$16 sps:$4 sm:$0xff]  }
  0xd1   : > { %1416 = vmatprep.subr.bf16.mxu0 %v7747_v49  ;;  %1642 = vmatprep.subr.bf16.mxu1 %v7749_v50  ;;  %v8956_v49 = vld [vmem:[%s8931_s21 + $0xa4] ss:$16 sps:$4 sm:$0xff]   ;;  %v7843_v50 = vld [vmem:[#allocation5 + $0x328] ss:$16 sps:$4 sm:$0xff]  }
  0xd4   : > { %1417 = vmatpush1.bf16.msra.mxu0 %v7751_v51  ;;  %1643 = vmatpush1.bf16.msra.mxu1 %v7752_v52  ;;  %v7851_v51 = vld [vmem:[#allocation5 + $0x344] ss:$16 sps:$4 sm:$0xff]   ;;  %v7854_v52 = vld [vmem:[#allocation5 + $0x34c] ss:$16 sps:$4 sm:$0xff]  }
  0xd5   : > { %1418 = vmatprep.subr.bf16.mxu0 %v7753_v53  ;;  %1644 = vmatprep.subr.bf16.mxu1 %v7755_v54  ;;  %v8961_v53 = vld [vmem:[%s8931_s21 + $0xa0] ss:$16 sps:$4 sm:$0xff]  }
  0xd6   : > { %v7849_v54 = vld [vmem:[#allocation5 + $0x340] ss:$16 sps:$4 sm:$0xff]  }
  0xd8   : > { %1419 = vmatpush1.bf16.msra.mxu0 %v7757_v55  ;;  %1645 = vmatpush1.bf16.msra.mxu1 %v7758_v56  ;;  %v7852_v55 = vld [vmem:[#allocation5 + $0x348] ss:$16 sps:$4 sm:$0xff]   ;;  %v7857_v56 = vld [vmem:[#allocation5 + $0x364] ss:$16 sps:$4 sm:$0xff]  }
  0xd9   : > { %1420 = vmatprep.subr.bf16.mxu0 %v7759_v57  ;;  %1646 = vmatprep.subr.bf16.mxu1 %v7761_v58  ;;  %v7860_v57 = vld [vmem:[#allocation5 + $0x36c] ss:$16 sps:$4 sm:$0xff]   ;;  %v8964_v58 = vld [vmem:[%s8931_s21 + $0xc4] ss:$16 sps:$4 sm:$0xff]  }
  0xdc   : > { %1421 = vmatpush1.bf16.msra.mxu0 %v7763_v59  ;;  %1647 = vmatpush1.bf16.msra.mxu1 %v7764_v60  ;;  %v7855_v59 = vld [vmem:[#allocation5 + $0x360] ss:$16 sps:$4 sm:$0xff]   ;;  %v7858_v60 = vld [vmem:[#allocation5 + $0x368] ss:$16 sps:$4 sm:$0xff]  }
  0xdd   : > { %1422 = vmatprep.subr.bf16.mxu0 %v7765_v61  ;;  %1648 = vmatprep.subr.bf16.mxu1 %v7767_v62  ;;  %v7866_v61 = vld [vmem:[#allocation5 + $0x384] ss:$16 sps:$4 sm:$0xff]   ;;  %v8969_v62 = vld [vmem:[%s8931_s21 + $0xc0] ss:$16 sps:$4 sm:$0xff]  }
  0xe0   : > { %1423 = vmatpush1.bf16.msra.mxu0 %v7769_v63  ;;  %1649 = vmatpush1.bf16.msra.mxu1 %v7770_v0  ;;  %v7869_v63 = vld [vmem:[#allocation5 + $0x38c] ss:$16 sps:$4 sm:$0xff]   ;;  %v7864_v0 = vld [vmem:[#allocation5 + $0x380] ss:$16 sps:$4 sm:$0xff]  }
  0xe1   : > { %1505 = vmatprep.subr.bf16.mxu0 %v7776_v1  ;;  %1731 = vmatprep.subr.bf16.mxu1 %v7779_v2  ;;  %v7867_v1 = vld [vmem:[#allocation5 + $0x388] ss:$16 sps:$4 sm:$0xff]   ;;  %v7872_v2 = vld [vmem:[#allocation5 + $0x3a4] ss:$16 sps:$4 sm:$0xff]  }
  0xe3   : > { %1425 = vmatmul.mubr.bf16.vlgmr.msra.gmra.mrb[0].mxu0 %v7773_v3  ;;  %1651 = vmatmul.mubr.bf16.vlgmr.msra.gmra.mrb[0].mxu1 %v7773_v3  ;;  %v7875_v3 = vld [vmem:[#allocation5 + $0x3ac] ss:$16 sps:$4 sm:$0xff]  }
  0xe4   : > { %1506 = vmatpush1.bf16.msra.mxu0 %v7774_v4  ;;  %1732 = vmatpush1.bf16.msra.mxu1 %v7777_v5  ;;  %v7870_v4 = vld [vmem:[#allocation5 + $0x3a0] ss:$16 sps:$4 sm:$0xff]   ;;  %v8974_v5 = vld [vmem:[%s8931_s21 + $0xe4] ss:$16 sps:$4 sm:$0xff]  }
  0xe5   : > { %1507 = vmatprep.subr.bf16.mxu0 %v7782_v6  ;;  %1733 = vmatprep.subr.bf16.mxu1 %v7785_v7  ;;  %v7873_v6 = vld [vmem:[#allocation5 + $0x3a8] ss:$16 sps:$4 sm:$0xff]   ;;  %v7881_v7 = vld [vmem:[#allocation5 + $0x3c4] ss:$16 sps:$4 sm:$0xff]  }
  0xe6   : > { %1434 = vmatprep.mubr.bf16.mxu0 %v7786_v8  ;;  %1660 = vmatprep.mubr.bf16.mxu1 %v7786_v8  ;;  %v7884_v8 = vld [vmem:[#allocation5 + $0x3cc] ss:$16 sps:$4 sm:$0xff]  }
  0xe8   : > { %1508 = vmatpush1.bf16.msra.mxu0 %v7780_v9  ;;  %1734 = vmatpush1.bf16.msra.mxu1 %v7783_v10  ;;  %v8981_v9 = vld [vmem:[%s8931_s21 + $0xe0] ss:$16 sps:$4 sm:$0xff]  }
  0xe9   : > { %1509 = vmatprep.subr.bf16.mxu0 %v7791_v11  ;;  %1735 = vmatprep.subr.bf16.mxu1 %v7794_v12  ;;  %v7879_v10 = vld [vmem:[#allocation5 + $0x3c0] ss:$16 sps:$4 sm:$0xff]   ;;  %v7882_v11 = vld [vmem:[#allocation5 + $0x3c8] ss:$16 sps:$4 sm:$0xff]   ;;  %v7887_v12 = vld [vmem:[#allocation5 + $0x3e4] ss:$16 sps:$4 sm:$0xff]  }
  0xeb   : > { %1435 = vmatmul.mubr.bf16.gmra.mrb[4].mxu0 %v7788_v13  ;;  %1661 = vmatmul.mubr.bf16.gmra.mrb[4].mxu1 %v7788_v13  ;;  %v7890_v13 = vld [vmem:[#allocation5 + $0x3ec] ss:$16 sps:$4 sm:$0xff]  }
  0xec   : > { %1510 = vmatpush1.bf16.msra.mxu0 %v7789_v14  ;;  %1736 = vmatpush1.bf16.msra.mxu1 %v7792_v15  ;;  %v8984_v14 = vld [vmem:[%s8931_s21 + $0xc] ss:$16 sps:$4 sm:$0xff]   ;;  %v7885_v15 = vld [vmem:[#allocation5 + $0x3e0] ss:$16 sps:$4 sm:$0xff]  }
  0xed   : > { %1511 = vmatprep.subr.bf16.mxu0 %v7797_v16  ;;  %1737 = vmatprep.subr.bf16.mxu1 %v7800_v17  ;;  %v7888_v16 = vld [vmem:[#allocation5 + $0x3e8] ss:$16 sps:$4 sm:$0xff]   ;;  %v7894_v17 = vld [vmem:[#allocation7 + $0x40] sm:$0xff]  }
  0xee   : > { %1444 = vmatprep.mubr.bf16.mxu0 %v7801_v18  ;;  %1670 = vmatprep.mubr.bf16.mxu1 %v7801_v18  ;;  %v8989_v18 = vld [vmem:[%s8931_s21 + $0x8] ss:$16 sps:$4 sm:$0xff]  }
  0xf0   : > { %1512 = vmatpush1.bf16.msra.mxu0 %v7795_v19  ;;  %1738 = vmatpush1.bf16.msra.mxu1 %v7798_v20  ;;  %v7896_v19 = vld [vmem:[#allocation7 + $0xc0] sm:$0xff]  }
  0xf1   : > { %1513 = vmatprep.subr.bf16.mxu0 %v7806_v21  ;;  %1739 = vmatprep.subr.bf16.mxu1 %v7809_v22  ;;  %v7895_v20 = vld [vmem:[#allocation7] sm:$0xff]   ;;  %v8994_v22 = vld [vmem:[%s8931_s21 + $0x2c] ss:$16 sps:$4 sm:$0xff]  }
  0xf2   : > { %v7897_v21 = vld [vmem:[#allocation7 + $0x80] sm:$0xff]  }
  0xf3   : > { %1445 = vmatmul.mubr.bf16.gmra.mrb[8].mxu0 %v7803_v23  ;;  %1671 = vmatmul.mubr.bf16.gmra.mrb[8].mxu1 %v7803_v23  ;;  %v7901_v23 = vld [vmem:[#allocation7 + $0x48] sm:$0xff]  }
  0xf4   : > { %1514 = vmatpush1.bf16.msra.mxu0 %v7804_v24  ;;  %1740 = vmatpush1.bf16.msra.mxu1 %v7807_v25  ;;  %v7902_v24 = vld [vmem:[#allocation7 + $0x8] sm:$0xff]  }
  0xf5   : > { %1515 = vmatprep.subr.bf16.mxu0 %v7812_v26  ;;  %1741 = vmatprep.subr.bf16.mxu1 %v7815_v27  ;;  %v7903_v25 = vld [vmem:[#allocation7 + $0xc8] sm:$0xff]   ;;  %v7908_v27 = vld [vmem:[#allocation7 + $0x50] sm:$0xff]  }
  0xf6   : > { %1454 = vmatprep.mubr.bf16.mxu0 %v7816_v28  ;;  %1680 = vmatprep.mubr.bf16.mxu1 %v7816_v28  ;;  %v7904_v26 = vld [vmem:[#allocation7 + $0x88] sm:$0xff]   ;;  %v7910_v28 = vld [vmem:[#allocation7 + $0xd0] sm:$0xff]  }
  0xf8   : > { %1516 = vmatpush1.bf16.msra.mxu0 %v7810_v29  ;;  %1742 = vmatpush1.bf16.msra.mxu1 %v7813_v30  ;;  %v9001_v29 = vld [vmem:[%s8931_s21 + $0x28] ss:$16 sps:$4 sm:$0xff]   ;;  %v9004_v30 = vld [vmem:[%s8931_s21 + $0x4c] ss:$16 sps:$4 sm:$0xff]  }
  0xf9   : > { %1517 = vmatprep.subr.bf16.mxu0 %v7821_v31  ;;  %1743 = vmatprep.subr.bf16.mxu1 %v7824_v32  ;;  %v7909_v31 = vld [vmem:[#allocation7 + $0x10] sm:$0xff]  }
  0xfa   : > { %v7911_v32 = vld [vmem:[#allocation7 + $0x90] sm:$0xff]  }
  0xfb   : > { %1455 = vmatmul.mubr.bf16.gmra.mrb[12].mxu0 %v7818_v33  ;;  %1681 = vmatmul.mubr.bf16.gmra.mrb[12].mxu1 %v7818_v33  ;;  %v7915_v33 = vld [vmem:[#allocation7 + $0x58] sm:$0xff]  }
  0xfc   : > { %1518 = vmatpush1.bf16.msra.mxu0 %v7819_v34  ;;  %1744 = vmatpush1.bf16.msra.mxu1 %v7822_v35  ;;  %v7917_v34 = vld [vmem:[#allocation7 + $0xd8] sm:$0xff]  }
  0xfd   : > { %1519 = vmatprep.subr.bf16.mxu0 %v7827_v36  ;;  %1745 = vmatprep.subr.bf16.mxu1 %v7830_v37  ;;  %v7916_v35 = vld [vmem:[#allocation7 + $0x18] sm:$0xff]  }
  0xfe   : > { %1464 = vmatprep.mubr.bf16.mxu0 %v7831_v38  ;;  %1690 = vmatprep.mubr.bf16.mxu1 %v7831_v38  ;;  %v7918_v36 = vld [vmem:[#allocation7 + $0x98] sm:$0xff]   ;;  %v7922_v38 = vld [vmem:[#allocation7 + $0x60] sm:$0xff]  }
  0xff   : > { %v9011_v37 = vld [vmem:[%s8931_s21 + $0x48] ss:$16 sps:$4 sm:$0xff]  }
 0x100   : > { %1520 = vmatpush1.bf16.msra.mxu0 %v7825_v39  ;;  %1746 = vmatpush1.bf16.msra.mxu1 %v7828_v40  ;;  %v9014_v39 = vld [vmem:[%s8931_s21 + $0x6c] ss:$16 sps:$4 sm:$0xff]   ;;  %v7924_v40 = vld [vmem:[#allocation7 + $0xe0] sm:$0xff]  }
 0x101   : > { %1521 = vmatprep.subr.bf16.mxu0 %v7836_v41  ;;  %1747 = vmatprep.subr.bf16.mxu1 %v7839_v42  ;;  %v7923_v41 = vld [vmem:[#allocation7 + $0x20] sm:$0xff]  }
 0x102   : > { %v7925_v42 = vld [vmem:[#allocation7 + $0xa0] sm:$0xff]  }
 0x103   : > { %1465 = vmatmul.mubr.bf16.gmra.mrb[16].mxu0 %v7833_v43  ;;  %1691 = vmatmul.mubr.bf16.gmra.mrb[16].mxu1 %v7833_v43  ;;  %v7929_v43 = vld [vmem:[#allocation7 + $0x68] sm:$0xff]  }
 0x104   : > { %1522 = vmatpush1.bf16.msra.mxu0 %v7834_v44  ;;  %1748 = vmatpush1.bf16.msra.mxu1 %v7837_v45  ;;  %v7931_v44 = vld [vmem:[#allocation7 + $0xe8] sm:$0xff]  }
 0x105   : > { %1523 = vmatprep.subr.bf16.mxu0 %v7842_v46  ;;  %1749 = vmatprep.subr.bf16.mxu1 %v7845_v47  ;;  %v7930_v45 = vld [vmem:[#allocation7 + $0x28] sm:$0xff]  }
 0x106   : > { %1474 = vmatprep.mubr.bf16.mxu0 %v8956_v49  ;;  %1700 = vmatprep.mubr.bf16.mxu1 %v8956_v49  ;;  %v7932_v46 = vld [vmem:[#allocation7 + $0xa8] sm:$0xff]  }
 0x107   : > { %v9021_v47 = vld [vmem:[%s8931_s21 + $0x68] ss:$16 sps:$4 sm:$0xff]  }
 0x108   : > { %1524 = vmatpush1.bf16.msra.mxu0 %v7840_v48  ;;  %1750 = vmatpush1.bf16.msra.mxu1 %v7843_v50  ;;  %v7936_v48 = vld [vmem:[#allocation7 + $0x70] sm:$0xff]   ;;  %v9024_v50 = vld [vmem:[%s8931_s21 + $0x8c] ss:$16 sps:$4 sm:$0xff]  }
 0x109   : > { %1525 = vmatprep.subr.bf16.mxu0 %v7851_v51  ;;  %1751 = vmatprep.subr.bf16.mxu1 %v7854_v52  ;;  %v7938_v51 = vld [vmem:[#allocation7 + $0xf0] sm:$0xff]  }
 0x10a   : > { %v7937_v52 = vld [vmem:[#allocation7 + $0x30] sm:$0xff]  }
 0x10b   : > { %1475 = vmatmul.mubr.bf16.gmra.mrb[20].mxu0 %v8961_v53  ;;  %1701 = vmatmul.mubr.bf16.gmra.mrb[20].mxu1 %v8961_v53 }
 0x10c   : > { %1526 = vmatpush1.bf16.msra.mxu0 %v7849_v54  ;;  %1752 = vmatpush1.bf16.msra.mxu1 %v7852_v55  ;;  %v7939_v54 = vld [vmem:[#allocation7 + $0xb0] sm:$0xff]   ;;  %v7943_v55 = vld [vmem:[#allocation7 + $0x78] sm:$0xff]  }
 0x10d   : > { %1527 = vmatprep.subr.bf16.mxu0 %v7857_v56  ;;  %1753 = vmatprep.subr.bf16.mxu1 %v7860_v57  ;;  %v7945_v56 = vld [vmem:[#allocation7 + $0xf8] sm:$0xff]  }
 0x10e   : > { %1484 = vmatprep.mubr.bf16.mxu0 %v8964_v58  ;;  %1710 = vmatprep.mubr.bf16.mxu1 %v8964_v58  ;;  %v7944_v57 = vld [vmem:[#allocation7 + $0x38] sm:$0xff]  }
 0x110   : > { %1528 = vmatpush1.bf16.msra.mxu0 %v7855_v59  ;;  %1754 = vmatpush1.bf16.msra.mxu1 %v7858_v60  ;;  %v7946_v59 = vld [vmem:[#allocation7 + $0xb8] sm:$0xff]   ;;  %v7947_v60 = vld [vmem:[#allocation8 + $0x40] sm:$0xff]  }
 0x111   : > { %1529 = vmatprep.subr.bf16.mxu0 %v7866_v61  ;;  %1755 = vmatprep.subr.bf16.mxu1 %v7869_v63  ;;  %v9031_v61 = vld [vmem:[%s8931_s21 + $0x88] ss:$16 sps:$4 sm:$0xff]   ;;  %v9034_v63 = vld [vmem:[%s8931_s21 + $0xac] ss:$16 sps:$4 sm:$0xff]  }
 0x113   : > { %1485 = vmatmul.mubr.bf16.gmra.mrb[24].mxu0 %v8969_v62  ;;  %1711 = vmatmul.mubr.bf16.gmra.mrb[24].mxu1 %v8969_v62 }
 0x114   : > { %1530 = vmatpush1.bf16.msra.mxu0 %v7864_v0  ;;  %1756 = vmatpush1.bf16.msra.mxu1 %v7867_v1  ;;  %v9041_v0 = vld [vmem:[%s8931_s21 + $0xa8] ss:$16 sps:$4 sm:$0xff]   ;;  %v9044_v1 = vld [vmem:[%s8931_s21 + $0xcc] ss:$16 sps:$4 sm:$0xff]  }
 0x115   : > { %1531 = vmatprep.subr.bf16.mxu0 %v7872_v2  ;;  %1757 = vmatprep.subr.bf16.mxu1 %v7875_v3  ;;  %v9051_v2 = vld [vmem:[%s8931_s21 + $0xc8] ss:$16 sps:$4 sm:$0xff]   ;;  %v9054_v3 = vld [vmem:[%s8931_s21 + $0xec] ss:$16 sps:$4 sm:$0xff]  }
 0x116   : > { %1494 = vmatprep.mubr.bf16.mxu0 %v8974_v5  ;;  %1720 = vmatprep.mubr.bf16.mxu1 %v8974_v5 }
 0x118   : > { %1532 = vmatpush1.bf16.msra.mxu0 %v7870_v4  ;;  %1758 = vmatpush1.bf16.msra.mxu1 %v7873_v6  ;;  %v9061_v4 = vld [vmem:[%s8931_s21 + $0xe8] ss:$16 sps:$4 sm:$0xff]   ;;  %v9066_v6 = vld [vmem:[%s8931_s21 + $0x4] ss:$16 sps:$4 sm:$0xff]  }
 0x119   : > { %1533 = vmatprep.subr.bf16.mxu0 %v7881_v7  ;;  %1759 = vmatprep.subr.bf16.mxu1 %v7884_v8  ;;  %v7948_v7 = vld [vmem:[#allocation8] sm:$0xff]   ;;  %v7949_v8 = vld [vmem:[#allocation8 + $0x48] sm:$0xff]  }
 0x11b   : > { %1495 = vmatmul.mubr.bf16.gmra.mrb[28].mxu0 %v8981_v9  ;;  %1721 = vmatmul.mubr.bf16.gmra.mrb[28].mxu1 %v8981_v9 }
 0x11c   : > { %1534 = vmatpush1.bf16.msra.mxu0 %v7879_v10  ;;  %1760 = vmatpush1.bf16.msra.mxu1 %v7882_v11  ;;  %v9071_v10 = vld [vmem:[%s8931_s21] ss:$16 sps:$4 sm:$0xff]   ;;  %v7950_v11 = vld [vmem:[#allocation8 + $0x8] sm:$0xff]  }
 0x11d   : > { %1535 = vmatprep.subr.bf16.mxu0 %v7887_v12  ;;  %1761 = vmatprep.subr.bf16.mxu1 %v7890_v13  ;;  %v9076_v12 = vld [vmem:[%s8931_s21 + $0x24] ss:$16 sps:$4 sm:$0xff]  }
 0x11e   : > { %1537 = vmatprep.mubr.bf16.mxu0 %v8984_v14  ;;  %1763 = vmatprep.mubr.bf16.mxu1 %v8984_v14  ;;  %v7951_v13 = vld [vmem:[#allocation8 + $0x50] sm:$0xff]  }
 0x120   : > { %1536 = vmatpush1.bf16.msra.mxu0 %v7885_v15  ;;  %1762 = vmatpush1.bf16.msra.mxu1 %v7888_v16  ;;  %v7952_v15 = vld [vmem:[#allocation8 + $0x10] sm:$0xff]   ;;  %v7953_v16 = vld [vmem:[#allocation8 + $0x58] sm:$0xff]  }
 0x121   : > { %6765 = vmatprep.subr.bf16.mxu0 %v7894_v17  ;;  %6829 = vmatprep.subr.bf16.mxu1 %v7896_v19  ;;  %v9081_v17 = vld [vmem:[%s8931_s21 + $0x20] ss:$16 sps:$4 sm:$0xff]   ;;  %v7954_v19 = vld [vmem:[#allocation8 + $0x18] sm:$0xff]  }
 0x123   : > { %1538 = vmatmul.mubr.bf16.vlgmr.msra.gmra.mrb[0].mxu0 %v8989_v18  ;;  %1764 = vmatmul.mubr.bf16.vlgmr.msra.gmra.mrb[0].mxu1 %v8989_v18 }
 0x124   : > { %6766 = vmatpush3.bf16.msra.mxu0 %v7895_v20  ;;  %6830 = vmatpush3.bf16.msra.mxu1 %v7897_v21  ;;  %v9086_v20 = vld [vmem:[%s8931_s21 + $0x44] ss:$16 sps:$4 sm:$0xff]  }
 0x125   : > { %1547 = vmatprep.mubr.bf16.mxu0 %v8994_v22  ;;  %1773 = vmatprep.mubr.bf16.mxu1 %v8994_v22  ;;  %v7955_v21 = vld [vmem:[#allocation8 + $0x60] sm:$0xff]  }
 0x126   : > { %6767 = vmatprep.subr.bf16.mxu0 %v7901_v23  ;;  %6831 = vmatprep.subr.bf16.mxu1 %v7903_v25  ;;  %v7956_v23 = vld [vmem:[#allocation8 + $0x20] sm:$0xff]  }
 0x127   : > { %v9091_v25 = vld [vmem:[%s8931_s21 + $0x40] ss:$16 sps:$4 sm:$0xff]  }
 0x128   : > { %6768 = vmatpush3.bf16.msra.mxu0 %v7902_v24  ;;  %6832 = vmatpush3.bf16.msra.mxu1 %v7904_v26  ;;  %v7957_v24 = vld [vmem:[#allocation8 + $0x68] sm:$0xff]   ;;  %v9096_v26 = vld [vmem:[%s8931_s21 + $0x64] ss:$16 sps:$4 sm:$0xff]  }
 0x129   : > { %6769 = vmatprep.subr.bf16.mxu0 %v7908_v27  ;;  %6833 = vmatprep.subr.bf16.mxu1 %v7910_v28  ;;  %v7958_v27 = vld [vmem:[#allocation8 + $0x28] sm:$0xff]   ;;  %v7959_v28 = vld [vmem:[#allocation8 + $0x70] sm:$0xff]  }
 0x12b   : > { %1548 = vmatmul.mubr.bf16.gmra.mrb[4].mxu0 %v9001_v29  ;;  %1774 = vmatmul.mubr.bf16.gmra.mrb[4].mxu1 %v9001_v29 }
 0x12c   : > { %1557 = vmatprep.mubr.bf16.mxu0 %v9004_v30  ;;  %1783 = vmatprep.mubr.bf16.mxu1 %v9004_v30 }
 0x12d   : > { %6770 = vmatpush3.bf16.msra.mxu0 %v7909_v31  ;;  %6834 = vmatpush3.bf16.msra.mxu1 %v7911_v32  ;;  %v7960_v31 = vld [vmem:[#allocation8 + $0x30] sm:$0xff]   ;;  %v7961_v32 = vld [vmem:[#allocation8 + $0x78] sm:$0xff]  }
 0x12e   : > { %6771 = vmatprep.subr.bf16.mxu0 %v7915_v33  ;;  %6835 = vmatprep.subr.bf16.mxu1 %v7917_v34  ;;  %v8434_v33 = vld [vmem:[%s8931_s21 + $0x60] ss:$16 sps:$4 sm:$0xff]   ;;  %v8435_v34 = vld [vmem:[%s8931_s21 + $0x84] ss:$16 sps:$4 sm:$0xff]  }
 0x131   : > { %6772 = vmatpush3.bf16.msra.mxu0 %v7916_v35  ;;  %6836 = vmatpush3.bf16.msra.mxu1 %v7918_v36  ;;  %v7962_v35 = vld [vmem:[#allocation8 + $0x38] sm:$0xff]   ;;  %v8436_v36 = vld [vmem:[%s8931_s21 + $0x80] ss:$16 sps:$4 sm:$0xff]  }
 0x132   : > { %6773 = vmatprep.subr.bf16.mxu0 %v7922_v38  ;;  %6837 = vmatprep.subr.bf16.mxu1 %v7924_v40  ;;  %v7967_v38 = vld [vmem:[#allocation8 + $0xd0] sm:$0xff]  }
 0x133   : > { %1558 = vmatmul.mubr.bf16.gmra.mrb[8].mxu0 %v9011_v37  ;;  %1784 = vmatmul.mubr.bf16.gmra.mrb[8].mxu1 %v9011_v37  ;;  %v7968_v40 = vld [vmem:[#allocation8 + $0x90] sm:$0xff]  }
 0x134   : > { %1567 = vmatprep.mubr.bf16.mxu0 %v9014_v39  ;;  %1793 = vmatprep.mubr.bf16.mxu1 %v9014_v39 }
 0x135   : > { %6774 = vmatpush3.bf16.msra.mxu0 %v7923_v41  ;;  %6838 = vmatpush3.bf16.msra.mxu1 %v7925_v42  ;;  %v7969_v41 = vld [vmem:[#allocation8 + $0xd8] sm:$0xff]   ;;  %v7971_v42 = vld [vmem:[#allocation8 + $0xe0] sm:$0xff]  }
 0x136   : > { %6775 = vmatprep.subr.bf16.mxu0 %v7929_v43  ;;  %6839 = vmatprep.subr.bf16.mxu1 %v7931_v44  ;;  %v7972_v43 = vld [vmem:[#allocation8 + $0xa0] sm:$0xff]   ;;  %v7973_v44 = vld [vmem:[#allocation8 + $0xe8] sm:$0xff]  }
 0x139   : > { %6776 = vmatpush3.bf16.msra.mxu0 %v7930_v45  ;;  %6840 = vmatpush3.bf16.msra.mxu1 %v7932_v46  ;;  %v7974_v45 = vld [vmem:[#allocation8 + $0xa8] sm:$0xff]   ;;  %v7975_v46 = vld [vmem:[#allocation8 + $0xf0] sm:$0xff]  }
 0x13a   : > { %6777 = vmatprep.subr.bf16.mxu0 %v7936_v48  ;;  %6841 = vmatprep.subr.bf16.mxu1 %v7938_v51  ;;  %v7976_v48 = vld [vmem:[#allocation8 + $0xb0] sm:$0xff]   ;;  %v7977_v51 = vld [vmem:[#allocation8 + $0xf8] sm:$0xff]  }
 0x13b   : > { %1568 = vmatmul.mubr.bf16.gmra.mrb[12].mxu0 %v9021_v47  ;;  %1794 = vmatmul.mubr.bf16.gmra.mrb[12].mxu1 %v9021_v47 }
 0x13c   : > { %1577 = vmatprep.mubr.bf16.mxu0 %v9024_v50  ;;  %1803 = vmatprep.mubr.bf16.mxu1 %v9024_v50 }
 0x13d   : > { %6778 = vmatpush3.bf16.msra.mxu0 %v7937_v52  ;;  %6842 = vmatpush3.bf16.msra.mxu1 %v7939_v54  ;;  %v7978_v52 = vld [vmem:[#allocation8 + $0xb8] sm:$0xff]   ;;  %v8437_v54 = vld [vmem:[%s8931_s21 + $0xa4] ss:$16 sps:$4 sm:$0xff]  }
 0x13e   : > { %6779 = vmatprep.subr.bf16.mxu0 %v7943_v55  ;;  %6843 = vmatprep.subr.bf16.mxu1 %v7945_v56  ;;  %v8438_v55 = vld [vmem:[%s8931_s21 + $0xa0] ss:$16 sps:$4 sm:$0xff]   ;;  %v8439_v56 = vld [vmem:[%s8931_s21 + $0xc4] ss:$16 sps:$4 sm:$0xff]  }
 0x141   : > { %6780 = vmatpush3.bf16.msra.mxu0 %v7944_v57  ;;  %6844 = vmatpush3.bf16.msra.mxu1 %v7946_v59  ;;  %v8440_v57 = vld [vmem:[%s8931_s21 + $0xc0] ss:$16 sps:$4 sm:$0xff]   ;;  %s10335_s21 = scalar_lea.hbm %s10597_s13, %s6764_s22 }
 0x142   : > { %6893 = vmatprep.subr.bf16.mxu0 %v7947_v60 }
 0x143   : > { %1578 = vmatmul.mubr.bf16.gmra.mrb[16].mxu0 %v9031_v61  ;;  %1804 = vmatmul.mubr.bf16.gmra.mrb[16].mxu1 %v9031_v61 }
 0x144   : > { %1587 = vmatprep.mubr.bf16.mxu0 %v9034_v63  ;;  %1813 = vmatprep.mubr.bf16.mxu1 %v9034_v63 }
 0x14b   : > { %1588 = vmatmul.mubr.bf16.gmra.mrb[20].mxu0 %v9041_v0  ;;  %1814 = vmatmul.mubr.bf16.gmra.mrb[20].mxu1 %v9041_v0 }
 0x14c   : > { %1597 = vmatprep.mubr.bf16.mxu0 %v9044_v1  ;;  %1823 = vmatprep.mubr.bf16.mxu1 %v9044_v1 }
 0x153   : > { %1598 = vmatmul.mubr.bf16.gmra.mrb[24].mxu0 %v9051_v2  ;;  %1824 = vmatmul.mubr.bf16.gmra.mrb[24].mxu1 %v9051_v2 }
 0x154   : > { %1607 = vmatprep.mubr.bf16.mxu0 %v9054_v3  ;;  %1833 = vmatprep.mubr.bf16.mxu1 %v9054_v3 }
 0x15b   : > { %1608 = vmatmul.mubr.bf16.gmra.mrb[28].mxu0 %v9061_v4  ;;  %1834 = vmatmul.mubr.bf16.gmra.mrb[28].mxu1 %v9061_v4 }
 0x15c   : > { %2139 = vmatprep.mubr.bf16.mxu0 %v9066_v6  ;;  %2236 = vmatprep.mubr.bf16.mxu1 %v8984_v14 }
 0x163   : > { %2140 = vmatmul.mubr.bf16.vlgmr.msra.gmra.mrb[32].mxu0 %v9071_v10  ;;  %2237 = vmatmul.mubr.bf16.vlgmr.msra.gmra.mrb[32].mxu1 %v8989_v18 }
 0x164   : > { %2147 = vmatprep.mubr.bf16.mxu0 %v9076_v12  ;;  %2244 = vmatprep.mubr.bf16.mxu1 %v8994_v22 }
 0x165   : > { %6894 = vmatpush3.bf16.msra.mxu0 %v7948_v7 }
 0x166   : > { %6895 = vmatprep.subr.bf16.mxu0 %v7949_v8 }
 0x169   : > { %6896 = vmatpush3.bf16.msra.mxu0 %v7950_v11 }
 0x16a   : > { %6897 = vmatprep.subr.bf16.mxu0 %v7951_v13 }
 0x16b   : > { %2148 = vmatmul.mubr.bf16.gmra.mrb[36].mxu0 %v9081_v17  ;;  %2245 = vmatmul.mubr.bf16.gmra.mrb[36].mxu1 %v9001_v29 }
 0x16c   : > { %2155 = vmatprep.mubr.bf16.mxu0 %v9086_v20  ;;  %2252 = vmatprep.mubr.bf16.mxu1 %v9004_v30 }
 0x16d   : > { %6898 = vmatpush3.bf16.msra.mxu0 %v7952_v15 }
 0x16e   : > { %6899 = vmatprep.subr.bf16.mxu0 %v7953_v16 }
 0x171   : > { %6900 = vmatpush3.bf16.msra.mxu0 %v7954_v19 }
 0x172   : > { %6901 = vmatprep.subr.bf16.mxu0 %v7955_v21 }
 0x173   : > { %2156 = vmatmul.mubr.bf16.gmra.mrb[40].mxu0 %v9091_v25  ;;  %2253 = vmatmul.mubr.bf16.gmra.mrb[40].mxu1 %v9011_v37 }
 0x174   : > { %2163 = vmatprep.mubr.bf16.mxu0 %v9096_v26  ;;  %2260 = vmatprep.mubr.bf16.mxu1 %v9014_v39 }
 0x175   : > { %6902 = vmatpush3.bf16.msra.mxu0 %v7956_v23 }
 0x176   : > { %6903 = vmatprep.subr.bf16.mxu0 %v7957_v24 }
 0x179   : > { %6904 = vmatpush3.bf16.msra.mxu0 %v7958_v27 }
 0x17a   : > { %6905 = vmatprep.subr.bf16.mxu0 %v7959_v28 }
 0x17b   : > { %2164 = vmatmul.mubr.bf16.gmra.mrb[44].mxu0 %v8434_v33  ;;  %2261 = vmatmul.mubr.bf16.gmra.mrb[44].mxu1 %v9021_v47 }
 0x17c   : > { %2171 = vmatprep.mubr.bf16.mxu0 %v8435_v34  ;;  %2268 = vmatprep.mubr.bf16.mxu1 %v9024_v50 }
 0x17d   : > { %6906 = vmatpush3.bf16.msra.mxu0 %v7960_v31 }
 0x17e   : > { %6907 = vmatprep.subr.bf16.mxu0 %v7961_v32 }
 0x181   : > { %6908 = vmatpush3.bf16.msra.mxu0 %v7962_v35 }
 0x183   : > { %2172 = vmatmul.mubr.bf16.gmra.mrb[48].mxu0 %v8436_v36  ;;  %2269 = vmatmul.mubr.bf16.gmra.mrb[48].mxu1 %v9031_v61 }
 0x184   : > { %2179 = vmatprep.mubr.bf16.mxu0 %v8956_v49  ;;  %2276 = vmatprep.mubr.bf16.mxu1 %v9034_v63  ;;  %v7963_v49 = vld [vmem:[#allocation8 + $0xc0] sm:$0xff]  }
 0x185   : > { %6957 = vmatprep.subr.bf16.mxu1 %v7963_v49 }
 0x18b   : > { %2180 = vmatmul.mubr.bf16.gmra.mrb[52].mxu0 %v8961_v53  ;;  %2277 = vmatmul.mubr.bf16.gmra.mrb[52].mxu1 %v9041_v0  ;;  %v7964_v53 = vld [vmem:[#allocation8 + $0x80] sm:$0xff]  }
 0x18c   : > { %2187 = vmatprep.mubr.bf16.mxu0 %v8964_v58  ;;  %2284 = vmatprep.mubr.bf16.mxu1 %v9044_v1  ;;  %v7965_v58 = vld [vmem:[#allocation8 + $0xc8] sm:$0xff]  }
 0x18d   : > { %6958 = vmatpush3.bf16.msra.mxu1 %v7964_v53 }
 0x18e   : > { %6959 = vmatprep.subr.bf16.mxu1 %v7965_v58 }
 0x193   : > { %2188 = vmatmul.mubr.bf16.gmra.mrb[56].mxu0 %v8969_v62  ;;  %2285 = vmatmul.mubr.bf16.gmra.mrb[56].mxu1 %v9051_v2  ;;  %v7966_v62 = vld [vmem:[#allocation8 + $0x88] sm:$0xff]  }
 0x194   : > { %2195 = vmatprep.mubr.bf16.mxu0 %v8974_v5  ;;  %2292 = vmatprep.mubr.bf16.mxu1 %v9054_v3 }
 0x195   : > { %6960 = vmatpush3.bf16.msra.mxu1 %v7966_v62 }
 0x196   : > { %6961 = vmatprep.subr.bf16.mxu1 %v7967_v38 }
 0x199   : > { %6962 = vmatpush3.bf16.msra.mxu1 %v7968_v40 }
 0x19a   : > { %6963 = vmatprep.subr.bf16.mxu1 %v7969_v41 }
 0x19b   : > { %2196 = vmatmul.mubr.bf16.gmra.mrb[60].mxu0 %v8981_v9  ;;  %2293 = vmatmul.mubr.bf16.gmra.mrb[60].mxu1 %v9061_v4 }
 0x19c   : > { %2596 = vmatprep.mubr.bf16.mxu0 %v9066_v6  ;;  %2693 = vmatprep.mubr.bf16.mxu1 %v8984_v14  ;;  %v7970_v14 = vld [vmem:[#allocation8 + $0x98] sm:$0xff]  }
 0x19d   : > { %6964 = vmatpush3.bf16.msra.mxu1 %v7970_v14 }
 0x19e   : > { %6965 = vmatprep.subr.bf16.mxu1 %v7971_v42 }
 0x1a1   : > { %6966 = vmatpush3.bf16.msra.mxu1 %v7972_v43 }
 0x1a2   : > { %6967 = vmatprep.subr.bf16.mxu1 %v7973_v44 }
 0x1a3   : > { %2597 = vmatmul.mubr.bf16.vlgmr.msra.gmra.mrb[64].mxu0 %v9071_v10 }
 0x1a4   : > { %2604 = vmatprep.mubr.bf16.mxu0 %v9076_v12 }
 0x1a5   : > { %6968 = vmatpush3.bf16.msra.mxu1 %v7974_v45 }
 0x1a6   : > { %6969 = vmatprep.subr.bf16.mxu1 %v7975_v46 }
 0x1a9   : > { %6970 = vmatpush3.bf16.msra.mxu1 %v7976_v48 }
 0x1aa   : > { %6971 = vmatprep.subr.bf16.mxu1 %v7977_v51 }
 0x1ab   : > { %2605 = vmatmul.mubr.bf16.gmra.mrb[68].mxu0 %v9081_v17 }
 0x1ac   : > { %2612 = vmatprep.mubr.bf16.mxu0 %v9086_v20 }
 0x1ad   : > { %6972 = vmatpush3.bf16.msra.mxu1 %v7978_v52 }
 0x1b0   : > { %2694 = vmatmul.mubr.bf16.vlgmr.msra.gmra.mrb[64].mxu1 %v8989_v18  ;;  %v572_v18 = vlaneseq }
 0x1b1   : > { %2701 = vmatprep.mubr.bf16.mxu1 %v8994_v22 }
 0x1b2   : > { %v9144_v22 = vshrl.u32 %v572_v18, 7 }
 0x1b3   : > { %2613 = vmatmul.mubr.bf16.gmra.mrb[72].mxu0 %v9091_v25 }
 0x1b4   : > { %2620 = vmatprep.mubr.bf16.mxu0 %v9096_v26  ;;  %10467 = vst [vmem:[#allocation18_spill] sm:$0xff] %v9144_v22 }
 0x1b8   : > { %2702 = vmatmul.mubr.bf16.gmra.mrb[68].mxu1 %v9001_v29  ;;  %v10406_v29 = vsub.s32 0, %v9144_v22 }
 0x1b9   : > { %2709 = vmatprep.mubr.bf16.mxu1 %v9004_v30  ;;  %v570_v30 = vld [vmem:[%s10387_s2] sm:$0xf] }
 0x1bb   : > { %2621 = vmatmul.mubr.bf16.gmra.mrb[76].mxu0 %v8434_v33 }
 0x1bc   : > { %2628 = vmatprep.mubr.bf16.mxu0 %v8435_v34 }
 0x1c0   : > { %2710 = vmatmul.mubr.bf16.gmra.mrb[72].mxu1 %v9011_v37  ;;  %v10403_v37 = vsub.s32 3, %v9144_v22 }
 0x1c1   : > { %2717 = vmatprep.mubr.bf16.mxu1 %v9014_v39  ;;  %v9157_v39 = vrot.slane %v570_v30, %v10406_v29 }
 0x1c2   : > { %v9169_v59 = vrot.slane %v570_v30, %v10403_v37 }
 0x1c3   : > { %2629 = vmatmul.mubr.bf16.gmra.mrb[80].mxu0 %v8436_v36 }
 0x1c4   : > { %2636 = vmatprep.mubr.bf16.mxu0 %v8437_v54 }
 0x1c8   : > { %2718 = vmatmul.mubr.bf16.gmra.mrb[76].mxu1 %v9021_v47 }
 0x1c9   : > { %2725 = vmatprep.mubr.bf16.mxu1 %v9024_v50 }
 0x1cb   : > { %2637 = vmatmul.mubr.bf16.gmra.mrb[84].mxu0 %v8438_v55 }
 0x1cc   : > { %2644 = vmatprep.mubr.bf16.mxu0 %v8439_v56 }
 0x1d0   : > { %2726 = vmatmul.mubr.bf16.gmra.mrb[80].mxu1 %v9031_v61 }
 0x1d1   : > { %2733 = vmatprep.mubr.bf16.mxu1 %v9034_v63 }
 0x1d3   : > { %2645 = vmatmul.mubr.bf16.gmra.mrb[88].mxu0 %v8440_v57 }
 0x1d4   : > { %2652 = vmatprep.mubr.bf16.mxu0 %v8974_v5  ;;  %v10405_v5 = vsub.s32 2, %v9144_v22 }
 0x1d6   : > { %v9161_v47 = vrot.slane %v570_v30, %v10405_v5 }
 0x1d8   : > { %2734 = vmatmul.mubr.bf16.gmra.mrb[84].mxu1 %v9041_v0 }
 0x1d9   : > { %2741 = vmatprep.mubr.bf16.mxu1 %v9044_v1 }
 0x1db   : > { %2653 = vmatmul.mubr.bf16.gmra.mrb[92].mxu0 %v8981_v9  ;;  %v10404_v9 = vsub.s32 1, %v9144_v22 }
 0x1dd   : > { %v9165_v50 = vrot.slane %v570_v30, %v10404_v9 }
 0x1e0   : > { %2742 = vmatmul.mubr.bf16.gmra.mrb[88].mxu1 %v9051_v2 }
 0x1e1   : > { %2749 = vmatprep.mubr.bf16.mxu1 %v9054_v3 }
 0x1e8   : > { %2750 = vmatmul.mubr.bf16.gmra.mrb[92].mxu1 %v9061_v4 }
 0x1f6   : > { %v1539_v60 = vpop.f32.mrb[0].mxu0  ;;  %v1765_v61 = vpop.f32.mrb[0].mxu1 }
 0x1f7   : > { %v7261_v63 = vadd.f32 %v1539_v60, %v9157_v39  ;;  %v7293_v0 = vadd.f32 %v1765_v61, %v9161_v47  ;;  %v1541_v1 = vpop.f32.mrb[1].mxu0  ;;  %v1767_v2 = vpop.f32.mrb[1].mxu1 }
 0x1f8   : > { %v7262_v3 = vadd.f32 %v1541_v1, %v9165_v50  ;;  %v7294_v6 = vadd.f32 %v1767_v2, %v9169_v59  ;;  %v1543_v7 = vpop.f32.mrb[2].mxu0  ;;  %v1769_v8 = vpop.f32.mrb[2].mxu1 }
 0x1f9   : > { %v7263_v10 = vadd.f32 %v1543_v7, %v9157_v39  ;;  %v7295_v11 = vadd.f32 %v1769_v8, %v9161_v47  ;;  %v1545_v12 = vpop.f32.mrb[3].mxu0  ;;  %v1771_v13 = vpop.f32.mrb[3].mxu1  ;;  %v2902_v15 = vmul.f32 0.088388346, %v7261_v63  ;;  %v9178_v16 = vmul.f32 0.088388346, %v7293_v0 }
 0x1fa   : > { %v7264_v17 = vadd.f32 %v1545_v12, %v9165_v50  ;;  %v7296_v19 = vadd.f32 %v1771_v13, %v9169_v59  ;;  %v9182_v20 = vmul.f32 0.088388346, %v7262_v3  ;;  %v9186_v24 = vmul.f32 0.088388346, %v7294_v6 }
 0x1fb   : > { %v2903_v21 = vmul.f32 0.088388346, %v7263_v10  ;;  %v9184_v23 = vmul.f32 0.088388346, %v7295_v11 }
 0x1fc   : > { %10468 = vst [vmem:[#allocation19_spill] sm:$0xff] %v9186_v24  ;;  %v9188_v4 = vmul.f32 0.088388346, %v7264_v17  ;;  %v9190_v25 = vmul.f32 0.088388346, %v7296_v19 }
 0x1fd   : > { %v2966_v26 = vpack.c.bf16 %v2903_v21, %v2902_v15 }
 0x1fe   : > { %10469 = vst [vmem:[#allocation20_spill] sm:$0xff] %v9190_v25  ;;  %v1549_v32 = vpop.f32.mrb[4].mxu0  ;;  %v1775_v33 = vpop.f32.mrb[4].mxu1 }
 0x1ff   : > { %v7265_v34 = vadd.f32 %v1549_v32, %v9157_v39  ;;  %v7297_v35 = vadd.f32 %v1775_v33, %v9161_v47  ;;  %v1551_v36 = vpop.f32.mrb[5].mxu0  ;;  %v1777_v49 = vpop.f32.mrb[5].mxu1  ;;  %7117 = vmatprep.mubr.bf16.mxu0 %v2966_v26 }
 0x200   : > { %v7266_v53 = vadd.f32 %v1551_v36, %v9165_v50  ;;  %v7298_v58 = vadd.f32 %v1777_v49, %v9169_v59  ;;  %v1553_v62 = vpop.f32.mrb[6].mxu0  ;;  %v1779_v38 = vpop.f32.mrb[6].mxu1 }
 0x201   : > { %v7267_v40 = vadd.f32 %v1553_v62, %v9157_v39  ;;  %v7299_v41 = vadd.f32 %v1779_v38, %v9161_v47  ;;  %v1555_v14 = vpop.f32.mrb[7].mxu0  ;;  %v1781_v42 = vpop.f32.mrb[7].mxu1  ;;  %v9204_v43 = vmul.f32 0.088388346, %v7265_v34  ;;  %v9206_v44 = vmul.f32 0.088388346, %v7297_v35 }
 0x202   : > { %v7268_v45 = vadd.f32 %v1555_v14, %v9165_v50  ;;  %v7300_v46 = vadd.f32 %v1781_v42, %v9169_v59  ;;  %v9210_v48 = vmul.f32 0.088388346, %v7266_v53  ;;  %v9216_v54 = vmul.f32 0.088388346, %v7298_v58 }
 0x203   : > { %v9212_v51 = vmul.f32 0.088388346, %v7267_v40  ;;  %v9214_v52 = vmul.f32 0.088388346, %v7299_v41 }
 0x204   : > { %10470 = vst [vmem:[#allocation21_spill] sm:$0xff] %v9216_v54  ;;  %v9218_v55 = vmul.f32 0.088388346, %v7268_v45  ;;  %v9220_v56 = vmul.f32 0.088388346, %v7300_v46 }
 0x206   : > { %10471 = vst [vmem:[#allocation22_spill] sm:$0xff] %v9220_v56  ;;  %v1559_v61 = vpop.f32.mrb[8].mxu0  ;;  %v1785_v63 = vpop.f32.mrb[8].mxu1 }
 0x207   : > { %v7269_v0 = vadd.f32 %v1559_v61, %v9157_v39  ;;  %v7301_v1 = vadd.f32 %v1785_v63, %v9161_v47  ;;  %v1561_v2 = vpop.f32.mrb[9].mxu0  ;;  %v1787_v3 = vpop.f32.mrb[9].mxu1 }
 0x208   : > { %v7270_v6 = vadd.f32 %v1561_v2, %v9165_v50  ;;  %v7302_v7 = vadd.f32 %v1787_v3, %v9169_v59  ;;  %v1563_v8 = vpop.f32.mrb[10].mxu0  ;;  %v1789_v10 = vpop.f32.mrb[10].mxu1 }
 0x209   : > { %v7271_v11 = vadd.f32 %v1563_v8, %v9157_v39  ;;  %v7303_v12 = vadd.f32 %v1789_v10, %v9161_v47  ;;  %v1565_v13 = vpop.f32.mrb[11].mxu0  ;;  %v1791_v15 = vpop.f32.mrb[11].mxu1  ;;  %v9236_v17 = vmul.f32 0.088388346, %v7269_v0  ;;  %v9238_v19 = vmul.f32 0.088388346, %v7301_v1 }
 0x20a   : > { %v7272_v21 = vadd.f32 %v1565_v13, %v9165_v50  ;;  %v7304_v26 = vadd.f32 %v1791_v15, %v9169_v59  ;;  %v9242_v32 = vmul.f32 0.088388346, %v7270_v6  ;;  %v9248_v35 = vmul.f32 0.088388346, %v7302_v7 }
 0x20b   : > { %v9244_v33 = vmul.f32 0.088388346, %v7271_v11  ;;  %v9246_v34 = vmul.f32 0.088388346, %v7303_v12 }
 0x20c   : > { %10472 = vst [vmem:[#allocation23_spill] sm:$0xff] %v9248_v35  ;;  %v9250_v36 = vmul.f32 0.088388346, %v7272_v21  ;;  %v9252_v49 = vmul.f32 0.088388346, %v7304_v26 }
 0x20e   : > { %10473 = vst [vmem:[#allocation24_spill] sm:$0xff] %v9252_v49  ;;  %v1569_v40 = vpop.f32.mrb[12].mxu0  ;;  %v1795_v41 = vpop.f32.mrb[12].mxu1 }
 0x20f   : > { %v7273_v14 = vadd.f32 %v1569_v40, %v9157_v39  ;;  %v7305_v42 = vadd.f32 %v1795_v41, %v9161_v47  ;;  %v1571_v45 = vpop.f32.mrb[13].mxu0  ;;  %v1797_v46 = vpop.f32.mrb[13].mxu1 }
 0x210   : > { %v7274_v61 = vadd.f32 %v1571_v45, %v9165_v50  ;;  %v7306_v63 = vadd.f32 %v1797_v46, %v9169_v59  ;;  %v1573_v0 = vpop.f32.mrb[14].mxu0  ;;  %v1799_v1 = vpop.f32.mrb[14].mxu1 }
 0x211   : > { %v7275_v2 = vadd.f32 %v1573_v0, %v9157_v39  ;;  %v7307_v3 = vadd.f32 %v1799_v1, %v9161_v47  ;;  %v1575_v6 = vpop.f32.mrb[15].mxu0  ;;  %v1801_v7 = vpop.f32.mrb[15].mxu1  ;;  %v9268_v8 = vmul.f32 0.088388346, %v7273_v14  ;;  %v9270_v10 = vmul.f32 0.088388346, %v7305_v42 }
 0x212   : > { %v7276_v11 = vadd.f32 %v1575_v6, %v9165_v50  ;;  %v7308_v12 = vadd.f32 %v1801_v7, %v9169_v59  ;;  %v9274_v13 = vmul.f32 0.088388346, %v7274_v61  ;;  %v9280_v26 = vmul.f32 0.088388346, %v7306_v63 }
 0x213   : > { %v9276_v15 = vmul.f32 0.088388346, %v7275_v2  ;;  %v9278_v21 = vmul.f32 0.088388346, %v7307_v3 }
 0x214   : > { %10474 = vst [vmem:[#allocation25_spill] sm:$0xff] %v9280_v26  ;;  %v9282_v40 = vmul.f32 0.088388346, %v7276_v11  ;;  %v9284_v41 = vmul.f32 0.088388346, %v7308_v12 }
 0x216   : > { %10475 = vst [vmem:[#allocation26_spill] sm:$0xff] %v9284_v41  ;;  %v1579_v61 = vpop.f32.mrb[16].mxu0  ;;  %v1805_v0 = vpop.f32.mrb[16].mxu1 }
 0x217   : > { %v7277_v63 = vadd.f32 %v1579_v61, %v9157_v39  ;;  %v7309_v1 = vadd.f32 %v1805_v0, %v9161_v47  ;;  %v1581_v2 = vpop.f32.mrb[17].mxu0  ;;  %v1807_v3 = vpop.f32.mrb[17].mxu1 }
 0x218   : > { %v7278_v6 = vadd.f32 %v1581_v2, %v9165_v50  ;;  %v7310_v7 = vadd.f32 %v1807_v3, %v9169_v59  ;;  %v1583_v11 = vpop.f32.mrb[18].mxu0  ;;  %v1809_v12 = vpop.f32.mrb[18].mxu1 }
 0x219   : > { %v7279_v37 = vadd.f32 %v1583_v11, %v9157_v39  ;;  %v7311_v9 = vadd.f32 %v1809_v12, %v9161_v47  ;;  %v1585_v5 = vpop.f32.mrb[19].mxu0  ;;  %v1811_v29 = vpop.f32.mrb[19].mxu1  ;;  %v9300_v46 = vmul.f32 0.088388346, %v7277_v63  ;;  %v9302_v38 = vmul.f32 0.088388346, %v7309_v1 }
 0x21a   : > { %v7280_v61 = vadd.f32 %v1585_v5, %v9165_v50  ;;  %v7312_v0 = vadd.f32 %v1811_v29, %v9169_v59  ;;  %v9306_v60 = vmul.f32 0.088388346, %v7278_v6  ;;  %v9312_v31 = vmul.f32 0.088388346, %v7310_v7 }
 0x21b   : > { %10476 = vst [vmem:[#allocation27_spill] sm:$0xff] %v9302_v38  ;;  %v9308_v2 = vmul.f32 0.088388346, %v7279_v37  ;;  %v9310_v3 = vmul.f32 0.088388346, %v7311_v9 }
 0x21c   : > { %10477 = vst [vmem:[#allocation28_spill] sm:$0xff] %v9312_v31  ;;  %v9314_v11 = vmul.f32 0.088388346, %v7280_v61  ;;  %v9316_v12 = vmul.f32 0.088388346, %v7312_v0 }
 0x21e   : > { %10478 = vst [vmem:[#allocation29_spill] sm:$0xff] %v9316_v12  ;;  %v1589_v9 = vpop.f32.mrb[20].mxu0  ;;  %v1815_v1 = vpop.f32.mrb[20].mxu1 }
 0x21f   : > { %v7281_v6 = vadd.f32 %v1589_v9, %v9157_v39  ;;  %v7313_v7 = vadd.f32 %v1815_v1, %v9161_v47  ;;  %v1591_v61 = vpop.f32.mrb[21].mxu0  ;;  %v1817_v0 = vpop.f32.mrb[21].mxu1 }
 0x220   : > { %v7282_v42 = vadd.f32 %v1591_v61, %v9165_v50  ;;  %v7314_v58 = vadd.f32 %v1817_v0, %v9169_v59  ;;  %v1593_v18 = vpop.f32.mrb[22].mxu0  ;;  %v1819_v5 = vpop.f32.mrb[22].mxu1 }
 0x221   : > { %v7283_v27 = vadd.f32 %v1593_v18, %v9157_v39  ;;  %v7315_v29 = vadd.f32 %v1819_v5, %v9161_v47  ;;  %v1595_v45 = vpop.f32.mrb[23].mxu0  ;;  %v1821_v37 = vpop.f32.mrb[23].mxu1  ;;  %v9332_v62 = vmul.f32 0.088388346, %v7281_v6  ;;  %v9334_v30 = vmul.f32 0.088388346, %v7313_v7 }
 0x222   : > { %v7284_v9 = vadd.f32 %v1595_v45, %v9165_v50  ;;  %v7316_v1 = vadd.f32 %v1821_v37, %v9169_v59  ;;  %v9338_v28 = vmul.f32 0.088388346, %v7282_v42  ;;  %v9344_v63 = vmul.f32 0.088388346, %v7314_v58 }
 0x223   : > { %10479 = vst [vmem:[#allocation30_spill] sm:$0xff] %v9334_v30  ;;  %v9340_v61 = vmul.f32 0.088388346, %v7283_v27  ;;  %v9342_v0 = vmul.f32 0.088388346, %v7315_v29 }
 0x224   : > { %10481 = vst [vmem:[#allocation32_spill] sm:$0xff] %v9344_v63  ;;  %v9346_v18 = vmul.f32 0.088388346, %v7284_v9  ;;  %v9348_v5 = vmul.f32 0.088388346, %v7316_v1 }
 0x225   : > { %10480 = vst [vmem:[#allocation31_spill] sm:$0xff] %v9342_v0 }
 0x226   : > { %10482 = vst [vmem:[#allocation33_spill] sm:$0xff] %v9348_v5  ;;  %v1599_v29 = vpop.f32.mrb[24].mxu0  ;;  %v1825_v37 = vpop.f32.mrb[24].mxu1 }
 0x227   : > { %v7285_v58 = vadd.f32 %v1599_v29, %v9157_v39  ;;  %v7317_v7 = vadd.f32 %v1825_v37, %v9161_v47  ;;  %v1601_v9 = vpop.f32.mrb[25].mxu0  ;;  %v1827_v1 = vpop.f32.mrb[25].mxu1 }
 0x228   : > { %v7286_v14 = vadd.f32 %v1601_v9, %v9165_v50  ;;  %v7318_v6 = vadd.f32 %v1827_v1, %v9169_v59  ;;  %v1603_v53 = vpop.f32.mrb[26].mxu0  ;;  %v1829_v45 = vpop.f32.mrb[26].mxu1 }
 0x229   : > { %v7287_v57 = vadd.f32 %v1603_v53, %v9157_v39  ;;  %v7319_v42 = vadd.f32 %v1829_v45, %v9161_v47  ;;  %v1605_v22 = vpop.f32.mrb[27].mxu0  ;;  %v1831_v27 = vpop.f32.mrb[27].mxu1  ;;  %v9364_v63 = vmul.f32 0.088388346, %v7285_v58  ;;  %v9366_v5 = vmul.f32 0.088388346, %v7317_v7 }
 0x22a   : > { %v7288_v29 = vadd.f32 %v1605_v22, %v9165_v50  ;;  %v7320_v37 = vadd.f32 %v1831_v27, %v9169_v59  ;;  %v9370_v31 = vmul.f32 0.088388346, %v7286_v14  ;;  %v9376_v12 = vmul.f32 0.088388346, %v7318_v6 }
 0x22b   : > { %10483 = vst [vmem:[#allocation34_spill] sm:$0xff] %v9366_v5  ;;  %v9372_v9 = vmul.f32 0.088388346, %v7287_v57  ;;  %v9374_v1 = vmul.f32 0.088388346, %v7319_v42 }
 0x22c   : > { %10485 = vst [vmem:[#allocation36_spill] sm:$0xff] %v9376_v12  ;;  %v9378_v53 = vmul.f32 0.088388346, %v7288_v29  ;;  %v9380_v45 = vmul.f32 0.088388346, %v7320_v37 }
 0x22d   : > { %10484 = vst [vmem:[#allocation35_spill] sm:$0xff] %v9374_v1 }
 0x22e   : > { %10486 = vst [vmem:[#allocation37_spill] sm:$0xff] %v9380_v45  ;;  %v1609_v42 = vpop.f32.mrb[28].mxu0  ;;  %v1835_v27 = vpop.f32.mrb[28].mxu1 }
 0x22f   : > { %v7289_v6 = vadd.f32 %v1609_v42, %v9157_v39  ;;  %v7321_v7 = vadd.f32 %v1835_v27, %v9161_v47  ;;  %v1611_v29 = vpop.f32.mrb[29].mxu0  ;;  %v1837_v37 = vpop.f32.mrb[29].mxu1 }
 0x230   : > { %v7290_v26 = vadd.f32 %v1611_v29, %v9165_v50  ;;  %v7322_v58 = vadd.f32 %v1837_v37, %v9169_v59  ;;  %v1613_v41 = vpop.f32.mrb[30].mxu0  ;;  %v1839_v22 = vpop.f32.mrb[30].mxu1 }
 0x231   : > { %v7291_v35 = vadd.f32 %v1613_v41, %v9157_v39  ;;  %v7323_v14 = vadd.f32 %v1839_v22, %v9161_v47  ;;  %v1615_v49 = vpop.f32.mrb[31].mxu0  ;;  %v1841_v57 = vpop.f32.mrb[31].mxu1  ;;  %v9396_v12 = vmul.f32 0.088388346, %v7289_v6  ;;  %v9398_v45 = vmul.f32 0.088388346, %v7321_v7 }
 0x232   : > { %v7292_v42 = vadd.f32 %v1615_v49, %v9165_v50  ;;  %v7324_v27 = vadd.f32 %v1841_v57, %v9169_v59  ;;  %v9402_v54 = vmul.f32 0.088388346, %v7290_v26  ;;  %v9408_v56 = vmul.f32 0.088388346, %v7322_v58  ;;  %v9425_v58 = vld [vmem:[%s10389_s4] ss:$0 sm:$0xff] }
 0x233   : > { %10487 = vst [vmem:[#allocation38_spill] sm:$0xff] %v9398_v45  ;;  %v9404_v29 = vmul.f32 0.088388346, %v7291_v35  ;;  %v9406_v37 = vmul.f32 0.088388346, %v7323_v14 }
 0x234   : > { %10489 = vst [vmem:[#allocation40_spill] sm:$0xff] %v9408_v56  ;;  %v9410_v39 = vmul.f32 0.088388346, %v7292_v42  ;;  %v9412_v47 = vmul.f32 0.088388346, %v7324_v27 }
 0x235   : > { %10488 = vst [vmem:[#allocation39_spill] sm:$0xff] %v9406_v37 }
 0x236   : > { %10490 = vst [vmem:[#allocation41_spill] sm:$0xff] %v9412_v47  ;;  %v6781_v49 = vpop.f32.mrb[32].mxu0  ;;  %v6845_v26 = vpop.f32.mrb[32].mxu1 }
 0x237   : > { %v6782_v22 = vpop.f32.mrb[33].mxu0  ;;  %v6846_v14 = vpop.f32.mrb[33].mxu1 }
 0x238   : > { %v6783_v57 = vadd.f32 %v6782_v22, %v6781_v49  ;;  %v6847_v6 = vadd.f32 %v6846_v14, %v6845_v26  ;;  %v6784_v7 = vpop.f32.mrb[34].mxu0  ;;  %v6848_v42 = vpop.f32.mrb[34].mxu1 }
 0x239   : > { %v6785_v27 = vpop.f32.mrb[35].mxu0  ;;  %v6849_v50 = vpop.f32.mrb[35].mxu1 }
 0x23a   : > { %v2142_v59 = vadd.f32 %v6783_v57, %v9425_v58  ;;  %v6786_v41 = vadd.f32 %v6785_v27, %v6784_v7  ;;  %v6850_v24 = vadd.f32 %v6849_v50, %v6848_v42 }
 0x23c   : > { %v2239_v35 = vadd.f32 %v6847_v6, %v2142_v59  ;;  %v2145_v56 = vadd.f32 %v6786_v41, %v9425_v58 }
 0x23e   : > { %v2242_v47 = vadd.f32 %v6850_v24, %v2145_v56  ;;  %v6787_v25 = vpop.f32.mrb[36].mxu0  ;;  %v6851_v45 = vpop.f32.mrb[36].mxu1 }
 0x23f   : > { %v6788_v37 = vpop.f32.mrb[37].mxu0  ;;  %v6852_v5 = vpop.f32.mrb[37].mxu1 }
 0x240   : > { %v6789_v1 = vadd.f32 %v6788_v37, %v6787_v25  ;;  %v6853_v30 = vadd.f32 %v6852_v5, %v6851_v45  ;;  %v6790_v49 = vpop.f32.mrb[38].mxu0  ;;  %v6854_v26 = vpop.f32.mrb[38].mxu1  ;;  %v2886_v22 = vpack.c.bf16 %v2242_v47, %v2239_v35 }
 0x241   : > { %v6791_v14 = vpop.f32.mrb[39].mxu0  ;;  %v6855_v0 = vpop.f32.mrb[39].mxu1 }
 0x242   : > { %v2150_v38 = vadd.f32 %v6789_v1, %v9425_v58  ;;  %v6792_v57 = vadd.f32 %v6791_v14, %v6790_v49  ;;  %v6856_v7 = vadd.f32 %v6855_v0, %v6854_v26  ;;  %7101 = vmatprep.subr.bf16.mxu0 %v2886_v22 }
 0x243   : > { %7102 = vmatpush3.bf16.xpose.msra.mxu0 %v2886_v22 }
 0x244   : > { %v2247_v50 = vadd.f32 %v6853_v30, %v2150_v38  ;;  %v2153_v24 = vadd.f32 %v6792_v57, %v9425_v58 }
 0x246   : > { %v2250_v56 = vadd.f32 %v6856_v7, %v2153_v24  ;;  %v6793_v41 = vpop.f32.mrb[40].mxu0  ;;  %v6857_v59 = vpop.f32.mrb[40].mxu1 }
 0x247   : > { %v6794_v6 = vpop.f32.mrb[41].mxu0  ;;  %v6858_v25 = vpop.f32.mrb[41].mxu1 }
 0x248   : > { %v6795_v5 = vadd.f32 %v6794_v6, %v6793_v41  ;;  %v6859_v45 = vadd.f32 %v6858_v25, %v6857_v59  ;;  %v6796_v37 = vpop.f32.mrb[42].mxu0  ;;  %v6860_v47 = vpop.f32.mrb[42].mxu1  ;;  %v2887_v35 = vpack.c.bf16 %v2250_v56, %v2247_v50 }
 0x249   : > { %v6797_v42 = vpop.f32.mrb[43].mxu0  ;;  %v6861_v27 = vpop.f32.mrb[43].mxu1 }
 0x24a   : > { %v2158_v1 = vadd.f32 %v6795_v5, %v9425_v58  ;;  %v6798_v0 = vadd.f32 %v6797_v42, %v6796_v37  ;;  %v6862_v49 = vadd.f32 %v6861_v27, %v6860_v47  ;;  %7103 = vmatprep.subr.bf16.mxu0 %v2887_v35 }
 0x24b   : > { %7104 = vmatpush3.bf16.xpose.msra.mxu0 %v2887_v35 }
 0x24c   : > { %v2255_v30 = vadd.f32 %v6859_v45, %v2158_v1  ;;  %v2161_v38 = vadd.f32 %v6798_v0, %v9425_v58 }
 0x24e   : > { %v2258_v26 = vadd.f32 %v6862_v49, %v2161_v38  ;;  %v6799_v22 = vpop.f32.mrb[44].mxu0  ;;  %v6863_v14 = vpop.f32.mrb[44].mxu1 }
 0x24f   : > { %v6800_v57 = vpop.f32.mrb[45].mxu0  ;;  %v6864_v7 = vpop.f32.mrb[45].mxu1 }
 0x250   : > { %v6801_v24 = vadd.f32 %v6800_v57, %v6799_v22  ;;  %v6865_v41 = vadd.f32 %v6864_v7, %v6863_v14  ;;  %v6802_v59 = vpop.f32.mrb[46].mxu0  ;;  %v6866_v50 = vpop.f32.mrb[46].mxu1  ;;  %v2888_v56 = vpack.c.bf16 %v2258_v26, %v2255_v30 }
 0x251   : > { %v6803_v6 = vpop.f32.mrb[47].mxu0  ;;  %v6867_v25 = vpop.f32.mrb[47].mxu1 }
 0x252   : > { %v2166_v5 = vadd.f32 %v6801_v24, %v9425_v58  ;;  %v6804_v37 = vadd.f32 %v6803_v6, %v6802_v59  ;;  %v6868_v47 = vadd.f32 %v6867_v25, %v6866_v50  ;;  %7105 = vmatprep.subr.bf16.mxu0 %v2888_v56 }
 0x253   : > { %7106 = vmatpush3.bf16.xpose.msra.mxu0 %v2888_v56 }
 0x254   : > { %v2263_v45 = vadd.f32 %v6865_v41, %v2166_v5  ;;  %v2169_v35 = vadd.f32 %v6804_v37, %v9425_v58 }
 0x256   : > { %v2266_v42 = vadd.f32 %v6868_v47, %v2169_v35  ;;  %v6805_v27 = vpop.f32.mrb[48].mxu0  ;;  %v6869_v1 = vpop.f32.mrb[48].mxu1 }
 0x257   : > { %v6806_v0 = vpop.f32.mrb[49].mxu0  ;;  %v6870_v49 = vpop.f32.mrb[49].mxu1 }
 0x258   : > { %v6807_v38 = vadd.f32 %v6806_v0, %v6805_v27  ;;  %v6871_v22 = vadd.f32 %v6870_v49, %v6869_v1  ;;  %v6808_v14 = vpop.f32.mrb[50].mxu0  ;;  %v6872_v30 = vpop.f32.mrb[50].mxu1  ;;  %v2889_v26 = vpack.c.bf16 %v2266_v42, %v2263_v45 }
 0x259   : > { %v6809_v57 = vpop.f32.mrb[51].mxu0  ;;  %v6873_v7 = vpop.f32.mrb[51].mxu1 }
 0x25a   : > { %v2174_v24 = vadd.f32 %v6807_v38, %v9425_v58  ;;  %v6810_v59 = vadd.f32 %v6809_v57, %v6808_v14  ;;  %v6874_v50 = vadd.f32 %v6873_v7, %v6872_v30  ;;  %7107 = vmatprep.subr.bf16.mxu0 %v2889_v26 }
 0x25b   : > { %7108 = vmatpush3.bf16.xpose.msra.mxu0 %v2889_v26 }
 0x25c   : > { %v2271_v41 = vadd.f32 %v6871_v22, %v2174_v24  ;;  %v2177_v56 = vadd.f32 %v6810_v59, %v9425_v58 }
 0x25e   : > { %v2274_v6 = vadd.f32 %v6874_v50, %v2177_v56  ;;  %v6811_v25 = vpop.f32.mrb[52].mxu0  ;;  %v6875_v5 = vpop.f32.mrb[52].mxu1 }
 0x25f   : > { %v6812_v37 = vpop.f32.mrb[53].mxu0  ;;  %v6876_v47 = vpop.f32.mrb[53].mxu1 }
 0x260   : > { %v6813_v35 = vadd.f32 %v6812_v37, %v6811_v25  ;;  %v6877_v27 = vadd.f32 %v6876_v47, %v6875_v5  ;;  %v6814_v1 = vpop.f32.mrb[54].mxu0  ;;  %v6878_v45 = vpop.f32.mrb[54].mxu1  ;;  %v2890_v42 = vpack.c.bf16 %v2274_v6, %v2271_v41 }
 0x261   : > { %v6815_v0 = vpop.f32.mrb[55].mxu0  ;;  %v6879_v49 = vpop.f32.mrb[55].mxu1 }
 0x262   : > { %v2182_v38 = vadd.f32 %v6813_v35, %v9425_v58  ;;  %v6816_v14 = vadd.f32 %v6815_v0, %v6814_v1  ;;  %v6880_v30 = vadd.f32 %v6879_v49, %v6878_v45  ;;  %7109 = vmatprep.subr.bf16.mxu0 %v2890_v42 }
 0x263   : > { %7110 = vmatpush3.bf16.xpose.msra.mxu0 %v2890_v42 }
 0x264   : > { %v2279_v22 = vadd.f32 %v6877_v27, %v2182_v38  ;;  %v2185_v26 = vadd.f32 %v6816_v14, %v9425_v58 }
 0x266   : > { %v2282_v57 = vadd.f32 %v6880_v30, %v2185_v26  ;;  %v6817_v7 = vpop.f32.mrb[56].mxu0  ;;  %v6881_v24 = vpop.f32.mrb[56].mxu1 }
 0x267   : > { %v6818_v59 = vpop.f32.mrb[57].mxu0  ;;  %v6882_v50 = vpop.f32.mrb[57].mxu1 }
 0x268   : > { %v6819_v56 = vadd.f32 %v6818_v59, %v6817_v7  ;;  %v6883_v25 = vadd.f32 %v6882_v50, %v6881_v24  ;;  %v6820_v5 = vpop.f32.mrb[58].mxu0  ;;  %v6884_v41 = vpop.f32.mrb[58].mxu1  ;;  %v2891_v6 = vpack.c.bf16 %v2282_v57, %v2279_v22 }
 0x269   : > { %v6821_v37 = vpop.f32.mrb[59].mxu0  ;;  %v6885_v47 = vpop.f32.mrb[59].mxu1 }
 0x26a   : > { %v2190_v35 = vadd.f32 %v6819_v56, %v9425_v58  ;;  %v6822_v1 = vadd.f32 %v6821_v37, %v6820_v5  ;;  %v6886_v45 = vadd.f32 %v6885_v47, %v6884_v41  ;;  %7111 = vmatprep.subr.bf16.mxu0 %v2891_v6 }
 0x26b   : > { %7112 = vmatpush3.bf16.xpose.msra.mxu0 %v2891_v6 }
 0x26c   : > { %v2287_v27 = vadd.f32 %v6883_v25, %v2190_v35  ;;  %v2193_v42 = vadd.f32 %v6822_v1, %v9425_v58 }
 0x26e   : > { %v2290_v0 = vadd.f32 %v6886_v45, %v2193_v42  ;;  %v6823_v49 = vpop.f32.mrb[60].mxu0  ;;  %v6887_v38 = vpop.f32.mrb[60].mxu1 }
 0x26f   : > { %v6824_v14 = vpop.f32.mrb[61].mxu0  ;;  %v6888_v30 = vpop.f32.mrb[61].mxu1 }
 0x270   : > { %v6825_v26 = vadd.f32 %v6824_v14, %v6823_v49  ;;  %v6889_v7 = vadd.f32 %v6888_v30, %v6887_v38  ;;  %v6826_v24 = vpop.f32.mrb[62].mxu0  ;;  %v6890_v22 = vpop.f32.mrb[62].mxu1  ;;  %v2892_v57 = vpack.c.bf16 %v2290_v0, %v2287_v27 }
 0x271   : > { %v6827_v59 = vpop.f32.mrb[63].mxu0  ;;  %v6891_v50 = vpop.f32.mrb[63].mxu1 }
 0x272   : > { %v2198_v56 = vadd.f32 %v6825_v26, %v9425_v58  ;;  %v6828_v5 = vadd.f32 %v6827_v59, %v6826_v24  ;;  %v6892_v41 = vadd.f32 %v6891_v50, %v6890_v22  ;;  %7113 = vmatprep.subr.bf16.mxu0 %v2892_v57  ;;  %v10492_v24 = vpack.c.bf16 %v9244_v33, %v9236_v17  ;;  %v9458_v17 = vld [vmem:[%s10391_s6] ss:$0 sm:$0xff] }
 0x273   : > { %7114 = vmatpush3.bf16.xpose.msra.mxu0 %v2892_v57 }
 0x274   : > { %v2295_v25 = vadd.f32 %v6889_v7, %v2198_v56  ;;  %v2201_v6 = vadd.f32 %v6828_v5, %v9425_v58  ;;  %v10491_v7 = vpack.c.bf16 %v9212_v51, %v9204_v43  ;;  %v10493_v5 = vpack.c.bf16 %v9276_v15, %v9268_v8 }
 0x275   : > { %v10495_v8 = vpack.c.bf16 %v9340_v61, %v9332_v62 }
 0x276   : > { %v2298_v37 = vadd.f32 %v6892_v41, %v2201_v6  ;;  %v6909_v35 = vpop.f32.mrb[64].mxu0 }
 0x277   : > { %v6910_v1 = vpop.f32.mrb[65].mxu0 }
 0x278   : > { %v2893_v47 = vpack.c.bf16 %v2298_v37, %v2295_v25  ;;  %v6911_v45 = vadd.f32 %v6910_v1, %v6909_v35  ;;  %v6912_v42 = vpop.f32.mrb[66].mxu0  ;;  %v10494_v25 = vpack.c.bf16 %v9308_v2, %v9300_v46  ;;  %v10496_v46 = vpack.c.bf16 %v9372_v9, %v9364_v63 }
 0x279   : > { %v6913_v27 = vpop.f32.mrb[67].mxu0  ;;  %v10497_v63 = vpack.c.bf16 %v9404_v29, %v9396_v12 }
 0x27a   : > { %7115 = vmatprep.subr.bf16.mxu0 %v2893_v47  ;;  %v6914_v0 = vadd.f32 %v6913_v27, %v6912_v42  ;;  %v2599_v2 = vadd.f32 %v6911_v45, %v9458_v17  ;;  %v10498_v45 = vpack.c.bf16 %v9188_v4, %v9182_v20 }
 0x27b   : > { %7116 = vmatpush3.bf16.xpose.msra.mxu0 %v2893_v47 }
 0x27c   : > { %v2602_v1 = vadd.f32 %v6914_v0, %v9458_v17 }
 0x27e   : > { %v6915_v49 = vpop.f32.mrb[68].mxu0 }
 0x27f   : > { %v6916_v38 = vpop.f32.mrb[69].mxu0 }
 0x280   : > { %v6917_v14 = vadd.f32 %v6916_v38, %v6915_v49  ;;  %v6918_v30 = vpop.f32.mrb[70].mxu0 }
 0x281   : > { %v6919_v26 = vpop.f32.mrb[71].mxu0 }
 0x282   : > { %7118 = vmatmul.mubr.bf16.vlgmr.msra.gmra.mrb[96].mxu0 %v10491_v7  ;;  %v6920_v58 = vadd.f32 %v6919_v26, %v6918_v30  ;;  %v2607_v0 = vadd.f32 %v6917_v14, %v9458_v17  ;;  %v10499_v14 = vpack.c.bf16 %v9218_v55, %v9210_v48 }
 0x283   : > { %7121 = vmatprep.mubr.bf16.mxu0 %v10492_v24  ;;  %v6973_v47 = vpop.f32.mrb[64].mxu1 }
 0x284   : > { %v6974_v35 = vpop.f32.mrb[65].mxu1 }
 0x285   : > { %v6975_v42 = vadd.f32 %v6974_v35, %v6973_v47  ;;  %v6976_v27 = vpop.f32.mrb[66].mxu1 }
 0x286   : > { %v6921_v22 = vpop.f32.mrb[72].mxu0  ;;  %v6977_v49 = vpop.f32.mrb[67].mxu1 }
 0x287   : > { %v6922_v57 = vpop.f32.mrb[73].mxu0  ;;  %v2696_v30 = vadd.f32 %v6975_v42, %v2599_v2  ;;  %v6978_v26 = vadd.f32 %v6977_v49, %v6976_v27 }
 0x288   : > { %v6923_v59 = vadd.f32 %v6922_v57, %v6921_v22  ;;  %v6924_v50 = vpop.f32.mrb[74].mxu0 }
 0x289   : > { %v6925_v56 = vpop.f32.mrb[75].mxu0  ;;  %v2699_v24 = vadd.f32 %v6978_v26, %v2602_v1 }
 0x28a   : > { %7122 = vmatmul.mubr.bf16.gmra.mrb[100].mxu0 %v10493_v5  ;;  %v6926_v41 = vadd.f32 %v6925_v56, %v6924_v50  ;;  %v2610_v5 = vadd.f32 %v6920_v58, %v9458_v17  ;;  %v10500_v58 = vpack.c.bf16 %v9250_v36, %v9242_v32  ;;  %v2615_v47 = vadd.f32 %v6923_v59, %v9458_v17 }
 0x28b   : > { %7125 = vmatprep.mubr.bf16.mxu0 %v10494_v25  ;;  %v6979_v57 = vpop.f32.mrb[68].mxu1  ;;  %v2894_v50 = vpack.c.bf16 %v2699_v24, %v2696_v30  ;;  %v10501_v59 = vpack.c.bf16 %v9282_v40, %v9274_v13 }
 0x28c   : > { %v6980_v56 = vpop.f32.mrb[69].mxu1  ;;  %v2618_v27 = vadd.f32 %v6926_v41, %v9458_v17  ;;  %v10502_v41 = vpack.c.bf16 %v9314_v11, %v9306_v60 }
 0x28d   : > { %v6981_v25 = vadd.f32 %v6980_v56, %v6979_v57  ;;  %7181 = vmatprep.subr.bf16.mxu1 %v2894_v50 }
 0x28e   : > { %v6927_v43 = vpop.f32.mrb[76].mxu0  ;;  %7182 = vmatpush3.bf16.msra.mxu1 %v2894_v50 }
 0x28f   : > { %v6928_v51 = vpop.f32.mrb[77].mxu0  ;;  %v2704_v29 = vadd.f32 %v6981_v25, %v2607_v0 }
 0x290   : > { %v9460_v33 = vadd.f32 %v6928_v51, %v6927_v43  ;;  %v6930_v6 = vpop.f32.mrb[78].mxu0  ;;  %v6982_v43 = vpop.f32.mrb[70].mxu1 }
 0x291   : > { %v6931_v37 = vpop.f32.mrb[79].mxu0  ;;  %v6983_v51 = vpop.f32.mrb[71].mxu1 }
 0x292   : > { %7126 = vmatmul.mubr.bf16.gmra.mrb[104].mxu0 %v10495_v8  ;;  %v9465_v15 = vadd.f32 %v6931_v37, %v6930_v6  ;;  %v6984_v6 = vadd.f32 %v6983_v51, %v6982_v43 }
 0x293   : > { %7129 = vmatprep.mubr.bf16.mxu0 %v10496_v46  ;;  %v6985_v35 = vpop.f32.mrb[72].mxu1 }
 0x294   : > { %v2707_v4 = vadd.f32 %v6984_v6, %v2610_v5  ;;  %v6986_v42 = vpop.f32.mrb[73].mxu1  ;;  %v2626_v50 = vadd.f32 %v9465_v15, %v9458_v17  ;;  %v10504_v15 = vpack.c.bf16 %v9378_v53, %v9370_v31  ;;  %v10505_v31 = vpack.c.bf16 %v9410_v39, %v9402_v54 }
 0x295   : > { %v6987_v49 = vadd.f32 %v6986_v42, %v6985_v35  ;;  %v10506_v53 = vpack.c.bf16 %v9184_v23, %v9178_v16  ;;  %v10507_v16 = vpack.c.bf16 %v9214_v52, %v9206_v44  ;;  %v10508_v23 = vpack.c.bf16 %v9246_v34, %v9238_v19  ;;  %v10510_v19 = vld [vmem:[#allocation27_spill] sm:$0xff] }
 0x296   : > { %v6933_v38 = vpop.f32.mrb[80].mxu0  ;;  %v2895_v1 = vpack.c.bf16 %v2707_v4, %v2704_v29  ;;  %v10509_v52 = vpack.c.bf16 %v9278_v21, %v9270_v10  ;;  %v10511_v34 = vpack.c.bf16 %v9310_v3, %v10510_v19  ;;  %v10512_v21 = vld [vmem:[#allocation31_spill] sm:$0xff] }
 0x297   : > { %v6934_v62 = vpop.f32.mrb[81].mxu0  ;;  %v2712_v55 = vadd.f32 %v6987_v49, %v2615_v47  ;;  %v10515_v3 = vld [vmem:[#allocation35_spill] sm:$0xff] }
 0x298   : > { %v9472_v61 = vadd.f32 %v6934_v62, %v6933_v38  ;;  %v6936_v7 = vpop.f32.mrb[82].mxu0  ;;  %v6988_v38 = vpop.f32.mrb[74].mxu1  ;;  %7183 = vmatprep.subr.bf16.mxu1 %v2895_v1 }
 0x299   : > { %v6937_v22 = vpop.f32.mrb[83].mxu0  ;;  %v6989_v30 = vpop.f32.mrb[75].mxu1  ;;  %7184 = vmatpush3.bf16.msra.mxu1 %v2895_v1 }
 0x29a   : > { %7130 = vmatmul.mubr.bf16.gmra.mrb[108].mxu0 %v10497_v63  ;;  %v9477_v9 = vadd.f32 %v6937_v22, %v6936_v7  ;;  %v6990_v26 = vadd.f32 %v6989_v30, %v6988_v38  ;;  %v2623_v63 = vadd.f32 %v9460_v33, %v9458_v17  ;;  %v10503_v33 = vpack.c.bf16 %v9346_v18, %v9338_v28 }
 0x29b   : > { %7133 = vmatprep.mubr.bf16.mxu0 %v10498_v45  ;;  %v6991_v45 = vpop.f32.mrb[76].mxu1 }
 0x29c   : > { %v2715_v32 = vadd.f32 %v6990_v26, %v2618_v27  ;;  %v6992_v57 = vpop.f32.mrb[77].mxu1 }
 0x29d   : > { %v6993_v56 = vadd.f32 %v6992_v57, %v6991_v45  ;;  %v6994_v5 = vpop.f32.mrb[78].mxu1 }
 0x29e   : > { %v6939_v12 = vpop.f32.mrb[84].mxu0  ;;  %v2896_v0 = vpack.c.bf16 %v2715_v32, %v2712_v55  ;;  %v6995_v25 = vpop.f32.mrb[79].mxu1 }
 0x29f   : > { %v6940_v37 = vpop.f32.mrb[85].mxu0  ;;  %v2720_v40 = vadd.f32 %v6993_v56, %v2623_v63  ;;  %v6996_v43 = vadd.f32 %v6995_v25, %v6994_v5 }
 0x2a0   : > { %v9484_v8 = vadd.f32 %v6940_v37, %v6939_v12  ;;  %v6942_v20 = vpop.f32.mrb[86].mxu0  ;;  %7185 = vmatprep.subr.bf16.mxu1 %v2896_v0  ;;  %v2631_v37 = vadd.f32 %v9472_v61, %v9458_v17 }
 0x2a1   : > { %v6943_v46 = vpop.f32.mrb[87].mxu0  ;;  %7186 = vmatpush3.bf16.msra.mxu1 %v2896_v0  ;;  %v2723_v12 = vadd.f32 %v6996_v43, %v2626_v50 }
 0x2a2   : > { %7134 = vmatmul.mubr.bf16.gmra.mrb[112].mxu0 %v10499_v14  ;;  %v9489_v2 = vadd.f32 %v6943_v46, %v6942_v20  ;;  %v2634_v14 = vadd.f32 %v9477_v9, %v9458_v17  ;;  %v2639_v61 = vadd.f32 %v9484_v8, %v9458_v17 }
 0x2a3   : > { %7137 = vmatprep.mubr.bf16.mxu0 %v10500_v58  ;;  %v6997_v20 = vpop.f32.mrb[80].mxu1  ;;  %v2897_v4 = vpack.c.bf16 %v2723_v12, %v2720_v40  ;;  %v10513_v40 = vld [vmem:[#allocation30_spill] sm:$0xff] }
 0x2a4   : > { %v6998_v46 = vpop.f32.mrb[81].mxu1  ;;  %v2642_v49 = vadd.f32 %v9489_v2, %v9458_v17  ;;  %v10514_v43 = vpack.c.bf16 %v10512_v21, %v10513_v40  ;;  %v10519_v12 = vld [vmem:[#allocation38_spill] sm:$0xff] }
 0x2a5   : > { %v6999_v58 = vadd.f32 %v6998_v46, %v6997_v20  ;;  %v7000_v47 = vpop.f32.mrb[82].mxu1  ;;  %7187 = vmatprep.subr.bf16.mxu1 %v2897_v4  ;;  %v10525_v20 = vld [vmem:[#allocation21_spill] sm:$0xff]  ;;  %v10527_v46 = vld [vmem:[#allocation24_spill] sm:$0xff] }
 0x2a6   : > { %v6945_v48 = vpop.f32.mrb[88].mxu0  ;;  %v7001_v35 = vpop.f32.mrb[83].mxu1  ;;  %7188 = vmatpush3.bf16.msra.mxu1 %v2897_v4 }
 0x2a7   : > { %v6946_v62 = vpop.f32.mrb[89].mxu0  ;;  %v2728_v28 = vadd.f32 %v6999_v58, %v2631_v37  ;;  %v7002_v18 = vadd.f32 %v7001_v35, %v7000_v47  ;;  %v10524_v37 = vld [vmem:[#allocation22_spill] sm:$0xff]  ;;  %v10531_v35 = vld [vmem:[#allocation25_spill] sm:$0xff] }
 0x2a8   : > { %v6947_v7 = vadd.f32 %v6946_v62, %v6945_v48  ;;  %v6948_v24 = vpop.f32.mrb[90].mxu0  ;;  %v10526_v4 = vpack.c.bf16 %v10524_v37, %v10525_v20  ;;  %v10530_v47 = vld [vmem:[#allocation26_spill] sm:$0xff] }
 0x2a9   : > { %v6949_v36 = vpop.f32.mrb[91].mxu0  ;;  %v2731_v1 = vadd.f32 %v7002_v18, %v2634_v14  ;;  %v10528_v14 = vld [vmem:[#allocation23_spill] sm:$0xff]  ;;  %v10533_v18 = vld [vmem:[#allocation29_spill] sm:$0xff] }
 0x2aa   : > { %7138 = vmatmul.mubr.bf16.gmra.mrb[116].mxu0 %v10501_v59  ;;  %v6950_v22 = vadd.f32 %v6949_v36, %v6948_v24  ;;  %v2647_v8 = vadd.f32 %v6947_v7, %v9458_v17  ;;  %v10529_v58 = vpack.c.bf16 %v10527_v46, %v10528_v14 }
 0x2ab   : > { %7141 = vmatprep.mubr.bf16.mxu0 %v10502_v41  ;;  %v7003_v9 = vpop.f32.mrb[84].mxu1  ;;  %v2898_v42 = vpack.c.bf16 %v2731_v1, %v2728_v28  ;;  %v10532_v28 = vpack.c.bf16 %v10530_v47, %v10531_v35  ;;  %v10534_v1 = vld [vmem:[#allocation28_spill] sm:$0xff] }
 0x2ac   : > { %v7004_v27 = vpop.f32.mrb[85].mxu1  ;;  %v2650_v24 = vadd.f32 %v6950_v22, %v9458_v17 }
 0x2ad   : > { %v7005_v38 = vadd.f32 %v7004_v27, %v7003_v9  ;;  %v7006_v30 = vpop.f32.mrb[86].mxu1  ;;  %7189 = vmatprep.subr.bf16.mxu1 %v2898_v42  ;;  %v10540_v27 = vld [vmem:[#allocation36_spill] sm:$0xff] }
 0x2ae   : > { %v6951_v13 = vpop.f32.mrb[92].mxu0  ;;  %v7007_v48 = vpop.f32.mrb[87].mxu1  ;;  %7190 = vmatpush3.bf16.msra.mxu1 %v2898_v42  ;;  %v10539_v42 = vld [vmem:[#allocation37_spill] sm:$0xff] }
 0x2af   : > { %v6952_v51 = vpop.f32.mrb[93].mxu0  ;;  %v2736_v54 = vadd.f32 %v7005_v38, %v2639_v61  ;;  %v7008_v39 = vadd.f32 %v7007_v48, %v7006_v30  ;;  %v10537_v61 = vld [vmem:[#allocation32_spill] sm:$0xff]  ;;  %v10542_v38 = vld [vmem:[#allocation41_spill] sm:$0xff] }
 0x2b0   : > { %v6953_v60 = vadd.f32 %v6952_v51, %v6951_v13  ;;  %v6954_v11 = vpop.f32.mrb[94].mxu0  ;;  %v10516_v51 = vld [vmem:[#allocation34_spill] sm:$0xff]  ;;  %v10543_v30 = vld [vmem:[#allocation40_spill] sm:$0xff] }
 0x2b1   : > { %v6955_v29 = vpop.f32.mrb[95].mxu0  ;;  %v2739_v55 = vadd.f32 %v7008_v39, %v2642_v49  ;;  %v10541_v49 = vpack.c.bf16 %v10539_v42, %v10540_v27  ;;  %v10544_v48 = vpack.c.bf16 %v10542_v38, %v10543_v30 }
 0x2b2   : > { %7142 = vmatmul.mubr.bf16.gmra.mrb[120].mxu0 %v10503_v33  ;;  %v6956_v6 = vadd.f32 %v6955_v29, %v6954_v11  ;;  %v2655_v7 = vadd.f32 %v6953_v60, %v9458_v17  ;;  %v10517_v60 = vpack.c.bf16 %v10515_v3, %v10516_v51  ;;  %v10521_v33 = vld [vmem:[#allocation20_spill] sm:$0xff] }
 0x2b3   : > { %7145 = vmatprep.mubr.bf16.mxu0 %v10504_v15  ;;  %v7009_v26 = vpop.f32.mrb[88].mxu1  ;;  %v2899_v2 = vpack.c.bf16 %v2739_v55, %v2736_v54 }
 0x2b4   : > { %v7010_v62 = vpop.f32.mrb[89].mxu1  ;;  %v2658_v57 = vadd.f32 %v6956_v6, %v9458_v17  ;;  %v10518_v17 = vld [vmem:[#allocation39_spill] sm:$0xff] }
 0x2b5   : > { %v7011_v32 = vadd.f32 %v7010_v62, %v7009_v26  ;;  %v7012_v36 = vpop.f32.mrb[90].mxu1  ;;  %7191 = vmatprep.subr.bf16.mxu1 %v2899_v2  ;;  %v10520_v29 = vpack.c.bf16 %v10518_v17, %v10519_v12  ;;  %v10522_v6 = vld [vmem:[#allocation19_spill] sm:$0xff] }
 0x2b6   : > { %v7013_v59 = vpop.f32.mrb[91].mxu1  ;;  %7192 = vmatpush3.bf16.msra.mxu1 %v2899_v2  ;;  %v10523_v15 = vpack.c.bf16 %v10521_v33, %v10522_v6 }
 0x2b7   : > { %v2744_v41 = vadd.f32 %v7011_v32, %v2647_v8  ;;  %v7014_v63 = vadd.f32 %v7013_v59, %v7012_v36 }
 0x2b9   : > { %v2747_v44 = vadd.f32 %v7014_v63, %v2650_v24 }
 0x2ba   : > { %7146 = vmatmul.mubr.bf16.gmra.mrb[124].mxu0 %v10505_v31  ;;  %v10535_v31 = vpack.c.bf16 %v10533_v18, %v10534_v1 }
 0x2bb   : > { %7149 = vmatprep.mubr.bf16.mxu0 %v10506_v53  ;;  %v7015_v45 = vpop.f32.mrb[92].mxu1  ;;  %v2900_v22 = vpack.c.bf16 %v2747_v44, %v2744_v41  ;;  %v10536_v53 = vld [vmem:[#allocation33_spill] sm:$0xff] }
 0x2bc   : > { %v7016_v0 = vpop.f32.mrb[93].mxu1  ;;  %v10538_v9 = vpack.c.bf16 %v10536_v53, %v10537_v61 }
 0x2bd   : > { %v7017_v50 = vadd.f32 %v7016_v0, %v7015_v45  ;;  %v7018_v56 = vpop.f32.mrb[94].mxu1  ;;  %7193 = vmatprep.subr.bf16.mxu1 %v2900_v22 }
 0x2be   : > { %v7019_v5 = vpop.f32.mrb[95].mxu1  ;;  %7194 = vmatpush3.bf16.msra.mxu1 %v2900_v22 }
 0x2bf   : > { %v2752_v25 = vadd.f32 %v7017_v50, %v2655_v7  ;;  %v7020_v13 = vadd.f32 %v7019_v5, %v7018_v56 }
 0x2c1   : > { %v2755_v10 = vadd.f32 %v7020_v13, %v2658_v57 }
 0x2c2   : > { %7150 = vmatmul.mubr.bf16.gmra.mrb[128].mxu0 %v10507_v16 }
 0x2c3   : > { %7153 = vmatprep.mubr.bf16.mxu0 %v10508_v23  ;;  %v2901_v11 = vpack.c.bf16 %v2755_v10, %v2752_v25 }
 0x2c5   : > { %7195 = vmatprep.subr.bf16.mxu1 %v2901_v11 }
 0x2c6   : > { %7196 = vmatpush3.bf16.msra.mxu1 %v2901_v11 }
 0x2ca   : > { %7154 = vmatmul.mubr.bf16.gmra.mrb[132].mxu0 %v10509_v52 }
 0x2cb   : > { %7157 = vmatprep.mubr.bf16.mxu0 %v10511_v34 }
 0x2d2   : > { %7158 = vmatmul.mubr.bf16.gmra.mrb[136].mxu0 %v10514_v43 }
 0x2d3   : > { %7161 = vmatprep.mubr.bf16.mxu0 %v10517_v60 }
 0x2da   : > { %7162 = vmatmul.mubr.bf16.gmra.mrb[140].mxu0 %v10520_v29 }
 0x2db   : > { %7165 = vmatprep.mubr.bf16.mxu0 %v10523_v15 }
 0x2e2   : > { %7166 = vmatmul.mubr.bf16.gmra.mrb[144].mxu0 %v10526_v4 }
 0x2e3   : > { %7169 = vmatprep.mubr.bf16.mxu0 %v10529_v58 }
 0x2ea   : > { %7170 = vmatmul.mubr.bf16.gmra.mrb[148].mxu0 %v10532_v28 }
 0x2eb   : > { %7173 = vmatprep.mubr.bf16.mxu0 %v10535_v31 }
 0x2f2   : > { %7174 = vmatmul.mubr.bf16.gmra.mrb[152].mxu0 %v10538_v9 }
 0x2f3   : > { %7177 = vmatprep.mubr.bf16.mxu0 %v10541_v49 }
 0x2fa   : > { %7178 = vmatmul.mubr.bf16.gmra.mrb[156].mxu0 %v10544_v48 }
 0x355   : > { %v9575_v54 = vpop.f32.mrb[96].mxu0 }
 0x356   : > { %3291 = vmax.xlane.f32.xlu1 %v9575_v54  ;;  %v9578_v39 = vpop.f32.mrb[97].mxu0 }
 0x357   : > { %3287 = vmax.xlane.f32.xlu0 %v9578_v39  ;;  %v9581_v55 = vpop.f32.mrb[98].mxu0 }
 0x358   : > { %v9583_v16 = vpop.f32.mrb[99].mxu0 }
 0x35a   : > { %3293 = vmax.xlane.f32.xlu1 %v9581_v55 }
 0x35b   : > { %3289 = vmax.xlane.f32.xlu0 %v9583_v16 }
 0x35d   : > { %v9587_v23 = vpop.f32.mrb[100].mxu0 }
 0x35e   : > { %v9589_v8 = vpop.f32.mrb[101].mxu0 }
 0x35f   : > { %3295 = vmax.xlane.f32.xlu0 %v9589_v8  ;;  %v9592_v26 = vpop.f32.mrb[102].mxu0 }
 0x360   : > { %v9594_v2 = vpop.f32.mrb[103].mxu0 }
 0x361   : > { %3297 = vmax.xlane.f32.xlu1 %v9594_v2 }
 0x363   : > { %3299 = vmax.xlane.f32.xlu0 %v9587_v23 }
 0x365   : > { %3301 = vmax.xlane.f32.xlu1 %v9592_v26  ;;  %v9599_v62 = vpop.f32.mrb[104].mxu0 }
 0x366   : > { %v9601_v24 = vpop.f32.mrb[105].mxu0 }
 0x367   : > { %3303 = vmax.xlane.f32.xlu0 %v9601_v24  ;;  %v9604_v32 = vpop.f32.mrb[106].mxu0 }
 0x368   : > { %v9606_v36 = vpop.f32.mrb[107].mxu0 }
 0x369   : > { %3305 = vmax.xlane.f32.xlu1 %v9606_v36 }
 0x36b   : > { %3307 = vmax.xlane.f32.xlu0 %v9599_v62 }
 0x36d   : > { %3309 = vmax.xlane.f32.xlu1 %v9604_v32  ;;  %v9611_v59 = vpop.f32.mrb[108].mxu0 }
 0x36e   : > { %v9613_v41 = vpop.f32.mrb[109].mxu0 }
 0x36f   : > { %3311 = vmax.xlane.f32.xlu0 %v9613_v41  ;;  %v9616_v63 = vpop.f32.mrb[110].mxu0 }
 0x370   : > { %v9618_v44 = vpop.f32.mrb[111].mxu0 }
 0x371   : > { %3313 = vmax.xlane.f32.xlu1 %v9618_v44 }
 0x373   : > { %3315 = vmax.xlane.f32.xlu0 %v9611_v59 }
 0x375   : > { %3317 = vmax.xlane.f32.xlu1 %v9616_v63  ;;  %v9623_v52 = vpop.f32.mrb[112].mxu0 }
 0x376   : > { %v9625_v19 = vpop.f32.mrb[113].mxu0 }
 0x377   : > { %3319 = vmax.xlane.f32.xlu0 %v9625_v19  ;;  %v9628_v34 = vpop.f32.mrb[114].mxu0 }
 0x378   : > { %v9630_v7 = vpop.f32.mrb[115].mxu0 }
 0x379   : > { %3321 = vmax.xlane.f32.xlu1 %v9630_v7 }
 0x37b   : > { %3323 = vmax.xlane.f32.xlu0 %v9623_v52 }
 0x37d   : > { %3325 = vmax.xlane.f32.xlu1 %v9628_v34  ;;  %v9635_v45 = vpop.f32.mrb[116].mxu0 }
 0x37e   : > { %v9637_v22 = vpop.f32.mrb[117].mxu0 }
 0x37f   : > { %3327 = vmax.xlane.f32.xlu0 %v9637_v22  ;;  %v9640_v0 = vpop.f32.mrb[118].mxu0 }
 0x380   : > { %v9642_v57 = vpop.f32.mrb[119].mxu0 }
 0x381   : > { %3329 = vmax.xlane.f32.xlu1 %v9642_v57 }
 0x383   : > { %3331 = vmax.xlane.f32.xlu0 %v9635_v45 }
 0x385   : > { %3333 = vmax.xlane.f32.xlu1 %v9640_v0  ;;  %v9647_v50 = vpop.f32.mrb[120].mxu0 }
 0x386   : > { %v9649_v56 = vpop.f32.mrb[121].mxu0 }
 0x387   : > { %3335 = vmax.xlane.f32.xlu0 %v9649_v56  ;;  %v9652_v5 = vpop.f32.mrb[122].mxu0 }
 0x388   : > { %v9654_v25 = vpop.f32.mrb[123].mxu0 }
 0x389   : > { %3337 = vmax.xlane.f32.xlu1 %v9654_v25 }
 0x38b   : > { %3339 = vmax.xlane.f32.xlu0 %v9647_v50 }
 0x38d   : > { %3341 = vmax.xlane.f32.xlu1 %v9652_v5  ;;  %v9659_v13 = vpop.f32.mrb[124].mxu0 }
 0x38e   : > { %v9661_v10 = vpop.f32.mrb[125].mxu0 }
 0x38f   : > { %3347 = vmax.xlane.f32.xlu0 %v9659_v13  ;;  %v9664_v21 = vpop.f32.mrb[126].mxu0 }
 0x390   : > { %v9666_v40 = vpop.f32.mrb[127].mxu0 }
 0x391   : > { %3349 = vmax.xlane.f32.xlu1 %v9664_v21 }
 0x393   : > { %3343 = vmax.xlane.f32.xlu0 %v9661_v10 }
 0x395   : > { %3345 = vmax.xlane.f32.xlu1 %v9666_v40  ;;  %v9671_v43 = vpop.f32.mrb[128].mxu0 }
 0x396   : > { %v9673_v3 = vpop.f32.mrb[129].mxu0 }
 0x397   : > { %v9675_v51 = vpop.f32.mrb[130].mxu0 }
 0x398   : > { %v9677_v60 = vpop.f32.mrb[131].mxu0 }
 0x39d   : > { %v9679_v11 = vpop.f32.mrb[132].mxu0 }
 0x39e   : > { %v9681_v17 = vpop.f32.mrb[133].mxu0 }
 0x39f   : > { %v9683_v12 = vpop.f32.mrb[134].mxu0 }
 0x3a0   : > { %v9685_v29 = vpop.f32.mrb[135].mxu0 }
 0x3a5   : > { %v9687_v33 = vpop.f32.mrb[136].mxu0 }
 0x3a6   : > { %v9689_v6 = vpop.f32.mrb[137].mxu0 }
 0x3a7   : > { %v9691_v15 = vpop.f32.mrb[138].mxu0 }
 0x3a8   : > { %v9693_v37 = vpop.f32.mrb[139].mxu0 }
 0x3ad   : > { %v9695_v20 = vpop.f32.mrb[140].mxu0 }
 0x3ae   : > { %v9697_v4 = vpop.f32.mrb[141].mxu0 }
 0x3af   : > { %v9699_v46 = vpop.f32.mrb[142].mxu0 }
 0x3b0   : > { %v9701_v14 = vpop.f32.mrb[143].mxu0 }
 0x3b5   : > { %v9703_v58 = vpop.f32.mrb[144].mxu0 }
 0x3b6   : > { %10545 = vst [vmem:[#allocation27_spill] sm:$0xff] %v9703_v58  ;;  %v9705_v47 = vpop.f32.mrb[145].mxu0 }
 0x3b7   : > { %10546 = vst [vmem:[#allocation31_spill] sm:$0xff] %v9705_v47  ;;  %v9707_v35 = vpop.f32.mrb[146].mxu0 }
 0x3b8   : > { %10547 = vst [vmem:[#allocation30_spill] sm:$0xff] %v9707_v35  ;;  %v9709_v28 = vpop.f32.mrb[147].mxu0 }
 0x3b9   : > { %10548 = vst [vmem:[#allocation35_spill] sm:$0xff] %v9709_v28 }
 0x3bd   : > { %v9711_v18 = vpop.f32.mrb[148].mxu0 }
 0x3be   : > { %10549 = vst [vmem:[#allocation34_spill] sm:$0xff] %v9711_v18  ;;  %v9713_v1 = vpop.f32.mrb[149].mxu0 }
 0x3bf   : > { %10550 = vst [vmem:[#allocation39_spill] sm:$0xff] %v9713_v1  ;;  %v9715_v31 = vpop.f32.mrb[150].mxu0 }
 0x3c0   : > { %10551 = vst [vmem:[#allocation38_spill] sm:$0xff] %v9715_v31  ;;  %v9717_v53 = vpop.f32.mrb[151].mxu0 }
 0x3c1   : > { %10552 = vst [vmem:[#allocation20_spill] sm:$0xff] %v9717_v53 }
 0x3c5   : > { %v9719_v61 = vpop.f32.mrb[152].mxu0 }
 0x3c6   : > { %10553 = vst [vmem:[#allocation19_spill] sm:$0xff] %v9719_v61  ;;  %v9721_v9 = vpop.f32.mrb[153].mxu0 }
 0x3c7   : > { %10554 = vst [vmem:[#allocation22_spill] sm:$0xff] %v9721_v9  ;;  %v9723_v42 = vpop.f32.mrb[154].mxu0 }
 0x3c8   : > { %10555 = vst [vmem:[#allocation21_spill] sm:$0xff] %v9723_v42  ;;  %v9725_v27 = vpop.f32.mrb[155].mxu0 }
 0x3c9   : > { %10556 = vst [vmem:[#allocation24_spill] sm:$0xff] %v9725_v27 }
 0x3cd   : > { %v9727_v49 = vpop.f32.mrb[156].mxu0 }
 0x3ce   : > { %10557 = vst [vmem:[#allocation23_spill] sm:$0xff] %v9727_v49  ;;  %v9729_v38 = vpop.f32.mrb[157].mxu0 }
 0x3cf   : > { %10558 = vst [vmem:[#allocation26_spill] sm:$0xff] %v9729_v38  ;;  %v9731_v30 = vpop.f32.mrb[158].mxu0 }
 0x3d0   : > { %10559 = vst [vmem:[#allocation25_spill] sm:$0xff] %v9731_v30  ;;  %v9733_v48 = vpop.f32.mrb[159].mxu0 }
 0x3d1   : > { %10560 = vst [vmem:[#allocation29_spill] sm:$0xff] %v9733_v48 }
 0x3e3   : > { %v3292_v18 = vpop.xlane.xlu1 %3291 }
 0x3e4   : > { %v3417_v31 = vsub.f32 %v9575_v54, %v3292_v18  ;;  %v3288_v53 = vpop.xlane.xlu0 %3287 }
 0x3e5   : > { %v3415_v61 = vsub.f32 %v9578_v39, %v3288_v53 }
 0x3e6   : > { %v3483_v35 = vmul.f32 1.442695, %v3417_v31 }
 0x3e7   : > { %v3479_v1 = vmul.f32 1.442695, %v3415_v61  ;;  %v3294_v9 = vpop.xlane.xlu1 %3293 }
 0x3e8   : > { %v3418_v42 = vsub.f32 %v9581_v55, %v3294_v9  ;;  %v3290_v27 = vpop.xlane.xlu0 %3289 }
 0x3e9   : > { %8171 = vpow2.f32 %v3479_v1  ;;  %v3416_v49 = vsub.f32 %v9583_v16, %v3290_v27 }
 0x3ea   : > { %8173 = vpow2.f32 %v3483_v35  ;;  %v3485_v30 = vmul.f32 1.442695, %v3418_v42 }
 0x3eb   : > { %v3481_v38 = vmul.f32 1.442695, %v3416_v49 }
 0x3ec   : > { %v3296_v28 = vpop.xlane.xlu0 %3295 }
 0x3ed   : > { %8175 = vpow2.f32 %v3481_v38  ;;  %v3419_v48 = vsub.f32 %v9589_v8, %v3296_v28 }
 0x3ee   : > { %v3298_v54 = vpop.xlane.xlu1 %3297  ;;  %8177 = vpow2.f32 %v3485_v30 }
 0x3ef   : > { %v3487_v18 = vmul.f32 1.442695, %v3419_v48  ;;  %v3420_v39 = vsub.f32 %v9594_v2, %v3298_v54 }
 0x3f0   : > { %v3300_v53 = vpop.xlane.xlu0 %3299 }
 0x3f1   : > { %8179 = vpow2.f32 %v3487_v18  ;;  %v3489_v31 = vmul.f32 1.442695, %v3420_v39  ;;  %v3421_v55 = vsub.f32 %v9587_v23, %v3300_v53 }
 0x3f2   : > { %v3302_v1 = vpop.xlane.xlu1 %3301 }
 0x3f3   : > { %v9742_v61 = vpop.eup %8171  ;;  %v3491_v16 = vmul.f32 1.442695, %v3421_v55  ;;  %v3422_v35 = vsub.f32 %v9592_v26, %v3302_v1  ;;  %8181 = vpow2.f32 %v3489_v31 }
 0x3f4   : > { %v3304_v9 = vpop.xlane.xlu0 %3303  ;;  %3607 = vadd.xlane.f32.xlu0 %v9742_v61  ;;  %v9747_v28 = vpop.eup %8173 }
 0x3f5   : > { %8183 = vpow2.f32 %v3491_v16  ;;  %v3493_v8 = vmul.f32 1.442695, %v3422_v35  ;;  %v3423_v2 = vsub.f32 %v9601_v24, %v3304_v9 }
 0x3f6   : > { %v3306_v42 = vpop.xlane.xlu1 %3305 }
 0x3f7   : > { %v9749_v27 = vpop.eup %8175  ;;  %v3495_v23 = vmul.f32 1.442695, %v3423_v2  ;;  %v3424_v49 = vsub.f32 %v9606_v36, %v3306_v42  ;;  %8185 = vpow2.f32 %v3493_v8 }
 0x3f8   : > { %v3308_v38 = vpop.xlane.xlu0 %3307  ;;  %3611 = vadd.xlane.f32.xlu0 %v9747_v28  ;;  %3609 = vadd.xlane.f32.xlu1 %v9749_v27  ;;  %v9755_v48 = vpop.eup %8177 }
 0x3f9   : > { %8187 = vpow2.f32 %v3495_v23  ;;  %v3497_v26 = vmul.f32 1.442695, %v3424_v49  ;;  %v3425_v30 = vsub.f32 %v9599_v62, %v3308_v38 }
 0x3fa   : > { %v3310_v24 = vpop.xlane.xlu1 %3309 }
 0x3fb   : > { %v9757_v54 = vpop.eup %8179  ;;  %v3499_v18 = vmul.f32 1.442695, %v3425_v30  ;;  %v3426_v39 = vsub.f32 %v9604_v32, %v3310_v24  ;;  %8189 = vpow2.f32 %v3497_v26 }
 0x3fc   : > { %v3312_v36 = vpop.xlane.xlu0 %3311  ;;  %3615 = vadd.xlane.f32.xlu0 %v9757_v54  ;;  %3613 = vadd.xlane.f32.xlu1 %v9755_v48 }
 0x3fd   : > { %8191 = vpow2.f32 %v3499_v18  ;;  %v3501_v53 = vmul.f32 1.442695, %v3426_v39  ;;  %v3427_v31 = vsub.f32 %v9613_v41, %v3312_v36  ;;  %v9763_v55 = vpop.eup %8181 }
 0x3fe   : > { %v3314_v62 = vpop.xlane.xlu1 %3313 }
 0x3ff   : > { %v9765_v1 = vpop.eup %8183  ;;  %v3503_v16 = vmul.f32 1.442695, %v3427_v31  ;;  %v3428_v35 = vsub.f32 %v9618_v44, %v3314_v62  ;;  %8193 = vpow2.f32 %v3501_v53 }
 0x400   : > { %v3316_v32 = vpop.xlane.xlu0 %3315  ;;  %3619 = vadd.xlane.f32.xlu0 %v9765_v1  ;;  %3617 = vadd.xlane.f32.xlu1 %v9763_v55 }
 0x401   : > { %8195 = vpow2.f32 %v3503_v16  ;;  %v3505_v9 = vmul.f32 1.442695, %v3428_v35  ;;  %v3429_v8 = vsub.f32 %v9611_v59, %v3316_v32  ;;  %v9771_v2 = vpop.eup %8185 }
 0x402   : > { %v3318_v41 = vpop.xlane.xlu1 %3317 }
 0x403   : > { %v9773_v42 = vpop.eup %8187  ;;  %v3507_v23 = vmul.f32 1.442695, %v3429_v8  ;;  %v3430_v49 = vsub.f32 %v9616_v63, %v3318_v41  ;;  %8197 = vpow2.f32 %v3505_v9 }
 0x404   : > { %v3320_v44 = vpop.xlane.xlu0 %3319  ;;  %3623 = vadd.xlane.f32.xlu0 %v9773_v42  ;;  %3621 = vadd.xlane.f32.xlu1 %v9771_v2 }
 0x405   : > { %8199 = vpow2.f32 %v3507_v23  ;;  %v3509_v38 = vmul.f32 1.442695, %v3430_v49  ;;  %v3431_v26 = vsub.f32 %v9625_v19, %v3320_v44  ;;  %v9779_v30 = vpop.eup %8189 }
 0x406   : > { %v3322_v59 = vpop.xlane.xlu1 %3321 }
 0x407   : > { %v9781_v24 = vpop.eup %8191  ;;  %v3511_v18 = vmul.f32 1.442695, %v3431_v26  ;;  %v3432_v39 = vsub.f32 %v9630_v7, %v3322_v59  ;;  %8201 = vpow2.f32 %v3509_v38 }
 0x408   : > { %v3324_v63 = vpop.xlane.xlu0 %3323  ;;  %3627 = vadd.xlane.f32.xlu0 %v9781_v24  ;;  %3625 = vadd.xlane.f32.xlu1 %v9779_v30 }
 0x409   : > { %8203 = vpow2.f32 %v3511_v18  ;;  %v3513_v36 = vmul.f32 1.442695, %v3432_v39  ;;  %v3433_v53 = vsub.f32 %v9623_v52, %v3324_v63  ;;  %v9787_v31 = vpop.eup %8193 }
 0x40a   : > { %v3326_v19 = vpop.xlane.xlu1 %3325 }
 0x40b   : > { %v9789_v62 = vpop.eup %8195  ;;  %v3515_v16 = vmul.f32 1.442695, %v3433_v53  ;;  %v3434_v35 = vsub.f32 %v9628_v34, %v3326_v19  ;;  %8205 = vpow2.f32 %v3513_v36 }
 0x40c   : > { %v3328_v7 = vpop.xlane.xlu0 %3327  ;;  %3631 = vadd.xlane.f32.xlu0 %v9789_v62  ;;  %3629 = vadd.xlane.f32.xlu1 %v9787_v31 }
 0x40d   : > { %8207 = vpow2.f32 %v3515_v16  ;;  %v3517_v32 = vmul.f32 1.442695, %v3434_v35  ;;  %v3435_v9 = vsub.f32 %v9637_v22, %v3328_v7  ;;  %v9795_v8 = vpop.eup %8197 }
 0x40e   : > { %v3330_v52 = vpop.xlane.xlu1 %3329 }
 0x40f   : > { %v9797_v41 = vpop.eup %8199  ;;  %v3519_v23 = vmul.f32 1.442695, %v3435_v9  ;;  %v3436_v49 = vsub.f32 %v9642_v57, %v3330_v52  ;;  %8209 = vpow2.f32 %v3517_v32 }
 0x410   : > { %v3332_v34 = vpop.xlane.xlu0 %3331  ;;  %3635 = vadd.xlane.f32.xlu0 %v9797_v41  ;;  %3633 = vadd.xlane.f32.xlu1 %v9795_v8 }
 0x411   : > { %8211 = vpow2.f32 %v3519_v23  ;;  %v3521_v44 = vmul.f32 1.442695, %v3436_v49  ;;  %v3437_v38 = vsub.f32 %v9635_v45, %v3332_v34  ;;  %v9803_v26 = vpop.eup %8201 }
 0x412   : > { %v3334_v22 = vpop.xlane.xlu1 %3333 }
 0x413   : > { %v9805_v59 = vpop.eup %8203  ;;  %v3523_v18 = vmul.f32 1.442695, %v3437_v38  ;;  %v3438_v39 = vsub.f32 %v9640_v0, %v3334_v22  ;;  %8213 = vpow2.f32 %v3521_v44 }
 0x414   : > { %v3336_v57 = vpop.xlane.xlu0 %3335  ;;  %3639 = vadd.xlane.f32.xlu0 %v9805_v59  ;;  %3637 = vadd.xlane.f32.xlu1 %v9803_v26 }
 0x415   : > { %8215 = vpow2.f32 %v3523_v18  ;;  %v3525_v63 = vmul.f32 1.442695, %v3438_v39  ;;  %v3439_v36 = vsub.f32 %v9649_v56, %v3336_v57  ;;  %v9811_v53 = vpop.eup %8205 }
 0x416   : > { %v3338_v45 = vpop.xlane.xlu1 %3337 }
 0x417   : > { %v9813_v19 = vpop.eup %8207  ;;  %v3527_v16 = vmul.f32 1.442695, %v3439_v36  ;;  %v3440_v35 = vsub.f32 %v9654_v25, %v3338_v45  ;;  %8217 = vpow2.f32 %v3525_v63 }
 0x418   : > { %v3340_v0 = vpop.xlane.xlu0 %3339  ;;  %3643 = vadd.xlane.f32.xlu0 %v9813_v19  ;;  %3641 = vadd.xlane.f32.xlu1 %v9811_v53 }
 0x419   : > { %8219 = vpow2.f32 %v3527_v16  ;;  %v3529_v7 = vmul.f32 1.442695, %v3440_v35  ;;  %v3441_v32 = vsub.f32 %v9647_v50, %v3340_v0  ;;  %v9819_v9 = vpop.eup %8209 }
 0x41a   : > { %v3342_v56 = vpop.xlane.xlu1 %3341 }
 0x41b   : > { %v9821_v52 = vpop.eup %8211  ;;  %v3531_v23 = vmul.f32 1.442695, %v3441_v32  ;;  %v3442_v49 = vsub.f32 %v9652_v5, %v3342_v56  ;;  %8221 = vpow2.f32 %v3529_v7 }
 0x41c   : > { %v3348_v25 = vpop.xlane.xlu0 %3347  ;;  %3647 = vadd.xlane.f32.xlu0 %v9821_v52  ;;  %3645 = vadd.xlane.f32.xlu1 %v9819_v9 }
 0x41d   : > { %8223 = vpow2.f32 %v3531_v23  ;;  %v3533_v34 = vmul.f32 1.442695, %v3442_v49  ;;  %v9826_v44 = vpop.eup %8213  ;;  %v3445_v63 = vsub.f32 %v9659_v13, %v3348_v25  ;;  %v10561_v49 = vld [vmem:[#allocation35_spill] sm:$0xff]  ;;  %v10562_v25 = vld [vmem:[#allocation30_spill] sm:$0xff] }
 0x41e   : > { %v3350_v38 = vpop.xlane.xlu1 %3349 }
 0x41f   : > { %v9828_v50 = vpop.eup %8215  ;;  %8225 = vpow2.f32 %v3533_v34  ;;  %v3539_v0 = vmul.f32 1.442695, %v3445_v63  ;;  %v10563_v34 = vld [vmem:[#allocation39_spill] sm:$0xff] }
 0x420   : > { %3651 = vadd.xlane.f32.xlu0 %v9828_v50  ;;  %v3344_v22 = vpop.xlane.xlu0 %3343  ;;  %3649 = vadd.xlane.f32.xlu1 %v9826_v44  ;;  %v10568_v63 = vld [vmem:[#allocation19_spill] sm:$0xff] }
 0x421   : > { %v3443_v5 = vsub.f32 %v9661_v10, %v3344_v22  ;;  %v9833_v18 = vpop.eup %8217  ;;  %v3446_v10 = vsub.f32 %v9664_v21, %v3350_v38  ;;  %v10564_v38 = vld [vmem:[#allocation34_spill] sm:$0xff]  ;;  %v10565_v22 = vld [vmem:[#allocation20_spill] sm:$0xff] }
 0x422   : > { %v3346_v39 = vpop.xlane.xlu1 %3345 }
 0x423   : > { %v9835_v57 = vpop.eup %8219  ;;  %v3535_v36 = vmul.f32 1.442695, %v3443_v5  ;;  %v3444_v45 = vsub.f32 %v9666_v40, %v3346_v39  ;;  %v3541_v40 = vmul.f32 1.442695, %v3446_v10  ;;  %v10566_v5 = vld [vmem:[#allocation38_spill] sm:$0xff]  ;;  %v10572_v10 = vld [vmem:[#allocation23_spill] sm:$0xff] }
 0x424   : > { %3655 = vadd.xlane.f32.xlu0 %v9835_v57  ;;  %3653 = vadd.xlane.f32.xlu1 %v9833_v18  ;;  %v10567_v39 = vld [vmem:[#allocation22_spill] sm:$0xff] }
 0x425   : > { %v9841_v16 = vpop.eup %8221  ;;  %8227 = vpow2.f32 %v3535_v36  ;;  %v3537_v13 = vmul.f32 1.442695, %v3444_v45  ;;  %v10569_v36 = vld [vmem:[#allocation24_spill] sm:$0xff]  ;;  %v10570_v45 = vld [vmem:[#allocation21_spill] sm:$0xff] }
 0x426   : > { %8229 = vpow2.f32 %v3539_v0  ;;  %v10571_v0 = vld [vmem:[#allocation26_spill] sm:$0xff] }
 0x427   : > { %v9843_v35 = vpop.eup %8223  ;;  %8231 = vpow2.f32 %v3537_v13  ;;  %v10573_v13 = vld [vmem:[#allocation29_spill] sm:$0xff] }
 0x428   : > { %3659 = vadd.xlane.f32.xlu0 %v9843_v35  ;;  %3657 = vadd.xlane.f32.xlu1 %v9841_v16  ;;  %8233 = vpow2.f32 %v3541_v40  ;;  %v10574_v40 = vld [vmem:[#allocation25_spill] sm:$0xff] }
 0x429   : > { %v9848_v7 = vpop.eup %8225 }
 0x42c   : > { %3661 = vadd.xlane.f32.xlu1 %v9848_v7  ;;  %3351 = vmax.xlane.f32.xlu0 %v9673_v3 }
 0x42f   : > { %v9854_v32 = vpop.eup %8227 }
 0x430   : > { %3355 = vmax.xlane.f32.xlu0 %v9671_v43  ;;  %3353 = vmax.xlane.f32.xlu1 %v9677_v60  ;;  %v9858_v21 = vpop.eup %8229 }
 0x431   : > { %v9860_v56 = vpop.eup %8231 }
 0x432   : > { %v9864_v23 = vpop.eup %8233 }
 0x434   : > { %3663 = vadd.xlane.f32.xlu0 %v9854_v32  ;;  %3357 = vmax.xlane.f32.xlu1 %v9675_v51 }
 0x438   : > { %3667 = vadd.xlane.f32.xlu0 %v9858_v21  ;;  %3665 = vadd.xlane.f32.xlu1 %v9860_v56 }
 0x43c   : > { %3669 = vadd.xlane.f32.xlu1 %v9864_v23  ;;  %3359 = vmax.xlane.f32.xlu0 %v9681_v17 }
 0x440   : > { %3363 = vmax.xlane.f32.xlu0 %v9679_v11  ;;  %3361 = vmax.xlane.f32.xlu1 %v9685_v29 }
 0x444   : > { %3365 = vmax.xlane.f32.xlu1 %v9683_v12  ;;  %3367 = vmax.xlane.f32.xlu0 %v9689_v6 }
 0x448   : > { %3371 = vmax.xlane.f32.xlu0 %v9687_v33  ;;  %3369 = vmax.xlane.f32.xlu1 %v9693_v37 }
 0x44c   : > { %3373 = vmax.xlane.f32.xlu1 %v9691_v15  ;;  %3375 = vmax.xlane.f32.xlu0 %v9697_v4 }
 0x450   : > { %3379 = vmax.xlane.f32.xlu0 %v9695_v20  ;;  %3377 = vmax.xlane.f32.xlu1 %v9701_v14 }
 0x454   : > { %3381 = vmax.xlane.f32.xlu1 %v9699_v46  ;;  %3383 = vmax.xlane.f32.xlu0 %v9705_v47 }
 0x458   : > { %3387 = vmax.xlane.f32.xlu0 %v9703_v58  ;;  %3385 = vmax.xlane.f32.xlu1 %v10561_v49  ;;  %v7981_v49 = vld [vmem:[#allocation10 + $0x104] ss:$16 sps:$4 sm:$0xff]  }
 0x459   : > { %4360 = vmatprep.subr.bf16.mxu0 %v7981_v49 }
 0x45c   : > { %3389 = vmax.xlane.f32.xlu1 %v10562_v25  ;;  %3391 = vmax.xlane.f32.xlu0 %v10563_v34  ;;  %v7979_v25 = vld [vmem:[#allocation10 + $0x100] ss:$16 sps:$4 sm:$0xff]  }
 0x45d   : > { %4361 = vmatpush1.bf16.msra.mxu0 %v7979_v25 }
 0x460   : > { %3395 = vmax.xlane.f32.xlu0 %v10564_v38  ;;  %3393 = vmax.xlane.f32.xlu1 %v10565_v22 }
 0x464   : > { %3397 = vmax.xlane.f32.xlu1 %v10566_v5  ;;  %3399 = vmax.xlane.f32.xlu0 %v10567_v39 }
 0x468   : > { %3403 = vmax.xlane.f32.xlu0 %v10568_v63  ;;  %3401 = vmax.xlane.f32.xlu1 %v10569_v36 }
 0x46c   : > { %3405 = vmax.xlane.f32.xlu1 %v10570_v45  ;;  %3407 = vmax.xlane.f32.xlu0 %v10571_v0 }
 0x470   : > { %3411 = vmax.xlane.f32.xlu0 %v10572_v10  ;;  %3409 = vmax.xlane.f32.xlu1 %v10573_v13 }
 0x474   : > { %3413 = vmax.xlane.f32.xlu1 %v10574_v40 }
 0x481   : > { %v3608_v38 = vpop.xlane.xlu0 %3607 }
 0x482   : > { %8235 = vrcp.f32 %v3608_v38 }
 0x485   : > { %v3612_v22 = vpop.xlane.xlu0 %3611  ;;  %v3610_v5 = vpop.xlane.xlu1 %3609 }
 0x486   : > { %8237 = vrcp.f32 %v3610_v5 }
 0x487   : > { %8239 = vrcp.f32 %v3612_v22  ;;  %v7984_v22 = vld [vmem:[#allocation10 + $0x10c] ss:$16 sps:$4 sm:$0xff]  }
 0x488   : > { %4473 = vmatprep.subr.bf16.mxu1 %v7984_v22 }
 0x489   : > { %v3616_v39 = vpop.xlane.xlu0 %3615  ;;  %v3614_v63 = vpop.xlane.xlu1 %3613 }
 0x48a   : > { %8241 = vrcp.f32 %v3614_v63 }
 0x48b   : > { %8243 = vrcp.f32 %v3616_v39 }
 0x48c   : > { %v8236_v34 = vpop.eup %8235 }
 0x48d   : > { %v3620_v36 = vpop.xlane.xlu0 %3619  ;;  %v3618_v45 = vpop.xlane.xlu1 %3617  ;;  %v3799_v40 = vmul.f32 %v8236_v34, %v9742_v61 }
 0x48e   : > { %8245 = vrcp.f32 %v3618_v45 }
 0x48f   : > { %8247 = vrcp.f32 %v3620_v36 }
 0x490   : > { %v8238_v0 = vpop.eup %8237 }
 0x491   : > { %v3624_v10 = vpop.xlane.xlu0 %3623  ;;  %v3622_v13 = vpop.xlane.xlu1 %3621  ;;  %v3800_v38 = vmul.f32 %v8238_v0, %v9749_v27  ;;  %v7982_v27 = vld [vmem:[#allocation10 + $0x108] ss:$16 sps:$4 sm:$0xff]  }
 0x492   : > { %v8240_v5 = vpop.eup %8239  ;;  %8249 = vrcp.f32 %v3622_v13 }
 0x493   : > { %v3863_v58 = vpack.c.bf16 %v3800_v38, %v3799_v40  ;;  %8251 = vrcp.f32 %v3624_v10  ;;  %v3801_v36 = vmul.f32 %v8240_v5, %v9747_v28 }
 0x494   : > { %v8242_v39 = vpop.eup %8241 }
 0x495   : > { %v3628_v63 = vpop.xlane.xlu0 %3627  ;;  %v3626_v47 = vpop.xlane.xlu1 %3625  ;;  %v3802_v45 = vmul.f32 %v8242_v39, %v9755_v48  ;;  %7197 = vmatprep.mubr.bf16.mxu1 %v3863_v58 }
 0x496   : > { %v8244_v61 = vpop.eup %8243  ;;  %8253 = vrcp.f32 %v3626_v47 }
 0x497   : > { %v3864_v34 = vpack.c.bf16 %v3802_v45, %v3801_v36  ;;  %8255 = vrcp.f32 %v3628_v63  ;;  %v3803_v49 = vmul.f32 %v8244_v61, %v9757_v54 }
 0x498   : > { %v8246_v0 = vpop.eup %8245 }
 0x499   : > { %v3632_v13 = vpop.xlane.xlu0 %3631  ;;  %v3630_v40 = vpop.xlane.xlu1 %3629  ;;  %7198 = vmatmul.mubr.bf16.vlgmr.msra.gmra.mrb[96].mxu1 %v3864_v34  ;;  %v3804_v10 = vmul.f32 %v8246_v0, %v9763_v55 }
 0x49a   : > { %v8248_v38 = vpop.eup %8247  ;;  %8257 = vrcp.f32 %v3630_v40  ;;  %4474 = vmatpush1.bf16.msra.mxu1 %v7982_v27 }
 0x49b   : > { %v3865_v28 = vpack.c.bf16 %v3804_v10, %v3803_v49  ;;  %8259 = vrcp.f32 %v3632_v13  ;;  %v3805_v47 = vmul.f32 %v8248_v38, %v9765_v1 }
 0x49c   : > { %v8250_v25 = vpop.eup %8249 }
 0x49d   : > { %v3636_v58 = vpop.xlane.xlu0 %3635  ;;  %v3634_v48 = vpop.xlane.xlu1 %3633  ;;  %7201 = vmatprep.mubr.bf16.mxu1 %v3865_v28  ;;  %v3806_v5 = vmul.f32 %v8250_v25, %v9771_v2 }
 0x49e   : > { %v8252_v22 = vpop.eup %8251  ;;  %8261 = vrcp.f32 %v3634_v48 }
 0x49f   : > { %v3866_v39 = vpack.c.bf16 %v3806_v5, %v3805_v47  ;;  %8263 = vrcp.f32 %v3636_v58  ;;  %v3807_v36 = vmul.f32 %v8252_v22, %v9773_v42 }
 0x4a0   : > { %v8254_v63 = vpop.eup %8253 }
 0x4a1   : > { %v3640_v54 = vpop.xlane.xlu0 %3639  ;;  %v3638_v55 = vpop.xlane.xlu1 %3637  ;;  %7202 = vmatmul.mubr.bf16.gmra.mrb[100].mxu1 %v3866_v39  ;;  %v3808_v45 = vmul.f32 %v8254_v63, %v9779_v30 }
 0x4a2   : > { %v8256_v61 = vpop.eup %8255  ;;  %8265 = vrcp.f32 %v3638_v55 }
 0x4a3   : > { %v3867_v27 = vpack.c.bf16 %v3808_v45, %v3807_v36  ;;  %8267 = vrcp.f32 %v3640_v54  ;;  %v3809_v2 = vmul.f32 %v8256_v61, %v9781_v24 }
 0x4a4   : > { %v8258_v34 = vpop.eup %8257 }
 0x4a5   : > { %v3644_v1 = vpop.xlane.xlu0 %3643  ;;  %v3642_v0 = vpop.xlane.xlu1 %3641  ;;  %7205 = vmatprep.mubr.bf16.mxu1 %v3867_v27  ;;  %v3810_v13 = vmul.f32 %v8258_v34, %v9787_v31 }
 0x4a6   : > { %v8260_v40 = vpop.eup %8259  ;;  %8269 = vrcp.f32 %v3642_v0 }
 0x4a7   : > { %v3868_v49 = vpack.c.bf16 %v3810_v13, %v3809_v2  ;;  %8271 = vrcp.f32 %v3644_v1  ;;  %v3811_v30 = vmul.f32 %v8260_v40, %v9789_v62 }
 0x4a8   : > { %v8262_v10 = vpop.eup %8261 }
 0x4a9   : > { %v3648_v42 = vpop.xlane.xlu0 %3647  ;;  %v3646_v38 = vpop.xlane.xlu1 %3645  ;;  %7206 = vmatmul.mubr.bf16.gmra.mrb[104].mxu1 %v3868_v49  ;;  %v3812_v28 = vmul.f32 %v8262_v10, %v9795_v8 }
 0x4aa   : > { %v8264_v25 = vpop.eup %8263  ;;  %8273 = vrcp.f32 %v3646_v38 }
 0x4ab   : > { %v3869_v58 = vpack.c.bf16 %v3812_v28, %v3811_v30  ;;  %8275 = vrcp.f32 %v3648_v42  ;;  %v3813_v31 = vmul.f32 %v8264_v25, %v9797_v41 }
 0x4ac   : > { %v8266_v48 = vpop.eup %8265 }
 0x4ad   : > { %v3652_v24 = vpop.xlane.xlu0 %3651  ;;  %v3650_v47 = vpop.xlane.xlu1 %3649  ;;  %7209 = vmatprep.mubr.bf16.mxu1 %v3869_v58  ;;  %v3814_v5 = vmul.f32 %v8266_v48, %v9803_v26 }
 0x4ae   : > { %v8268_v22 = vpop.eup %8267  ;;  %8277 = vrcp.f32 %v3650_v47 }
 0x4af   : > { %8279 = vrcp.f32 %v3652_v24  ;;  %v3870_v39 = vpack.c.bf16 %v3814_v5, %v3813_v31  ;;  %v3815_v8 = vmul.f32 %v8268_v22, %v9805_v59 }
 0x4b0   : > { %v8270_v63 = vpop.eup %8269 }
 0x4b1   : > { %v3656_v62 = vpop.xlane.xlu0 %3655  ;;  %v3654_v54 = vpop.xlane.xlu1 %3653  ;;  %7210 = vmatmul.mubr.bf16.gmra.mrb[108].mxu1 %v3870_v39  ;;  %v3816_v55 = vmul.f32 %v8270_v63, %v9811_v53 }
 0x4b2   : > { %v8272_v36 = vpop.eup %8271  ;;  %8281 = vrcp.f32 %v3654_v54 }
 0x4b3   : > { %v3871_v45 = vpack.c.bf16 %v3816_v55, %v3815_v8  ;;  %8283 = vrcp.f32 %v3656_v62  ;;  %v3817_v26 = vmul.f32 %v8272_v36, %v9813_v19 }
 0x4b4   : > { %v8274_v61 = vpop.eup %8273 }
 0x4b5   : > { %v3660_v41 = vpop.xlane.xlu0 %3659  ;;  %v3658_v27 = vpop.xlane.xlu1 %3657  ;;  %7213 = vmatprep.mubr.bf16.mxu1 %v3871_v45  ;;  %v3818_v34 = vmul.f32 %v8274_v61, %v9819_v9 }
 0x4b6   : > { %v8276_v1 = vpop.eup %8275  ;;  %8285 = vrcp.f32 %v3658_v27 }
 0x4b7   : > { %8287 = vrcp.f32 %v3660_v41  ;;  %v3872_v0 = vpack.c.bf16 %v3818_v34, %v3817_v26  ;;  %v3819_v49 = vmul.f32 %v8276_v1, %v9821_v52 }
 0x4b8   : > { %v8278_v2 = vpop.eup %8277 }
 0x4b9   : > { %v3662_v59 = vpop.xlane.xlu1 %3661  ;;  %v3352_v13 = vpop.xlane.xlu0 %3351  ;;  %7214 = vmatmul.mubr.bf16.gmra.mrb[112].mxu1 %v3872_v0  ;;  %v3820_v10 = vmul.f32 %v8278_v2, %v9826_v44 }
 0x4ba   : > { %v8280_v53 = vpop.eup %8279  ;;  %8289 = vrcp.f32 %v3662_v59  ;;  %v3447_v40 = vsub.f32 %v9673_v3, %v3352_v13 }
 0x4bb   : > { %v3873_v19 = vpack.c.bf16 %v3820_v10, %v3819_v49  ;;  %v3821_v28 = vmul.f32 %v8280_v53, %v9828_v50 }
 0x4bc   : > { %v3543_v42 = vmul.f32 1.442695, %v3447_v40  ;;  %v8282_v38 = vpop.eup %8281 }
 0x4bd   : > { %v3356_v9 = vpop.xlane.xlu0 %3355  ;;  %v3354_v30 = vpop.xlane.xlu1 %3353  ;;  %7217 = vmatprep.mubr.bf16.mxu1 %v3873_v19  ;;  %v3822_v48 = vmul.f32 %v8282_v38, %v9833_v18 }
 0x4be   : > { %8291 = vpow2.f32 %v3543_v42  ;;  %v3449_v25 = vsub.f32 %v9671_v43, %v3356_v9  ;;  %v3448_v58 = vsub.f32 %v9677_v60, %v3354_v30  ;;  %v8284_v3 = vpop.eup %8283 }
 0x4bf   : > { %v3874_v47 = vpack.c.bf16 %v3822_v48, %v3821_v28  ;;  %v3823_v39 = vmul.f32 %v8284_v3, %v9835_v57  ;;  %v7985_v48 = vld [vmem:[#allocation10 + $0x120] ss:$16 sps:$4 sm:$0xff]   ;;  %v7988_v3 = vld [vmem:[#allocation10 + $0x128] ss:$16 sps:$4 sm:$0xff]  }
 0x4c0   : > { %v3547_v24 = vmul.f32 1.442695, %v3449_v25  ;;  %v3545_v52 = vmul.f32 1.442695, %v3448_v58  ;;  %v8286_v44 = vpop.eup %8285 }
 0x4c1   : > { %v3664_v31 = vpop.xlane.xlu0 %3663  ;;  %v3358_v5 = vpop.xlane.xlu1 %3357  ;;  %7218 = vmatmul.mubr.bf16.gmra.mrb[116].mxu1 %v3874_v47  ;;  %v3824_v43 = vmul.f32 %v8286_v44, %v9841_v16  ;;  %v7990_v44 = vld [vmem:[#allocation10 + $0x12c] ss:$16 sps:$4 sm:$0xff]  }
 0x4c2   : > { %v8288_v22 = vpop.eup %8287  ;;  %8293 = vpow2.f32 %v3547_v24  ;;  %v3450_v50 = vsub.f32 %v9675_v51, %v3358_v5  ;;  %4475 = vmatprep.subr.bf16.mxu1 %v7990_v44 }
 0x4c3   : > { %8295 = vpow2.f32 %v3545_v52  ;;  %v3875_v18 = vpack.c.bf16 %v3824_v43, %v3823_v39  ;;  %v3825_v8 = vmul.f32 %v8288_v22, %v9843_v35  ;;  %4476 = vmatpush1.bf16.msra.mxu1 %v7988_v3 }
 0x4c4   : > { %v8290_v60 = vpop.eup %8289  ;;  %v3549_v63 = vmul.f32 1.442695, %v3450_v50  ;;  %8297 = vrcp.f32 %v3664_v31 }
 0x4c5   : > { %v3668_v62 = vpop.xlane.xlu0 %3667  ;;  %v3666_v54 = vpop.xlane.xlu1 %3665  ;;  %v3826_v55 = vmul.f32 %v8290_v60, %v9848_v7  ;;  %7221 = vmatprep.mubr.bf16.mxu1 %v3875_v18 }
 0x4c6   : > { %8299 = vpow2.f32 %v3549_v63 }
 0x4c7   : > { %8301 = vrcp.f32 %v3668_v62  ;;  %v3876_v36 = vpack.c.bf16 %v3826_v55, %v3825_v8 }
 0x4c8   : > { %v9927_v51 = vpop.eup %8291  ;;  %8303 = vrcp.f32 %v3666_v54 }
 0x4c9   : > { %v3670_v57 = vpop.xlane.xlu1 %3669  ;;  %v3360_v16 = vpop.xlane.xlu0 %3359  ;;  %3671 = vadd.xlane.f32.xlu0 %v9927_v51  ;;  %7222 = vmatmul.mubr.bf16.gmra.mrb[120].mxu1 %v3876_v36  ;;  %v10575_v36 = vld [vmem:[#allocation31_spill] sm:$0xff] }
 0x4ca   : > { %8305 = vrcp.f32 %v3670_v57  ;;  %v3451_v45 = vsub.f32 %v9681_v17, %v3360_v16 }
 0x4cc   : > { %v9931_v61 = vpop.eup %8293  ;;  %v3551_v35 = vmul.f32 1.442695, %v3451_v45 }
 0x4cd   : > { %v9933_v41 = vpop.eup %8295  ;;  %v3364_v7 = vpop.xlane.xlu0 %3363  ;;  %3675 = vadd.xlane.f32.xlu0 %v9931_v61 }
 0x4ce   : > { %v3362_v27 = vpop.xlane.xlu1 %3361  ;;  %8307 = vpow2.f32 %v3551_v35  ;;  %v3453_v26 = vsub.f32 %v9679_v11, %v3364_v7  ;;  %3673 = vadd.xlane.f32.xlu1 %v9933_v41  ;;  %v8298_v1 = vpop.eup %8297 }
 0x4cf   : > { %v3452_v34 = vsub.f32 %v9685_v29, %v3362_v27  ;;  %v3827_v11 = vmul.f32 %v8298_v1, %v9854_v32  ;;  %v10576_v27 = vld [vmem:[#allocation27_spill] sm:$0xff]  ;;  %v7991_v1 = vld [vmem:[#allocation10 + $0x140] ss:$16 sps:$4 sm:$0xff]  }
 0x4d0   : > { %v9939_v0 = vpop.eup %8299  ;;  %v3555_v17 = vmul.f32 1.442695, %v3453_v26 }
 0x4d1   : > { %v3553_v2 = vmul.f32 1.442695, %v3452_v34  ;;  %v8302_v59 = vpop.eup %8301  ;;  %v3368_v53 = vpop.xlane.xlu0 %3367  ;;  %v10577_v34 = vld [vmem:[#allocation35_spill] sm:$0xff] }
 0x4d2   : > { %v3366_v13 = vpop.xlane.xlu1 %3365  ;;  %v8304_v40 = vpop.eup %8303  ;;  %8309 = vpow2.f32 %v3555_v17  ;;  %v3455_v10 = vsub.f32 %v9689_v6, %v3368_v53  ;;  %3677 = vadd.xlane.f32.xlu1 %v9939_v0  ;;  %v3829_v25 = vmul.f32 %v8302_v59, %v9858_v21  ;;  %v7993_v17 = vld [vmem:[#allocation10 + $0x144] ss:$16 sps:$4 sm:$0xff]  }
 0x4d3   : > { %v3454_v49 = vsub.f32 %v9683_v12, %v3366_v13  ;;  %8311 = vpow2.f32 %v3553_v2  ;;  %v3828_v29 = vmul.f32 %v8304_v40, %v9860_v56  ;;  %v7987_v56 = vld [vmem:[#allocation10 + $0x124] ss:$16 sps:$4 sm:$0xff]   ;;  %v7994_v2 = vld [vmem:[#allocation10 + $0x148] ss:$16 sps:$4 sm:$0xff]   ;;  %v7996_v40 = vld [vmem:[#allocation10 + $0x14c] ss:$16 sps:$4 sm:$0xff]  }
 0x4d4   : > { %v8306_v42 = vpop.eup %8305  ;;  %v3559_v38 = vmul.f32 1.442695, %v3455_v10  ;;  %4362 = vmatprep.subr.bf16.mxu0 %v7987_v56  ;;  %4477 = vmatprep.subr.bf16.mxu1 %v7996_v40 }
 0x4d5   : > { %v3557_v19 = vmul.f32 1.442695, %v3454_v49  ;;  %v3877_v9 = vpack.c.bf16 %v3828_v29, %v3827_v11  ;;  %v3372_v30 = vpop.xlane.xlu0 %3371  ;;  %v3830_v58 = vmul.f32 %v8306_v42, %v9864_v23  ;;  %4363 = vmatpush1.bf16.msra.mxu0 %v7985_v48  ;;  %v10578_v29 = vld [vmem:[#allocation30_spill] sm:$0xff]  ;;  %4478 = vmatpush1.bf16.msra.mxu1 %v7994_v2  ;;  %v10581_v48 = vld [vmem:[#allocation20_spill] sm:$0xff] }
 0x4d6   : > { %v3370_v28 = vpop.xlane.xlu1 %3369  ;;  %v3457_v12 = vsub.f32 %v9687_v33, %v3372_v30  ;;  %4364 = vmatprep.subr.bf16.mxu0 %v7993_v17  ;;  %v10587_v2 = vld [vmem:[#allocation26_spill] sm:$0xff] }
 0x4d7   : > { %8313 = vpow2.f32 %v3557_v19  ;;  %v3456_v6 = vsub.f32 %v9693_v37, %v3370_v28  ;;  %7225 = vmatprep.mubr.bf16.mxu1 %v3877_v9  ;;  %v3878_v32 = vpack.c.bf16 %v3830_v58, %v3829_v25  ;;  %v10579_v19 = vld [vmem:[#allocation39_spill] sm:$0xff] }
 0x4d8   : > { %8315 = vpow2.f32 %v3559_v38  ;;  %v9950_v24 = vpop.eup %8307  ;;  %v3563_v52 = vmul.f32 1.442695, %v3457_v12 }
 0x4d9   : > { %v3561_v47 = vmul.f32 1.442695, %v3456_v6  ;;  %7226 = vmatmul.mubr.bf16.gmra.mrb[124].mxu1 %v3878_v32  ;;  %v3376_v31 = vpop.xlane.xlu0 %3375  ;;  %3679 = vadd.xlane.f32.xlu0 %v9950_v24  ;;  %v10580_v6 = vld [vmem:[#allocation34_spill] sm:$0xff] }
 0x4da   : > { %v3374_v21 = vpop.xlane.xlu1 %3373  ;;  %8317 = vpow2.f32 %v3563_v52  ;;  %v3459_v37 = vsub.f32 %v9697_v4, %v3376_v31  ;;  %4365 = vmatpush1.bf16.msra.mxu0 %v7991_v1  ;;  %v10586_v1 = vld [vmem:[#allocation21_spill] sm:$0xff] }
 0x4db   : > { %v3458_v33 = vsub.f32 %v9691_v15, %v3374_v21  ;;  %8319 = vpow2.f32 %v3561_v47 }
 0x4dc   : > { %v9955_v23 = vpop.eup %8309  ;;  %v3567_v22 = vmul.f32 1.442695, %v3459_v37 }
 0x4dd   : > { %v3565_v5 = vmul.f32 1.442695, %v3458_v33  ;;  %v9957_v50 = vpop.eup %8311  ;;  %v3380_v39 = vpop.xlane.xlu0 %3379  ;;  %3683 = vadd.xlane.f32.xlu0 %v9955_v23  ;;  %v10582_v33 = vld [vmem:[#allocation38_spill] sm:$0xff] }
 0x4de   : > { %v3378_v43 = vpop.xlane.xlu1 %3377  ;;  %v3461_v15 = vsub.f32 %v9695_v20, %v3380_v39  ;;  %3681 = vadd.xlane.f32.xlu1 %v9957_v50 }
 0x4df   : > { %8321 = vpow2.f32 %v3565_v5  ;;  %v3460_v4 = vsub.f32 %v9701_v14, %v3378_v43  ;;  %v10583_v5 = vld [vmem:[#allocation22_spill] sm:$0xff] }
 0x4e0   : > { %8323 = vpow2.f32 %v3567_v22  ;;  %v3571_v63 = vmul.f32 1.442695, %v3461_v15 }
 0x4e1   : > { %v9963_v60 = vpop.eup %8313  ;;  %v3569_v18 = vmul.f32 1.442695, %v3460_v4  ;;  %v3384_v8 = vpop.xlane.xlu0 %3383 }
 0x4e2   : > { %v9965_v62 = vpop.eup %8315  ;;  %v3382_v54 = vpop.xlane.xlu1 %3381  ;;  %8325 = vpow2.f32 %v3571_v63  ;;  %v3463_v57 = vsub.f32 %v10575_v36, %v3384_v8  ;;  %3685 = vadd.xlane.f32.xlu1 %v9963_v60 }
 0x4e3   : > { %v3462_v55 = vsub.f32 %v9699_v46, %v3382_v54  ;;  %3687 = vadd.xlane.f32.xlu0 %v9965_v62  ;;  %8327 = vpow2.f32 %v3569_v18  ;;  %v10584_v54 = vld [vmem:[#allocation19_spill] sm:$0xff] }
 0x4e4   : > { %v9971_v20 = vpop.eup %8317  ;;  %v3575_v16 = vmul.f32 1.442695, %v3463_v57 }
 0x4e5   : > { %v3573_v14 = vmul.f32 1.442695, %v3462_v55  ;;  %v9973_v45 = vpop.eup %8319  ;;  %v3388_v35 = vpop.xlane.xlu0 %3387  ;;  %v10585_v55 = vld [vmem:[#allocation24_spill] sm:$0xff] }
 0x4e6   : > { %v3386_v7 = vpop.xlane.xlu1 %3385  ;;  %v3465_v26 = vsub.f32 %v10576_v27, %v3388_v35  ;;  %3689 = vadd.xlane.f32.xlu1 %v9973_v45 }
 0x4e7   : > { %8329 = vpow2.f32 %v3573_v14  ;;  %v3464_v46 = vsub.f32 %v10577_v34, %v3386_v7  ;;  %3691 = vadd.xlane.f32.xlu0 %v9971_v20  ;;  %v7999_v34 = vld [vmem:[#allocation10 + $0x164] ss:$16 sps:$4 sm:$0xff]  }
 0x4e8   : > { %8331 = vpow2.f32 %v3575_v16  ;;  %v3579_v13 = vmul.f32 1.442695, %v3465_v26  ;;  %v7997_v26 = vld [vmem:[#allocation10 + $0x160] ss:$16 sps:$4 sm:$0xff]   ;;  %4366 = vmatprep.subr.bf16.mxu0 %v7999_v34  ;;  %v8018_v34 = vld [vmem:[#allocation10 + $0x1a8] ss:$16 sps:$4 sm:$0xff]  }
 0x4e9   : > { %v9979_v59 = vpop.eup %8321  ;;  %v3577_v53 = vmul.f32 1.442695, %v3464_v46  ;;  %v3392_v11 = vpop.xlane.xlu0 %3391  ;;  %v8000_v46 = vld [vmem:[#allocation10 + $0x168] ss:$16 sps:$4 sm:$0xff]   ;;  %4367 = vmatpush1.bf16.msra.mxu0 %v7997_v26  ;;  %v8668_v26 = vmov 0  }
 0x4ea   : > { %v9981_v49 = vpop.eup %8323  ;;  %v3390_v10 = vpop.xlane.xlu1 %3389  ;;  %8333 = vpow2.f32 %v3579_v13  ;;  %v3467_v38 = vsub.f32 %v10579_v19, %v3392_v11  ;;  %3693 = vadd.xlane.f32.xlu1 %v9979_v59  ;;  %4392 = vmatprep.mubr.bf16.mxu0 %v8668_v26 }
 0x4eb   : > { %v3466_v42 = vsub.f32 %v10578_v29, %v3390_v10  ;;  %3695 = vadd.xlane.f32.xlu0 %v9981_v49  ;;  %8335 = vpow2.f32 %v3577_v53  ;;  %v8002_v53 = vld [vmem:[#allocation10 + $0x16c] ss:$16 sps:$4 sm:$0xff]  }
 0x4ec   : > { %v9987_v9 = vpop.eup %8325  ;;  %v3583_v28 = vmul.f32 1.442695, %v3467_v38  ;;  %4479 = vmatprep.subr.bf16.mxu1 %v8002_v53  ;;  %v10588_v38 = vld [vmem:[#allocation23_spill] sm:$0xff] }
 0x4ed   : > { %v3581_v30 = vmul.f32 1.442695, %v3466_v42  ;;  %v9989_v25 = vpop.eup %8327  ;;  %v3396_v58 = vpop.xlane.xlu0 %3395  ;;  %4480 = vmatpush1.bf16.msra.mxu1 %v8000_v46  ;;  %v8020_v46 = vld [vmem:[#allocation10 + $0x1ac] ss:$16 sps:$4 sm:$0xff]   ;;  %v8024_v53 = vld [vmem:[#allocation10 + $0x1e8] ss:$16 sps:$4 sm:$0xff]  }
 0x4ee   : > { %v3394_v12 = vpop.xlane.xlu1 %3393  ;;  %v3469_v32 = vsub.f32 %v10580_v6, %v3396_v58  ;;  %3697 = vadd.xlane.f32.xlu1 %v9989_v25 }
 0x4ef   : > { %8337 = vpow2.f32 %v3581_v30  ;;  %v3468_v56 = vsub.f32 %v10581_v48, %v3394_v12  ;;  %3699 = vadd.xlane.f32.xlu0 %v9987_v9 }
 0x4f0   : > { %8339 = vpow2.f32 %v3583_v28  ;;  %v3587_v52 = vmul.f32 1.442695, %v3469_v32  ;;  %v10589_v28 = vld [vmem:[#allocation29_spill] sm:$0xff] }
 0x4f1   : > { %v9995_v3 = vpop.eup %8329  ;;  %v3585_v47 = vmul.f32 1.442695, %v3468_v56  ;;  %v3400_v31 = vpop.xlane.xlu0 %3399 }
 0x4f2   : > { %v9997_v44 = vpop.eup %8331  ;;  %v3398_v21 = vpop.xlane.xlu1 %3397  ;;  %8341 = vpow2.f32 %v3587_v52  ;;  %v3471_v22 = vsub.f32 %v10583_v5, %v3400_v31  ;;  %3701 = vadd.xlane.f32.xlu1 %v9995_v3  ;;  %v8003_v52 = vld [vmem:[#allocation10 + $0x180] ss:$16 sps:$4 sm:$0xff]  }
 0x4f3   : > { %v3470_v37 = vsub.f32 %v10582_v33, %v3398_v21  ;;  %3703 = vadd.xlane.f32.xlu0 %v9997_v44  ;;  %8343 = vpow2.f32 %v3585_v47  ;;  %v8005_v47 = vld [vmem:[#allocation10 + $0x184] ss:$16 sps:$4 sm:$0xff]   ;;  %v10590_v21 = vld [vmem:[#allocation25_spill] sm:$0xff] }
 0x4f4   : > { %v10003_v39 = vpop.eup %8333  ;;  %v3591_v15 = vmul.f32 1.442695, %v3471_v22  ;;  %4368 = vmatprep.subr.bf16.mxu0 %v8005_v47  ;;  %v8008_v22 = vld [vmem:[#allocation10 + $0x1a4] ss:$16 sps:$4 sm:$0xff]  }
 0x4f5   : > { %v3589_v43 = vmul.f32 1.442695, %v3470_v37  ;;  %v10005_v4 = vpop.eup %8335  ;;  %v3404_v63 = vpop.xlane.xlu0 %3403  ;;  %4369 = vmatpush1.bf16.msra.mxu0 %v8003_v52 }
 0x4f6   : > { %v3402_v18 = vpop.xlane.xlu1 %3401  ;;  %v3473_v8 = vsub.f32 %v10584_v54, %v3404_v63  ;;  %3705 = vadd.xlane.f32.xlu1 %v10005_v4  ;;  %4370 = vmatprep.subr.bf16.mxu0 %v8008_v22  ;;  %v8011_v54 = vld [vmem:[#allocation10 + $0x18c] ss:$16 sps:$4 sm:$0xff]  }
 0x4f7   : > { %8345 = vpow2.f32 %v3589_v43  ;;  %v3472_v36 = vsub.f32 %v10585_v55, %v3402_v18  ;;  %3707 = vadd.xlane.f32.xlu0 %v10003_v39  ;;  %v8006_v43 = vld [vmem:[#allocation10 + $0x1a0] ss:$16 sps:$4 sm:$0xff]   ;;  %v8009_v18 = vld [vmem:[#allocation10 + $0x188] ss:$16 sps:$4 sm:$0xff]   ;;  %v8014_v55 = vld [vmem:[#allocation10 + $0x1c4] ss:$16 sps:$4 sm:$0xff]   ;;  %4481 = vmatprep.subr.bf16.mxu1 %v8011_v54 }
 0x4f8   : > { %8347 = vpow2.f32 %v3591_v15  ;;  %v3595_v14 = vmul.f32 1.442695, %v3473_v8  ;;  %v8012_v8 = vld [vmem:[#allocation10 + $0x1c0] ss:$16 sps:$4 sm:$0xff]   ;;  %4482 = vmatpush1.bf16.msra.mxu1 %v8009_v18 }
 0x4f9   : > { %v10011_v57 = vpop.eup %8337  ;;  %v3593_v16 = vmul.f32 1.442695, %v3472_v36  ;;  %v3408_v27 = vpop.xlane.xlu0 %3407  ;;  %4371 = vmatpush1.bf16.msra.mxu0 %v8006_v43  ;;  %4483 = vmatprep.subr.bf16.mxu1 %v8020_v46 }
 0x4fa   : > { %v10013_v35 = vpop.eup %8339  ;;  %v3406_v7 = vpop.xlane.xlu1 %3405  ;;  %8349 = vpow2.f32 %v3595_v14  ;;  %v3475_v13 = vsub.f32 %v10587_v2, %v3408_v27  ;;  %3709 = vadd.xlane.f32.xlu1 %v10011_v57  ;;  %4372 = vmatprep.subr.bf16.mxu0 %v8014_v55  ;;  %v8026_v2 = vld [vmem:[#allocation10 + $0x1ec] ss:$16 sps:$4 sm:$0xff]  }
 0x4fb   : > { %v3474_v17 = vsub.f32 %v10586_v1, %v3406_v7  ;;  %3711 = vadd.xlane.f32.xlu0 %v10013_v35  ;;  %8351 = vpow2.f32 %v3593_v16  ;;  %v8017_v16 = vld [vmem:[#allocation10 + $0x1e4] ss:$16 sps:$4 sm:$0xff]   ;;  %v8015_v7 = vld [vmem:[#allocation10 + $0x1e0] ss:$16 sps:$4 sm:$0xff]   ;;  %v8021_v1 = vld [vmem:[#allocation10 + $0x1c8] ss:$16 sps:$4 sm:$0xff]  }
 0x4fc   : > { %v10019_v40 = vpop.eup %8341  ;;  %v3599_v11 = vmul.f32 1.442695, %v3475_v13  ;;  %4484 = vmatpush1.bf16.msra.mxu1 %v8018_v34  ;;  %v8029_v13 = vld [vmem:[#allocation10 + $0x4] ss:$16 sps:$4 sm:$0xff]  }
 0x4fd   : > { %v3597_v10 = vmul.f32 1.442695, %v3474_v17  ;;  %v10021_v29 = vpop.eup %8343  ;;  %v3412_v42 = vpop.xlane.xlu0 %3411  ;;  %4373 = vmatpush1.bf16.msra.mxu0 %v8012_v8  ;;  %v8023_v17 = vld [vmem:[#allocation10 + $0x1cc] ss:$16 sps:$4 sm:$0xff]  }
 0x4fe   : > { %v3410_v19 = vpop.xlane.xlu1 %3409  ;;  %v3477_v30 = vsub.f32 %v10588_v38, %v3412_v42  ;;  %3713 = vadd.xlane.f32.xlu1 %v10021_v29  ;;  %4374 = vmatprep.subr.bf16.mxu0 %v8017_v16 }
 0x4ff   : > { %8353 = vpow2.f32 %v3597_v10  ;;  %3715 = vadd.xlane.f32.xlu0 %v10019_v40  ;;  %v3476_v58 = vsub.f32 %v10589_v28, %v3410_v19  ;;  %4485 = vmatprep.subr.bf16.mxu1 %v8023_v17  ;;  %v8047_v10 = vld [vmem:[#allocation10 + $0xc] ss:$16 sps:$4 sm:$0xff]  }
 0x500   : > { %8355 = vpow2.f32 %v3599_v11  ;;  %v3603_v6 = vmul.f32 1.442695, %v3477_v30  ;;  %4486 = vmatpush1.bf16.msra.mxu1 %v8021_v1 }
 0x501   : > { %v10027_v12 = vpop.eup %8345  ;;  %v3601_v32 = vmul.f32 1.442695, %v3476_v58  ;;  %4375 = vmatpush1.bf16.msra.mxu0 %v8015_v7  ;;  %4487 = vmatprep.subr.bf16.mxu1 %v8026_v2 }
 0x502   : > { %v10029_v48 = vpop.eup %8347  ;;  %v3414_v56 = vpop.xlane.xlu1 %3413  ;;  %8357 = vpow2.f32 %v3603_v6  ;;  %3717 = vadd.xlane.f32.xlu1 %v10027_v12  ;;  %4746 = vmatprep.subr.bf16.mxu0 %v8029_v13 }
 0x503   : > { %3719 = vadd.xlane.f32.xlu0 %v10029_v48  ;;  %v3478_v31 = vsub.f32 %v10590_v21, %v3414_v56  ;;  %8359 = vpow2.f32 %v3601_v32 }
 0x504   : > { %v10034_v33 = vpop.eup %8349  ;;  %4488 = vmatpush1.bf16.msra.mxu1 %v8024_v53 }
 0x505   : > { %v3605_v37 = vmul.f32 1.442695, %v3478_v31  ;;  %v10036_v5 = vpop.eup %8351  ;;  %4859 = vmatprep.subr.bf16.mxu1 %v8047_v10 }
 0x506   : > { %3721 = vadd.xlane.f32.xlu1 %v10036_v5 }
 0x507   : > { %8361 = vpow2.f32 %v3605_v37  ;;  %3723 = vadd.xlane.f32.xlu0 %v10034_v33 }
 0x509   : > { %v10040_v15 = vpop.eup %8353 }
 0x50a   : > { %v10042_v63 = vpop.eup %8355  ;;  %3725 = vadd.xlane.f32.xlu1 %v10040_v15 }
 0x50b   : > { %3727 = vadd.xlane.f32.xlu0 %v10042_v63 }
 0x50c   : > { %v10046_v36 = vpop.eup %8357 }
 0x50d   : > { %v10048_v14 = vpop.eup %8359 }
 0x50e   : > { %3729 = vadd.xlane.f32.xlu1 %v10048_v14 }
 0x50f   : > { %3731 = vadd.xlane.f32.xlu0 %v10046_v36 }
 0x511   : > { %v10052_v27 = vpop.eup %8361 }
 0x512   : > { %3733 = vadd.xlane.f32.xlu1 %v10052_v27 }
 0x556   : > { %v3672_v11 = vpop.xlane.xlu0 %3671 }
 0x557   : > { %8363 = vrcp.f32 %v3672_v11 }
 0x55a   : > { %v3676_v42 = vpop.xlane.xlu0 %3675 }
 0x55b   : > { %v3674_v19 = vpop.xlane.xlu1 %3673 }
 0x55c   : > { %8365 = vrcp.f32 %v3674_v19 }
 0x55d   : > { %8367 = vrcp.f32 %v3676_v42 }
 0x55f   : > { %v3678_v38 = vpop.xlane.xlu1 %3677 }
 0x560   : > { %8369 = vrcp.f32 %v3678_v38 }
 0x561   : > { %v8364_v30 = vpop.eup %8363 }
 0x562   : > { %v3831_v6 = vmul.f32 %v8364_v30, %v9927_v51 }
 0x566   : > { %v8366_v28 = vpop.eup %8365  ;;  %v3680_v58 = vpop.xlane.xlu0 %3679 }
 0x567   : > { %v3832_v32 = vmul.f32 %v8366_v28, %v9933_v41  ;;  %v8368_v56 = vpop.eup %8367  ;;  %8371 = vrcp.f32 %v3680_v58 }
 0x568   : > { %v3833_v37 = vmul.f32 %v8368_v56, %v9931_v61 }
 0x569   : > { %v3879_v52 = vpack.c.bf16 %v3832_v32, %v3831_v6 }
 0x56a   : > { %v8370_v47 = vpop.eup %8369  ;;  %v3684_v21 = vpop.xlane.xlu0 %3683 }
 0x56b   : > { %7229 = vmatprep.mubr.bf16.mxu1 %v3879_v52  ;;  %v3682_v31 = vpop.xlane.xlu1 %3681  ;;  %v3834_v22 = vmul.f32 %v8370_v47, %v9939_v0 }
 0x56c   : > { %8373 = vrcp.f32 %v3682_v31  ;;  %v7199_v43 = vpop.f32.mrb[96].mxu1 }
 0x56d   : > { %v3880_v18 = vpack.c.bf16 %v3834_v22, %v3833_v37  ;;  %v3929_v54 = vpop.f32.mrb[97].mxu1  ;;  %8375 = vrcp.f32 %v3684_v21 }
 0x56e   : > { %v7200_v8 = vpop.f32.mrb[98].mxu1 }
 0x56f   : > { %7230 = vmatmul.mubr.bf16.gmra.mrb[128].mxu1 %v3880_v18  ;;  %v10060_v41 = vpack.c.bf16 %v7200_v8, %v7199_v43  ;;  %v3686_v55 = vpop.xlane.xlu1 %3685  ;;  %v3932_v16 = vpop.f32.mrb[99].mxu1 }
 0x570   : > { %v3688_v51 = vpop.xlane.xlu0 %3687  ;;  %8377 = vrcp.f32 %v3686_v55  ;;  %v10062_v7 = vpack.c.bf16 %v3932_v16, %v3929_v54 }
 0x571   : > { %8379 = vrcp.f32 %v3688_v51  ;;  %v8372_v61 = vpop.eup %8371 }
 0x572   : > { %v3835_v53 = vmul.f32 %v8372_v61, %v9950_v24 }
 0x573   : > { %v3690_v46 = vpop.xlane.xlu1 %3689 }
 0x574   : > { %v3692_v34 = vpop.xlane.xlu0 %3691  ;;  %8381 = vrcp.f32 %v3690_v46  ;;  %v7203_v0 = vpop.f32.mrb[100].mxu1 }
 0x575   : > { %v3945_v17 = vpop.f32.mrb[101].mxu1  ;;  %8383 = vrcp.f32 %v3692_v34 }
 0x576   : > { %v8374_v1 = vpop.eup %8373  ;;  %v7204_v2 = vpop.f32.mrb[102].mxu1 }
 0x577   : > { %v3836_v10 = vmul.f32 %v8374_v1, %v9957_v50  ;;  %v10066_v11 = vpack.c.bf16 %v7204_v2, %v7203_v0  ;;  %v3694_v42 = vpop.xlane.xlu1 %3693  ;;  %v3948_v19 = vpop.f32.mrb[103].mxu1 }
 0x578   : > { %v3696_v13 = vpop.xlane.xlu0 %3695  ;;  %v8376_v38 = vpop.eup %8375  ;;  %8385 = vrcp.f32 %v3694_v42  ;;  %v10068_v30 = vpack.c.bf16 %v3948_v19, %v3945_v17 }
 0x579   : > { %v3881_v28 = vpack.c.bf16 %v3836_v10, %v3835_v53  ;;  %8387 = vrcp.f32 %v3696_v13  ;;  %v3837_v56 = vmul.f32 %v8376_v38, %v9955_v23 }
 0x57a   : > { %v8378_v58 = vpop.eup %8377 }
 0x57b   : > { %7233 = vmatprep.mubr.bf16.mxu1 %v3881_v28  ;;  %v3698_v32 = vpop.xlane.xlu1 %3697  ;;  %v3838_v24 = vmul.f32 %v8378_v58, %v9963_v60  ;;  %v8380_v52 = vpop.eup %8379 }
 0x57c   : > { %v3700_v6 = vpop.xlane.xlu0 %3699  ;;  %8389 = vrcp.f32 %v3698_v32  ;;  %v7207_v50 = vpop.f32.mrb[104].mxu1  ;;  %v3839_v8 = vmul.f32 %v8380_v52, %v9965_v62 }
 0x57d   : > { %v3961_v47 = vpop.f32.mrb[105].mxu1  ;;  %v3882_v21 = vpack.c.bf16 %v3838_v24, %v3837_v56  ;;  %8391 = vrcp.f32 %v3700_v6 }
 0x57e   : > { %v8382_v31 = vpop.eup %8381  ;;  %v7208_v37 = vpop.f32.mrb[106].mxu1 }
 0x57f   : > { %v10072_v43 = vpack.c.bf16 %v7208_v37, %v7207_v50  ;;  %7234 = vmatmul.mubr.bf16.gmra.mrb[132].mxu1 %v3882_v21  ;;  %v3702_v18 = vpop.xlane.xlu1 %3701  ;;  %v3964_v54 = vpop.f32.mrb[107].mxu1  ;;  %v3840_v23 = vmul.f32 %v8382_v31, %v9973_v45 }
 0x580   : > { %v3704_v22 = vpop.xlane.xlu0 %3703  ;;  %v8384_v51 = vpop.eup %8383  ;;  %8393 = vrcp.f32 %v3702_v18  ;;  %v10076_v60 = vpack.c.bf16 %v3964_v54, %v3961_v47 }
 0x581   : > { %v3883_v55 = vpack.c.bf16 %v3840_v23, %v3839_v8  ;;  %8395 = vrcp.f32 %v3704_v22  ;;  %v3841_v46 = vmul.f32 %v8384_v51, %v9971_v20  ;;  %v8027_v51 = vld [vmem:[#allocation10] ss:$16 sps:$4 sm:$0xff]  }
 0x582   : > { %v8386_v16 = vpop.eup %8385 }
 0x583   : > { %7237 = vmatprep.mubr.bf16.mxu1 %v3883_v55  ;;  %v3706_v61 = vpop.xlane.xlu1 %3705  ;;  %v3842_v0 = vmul.f32 %v8386_v16, %v9979_v59  ;;  %v8388_v1 = vpop.eup %8387  ;;  %v8032_v16 = vld [vmem:[#allocation10 + $0x24] ss:$16 sps:$4 sm:$0xff]  }
 0x584   : > { %v3708_v34 = vpop.xlane.xlu0 %3707  ;;  %8397 = vrcp.f32 %v3706_v61  ;;  %v7211_v17 = vpop.f32.mrb[108].mxu1  ;;  %v3843_v38 = vmul.f32 %v8388_v1, %v9981_v49 }
 0x585   : > { %v3977_v62 = vpop.f32.mrb[109].mxu1  ;;  %v3884_v2 = vpack.c.bf16 %v3842_v0, %v3841_v46  ;;  %8399 = vrcp.f32 %v3708_v34 }
 0x586   : > { %v8390_v45 = vpop.eup %8389  ;;  %v7212_v13 = vpop.f32.mrb[110].mxu1 }
 0x587   : > { %v10080_v10 = vpack.c.bf16 %v7212_v13, %v7211_v17  ;;  %7238 = vmatmul.mubr.bf16.gmra.mrb[136].mxu1 %v3884_v2  ;;  %v3710_v42 = vpop.xlane.xlu1 %3709  ;;  %v3980_v19 = vpop.f32.mrb[111].mxu1  ;;  %v3844_v20 = vmul.f32 %v8390_v45, %v9989_v25  ;;  %v8030_v17 = vld [vmem:[#allocation10 + $0x20] ss:$16 sps:$4 sm:$0xff]   ;;  %v8035_v45 = vld [vmem:[#allocation10 + $0x44] ss:$16 sps:$4 sm:$0xff]  }
 0x588   : > { %v3712_v53 = vpop.xlane.xlu0 %3711  ;;  %v8392_v28 = vpop.eup %8391  ;;  %8401 = vrcp.f32 %v3710_v42  ;;  %v10084_v59 = vpack.c.bf16 %v3980_v19, %v3977_v62 }
 0x589   : > { %v3885_v58 = vpack.c.bf16 %v3844_v20, %v3843_v38  ;;  %8403 = vrcp.f32 %v3712_v53  ;;  %v3845_v24 = vmul.f32 %v8392_v28, %v9987_v9 }
 0x58a   : > { %v8394_v6 = vpop.eup %8393 }
 0x58b   : > { %7241 = vmatprep.mubr.bf16.mxu1 %v3885_v58  ;;  %v3714_v56 = vpop.xlane.xlu1 %3713  ;;  %v3846_v52 = vmul.f32 %v8394_v6, %v9995_v3  ;;  %v8396_v50 = vpop.eup %8395  ;;  %v8033_v6 = vld [vmem:[#allocation10 + $0x40] ss:$16 sps:$4 sm:$0xff]  }
 0x58c   : > { %v3716_v32 = vpop.xlane.xlu0 %3715  ;;  %8405 = vrcp.f32 %v3714_v56  ;;  %v7215_v47 = vpop.f32.mrb[112].mxu1  ;;  %v3847_v8 = vmul.f32 %v8396_v50, %v9997_v44  ;;  %v8038_v56 = vld [vmem:[#allocation10 + $0x64] ss:$16 sps:$4 sm:$0xff]  }
 0x58d   : > { %v3993_v49 = vpop.f32.mrb[113].mxu1  ;;  %v3886_v21 = vpack.c.bf16 %v3846_v52, %v3845_v24  ;;  %8407 = vrcp.f32 %v3716_v32 }
 0x58e   : > { %v8398_v25 = vpop.eup %8397  ;;  %v7216_v31 = vpop.f32.mrb[114].mxu1 }
 0x58f   : > { %v10088_v22 = vpack.c.bf16 %v7216_v31, %v7215_v47  ;;  %7242 = vmatmul.mubr.bf16.gmra.mrb[140].mxu1 %v3886_v21  ;;  %v3718_v18 = vpop.xlane.xlu1 %3717  ;;  %v3996_v54 = vpop.f32.mrb[115].mxu1  ;;  %v3848_v9 = vmul.f32 %v8398_v25, %v10005_v4  ;;  %v8036_v21 = vld [vmem:[#allocation10 + $0x60] ss:$16 sps:$4 sm:$0xff]  }
 0x590   : > { %v3720_v37 = vpop.xlane.xlu0 %3719  ;;  %v8400_v23 = vpop.eup %8399  ;;  %8409 = vrcp.f32 %v3718_v18  ;;  %v10092_v3 = vpack.c.bf16 %v3996_v54, %v3993_v49 }
 0x591   : > { %v3887_v55 = vpack.c.bf16 %v3848_v9, %v3847_v8  ;;  %8411 = vrcp.f32 %v3720_v37  ;;  %v3849_v0 = vmul.f32 %v8400_v23, %v10003_v39  ;;  %v8041_v37 = vld [vmem:[#allocation10 + $0x84] ss:$16 sps:$4 sm:$0xff]  }
 0x592   : > { %v8402_v34 = vpop.eup %8401  ;;  %4393 = vmatmul.mubr.bf16.vlgmr.msra.gmra.mrb[160].mxu0 %v10092_v3 }
 0x593   : > { %7245 = vmatprep.mubr.bf16.mxu1 %v3887_v55  ;;  %v3722_v46 = vpop.xlane.xlu1 %3721  ;;  %v3850_v44 = vmul.f32 %v8402_v34, %v10011_v57  ;;  %4402 = vmatprep.mubr.bf16.mxu0 %v8668_v26  ;;  %v8404_v4 = vpop.eup %8403 }
 0x594   : > { %v3724_v61 = vpop.xlane.xlu0 %3723  ;;  %8413 = vrcp.f32 %v3722_v46  ;;  %v7219_v1 = vpop.f32.mrb[116].mxu1  ;;  %4747 = vmatpush1.bf16.msra.mxu0 %v8027_v51  ;;  %v3851_v38 = vmul.f32 %v8404_v4, %v10013_v35 }
 0x595   : > { %v4009_v62 = vpop.f32.mrb[117].mxu1  ;;  %v3888_v2 = vpack.c.bf16 %v3850_v44, %v3849_v0  ;;  %4748 = vmatprep.subr.bf16.mxu0 %v8032_v16  ;;  %8415 = vrcp.f32 %v3724_v61  ;;  %v8039_v16 = vld [vmem:[#allocation10 + $0x80] ss:$16 sps:$4 sm:$0xff]   ;;  %v8044_v61 = vld [vmem:[#allocation10 + $0xa4] ss:$16 sps:$4 sm:$0xff]  }
 0x596   : > { %v8406_v13 = vpop.eup %8405  ;;  %v7220_v53 = vpop.f32.mrb[118].mxu1 }
 0x597   : > { %v10098_v19 = vpack.c.bf16 %v7220_v53, %v7219_v1  ;;  %7246 = vmatmul.mubr.bf16.gmra.mrb[144].mxu1 %v3888_v2  ;;  %v3726_v39 = vpop.xlane.xlu1 %3725  ;;  %v4012_v57 = vpop.f32.mrb[119].mxu1  ;;  %v3852_v20 = vmul.f32 %v8406_v13, %v10021_v29  ;;  %v8050_v1 = vld [vmem:[#allocation10 + $0xc4] ss:$16 sps:$4 sm:$0xff]   ;;  %v8048_v13 = vld [vmem:[#allocation10 + $0xc0] ss:$16 sps:$4 sm:$0xff]  }
 0x598   : > { %v3728_v42 = vpop.xlane.xlu0 %3727  ;;  %v8408_v28 = vpop.eup %8407  ;;  %8417 = vrcp.f32 %v3726_v39  ;;  %v10102_v58 = vpack.c.bf16 %v4012_v57, %v4009_v62  ;;  %4749 = vmatpush1.bf16.msra.mxu0 %v8030_v17 }
 0x599   : > { %v3889_v32 = vpack.c.bf16 %v3852_v20, %v3851_v38  ;;  %4750 = vmatprep.subr.bf16.mxu0 %v8035_v45  ;;  %8419 = vrcp.f32 %v3728_v42  ;;  %v3853_v35 = vmul.f32 %v8408_v28, %v10019_v40  ;;  %v8077_v28 = vld [vmem:[#allocation10 + $0x204] ss:$16 sps:$4 sm:$0xff]  }
 0x59a   : > { %v8410_v24 = vpop.eup %8409  ;;  %4403 = vmatmul.mubr.bf16.gmra.mrb[164].mxu0 %v10088_v22 }
 0x59b   : > { %7249 = vmatprep.mubr.bf16.mxu1 %v3889_v32  ;;  %v3730_v50 = vpop.xlane.xlu1 %3729  ;;  %v3854_v29 = vmul.f32 %v8410_v24, %v10027_v12  ;;  %4412 = vmatprep.mubr.bf16.mxu0 %v8668_v26  ;;  %v8412_v47 = vpop.eup %8411  ;;  %v8054_v24 = vld [vmem:[#allocation10 + $0x28] ss:$16 sps:$4 sm:$0xff]  }
 0x59c   : > { %v3732_v52 = vpop.xlane.xlu0 %3731  ;;  %8421 = vrcp.f32 %v3730_v50  ;;  %v7223_v49 = vpop.f32.mrb[120].mxu1  ;;  %4751 = vmatpush1.bf16.msra.mxu0 %v8033_v6  ;;  %v3855_v12 = vmul.f32 %v8412_v47, %v10029_v48  ;;  %v8057_v50 = vld [vmem:[#allocation10 + $0x48] ss:$16 sps:$4 sm:$0xff]  }
 0x59d   : > { %v4025_v25 = vpop.f32.mrb[121].mxu1  ;;  %v3890_v31 = vpack.c.bf16 %v3854_v29, %v3853_v35  ;;  %4752 = vmatprep.subr.bf16.mxu0 %v8038_v56  ;;  %8423 = vrcp.f32 %v3732_v52  ;;  %v8059_v52 = vld [vmem:[#allocation10 + $0x4c] ss:$16 sps:$4 sm:$0xff]   ;;  %v8063_v47 = vld [vmem:[#allocation10 + $0x88] ss:$16 sps:$4 sm:$0xff]  }
 0x59e   : > { %v8414_v18 = vpop.eup %8413  ;;  %v7224_v54 = vpop.f32.mrb[122].mxu1  ;;  %v8062_v35 = vld [vmem:[#allocation10 + $0x6c] ss:$16 sps:$4 sm:$0xff]  }
 0x59f   : > { %v10108_v8 = vpack.c.bf16 %v7224_v54, %v7223_v49  ;;  %7250 = vmatmul.mubr.bf16.gmra.mrb[148].mxu1 %v3890_v31  ;;  %v3734_v40 = vpop.xlane.xlu1 %3733  ;;  %v4028_v9 = vpop.f32.mrb[123].mxu1  ;;  %v3856_v23 = vmul.f32 %v8414_v18, %v10036_v5  ;;  %v8042_v5 = vld [vmem:[#allocation10 + $0xa0] ss:$16 sps:$4 sm:$0xff]   ;;  %v8065_v29 = vld [vmem:[#allocation10 + $0x8c] ss:$16 sps:$4 sm:$0xff]  }
 0x5a0   : > { %v8416_v51 = vpop.eup %8415  ;;  %8425 = vrcp.f32 %v3734_v40  ;;  %v10112_v55 = vpack.c.bf16 %v4028_v9, %v4025_v25  ;;  %4753 = vmatpush1.bf16.msra.mxu0 %v8036_v21  ;;  %v8068_v49 = vld [vmem:[#allocation10 + $0xac] ss:$16 sps:$4 sm:$0xff]   ;;  %v8069_v25 = vld [vmem:[#allocation10 + $0xc8] ss:$16 sps:$4 sm:$0xff]   ;;  %v8083_v18 = vld [vmem:[#allocation10 + $0x224] ss:$16 sps:$4 sm:$0xff]  }
 0x5a1   : > { %v3891_v34 = vpack.c.bf16 %v3856_v23, %v3855_v12  ;;  %4754 = vmatprep.subr.bf16.mxu0 %v8041_v37  ;;  %v3857_v0 = vmul.f32 %v8416_v51, %v10034_v33  ;;  %v8071_v21 = vld [vmem:[#allocation10 + $0xcc] ss:$16 sps:$4 sm:$0xff]   ;;  %v8075_v37 = vld [vmem:[#allocation10 + $0x200] ss:$16 sps:$4 sm:$0xff]   ;;  %v8089_v9 = vld [vmem:[#allocation10 + $0x244] ss:$16 sps:$4 sm:$0xff]  }
 0x5a2   : > { %v8418_v46 = vpop.eup %8417  ;;  %4413 = vmatmul.mubr.bf16.gmra.mrb[168].mxu0 %v10102_v58  ;;  %v8074_v31 = vld [vmem:[#allocation10 + $0xec] ss:$16 sps:$4 sm:$0xff]   ;;  %v8081_v40 = vld [vmem:[#allocation10 + $0x220] ss:$16 sps:$4 sm:$0xff]   ;;  %v8095_v12 = vld [vmem:[#allocation10 + $0x264] ss:$16 sps:$4 sm:$0xff]  }
 0x5a3   : > { %7253 = vmatprep.mubr.bf16.mxu1 %v3891_v34  ;;  %v3858_v44 = vmul.f32 %v8418_v46, %v10040_v15  ;;  %4422 = vmatprep.mubr.bf16.mxu0 %v8668_v26  ;;  %v8420_v48 = vpop.eup %8419  ;;  %v8053_v15 = vld [vmem:[#allocation10 + $0xe4] ss:$16 sps:$4 sm:$0xff]   ;;  %v8080_v54 = vld [vmem:[#allocation10 + $0x20c] ss:$16 sps:$4 sm:$0xff]   ;;  %v8093_v23 = vld [vmem:[#allocation10 + $0x260] ss:$16 sps:$4 sm:$0xff]  }
 0x5a4   : > { %4755 = vmatpush1.bf16.msra.mxu0 %v8039_v16  ;;  %v3859_v62 = vmul.f32 %v8420_v48, %v10042_v63  ;;  %v8101_v51 = vld [vmem:[#allocation10 + $0x284] ss:$16 sps:$4 sm:$0xff]   ;;  %v8099_v16 = vld [vmem:[#allocation10 + $0x280] ss:$16 sps:$4 sm:$0xff]   ;;  %v8078_v48 = vld [vmem:[#allocation10 + $0x208] ss:$16 sps:$4 sm:$0xff]  }
 0x5a5   : > { %v3892_v4 = vpack.c.bf16 %v3858_v44, %v3857_v0  ;;  %4756 = vmatprep.subr.bf16.mxu0 %v8044_v61  ;;  %v8105_v34 = vld [vmem:[#allocation10 + $0x2a0] ss:$16 sps:$4 sm:$0xff]   ;;  %v8113_v61 = vld [vmem:[#allocation10 + $0x2c4] ss:$16 sps:$4 sm:$0xff]  }
 0x5a6   : > { %v8422_v17 = vpop.eup %8421  ;;  %v8111_v46 = vld [vmem:[#allocation10 + $0x2c0] ss:$16 sps:$4 sm:$0xff]   ;;  %v8125_v44 = vld [vmem:[#allocation10 + $0x304] ss:$16 sps:$4 sm:$0xff]  }
 0x5a7   : > { %7254 = vmatmul.mubr.bf16.gmra.mrb[152].mxu1 %v3892_v4  ;;  %v3860_v2 = vmul.f32 %v8422_v17, %v10048_v14  ;;  %v8424_v45 = vpop.eup %8423  ;;  %v8051_v14 = vld [vmem:[#allocation10 + $0xe0] ss:$16 sps:$4 sm:$0xff]   ;;  %v8084_v4 = vld [vmem:[#allocation10 + $0x228] ss:$16 sps:$4 sm:$0xff]  }
 0x5a8   : > { %4757 = vmatpush1.bf16.msra.mxu0 %v8042_v5  ;;  %v3861_v39 = vmul.f32 %v8424_v45, %v10046_v36  ;;  %v8045_v36 = vld [vmem:[#allocation10 + $0x8] ss:$16 sps:$4 sm:$0xff]   ;;  %v8117_v0 = vld [vmem:[#allocation10 + $0x2e0] ss:$16 sps:$4 sm:$0xff]   ;;  %v8086_v5 = vld [vmem:[#allocation10 + $0x22c] ss:$16 sps:$4 sm:$0xff]  }
 0x5a9   : > { %v3893_v33 = vpack.c.bf16 %v3860_v2, %v3859_v62  ;;  %4758 = vmatprep.subr.bf16.mxu0 %v8050_v1  ;;  %v8092_v1 = vld [vmem:[#allocation10 + $0x24c] ss:$16 sps:$4 sm:$0xff]   ;;  %v8090_v17 = vld [vmem:[#allocation10 + $0x248] ss:$16 sps:$4 sm:$0xff]  }
 0x5aa   : > { %v8426_v53 = vpop.eup %8425  ;;  %4423 = vmatmul.mubr.bf16.gmra.mrb[172].mxu0 %v10098_v19  ;;  %v8098_v62 = vld [vmem:[#allocation10 + $0x26c] ss:$16 sps:$4 sm:$0xff]   ;;  %v8102_v45 = vld [vmem:[#allocation10 + $0x288] ss:$16 sps:$4 sm:$0xff]  }
 0x5ab   : > { %7257 = vmatprep.mubr.bf16.mxu1 %v3893_v33  ;;  %v3862_v57 = vmul.f32 %v8426_v53, %v10052_v27  ;;  %4432 = vmatprep.mubr.bf16.mxu0 %v8668_v26  ;;  %v8056_v27 = vld [vmem:[#allocation10 + $0x2c] ss:$16 sps:$4 sm:$0xff]  }
 0x5ac   : > { %v7227_v42 = vpop.f32.mrb[124].mxu1  ;;  %4759 = vmatpush1.bf16.msra.mxu0 %v8048_v13  ;;  %v8104_v2 = vld [vmem:[#allocation10 + $0x28c] ss:$16 sps:$4 sm:$0xff]  }
 0x5ad   : > { %v4041_v63 = vpop.f32.mrb[125].mxu1  ;;  %v3894_v20 = vpack.c.bf16 %v3862_v57, %v3861_v39  ;;  %4760 = vmatprep.subr.bf16.mxu0 %v8053_v15  ;;  %v8110_v13 = vld [vmem:[#allocation10 + $0x2ac] ss:$16 sps:$4 sm:$0xff]   ;;  %v8114_v15 = vld [vmem:[#allocation10 + $0x2c8] ss:$16 sps:$4 sm:$0xff]  }
 0x5ae   : > { %v7228_v38 = vpop.f32.mrb[126].mxu1  ;;  %v8116_v33 = vld [vmem:[#allocation10 + $0x2cc] ss:$16 sps:$4 sm:$0xff]  }
 0x5af   : > { %v10124_v6 = vpack.c.bf16 %v7228_v38, %v7227_v42  ;;  %v4044_v32 = vpop.f32.mrb[127].mxu1  ;;  %7258 = vmatmul.mubr.bf16.gmra.mrb[156].mxu1 %v3894_v20  ;;  %v8122_v53 = vld [vmem:[#allocation10 + $0x2ec] ss:$16 sps:$4 sm:$0xff]   ;;  %v8126_v38 = vld [vmem:[#allocation10 + $0x308] ss:$16 sps:$4 sm:$0xff]  }
 0x5b0   : > { %v10126_v56 = vpack.c.bf16 %v4044_v32, %v4041_v63  ;;  %4505 = vmatprep.mubr.bf16.mxu1 %v8668_v26  ;;  %4761 = vmatpush1.bf16.msra.mxu0 %v8051_v14  ;;  %v8128_v42 = vld [vmem:[#allocation10 + $0x30c] ss:$16 sps:$4 sm:$0xff]  }
 0x5b1   : > { %5140 = vmatprep.subr.bf16.mxu0 %v8077_v28  ;;  %v8131_v28 = vld [vmem:[#allocation10 + $0x324] ss:$16 sps:$4 sm:$0xff]   ;;  %v8140_v32 = vld [vmem:[#allocation10 + $0x34c] ss:$16 sps:$4 sm:$0xff]  }
 0x5b2   : > { %4433 = vmatmul.mubr.bf16.gmra.mrb[176].mxu0 %v10112_v55 }
 0x5b3   : > { %4442 = vmatprep.mubr.bf16.mxu0 %v8668_v26 }
 0x5b7   : > { %4506 = vmatmul.mubr.bf16.vlgmr.msra.gmra.mrb[160].mxu1 %v10092_v3  ;;  %v8060_v3 = vld [vmem:[#allocation10 + $0x68] ss:$16 sps:$4 sm:$0xff]  }
 0x5b8   : > { %4515 = vmatprep.mubr.bf16.mxu1 %v8668_v26  ;;  %4860 = vmatpush1.bf16.msra.mxu1 %v8045_v36  ;;  %v8138_v36 = vld [vmem:[#allocation10 + $0x348] ss:$16 sps:$4 sm:$0xff]  }
 0x5b9   : > { %4861 = vmatprep.subr.bf16.mxu1 %v8056_v27  ;;  %v8143_v27 = vld [vmem:[#allocation10 + $0x364] ss:$16 sps:$4 sm:$0xff]  }
 0x5ba   : > { %4443 = vmatmul.mubr.bf16.gmra.mrb[180].mxu0 %v10108_v8 }
 0x5bb   : > { %4452 = vmatprep.mubr.bf16.mxu0 %v8668_v26 }
 0x5bc   : > { %4862 = vmatpush1.bf16.msra.mxu1 %v8054_v24  ;;  %v8146_v24 = vld [vmem:[#allocation10 + $0x36c] ss:$16 sps:$4 sm:$0xff]  }
 0x5bd   : > { %4863 = vmatprep.subr.bf16.mxu1 %v8059_v52  ;;  %v8141_v52 = vld [vmem:[#allocation10 + $0x360] ss:$16 sps:$4 sm:$0xff]  }
 0x5bf   : > { %4516 = vmatmul.mubr.bf16.gmra.mrb[164].mxu1 %v10088_v22  ;;  %v8066_v22 = vld [vmem:[#allocation10 + $0xa8] ss:$16 sps:$4 sm:$0xff]  }
 0x5c0   : > { %4525 = vmatprep.mubr.bf16.mxu1 %v8668_v26  ;;  %4864 = vmatpush1.bf16.msra.mxu1 %v8057_v50  ;;  %v8144_v50 = vld [vmem:[#allocation10 + $0x368] ss:$16 sps:$4 sm:$0xff]  }
 0x5c1   : > { %4865 = vmatprep.subr.bf16.mxu1 %v8062_v35 }
 0x5c2   : > { %4453 = vmatmul.mubr.bf16.gmra.mrb[184].mxu0 %v10126_v56 }
 0x5c3   : > { %4462 = vmatprep.mubr.bf16.mxu0 %v8668_v26 }
 0x5c4   : > { %4866 = vmatpush1.bf16.msra.mxu1 %v8060_v3  ;;  %v8149_v3 = vld [vmem:[#allocation10 + $0x384] ss:$16 sps:$4 sm:$0xff]  }
 0x5c5   : > { %4867 = vmatprep.subr.bf16.mxu1 %v8065_v29  ;;  %v8152_v29 = vld [vmem:[#allocation10 + $0x38c] ss:$16 sps:$4 sm:$0xff]  }
 0x5c7   : > { %4526 = vmatmul.mubr.bf16.gmra.mrb[168].mxu1 %v10102_v58  ;;  %v8072_v58 = vld [vmem:[#allocation10 + $0xe8] ss:$16 sps:$4 sm:$0xff]  }
 0x5c8   : > { %4535 = vmatprep.mubr.bf16.mxu1 %v8668_v26  ;;  %4868 = vmatpush1.bf16.msra.mxu1 %v8063_v47 }
 0x5c9   : > { %4869 = vmatprep.subr.bf16.mxu1 %v8068_v49 }
 0x5ca   : > { %4463 = vmatmul.mubr.bf16.gmra.mrb[188].mxu0 %v10124_v6 }
 0x5cb   : > { %4778 = vmatprep.mubr.bf16.mxu0 %v8668_v26 }
 0x5cc   : > { %4870 = vmatpush1.bf16.msra.mxu1 %v8066_v22 }
 0x5cd   : > { %4871 = vmatprep.subr.bf16.mxu1 %v8071_v21 }
 0x5cf   : > { %4536 = vmatmul.mubr.bf16.gmra.mrb[172].mxu1 %v10098_v19  ;;  %v8087_v19 = vld [vmem:[#allocation10 + $0x240] ss:$16 sps:$4 sm:$0xff]  }
 0x5d0   : > { %4545 = vmatprep.mubr.bf16.mxu1 %v8668_v26  ;;  %4872 = vmatpush1.bf16.msra.mxu1 %v8069_v25 }
 0x5d1   : > { %4873 = vmatprep.subr.bf16.mxu1 %v8074_v31  ;;  %v8147_v31 = vld [vmem:[#allocation10 + $0x380] ss:$16 sps:$4 sm:$0xff]  }
 0x5d2   : > { %4779 = vmatmul.mubr.bf16.vlgmr.msra.gmra.mrb[160].mxu0 %v10062_v7 }
 0x5d3   : > { %4788 = vmatprep.mubr.bf16.mxu0 %v8668_v26  ;;  %5141 = vmatpush1.bf16.msra.mxu0 %v8075_v37  ;;  %v8150_v37 = vld [vmem:[#allocation10 + $0x388] ss:$16 sps:$4 sm:$0xff]  }
 0x5d4   : > { %4874 = vmatpush1.bf16.msra.mxu1 %v8072_v58  ;;  %5142 = vmatprep.subr.bf16.mxu0 %v8083_v18  ;;  %v8155_v58 = vld [vmem:[#allocation10 + $0x3a4] ss:$16 sps:$4 sm:$0xff]   ;;  %v8158_v18 = vld [vmem:[#allocation10 + $0x3ac] ss:$16 sps:$4 sm:$0xff]  }
 0x5d5   : > { %5253 = vmatprep.subr.bf16.mxu1 %v8080_v54 }
 0x5d7   : > { %4546 = vmatmul.mubr.bf16.gmra.mrb[176].mxu1 %v10112_v55  ;;  %5143 = vmatpush1.bf16.msra.mxu0 %v8081_v40  ;;  %v8107_v55 = vld [vmem:[#allocation10 + $0x2a4] ss:$16 sps:$4 sm:$0xff]   ;;  %v8153_v40 = vld [vmem:[#allocation10 + $0x3a0] ss:$16 sps:$4 sm:$0xff]  }
 0x5d8   : > { %4555 = vmatprep.mubr.bf16.mxu1 %v8668_v26  ;;  %5144 = vmatprep.subr.bf16.mxu0 %v8089_v9  ;;  %v8156_v9 = vld [vmem:[#allocation10 + $0x3a8] ss:$16 sps:$4 sm:$0xff]  }
 0x5da   : > { %4789 = vmatmul.mubr.bf16.gmra.mrb[164].mxu0 %v10060_v41 }
 0x5db   : > { %4798 = vmatprep.mubr.bf16.mxu0 %v8668_v26  ;;  %5145 = vmatpush1.bf16.msra.mxu0 %v8087_v19 }
 0x5dc   : > { %5146 = vmatprep.subr.bf16.mxu0 %v8095_v12  ;;  %v8161_v12 = vld [vmem:[#allocation10 + $0x3c4] ss:$16 sps:$4 sm:$0xff]  }
 0x5df   : > { %4556 = vmatmul.mubr.bf16.gmra.mrb[180].mxu1 %v10108_v8  ;;  %5147 = vmatpush1.bf16.msra.mxu0 %v8093_v23  ;;  %v8119_v8 = vld [vmem:[#allocation10 + $0x2e4] ss:$16 sps:$4 sm:$0xff]   ;;  %v8164_v23 = vld [vmem:[#allocation10 + $0x3cc] ss:$16 sps:$4 sm:$0xff]  }
 0x5e0   : > { %4565 = vmatprep.mubr.bf16.mxu1 %v8668_v26  ;;  %5148 = vmatprep.subr.bf16.mxu0 %v8101_v51 }
 0x5e2   : > { %4799 = vmatmul.mubr.bf16.gmra.mrb[168].mxu0 %v10068_v30 }
 0x5e3   : > { %4808 = vmatprep.mubr.bf16.mxu0 %v8668_v26  ;;  %5149 = vmatpush1.bf16.msra.mxu0 %v8099_v16 }
 0x5e4   : > { %5150 = vmatprep.subr.bf16.mxu0 %v8107_v55 }
 0x5e7   : > { %4566 = vmatmul.mubr.bf16.gmra.mrb[184].mxu1 %v10126_v56  ;;  %5151 = vmatpush1.bf16.msra.mxu0 %v8105_v34  ;;  %v8135_v56 = vld [vmem:[#allocation10 + $0x340] ss:$16 sps:$4 sm:$0xff]  }
 0x5e8   : > { %4575 = vmatprep.mubr.bf16.mxu1 %v8668_v26  ;;  %5152 = vmatprep.subr.bf16.mxu0 %v8113_v61  ;;  %v8159_v61 = vld [vmem:[#allocation10 + $0x3c0] ss:$16 sps:$4 sm:$0xff]  }
 0x5ea   : > { %4809 = vmatmul.mubr.bf16.gmra.mrb[172].mxu0 %v10066_v11 }
 0x5eb   : > { %4818 = vmatprep.mubr.bf16.mxu0 %v8668_v26  ;;  %5153 = vmatpush1.bf16.msra.mxu0 %v8111_v46  ;;  %v8162_v46 = vld [vmem:[#allocation10 + $0x3c8] ss:$16 sps:$4 sm:$0xff]  }
 0x5ec   : > { %5154 = vmatprep.subr.bf16.mxu0 %v8119_v8  ;;  %v8167_v8 = vld [vmem:[#allocation10 + $0x3e4] ss:$16 sps:$4 sm:$0xff]  }
 0x5ef   : > { %4576 = vmatmul.mubr.bf16.gmra.mrb[188].mxu1 %v10124_v6  ;;  %5155 = vmatpush1.bf16.msra.mxu0 %v8117_v0  ;;  %v8132_v6 = vld [vmem:[#allocation10 + $0x328] ss:$16 sps:$4 sm:$0xff]   ;;  %v8170_v0 = vld [vmem:[#allocation10 + $0x3ec] ss:$16 sps:$4 sm:$0xff]  }
 0x5f0   : > { %4891 = vmatprep.mubr.bf16.mxu1 %v8668_v26  ;;  %5598 = vmatprep.subr.bf16.mxu0 %v8125_v44 }
 0x5f2   : > { %4819 = vmatmul.mubr.bf16.gmra.mrb[176].mxu0 %v10076_v60 }
 0x5f3   : > { %4828 = vmatprep.mubr.bf16.mxu0 %v8668_v26 }
 0x5f7   : > { %4892 = vmatmul.mubr.bf16.vlgmr.msra.gmra.mrb[160].mxu1 %v10062_v7  ;;  %v8096_v7 = vld [vmem:[#allocation10 + $0x268] ss:$16 sps:$4 sm:$0xff]  }
 0x5f8   : > { %4901 = vmatprep.mubr.bf16.mxu1 %v8668_v26  ;;  %5254 = vmatpush1.bf16.msra.mxu1 %v8078_v48  ;;  %v8165_v48 = vld [vmem:[#allocation10 + $0x3e0] ss:$16 sps:$4 sm:$0xff]  }
 0x5f9   : > { %5255 = vmatprep.subr.bf16.mxu1 %v8086_v5  ;;  %v8168_v5 = vld [vmem:[#allocation10 + $0x3e8] ss:$16 sps:$4 sm:$0xff]  }
 0x5fa   : > { %4829 = vmatmul.mubr.bf16.gmra.mrb[180].mxu0 %v10072_v43 }
 0x5fb   : > { %4838 = vmatprep.mubr.bf16.mxu0 %v8668_v26 }
 0x5fc   : > { %5256 = vmatpush1.bf16.msra.mxu1 %v8084_v4 }
 0x5fd   : > { %5257 = vmatprep.subr.bf16.mxu1 %v8092_v1 }
 0x5ff   : > { %4902 = vmatmul.mubr.bf16.gmra.mrb[164].mxu1 %v10060_v41  ;;  %v8108_v41 = vld [vmem:[#allocation10 + $0x2a8] ss:$16 sps:$4 sm:$0xff]  }
 0x600   : > { %4911 = vmatprep.mubr.bf16.mxu1 %v8668_v26  ;;  %5258 = vmatpush1.bf16.msra.mxu1 %v8090_v17 }
 0x601   : > { %5259 = vmatprep.subr.bf16.mxu1 %v8098_v62 }
 0x602   : > { %4839 = vmatmul.mubr.bf16.gmra.mrb[184].mxu0 %v10084_v59 }
 0x603   : > { %4848 = vmatprep.mubr.bf16.mxu0 %v8668_v26 }
 0x604   : > { %5260 = vmatpush1.bf16.msra.mxu1 %v8096_v7 }
 0x605   : > { %5261 = vmatprep.subr.bf16.mxu1 %v8104_v2 }
 0x607   : > { %4912 = vmatmul.mubr.bf16.gmra.mrb[168].mxu1 %v10068_v30  ;;  %v8120_v30 = vld [vmem:[#allocation10 + $0x2e8] ss:$16 sps:$4 sm:$0xff]  }
 0x608   : > { %4921 = vmatprep.mubr.bf16.mxu1 %v8668_v26  ;;  %5262 = vmatpush1.bf16.msra.mxu1 %v8102_v45 }
 0x609   : > { %5263 = vmatprep.subr.bf16.mxu1 %v8110_v13 }
 0x60a   : > { %4849 = vmatmul.mubr.bf16.gmra.mrb[188].mxu0 %v10080_v10 }
 0x60b   : > { %5172 = vmatprep.mubr.bf16.mxu0 %v8668_v26 }
 0x60c   : > { %5264 = vmatpush1.bf16.msra.mxu1 %v8108_v41 }
 0x60d   : > { %5265 = vmatprep.subr.bf16.mxu1 %v8116_v33 }
 0x60f   : > { %4922 = vmatmul.mubr.bf16.gmra.mrb[172].mxu1 %v10066_v11 }
 0x610   : > { %4931 = vmatprep.mubr.bf16.mxu1 %v8668_v26  ;;  %5266 = vmatpush1.bf16.msra.mxu1 %v8114_v15 }
 0x611   : > { %5267 = vmatprep.subr.bf16.mxu1 %v8122_v53 }
 0x614   : > { %5268 = vmatpush1.bf16.msra.mxu1 %v8120_v30 }
 0x615   : > { %5711 = vmatprep.subr.bf16.mxu1 %v8128_v42 }
 0x617   : > { %4932 = vmatmul.mubr.bf16.gmra.mrb[176].mxu1 %v10076_v60  ;;  %v8123_v60 = vld [vmem:[#allocation10 + $0x300] ss:$16 sps:$4 sm:$0xff]  }
 0x618   : > { %4941 = vmatprep.mubr.bf16.mxu1 %v8668_v26 }
 0x61f   : > { %4942 = vmatmul.mubr.bf16.gmra.mrb[180].mxu1 %v10072_v43  ;;  %v8134_v43 = vld [vmem:[#allocation10 + $0x32c] ss:$16 sps:$4 sm:$0xff]  }
 0x620   : > { %4951 = vmatprep.mubr.bf16.mxu1 %v8668_v26 }
 0x627   : > { %4952 = vmatmul.mubr.bf16.gmra.mrb[184].mxu1 %v10084_v59  ;;  %v8129_v59 = vld [vmem:[#allocation10 + $0x320] ss:$16 sps:$4 sm:$0xff]  }
 0x628   : > { %4961 = vmatprep.mubr.bf16.mxu1 %v8668_v26 }
 0x62f   : > { %4962 = vmatmul.mubr.bf16.gmra.mrb[188].mxu1 %v10080_v10  ;;  %v8137_v10 = vld [vmem:[#allocation10 + $0x344] ss:$16 sps:$4 sm:$0xff]  }
 0x630   : > { %5285 = vmatprep.mubr.bf16.mxu1 %v8668_v26 }
 0x642   : > { %v7231_v11 = vpop.f32.mrb[128].mxu1 }
 0x643   : > { %v4057_v39 = vpop.f32.mrb[129].mxu1 }
 0x644   : > { %v7232_v57 = vpop.f32.mrb[130].mxu1 }
 0x645   : > { %v4973_v63 = vpack.c.bf16 %v7232_v57, %v7231_v11  ;;  %v4060_v14 = vpop.f32.mrb[131].mxu1 }
 0x646   : > { %v4972_v20 = vpack.c.bf16 %v4060_v14, %v4057_v39 }
 0x648   : > { %5173 = vmatmul.mubr.bf16.vlgmr.msra.gmra.mrb[160].mxu0 %v4972_v20  ;;  %5286 = vmatmul.mubr.bf16.vlgmr.msra.gmra.mrb[160].mxu1 %v4972_v20 }
 0x649   : > { %5599 = vmatpush1.bf16.msra.mxu0 %v8123_v60  ;;  %5712 = vmatpush1.bf16.msra.mxu1 %v8126_v38 }
 0x64a   : > { %5182 = vmatprep.mubr.bf16.mxu0 %v8668_v26  ;;  %5295 = vmatprep.mubr.bf16.mxu1 %v8668_v26 }
 0x64b   : > { %5600 = vmatprep.subr.bf16.mxu0 %v8131_v28  ;;  %5713 = vmatprep.subr.bf16.mxu1 %v8134_v43 }
 0x64d   : > { %5601 = vmatpush1.bf16.msra.mxu0 %v8129_v59  ;;  %5714 = vmatpush1.bf16.msra.mxu1 %v8132_v6 }
 0x64e   : > { %5602 = vmatprep.subr.bf16.mxu0 %v8137_v10  ;;  %5715 = vmatprep.subr.bf16.mxu1 %v8140_v32 }
 0x650   : > { %5183 = vmatmul.mubr.bf16.gmra.mrb[164].mxu0 %v4973_v63  ;;  %5296 = vmatmul.mubr.bf16.gmra.mrb[164].mxu1 %v4973_v63 }
 0x651   : > { %5192 = vmatprep.mubr.bf16.mxu0 %v8668_v26  ;;  %5305 = vmatprep.mubr.bf16.mxu1 %v8668_v26 }
 0x652   : > { %5603 = vmatpush1.bf16.msra.mxu0 %v8135_v56  ;;  %5716 = vmatpush1.bf16.msra.mxu1 %v8138_v36  ;;  %v7235_v35 = vpop.f32.mrb[132].mxu1  ;;  %v5888_v36 = vld [vmem:[%s10591_s26] sm:$0xf] }
 0x653   : > { %5604 = vmatprep.subr.bf16.mxu0 %v8143_v27  ;;  %5717 = vmatprep.subr.bf16.mxu1 %v8146_v24  ;;  %v4073_v47 = vpop.f32.mrb[133].mxu1  ;;  %v10592_v27 = vld [vmem:[#allocation18_spill] sm:$0xff] }
 0x654   : > { %v7236_v49 = vpop.f32.mrb[134].mxu1  ;;  %v10593_v24 = vsub.s32 0, %v10592_v27 }
 0x655   : > { %v4975_v22 = vpack.c.bf16 %v7236_v49, %v7235_v35  ;;  %v4076_v21 = vpop.f32.mrb[135].mxu1 }
 0x656   : > { %5605 = vmatpush1.bf16.msra.mxu0 %v8141_v52  ;;  %5718 = vmatpush1.bf16.msra.mxu1 %v8144_v50  ;;  %v4974_v25 = vpack.c.bf16 %v4076_v21, %v4073_v47  ;;  %v10220_v52 = vrot.slane %v5888_v36, %v10593_v24  ;;  %v10594_v50 = vsub.s32 2, %v10592_v27 }
 0x657   : > { %5606 = vmatprep.subr.bf16.mxu0 %v8149_v3  ;;  %5719 = vmatprep.subr.bf16.mxu1 %v8152_v29  ;;  %v10595_v3 = vsub.s32 1, %v10592_v27 }
 0x658   : > { %5193 = vmatmul.mubr.bf16.gmra.mrb[168].mxu0 %v4974_v25  ;;  %5306 = vmatmul.mubr.bf16.gmra.mrb[168].mxu1 %v4974_v25  ;;  %v10224_v35 = vrot.slane %v5888_v36, %v10594_v50 }
 0x659   : > { %5202 = vmatprep.mubr.bf16.mxu0 %v8668_v26  ;;  %5315 = vmatprep.mubr.bf16.mxu1 %v8668_v26  ;;  %v10228_v29 = vrot.slane %v5888_v36, %v10595_v3 }
 0x65a   : > { %v7239_v54 = vpop.f32.mrb[136].mxu1  ;;  %5607 = vmatpush1.bf16.msra.mxu0 %v8147_v31  ;;  %5720 = vmatpush1.bf16.msra.mxu1 %v8150_v37 }
 0x65b   : > { %v4089_v19 = vpop.f32.mrb[137].mxu1  ;;  %5608 = vmatprep.subr.bf16.mxu0 %v8155_v58  ;;  %5721 = vmatprep.subr.bf16.mxu1 %v8158_v18 }
 0x65c   : > { %v7240_v51 = vpop.f32.mrb[138].mxu1 }
 0x65d   : > { %v4977_v16 = vpack.c.bf16 %v7240_v51, %v7239_v54  ;;  %v4092_v55 = vpop.f32.mrb[139].mxu1 }
 0x65e   : > { %v4976_v34 = vpack.c.bf16 %v4092_v55, %v4089_v19  ;;  %5609 = vmatpush1.bf16.msra.mxu0 %v8153_v40  ;;  %5722 = vmatpush1.bf16.msra.mxu1 %v8156_v9 }
 0x65f   : > { %5610 = vmatprep.subr.bf16.mxu0 %v8161_v12  ;;  %5723 = vmatprep.subr.bf16.mxu1 %v8164_v23 }
 0x660   : > { %5203 = vmatmul.mubr.bf16.gmra.mrb[172].mxu0 %v4975_v22  ;;  %5316 = vmatmul.mubr.bf16.gmra.mrb[172].mxu1 %v4975_v22 }
 0x661   : > { %5212 = vmatprep.mubr.bf16.mxu0 %v8668_v26  ;;  %5325 = vmatprep.mubr.bf16.mxu1 %v8668_v26 }
 0x662   : > { %v7243_v44 = vpop.f32.mrb[140].mxu1  ;;  %5611 = vmatpush1.bf16.msra.mxu0 %v8159_v61  ;;  %5724 = vmatpush1.bf16.msra.mxu1 %v8162_v46 }
 0x663   : > { %v4105_v4 = vpop.f32.mrb[141].mxu1  ;;  %5612 = vmatprep.subr.bf16.mxu0 %v8167_v8  ;;  %5725 = vmatprep.subr.bf16.mxu1 %v8170_v0 }
 0x664   : > { %v7244_v1 = vpop.f32.mrb[142].mxu1 }
 0x665   : > { %v4979_v17 = vpack.c.bf16 %v7244_v1, %v7243_v44  ;;  %v4108_v62 = vpop.f32.mrb[143].mxu1 }
 0x666   : > { %v4978_v7 = vpack.c.bf16 %v4108_v62, %v4105_v4  ;;  %5613 = vmatpush1.bf16.msra.mxu0 %v8165_v48  ;;  %5726 = vmatpush1.bf16.msra.mxu1 %v8168_v5 }
 0x668   : > { %5213 = vmatmul.mubr.bf16.gmra.mrb[176].mxu0 %v4976_v34  ;;  %5326 = vmatmul.mubr.bf16.gmra.mrb[176].mxu1 %v4976_v34 }
 0x669   : > { %5222 = vmatprep.mubr.bf16.mxu0 %v8668_v26  ;;  %5335 = vmatprep.mubr.bf16.mxu1 %v8668_v26 }
 0x66a   : > { %v7247_v2 = vpop.f32.mrb[144].mxu1 }
 0x66b   : > { %v4121_v45 = vpop.f32.mrb[145].mxu1 }
 0x66c   : > { %v7248_v13 = vpop.f32.mrb[146].mxu1 }
 0x66d   : > { %v5431_v41 = vpack.c.bf16 %v7248_v13, %v7247_v2  ;;  %v4124_v33 = vpop.f32.mrb[147].mxu1 }
 0x66e   : > { %v5430_v15 = vpack.c.bf16 %v4124_v33, %v4121_v45 }
 0x670   : > { %5223 = vmatmul.mubr.bf16.gmra.mrb[180].mxu0 %v4977_v16  ;;  %5336 = vmatmul.mubr.bf16.gmra.mrb[180].mxu1 %v4977_v16 }
 0x671   : > { %5232 = vmatprep.mubr.bf16.mxu0 %v8668_v26  ;;  %5345 = vmatprep.mubr.bf16.mxu1 %v8668_v26 }
 0x672   : > { %v7251_v53 = vpop.f32.mrb[148].mxu1 }
 0x673   : > { %v4137_v30 = vpop.f32.mrb[149].mxu1 }
 0x674   : > { %v7252_v42 = vpop.f32.mrb[150].mxu1 }
 0x675   : > { %v5433_v11 = vpack.c.bf16 %v7252_v42, %v7251_v53  ;;  %v4140_v39 = vpop.f32.mrb[151].mxu1 }
 0x676   : > { %v5432_v57 = vpack.c.bf16 %v4140_v39, %v4137_v30 }
 0x678   : > { %5233 = vmatmul.mubr.bf16.gmra.mrb[184].mxu0 %v4978_v7  ;;  %5346 = vmatmul.mubr.bf16.gmra.mrb[184].mxu1 %v4978_v7 }
 0x679   : > { %5242 = vmatprep.mubr.bf16.mxu0 %v8668_v26  ;;  %5355 = vmatprep.mubr.bf16.mxu1 %v8668_v26 }
 0x67a   : > { %v7255_v63 = vpop.f32.mrb[152].mxu1 }
 0x67b   : > { %v4153_v14 = vpop.f32.mrb[153].mxu1 }
 0x67c   : > { %v7256_v60 = vpop.f32.mrb[154].mxu1 }
 0x67d   : > { %v5435_v38 = vpack.c.bf16 %v7256_v60, %v7255_v63  ;;  %v4156_v20 = vpop.f32.mrb[155].mxu1 }
 0x67e   : > { %v5434_v28 = vpack.c.bf16 %v4156_v20, %v4153_v14 }
 0x680   : > { %5243 = vmatmul.mubr.bf16.gmra.mrb[188].mxu0 %v4979_v17  ;;  %5356 = vmatmul.mubr.bf16.gmra.mrb[188].mxu1 %v4979_v17 }
 0x681   : > { %5630 = vmatprep.mubr.bf16.mxu0 %v8668_v26  ;;  %5743 = vmatprep.mubr.bf16.mxu1 %v8668_v26 }
 0x682   : > { %v7259_v43 = vpop.f32.mrb[156].mxu1 }
 0x683   : > { %v4169_v59 = vpop.f32.mrb[157].mxu1 }
 0x684   : > { %v7260_v6 = vpop.f32.mrb[158].mxu1 }
 0x685   : > { %v5437_v10 = vpack.c.bf16 %v7260_v6, %v7259_v43  ;;  %v4172_v32 = vpop.f32.mrb[159].mxu1 }
 0x686   : > { %v5436_v56 = vpack.c.bf16 %v4172_v32, %v4169_v59 }
 0x688   : > { %5631 = vmatmul.mubr.bf16.vlgmr.msra.gmra.mrb[160].mxu0 %v5430_v15  ;;  %5744 = vmatmul.mubr.bf16.vlgmr.msra.gmra.mrb[160].mxu1 %v5430_v15 }
 0x689   : > { %5640 = vmatprep.mubr.bf16.mxu0 %v8668_v26  ;;  %5753 = vmatprep.mubr.bf16.mxu1 %v8668_v26 }
 0x690   : > { %5641 = vmatmul.mubr.bf16.gmra.mrb[164].mxu0 %v5431_v41  ;;  %5754 = vmatmul.mubr.bf16.gmra.mrb[164].mxu1 %v5431_v41 }
 0x691   : > { %5650 = vmatprep.mubr.bf16.mxu0 %v8668_v26  ;;  %5763 = vmatprep.mubr.bf16.mxu1 %v8668_v26 }
 0x698   : > { %5651 = vmatmul.mubr.bf16.gmra.mrb[168].mxu0 %v5432_v57  ;;  %5764 = vmatmul.mubr.bf16.gmra.mrb[168].mxu1 %v5432_v57 }
 0x699   : > { %5660 = vmatprep.mubr.bf16.mxu0 %v8668_v26  ;;  %5773 = vmatprep.mubr.bf16.mxu1 %v8668_v26 }
 0x6a0   : > { %5661 = vmatmul.mubr.bf16.gmra.mrb[172].mxu0 %v5433_v11  ;;  %5774 = vmatmul.mubr.bf16.gmra.mrb[172].mxu1 %v5433_v11 }
 0x6a1   : > { %5670 = vmatprep.mubr.bf16.mxu0 %v8668_v26  ;;  %5783 = vmatprep.mubr.bf16.mxu1 %v8668_v26 }
 0x6a8   : > { %5671 = vmatmul.mubr.bf16.gmra.mrb[176].mxu0 %v5434_v28  ;;  %5784 = vmatmul.mubr.bf16.gmra.mrb[176].mxu1 %v5434_v28 }
 0x6a9   : > { %5680 = vmatprep.mubr.bf16.mxu0 %v8668_v26  ;;  %5793 = vmatprep.mubr.bf16.mxu1 %v8668_v26 }
 0x6b0   : > { %5681 = vmatmul.mubr.bf16.gmra.mrb[180].mxu0 %v5435_v38  ;;  %5794 = vmatmul.mubr.bf16.gmra.mrb[180].mxu1 %v5435_v38 }
 0x6b1   : > { %5690 = vmatprep.mubr.bf16.mxu0 %v8668_v26  ;;  %5803 = vmatprep.mubr.bf16.mxu1 %v8668_v26 }
 0x6b8   : > { %5691 = vmatmul.mubr.bf16.gmra.mrb[184].mxu0 %v5436_v56  ;;  %5804 = vmatmul.mubr.bf16.gmra.mrb[184].mxu1 %v5436_v56 }
 0x6b9   : > { %5700 = vmatprep.mubr.bf16.mxu0 %v8668_v26  ;;  %5813 = vmatprep.mubr.bf16.mxu1 %v8668_v26  ;;  %v10596_v26 = vsub.s32 3, %v10592_v27 }
 0x6bb   : > { %v10232_v47 = vrot.slane %v5888_v36, %v10596_v26 }
 0x6c0   : > { %5701 = vmatmul.mubr.bf16.gmra.mrb[188].mxu0 %v5437_v10  ;;  %5814 = vmatmul.mubr.bf16.gmra.mrb[188].mxu1 %v5437_v10 }
 0x75b   : > { %v5632_v49 = vpop.f32.mrb[160].mxu0  ;;  %v5745_v22 = vpop.f32.mrb[160].mxu1 }
 0x75c   : > { %v5910_v21 = vadd.f32 %v10220_v52, %v5632_v49  ;;  %v5912_v25 = vadd.f32 %v10224_v35, %v5745_v22  ;;  %v5634_v31 = vpop.f32.mrb[161].mxu0  ;;  %v5747_v37 = vpop.f32.mrb[161].mxu1 }
 0x75d   : > { %v5911_v58 = vadd.f32 %v10228_v29, %v5634_v31  ;;  %v5913_v18 = vadd.f32 %v10232_v47, %v5747_v37  ;;  %v5636_v54 = vpop.f32.mrb[162].mxu0  ;;  %v5749_v40 = vpop.f32.mrb[162].mxu1 }
 0x75e   : > { %v5914_v9 = vadd.f32 %v10220_v52, %v5636_v54  ;;  %v5916_v19 = vadd.f32 %v10224_v35, %v5749_v40  ;;  %v5638_v12 = vpop.f32.mrb[163].mxu0  ;;  %v5751_v23 = vpop.f32.mrb[163].mxu1 }
 0x75f   : > { %v6732_v51 = vpack.c.bf16 %v5911_v58, %v5910_v21  ;;  %v6733_v16 = vpack.c.bf16 %v5913_v18, %v5912_v25  ;;  %v5915_v55 = vadd.f32 %v10228_v29, %v5638_v12  ;;  %v5917_v34 = vadd.f32 %v10232_v47, %v5751_v23 }
 0x761   : > { %6166 = vst [vmem:[%s10244_s8] sm:$0xff] %v6732_v51  ;;  %6167 = vst [vmem:[%s10244_s8 + $0x8] sm:$0xff] %v6733_v16  ;;  %v6734_v61 = vpack.c.bf16 %v5915_v55, %v5914_v9  ;;  %v6735_v46 = vpack.c.bf16 %v5917_v34, %v5916_v19 }
 0x763   : > { %6168 = vst [vmem:[%s10244_s8 + $0x10] sm:$0xff] %v6734_v61  ;;  %6169 = vst [vmem:[%s10244_s8 + $0x18] sm:$0xff] %v6735_v46  ;;  %v5642_v8 = vpop.f32.mrb[164].mxu0  ;;  %v5755_v0 = vpop.f32.mrb[164].mxu1 }
 0x764   : > { %v5918_v44 = vadd.f32 %v10220_v52, %v5642_v8  ;;  %v5920_v48 = vadd.f32 %v10224_v35, %v5755_v0  ;;  %v5644_v5 = vpop.f32.mrb[165].mxu0  ;;  %v5757_v4 = vpop.f32.mrb[165].mxu1 }
 0x765   : > { %v5919_v1 = vadd.f32 %v10228_v29, %v5644_v5  ;;  %v5921_v17 = vadd.f32 %v10232_v47, %v5757_v4  ;;  %v5646_v62 = vpop.f32.mrb[166].mxu0  ;;  %v5759_v7 = vpop.f32.mrb[166].mxu1 }
 0x766   : > { %v5922_v2 = vadd.f32 %v10220_v52, %v5646_v62  ;;  %v5924_v45 = vadd.f32 %v10224_v35, %v5759_v7  ;;  %v5648_v13 = vpop.f32.mrb[167].mxu0  ;;  %v5761_v41 = vpop.f32.mrb[167].mxu1 }
 0x767   : > { %v6736_v33 = vpack.c.bf16 %v5919_v1, %v5918_v44  ;;  %v6737_v15 = vpack.c.bf16 %v5921_v17, %v5920_v48  ;;  %v5923_v53 = vadd.f32 %v10228_v29, %v5648_v13  ;;  %v5925_v30 = vadd.f32 %v10232_v47, %v5761_v41 }
 0x769   : > { %6170 = vst [vmem:[%s10244_s8 + $0x20] sm:$0xff] %v6736_v33  ;;  %6171 = vst [vmem:[%s10244_s8 + $0x28] sm:$0xff] %v6737_v15  ;;  %v6738_v42 = vpack.c.bf16 %v5923_v53, %v5922_v2  ;;  %v6739_v11 = vpack.c.bf16 %v5925_v30, %v5924_v45 }
 0x76b   : > { %6172 = vst [vmem:[%s10244_s8 + $0x30] sm:$0xff] %v6738_v42  ;;  %6173 = vst [vmem:[%s10244_s8 + $0x38] sm:$0xff] %v6739_v11  ;;  %v5652_v39 = vpop.f32.mrb[168].mxu0  ;;  %v5765_v57 = vpop.f32.mrb[168].mxu1 }
 0x76c   : > { %v5926_v63 = vadd.f32 %v10220_v52, %v5652_v39  ;;  %v5928_v14 = vadd.f32 %v10224_v35, %v5765_v57  ;;  %v5654_v60 = vpop.f32.mrb[169].mxu0  ;;  %v5767_v38 = vpop.f32.mrb[169].mxu1 }
 0x76d   : > { %v5927_v20 = vadd.f32 %v10228_v29, %v5654_v60  ;;  %v5929_v28 = vadd.f32 %v10232_v47, %v5767_v38  ;;  %v5656_v43 = vpop.f32.mrb[170].mxu0  ;;  %v5769_v59 = vpop.f32.mrb[170].mxu1 }
 0x76e   : > { %v5930_v6 = vadd.f32 %v10220_v52, %v5656_v43  ;;  %v5932_v10 = vadd.f32 %v10224_v35, %v5769_v59  ;;  %v5658_v32 = vpop.f32.mrb[171].mxu0  ;;  %v5771_v56 = vpop.f32.mrb[171].mxu1 }
 0x76f   : > { %v6740_v36 = vpack.c.bf16 %v5927_v20, %v5926_v63  ;;  %v6741_v27 = vpack.c.bf16 %v5929_v28, %v5928_v14  ;;  %v5931_v24 = vadd.f32 %v10228_v29, %v5658_v32  ;;  %v5933_v50 = vadd.f32 %v10232_v47, %v5771_v56 }
 0x771   : > { %6174 = vst [vmem:[%s10244_s8 + $0x40] sm:$0xff] %v6740_v36  ;;  %6175 = vst [vmem:[%s10244_s8 + $0x48] sm:$0xff] %v6741_v27  ;;  %v6742_v3 = vpack.c.bf16 %v5931_v24, %v5930_v6  ;;  %v6743_v26 = vpack.c.bf16 %v5933_v50, %v5932_v10 }
 0x773   : > { %6176 = vst [vmem:[%s10244_s8 + $0x50] sm:$0xff] %v6742_v3  ;;  %6177 = vst [vmem:[%s10244_s8 + $0x58] sm:$0xff] %v6743_v26  ;;  %v5662_v49 = vpop.f32.mrb[172].mxu0  ;;  %v5775_v22 = vpop.f32.mrb[172].mxu1 }
 0x774   : > { %v5934_v21 = vadd.f32 %v10220_v52, %v5662_v49  ;;  %v5936_v25 = vadd.f32 %v10224_v35, %v5775_v22  ;;  %v5664_v31 = vpop.f32.mrb[173].mxu0  ;;  %v5777_v37 = vpop.f32.mrb[173].mxu1 }
 0x775   : > { %v5935_v58 = vadd.f32 %v10228_v29, %v5664_v31  ;;  %v5937_v18 = vadd.f32 %v10232_v47, %v5777_v37  ;;  %v5666_v54 = vpop.f32.mrb[174].mxu0  ;;  %v5779_v40 = vpop.f32.mrb[174].mxu1 }
 0x776   : > { %v5938_v9 = vadd.f32 %v10220_v52, %v5666_v54  ;;  %v5940_v19 = vadd.f32 %v10224_v35, %v5779_v40  ;;  %v5668_v12 = vpop.f32.mrb[175].mxu0  ;;  %v5781_v23 = vpop.f32.mrb[175].mxu1 }
 0x777   : > { %v6744_v51 = vpack.c.bf16 %v5935_v58, %v5934_v21  ;;  %v6745_v16 = vpack.c.bf16 %v5937_v18, %v5936_v25  ;;  %v5939_v55 = vadd.f32 %v10228_v29, %v5668_v12  ;;  %v5941_v34 = vadd.f32 %v10232_v47, %v5781_v23 }
 0x779   : > { %6178 = vst [vmem:[%s10244_s8 + $0x60] sm:$0xff] %v6744_v51  ;;  %6179 = vst [vmem:[%s10244_s8 + $0x68] sm:$0xff] %v6745_v16  ;;  %v6746_v61 = vpack.c.bf16 %v5939_v55, %v5938_v9  ;;  %v6747_v46 = vpack.c.bf16 %v5941_v34, %v5940_v19 }
 0x77b   : > { %6180 = vst [vmem:[%s10244_s8 + $0x70] sm:$0xff] %v6746_v61  ;;  %6181 = vst [vmem:[%s10244_s8 + $0x78] sm:$0xff] %v6747_v46  ;;  %v5672_v8 = vpop.f32.mrb[176].mxu0  ;;  %v5785_v0 = vpop.f32.mrb[176].mxu1 }
 0x77c   : > { %v5942_v44 = vadd.f32 %v10220_v52, %v5672_v8  ;;  %v5944_v48 = vadd.f32 %v10224_v35, %v5785_v0  ;;  %v5674_v5 = vpop.f32.mrb[177].mxu0  ;;  %v5787_v4 = vpop.f32.mrb[177].mxu1 }
 0x77d   : > { %v5943_v1 = vadd.f32 %v10228_v29, %v5674_v5  ;;  %v5945_v17 = vadd.f32 %v10232_v47, %v5787_v4  ;;  %v5676_v62 = vpop.f32.mrb[178].mxu0  ;;  %v5789_v7 = vpop.f32.mrb[178].mxu1 }
 0x77e   : > { %v5946_v2 = vadd.f32 %v10220_v52, %v5676_v62  ;;  %v5948_v45 = vadd.f32 %v10224_v35, %v5789_v7  ;;  %v5678_v13 = vpop.f32.mrb[179].mxu0  ;;  %v5791_v41 = vpop.f32.mrb[179].mxu1 }
 0x77f   : > { %v6748_v33 = vpack.c.bf16 %v5943_v1, %v5942_v44  ;;  %v6749_v15 = vpack.c.bf16 %v5945_v17, %v5944_v48  ;;  %v5947_v53 = vadd.f32 %v10228_v29, %v5678_v13  ;;  %v5949_v30 = vadd.f32 %v10232_v47, %v5791_v41 }
 0x781   : > { %6182 = vst [vmem:[%s10244_s8 + $0x80] sm:$0xff] %v6748_v33  ;;  %6183 = vst [vmem:[%s10244_s8 + $0x88] sm:$0xff] %v6749_v15  ;;  %v6750_v42 = vpack.c.bf16 %v5947_v53, %v5946_v2  ;;  %v6751_v11 = vpack.c.bf16 %v5949_v30, %v5948_v45 }
 0x783   : > { %6184 = vst [vmem:[%s10244_s8 + $0x90] sm:$0xff] %v6750_v42  ;;  %6185 = vst [vmem:[%s10244_s8 + $0x98] sm:$0xff] %v6751_v11  ;;  %v5682_v39 = vpop.f32.mrb[180].mxu0  ;;  %v5795_v57 = vpop.f32.mrb[180].mxu1 }
 0x784   : > { %v5950_v63 = vadd.f32 %v10220_v52, %v5682_v39  ;;  %v5952_v14 = vadd.f32 %v10224_v35, %v5795_v57  ;;  %v5684_v60 = vpop.f32.mrb[181].mxu0  ;;  %v5797_v38 = vpop.f32.mrb[181].mxu1 }
 0x785   : > { %v5951_v20 = vadd.f32 %v10228_v29, %v5684_v60  ;;  %v5953_v28 = vadd.f32 %v10232_v47, %v5797_v38  ;;  %v5686_v43 = vpop.f32.mrb[182].mxu0  ;;  %v5799_v59 = vpop.f32.mrb[182].mxu1 }
 0x786   : > { %v5954_v6 = vadd.f32 %v10220_v52, %v5686_v43  ;;  %v5956_v10 = vadd.f32 %v10224_v35, %v5799_v59  ;;  %v5688_v32 = vpop.f32.mrb[183].mxu0  ;;  %v5801_v56 = vpop.f32.mrb[183].mxu1 }
 0x787   : > { %v6752_v36 = vpack.c.bf16 %v5951_v20, %v5950_v63  ;;  %v6753_v27 = vpack.c.bf16 %v5953_v28, %v5952_v14  ;;  %v5955_v24 = vadd.f32 %v10228_v29, %v5688_v32  ;;  %v5957_v50 = vadd.f32 %v10232_v47, %v5801_v56 }
 0x789   : > { %6186 = vst [vmem:[%s10244_s8 + $0xa0] sm:$0xff] %v6752_v36  ;;  %6187 = vst [vmem:[%s10244_s8 + $0xa8] sm:$0xff] %v6753_v27  ;;  %v6754_v3 = vpack.c.bf16 %v5955_v24, %v5954_v6  ;;  %v6755_v26 = vpack.c.bf16 %v5957_v50, %v5956_v10 }
 0x78b   : > { %6188 = vst [vmem:[%s10244_s8 + $0xb0] sm:$0xff] %v6754_v3  ;;  %6189 = vst [vmem:[%s10244_s8 + $0xb8] sm:$0xff] %v6755_v26  ;;  %v5692_v49 = vpop.f32.mrb[184].mxu0  ;;  %v5805_v22 = vpop.f32.mrb[184].mxu1 }
 0x78c   : > { %v5958_v21 = vadd.f32 %v10220_v52, %v5692_v49  ;;  %v5960_v25 = vadd.f32 %v10224_v35, %v5805_v22  ;;  %v5694_v31 = vpop.f32.mrb[185].mxu0  ;;  %v5807_v37 = vpop.f32.mrb[185].mxu1 }
 0x78d   : > { %v5959_v58 = vadd.f32 %v10228_v29, %v5694_v31  ;;  %v5961_v18 = vadd.f32 %v10232_v47, %v5807_v37  ;;  %v5696_v54 = vpop.f32.mrb[186].mxu0  ;;  %v5809_v40 = vpop.f32.mrb[186].mxu1 }
 0x78e   : > { %v5962_v9 = vadd.f32 %v10220_v52, %v5696_v54  ;;  %v5964_v19 = vadd.f32 %v10224_v35, %v5809_v40  ;;  %v5698_v12 = vpop.f32.mrb[187].mxu0  ;;  %v5811_v23 = vpop.f32.mrb[187].mxu1 }
 0x78f   : > { %v6756_v51 = vpack.c.bf16 %v5959_v58, %v5958_v21  ;;  %v6757_v16 = vpack.c.bf16 %v5961_v18, %v5960_v25  ;;  %v5963_v55 = vadd.f32 %v10228_v29, %v5698_v12  ;;  %v5965_v34 = vadd.f32 %v10232_v47, %v5811_v23 }
 0x791   : > { %6190 = vst [vmem:[%s10244_s8 + $0xc0] sm:$0xff] %v6756_v51  ;;  %6191 = vst [vmem:[%s10244_s8 + $0xc8] sm:$0xff] %v6757_v16  ;;  %v6758_v61 = vpack.c.bf16 %v5963_v55, %v5962_v9  ;;  %v6759_v46 = vpack.c.bf16 %v5965_v34, %v5964_v19 }
 0x793   : > { %6192 = vst [vmem:[%s10244_s8 + $0xd0] sm:$0xff] %v6758_v61  ;;  %6193 = vst [vmem:[%s10244_s8 + $0xd8] sm:$0xff] %v6759_v46  ;;  %v5702_v8 = vpop.f32.mrb[188].mxu0  ;;  %v5815_v0 = vpop.f32.mrb[188].mxu1 }
 0x794   : > { %v5966_v44 = vadd.f32 %v10220_v52, %v5702_v8  ;;  %v5968_v48 = vadd.f32 %v10224_v35, %v5815_v0  ;;  %v5704_v5 = vpop.f32.mrb[189].mxu0  ;;  %v5817_v4 = vpop.f32.mrb[189].mxu1 }
 0x795   : > { %v5967_v1 = vadd.f32 %v10228_v29, %v5704_v5  ;;  %v5969_v17 = vadd.f32 %v10232_v47, %v5817_v4  ;;  %v5706_v62 = vpop.f32.mrb[190].mxu0  ;;  %v5819_v7 = vpop.f32.mrb[190].mxu1 }
 0x796   : > { %v5970_v2 = vadd.f32 %v10220_v52, %v5706_v62  ;;  %v5972_v45 = vadd.f32 %v10224_v35, %v5819_v7  ;;  %v5708_v13 = vpop.f32.mrb[191].mxu0  ;;  %v5821_v41 = vpop.f32.mrb[191].mxu1 }
 0x797   : > { %v6760_v33 = vpack.c.bf16 %v5967_v1, %v5966_v44  ;;  %v6761_v15 = vpack.c.bf16 %v5969_v17, %v5968_v48  ;;  %v5971_v53 = vadd.f32 %v10228_v29, %v5708_v13  ;;  %v5973_v30 = vadd.f32 %v10232_v47, %v5821_v41 }
 0x799   : > { %6194 = vst [vmem:[%s10244_s8 + $0xe0] sm:$0xff] %v6760_v33  ;;  %6195 = vst [vmem:[%s10244_s8 + $0xe8] sm:$0xff] %v6761_v15  ;;  %v6762_v52 = vpack.c.bf16 %v5971_v53, %v5970_v2  ;;  %v6763_v35 = vpack.c.bf16 %v5973_v30, %v5972_v45 }
 0x79b   : > { %6196 = vst [vmem:[%s10244_s8 + $0xf0] sm:$0xff] %v6762_v52  ;;  %6197 = vst [vmem:[%s10244_s8 + $0xf8] sm:$0xff] %v6763_v35 }
 0x79c   : > { %8596 = shalt.err (!%p8593_p13)
}
 0x79d   : > { %s8597_s27 = scalar_lea.hbm %s10335_s21, 4096  ;;  %s8601_s26 = scalar_lea.hbm %s10597_s13, 8192 }
 0x79e   : > { %p8598_p0 = scmp.ne.s32.totalorder %s10335_s21, %s8597_s27  ;;  %p8602_p1 = scmp.lt.u32.totalorder %s10335_s21, %s10597_s13 }
 0x79f   : > { %p8603_p2 = scmp.lt.u32.totalorder %s8601_s26, %s8597_s27  ;;  %p8605_p8 = scmp.lt.u32.totalorder %s8597_s27, %s10335_s21 }
 0x7a0   : > { %p8599_p5 = pnand %p8598_p0, %p8870_p6 }
 0x7a1   : > { %p8604_p4 = por %p8603_p2, %p8602_p1 }
 0x7a2   : > { %p8600_p11 = pneg %p8599_p5 }
 0x7a3   : > { %p8606_p10 = por %p8605_p8, %p8604_p4 }
 0x7a5   : > { %p8607_p12 = pnand %p8606_p10, %p8600_p11 }
 0x7a7   : > { %8610 = shalt.err (!%p8607_p12)
}
 0x7a8   : > { %s8670_s25 = smov 256   ;;  %s8671_s14 = smov 16  }
 0x7a9   : > { %7599 = dma.vmem_to_hbm [thread:$0]  (%p8870_p6), %s10337_s29, 4096, %s10335_s21, %s6199_s15, %s8670_s25, %s8670_s25, %s8671_s14  }
 0x7aa PF: > { %s10598_s17 = sld [smem:[#allocation16_spill]]  ;;  %s10599_s23 = sld [smem:[#allocation17_spill]] }
 0x7ab   : > { %p10601_p7 = scmp.ge.s32.totalorder %s8657_s12, 2 }
 0x7b0   : > { %s6227_s30 = sand.u32 1, %s10598_s17   ;;  %p10600_p3 = scmp.ne.s32.totalorder %s10599_s23, 0 }
 0x7b1   : > { %s6228_s19 = scalar_lea.sflag [#allocation4], %s6227_s30 }
 0x7b2   : > { %p7619_p9 = pnand %p10601_p7, %p10600_p3 }
 0x7b4   : > { %8640 = dma.done.wait (!%p7619_p9), %s6228_s19, 4096  }
 0x7b5   : > { %8642 = vsyncadd (!%p7619_p9), %s6228_s19, 4294963200  ;;  %p24_p13 = scmp.ge.s32.totalorder %s8860_s28, 4   ;;  %s10602_s30 = smov %s8649_s10 }
 0x7b6   : > { %s10603_s10 = smov %s8653_s11  ;;  %s10604_s11 = smov %s8876_s24 }
 0x7b7   : > { %s10605_s12 = smov %s8860_s28  ;;  %26 = sbr.rel (!%p24_p13) target bundleno = 10 (0xa), region = 117 }
 0x7be   :  { %6233 = vsyncpa [#allocation3], 1 }
 0x7bf   :  { %6235 = vsyncpa [#allocation3 + $0x1], 1 }
 0x7c0   :  { %6236 = vsyncpa [#allocation6], 1 }
 0x7c1   :  { %6237 = vsyncpa [#allocation9], 1 }
 0x7c2   :  { %6238 = vsyncpa [#allocation4], 1 }
 0x7c3   :  { %6240 = vsyncpa [#allocation4 + $0x1], 1 }

// kernel: tpu_custom_call.1
= control target key start
LH: loop header
LB: loop body
LE: loop exit
PB: predicated region body
PF: predicated region fallthrough
CT: control target
= control target key end

     0   :  { %s10385_s0 = inlined_call_operand.hbm [shape: bf16[2,128,512], index: 0, kind: input, shape index: {}]   ;;  %s10386_s1 = inlined_call_operand.hbm [shape: bf16[512,512], index: 1, kind: input, shape index: {}]   ;;  %s10387_s2 = inlined_call_operand.vmem [shape: f32[1,512], index: 2, kind: input, shape index: {}]   ;;  %s10388_s3 = inlined_call_operand.hbm [shape: bf16[512,128], index: 3, kind: input, shape index: {}]   ;;  %s10389_s4 = inlined_call_operand.vmem [shape: f32[1,128], index: 4, kind: input, shape index: {}]   ;;  %s10390_s5 = inlined_call_operand.hbm [shape: bf16[512,128], index: 5, kind: input, shape index: {}]   ;;  %s10391_s6 = inlined_call_operand.vmem [shape: f32[1,128], index: 6, kind: input, shape index: {}]   ;;  %s10392_s7 = inlined_call_operand.hbm [shape: bf16[512,512], index: 7, kind: input, shape index: {}]   ;;  %s10393_s8 = inlined_call_operand.vmem [shape: f32[1,512], index: 8, kind: input, shape index: {}]   ;;  %s10394_s9 = inlined_call_operand.hbm [shape: bf16[2,128,512], index: 9, kind: output, shape index: {}]  }
   0x1   :  { %10448 = sst [smem:[#allocation42_spill]] %s10393_s8 }
   0x2   :  { %10449 = sst [smem:[#allocation43_spill]] %s10394_s9 }
   0x3   :  { %14 = vsyncpa [#allocation3], 0 }
   0x4   :  { %16 = vsyncpa [#allocation3 + $0x1], 0 }
   0x5   :  { %17 = vsyncpa [#allocation6], 0 }
   0x6   :  { %18 = vsyncpa [#allocation9], 0 }
   0x7   :  { %19 = vsyncpa [#allocation4], 0 }
   0x8   :  { %21 = vsyncpa [#allocation4 + $0x1], 0  ;;  %s8722_s30 = smov 0   ;;  %s8724_s10 = smov 0  }
   0x9   :  { %s8726_s11 = smov 0   ;;  %s8728_s12 = smov 0  }
   0xa LB: > { %10450 = sst [smem:[#allocation16_spill]] %s8645_s30  ;;  %s8743_s13 = sadd.s32 4294967295, %s8657_s12   ;;  %s8657_s12 = sphi %s8728_s12, %s10605_s12   ;;  %s8653_s11 = sphi %s8726_s11, %s10604_s11   ;;  %s8649_s10 = sphi %s8724_s10, %s10603_s10   ;;  %s8645_s30 = sphi %s8722_s30, %s10602_s30  }
   0xb   : > { %s6323_s14 = sadd.s32 4294967294, %s8657_s12   ;;  %p47_p0 = scmp.ne.s32.totalorder %s8649_s10, %s8645_s30 }
   0xc   : > { %p10395_p1 = scmp.eq.s32.totalorder %s8743_s13, 0  ;;  %p245_p3 = scmp.eq.s32.totalorder %s6323_s14, 1 }
   0xd   : > { %p6324_p5 = scmp.ge.s32.totalorder %s8657_s12, 1  ;;  %p252_p7 = scmp.lt.s32.totalorder %s8657_s12, 3 }
   0xe   : > { %p8752_p4 = por %p10395_p1, %p47_p0  ;;  %p8757_p6 = por %p245_p3, %p47_p0 }
   0xf   : > { %p8762_p8 = pnand %p6324_p5, %p252_p7  ;;  %s8659_s18 = smov [#allocation5]  }
  0x10   : > { %s10451_s15 = scalar_select %p8752_p4, 1, 0 }
  0x11   : > { %s10452_s16 = scalar_select %p8757_p6, 1, 0 }
  0x12   : > { %s10454_s17 = scalar_select %p8762_p8, 1, 0 }
  0x13   : > { %10453 = sst [smem:[#allocation17_spill]] %s10452_s16  ;;  %s264_s19 = sshll.u32 %s8659_s18, 4  ;;  %s265_s19 = int_to_ptr.vmem [resolvable:$true] %s264_s19 }
  0x14   : > { %p7601_p9 = pneg %p8762_p8  ;;  %s8660_s21 = smov [#allocation8]  }
  0x15   : > { %s296_s22 = sshll.u32 %s8660_s21, 4  ;;  %s8441_s25 = scalar_lea.hbm %s10386_s1, 16384  ;;  %s297_s22 = int_to_ptr.vmem [resolvable:$true] %s296_s22 }
  0x16   : > { %p8771_p11 = pnand %p7601_p9, %p10395_p1  ;;  %p8442_p12 = scmp.ne.s32.totalorder %s10386_s1, %s8441_s25 }
  0x17   : > { %p8448_p5 = scmp.lt.u32.totalorder %s8441_s25, %s10386_s1 }
  0x18   : > { %p8783_p13 = pneg %p8771_p11 }
  0x1a   : > { %p8444_p0 = pnand %p8783_p13, %p8442_p12 }
  0x1c   : > { %p8445_p3 = pneg %p8444_p0 }
  0x1e   : > { %p8450_p7 = pnand %p8448_p5, %p8445_p3 }
  0x20   : > { %8453 = shalt.err (!%p8450_p7)
}
  0x21   : > { %s8454_s18 = scalar_lea.vmem %s265_s19, 16384  ;;  %p8462_p2 = scmp.lt.s32.totalorder %s265_s19, %s265_s19 }
  0x22   : > { %p8455_p9 = scmp.ne.s32.totalorder %s265_s19, %s8454_s18  ;;  %p8463_p6 = scmp.lt.s32.totalorder %s8454_s18, %s8454_s18 }
  0x24   : > { %p8457_p10 = pnand %p8455_p9, %p8783_p13  ;;  %p8464_p4 = por %p8463_p6, %p8462_p2 }
  0x26   : > { %p8458_p1 = pneg %p8457_p10 }
  0x28   : > { %p8465_p8 = pnand %p8464_p4, %p8458_p1 }
  0x2a   : > { %8468 = shalt.err (!%p8465_p8)
}
  0x2b   : > { %s10401_s21 = smov 256   ;;  %s8662_s23 = smov 16  }
  0x2c   : > { %7604 = dma.hbm_to_vmem [thread:$0]  (!%p8771_p11), %s10386_s1, 16384, %s265_s19, [#allocation6], %s10401_s21, %s10401_s21, %s8662_s23  }
  0x2d   : > { %s8663_s26 = smov [#allocation7]   ;;  %s8469_s18 = scalar_lea.hbm %s10390_s5, 4096 }
  0x2e   : > { %s280_s27 = sshll.u32 %s8663_s26, 4  ;;  %p8470_p1 = scmp.ne.s32.totalorder %s10390_s5, %s8469_s18  ;;  %s281_s27 = int_to_ptr.vmem [resolvable:$true] %s280_s27 }
  0x2f   : > { %p8476_p6 = scmp.lt.u32.totalorder %s8469_s18, %s10390_s5 }
  0x30   : > { %p8472_p2 = pnand %p8470_p1, %p8783_p13 }
  0x32   : > { %p8473_p4 = pneg %p8472_p2 }
  0x34   : > { %p8478_p8 = pnand %p8476_p6, %p8473_p4 }
  0x36   : > { %8481 = shalt.err (!%p8478_p8)
}
  0x37   : > { %s8482_s19 = scalar_lea.vmem %s297_s22, 4096  ;;  %p8490_p3 = scmp.lt.s32.totalorder %s297_s22, %s297_s22 }
  0x38   : > { %p8483_p10 = scmp.ne.s32.totalorder %s297_s22, %s8482_s19  ;;  %p8491_p5 = scmp.lt.s32.totalorder %s8482_s19, %s8482_s19 }
  0x3a   : > { %p8485_p12 = pnand %p8483_p10, %p8783_p13  ;;  %p8492_p7 = por %p8491_p5, %p8490_p3 }
  0x3c   : > { %p8486_p0 = pneg %p8485_p12 }
  0x3e   : > { %p8493_p9 = pnand %p8492_p7, %p8486_p0 }
  0x40   : > { %8496 = shalt.err (!%p8493_p9)
}
  0x41   : > { %s8664_s30 = smov 64   ;;  %s8665_s16 = smov 4  }
  0x42   : > { %7610 = dma.hbm_to_vmem [thread:$0]  (!%p8771_p11), %s10390_s5, 4096, %s297_s22, [#allocation9], %s8664_s30, %s8664_s30, %s8665_s16  }
  0x43   : > { %s8497_s26 = scalar_lea.hbm %s10388_s3, 4096 }
  0x44   : > { %p8498_p1 = scmp.ne.s32.totalorder %s10388_s3, %s8497_s26  ;;  %p8504_p6 = scmp.lt.u32.totalorder %s8497_s26, %s10388_s3 }
  0x46   : > { %p8500_p2 = pnand %p8498_p1, %p8783_p13 }
  0x48   : > { %p8501_p4 = pneg %p8500_p2 }
  0x4a   : > { %p8506_p8 = pnand %p8504_p6, %p8501_p4 }
  0x4c   : > { %8509 = shalt.err (!%p8506_p8)
}
  0x4d   : > { %s8510_s8 = scalar_lea.vmem %s281_s27, 4096  ;;  %p8518_p3 = scmp.lt.s32.totalorder %s281_s27, %s281_s27 }
  0x4e   : > { %p8511_p10 = scmp.ne.s32.totalorder %s281_s27, %s8510_s8  ;;  %p8519_p5 = scmp.lt.s32.totalorder %s8510_s8, %s8510_s8 }
  0x50   : > { %p8513_p12 = pnand %p8511_p10, %p8783_p13  ;;  %p8520_p7 = por %p8519_p5, %p8518_p3 }
  0x52   : > { %p8514_p0 = pneg %p8513_p12 }
  0x54   : > { %p8521_p9 = pnand %p8520_p7, %p8514_p0 }
  0x56   : > { %8524 = shalt.err (!%p8521_p9)
}
  0x57   : > { %7607 = dma.hbm_to_vmem [thread:$0]  (!%p8771_p11), %s10388_s3, 4096, %s281_s27, [#allocation6], %s8664_s30, %s8664_s30, %s8665_s16  }
  0x58   : > { %s8666_s24 = smov [#allocation10]   ;;  %s8525_s14 = scalar_lea.hbm %s10392_s7, 16384 }
  0x59   : > { %s312_s25 = sshll.u32 %s8666_s24, 4  ;;  %p8526_p1 = scmp.ne.s32.totalorder %s10392_s7, %s8525_s14  ;;  %s313_s25 = int_to_ptr.vmem [resolvable:$true] %s312_s25 }
  0x5a   : > { %p8532_p6 = scmp.lt.u32.totalorder %s8525_s14, %s10392_s7 }
  0x5b   : > { %p8528_p2 = pnand %p8526_p1, %p8783_p13 }
  0x5d   : > { %p8529_p4 = pneg %p8528_p2 }
  0x5f   : > { %p8534_p8 = pnand %p8532_p6, %p8529_p4 }
  0x61   : > { %8537 = shalt.err (!%p8534_p8)
}
  0x62   : > { %s8538_s27 = scalar_lea.vmem %s313_s25, 16384  ;;  %p8546_p3 = scmp.lt.s32.totalorder %s313_s25, %s313_s25 }
  0x63   : > { %p8539_p10 = scmp.ne.s32.totalorder %s313_s25, %s8538_s27  ;;  %p8547_p5 = scmp.lt.s32.totalorder %s8538_s27, %s8538_s27 }
  0x65   : > { %p8541_p12 = pnand %p8539_p10, %p8783_p13  ;;  %p8548_p7 = por %p8547_p5, %p8546_p3 }
  0x67   : > { %p8542_p0 = pneg %p8541_p12 }
  0x69   : > { %p8549_p9 = pnand %p8548_p7, %p8542_p0 }
  0x6b   : > { %8552 = shalt.err (!%p8549_p9)
}
  0x6c   : > { %s10457_s30 = smov 256   ;;  %s8860_s28 = sadd.s32 1, %s8657_s12  }
  0x6d   : > { %7613 = dma.hbm_to_vmem [thread:$0]  (!%p8771_p11), %s10392_s7, 16384, %s313_s25, [#allocation9], %s10457_s30, %s10457_s30, %s8662_s23  }
  0x6e   : > { %s34_s20 = sadd.s32 1, %s8653_s11  ;;  %s31_s22 = ssub.s32 %s8657_s12, %s8860_s28 }
  0x6f   : > { %p41_p13 = scmp.ne.s32.totalorder %s8653_s11, %s8649_s10  ;;  %p32_p1 = scmp.eq.s32.totalorder %s31_s22, 0 }
  0x70   : > { %p42_p2 = scmp.eq.s32.totalorder %s8657_s12, 0  ;;  %p10458_p4 = scmp.eq.s32.totalorder %s8743_s13, 1 }
  0x71   : > { %p7626_p8 = scmp.lt.s32.totalorder %s8657_s12, 2  ;;  %s329_s26 = sand.u32 1, %s8653_s11  }
  0x72   : > { %p8870_p6 = por %p10458_p4, %p41_p13  ;;  %p43_p10 = por %p42_p2, %p41_p13 }
  0x73   : > { %s8876_s24 = scalar_select %p32_p1, %s8653_s11, %s34_s20  }
  0x74   : > { %s6330_s29 = sshll.u32 %s329_s26, 8  ;;  %s6731_s25 = sshll.u32 %s8657_s12, 12 }
  0x75   : > { %s8883_s19 = scalar_lea.hbm %s10385_s0, %s6731_s25  ;;  %s333_s8 = scalar_lea.vmem [#allocation2], %s6330_s29 }
  0x76   : > { %s340_s27 = sshll.u32 %s333_s8, 4  ;;  %p8887_p11 = pnand %p7626_p8, %p43_p10  ;;  %s8885_s27 = int_to_ptr.vmem [resolvable:$true] %s340_s27 }
  0x77   : > { %s8891_s16 = scalar_lea.sflag [#allocation3], %s329_s26  ;;  %s8553_s20 = scalar_lea.hbm %s8883_s19, 4096 }
  0x78   : > { %p8554_p12 = scmp.ne.s32.totalorder %s8883_s19, %s8553_s20  ;;  %p8555_p0 = pneg %p8887_p11 }
  0x79   : > { %s8558_s25 = scalar_lea.hbm %s10385_s0, 8192  ;;  %p8559_p7 = scmp.lt.u32.totalorder %s8883_s19, %s10385_s0 }
  0x7a   : > { %p8556_p3 = pnand %p8555_p0, %p8554_p12  ;;  %p8560_p9 = scmp.lt.u32.totalorder %s8558_s25, %s8553_s20 }
  0x7b   : > { %p8562_p1 = scmp.lt.u32.totalorder %s8553_s20, %s8883_s19 }
  0x7c   : > { %p8557_p5 = pneg %p8556_p3  ;;  %p8561_p13 = por %p8560_p9, %p8559_p7 }
  0x7e   : > { %p8563_p2 = por %p8562_p1, %p8561_p13 }
  0x80   : > { %p8564_p4 = pnand %p8563_p2, %p8557_p5 }
  0x82   : > { %8567 = shalt.err (!%p8564_p4)
}
  0x83   : > { %s8568_s26 = scalar_lea.vmem %s8885_s27, 4096  ;;  %s8667_s8 = smov [#allocation2]  }
  0x84   : > { %p8569_p8 = scmp.ne.s32.totalorder %s8885_s27, %s8568_s26  ;;  %s8573_s22 = sshll.u32 %s8667_s8, 4  ;;  %s8574_s22 = int_to_ptr.vmem [resolvable:$false] %s8573_s22 }
  0x85   : > { %s8575_s29 = scalar_lea.vmem %s8574_s22, 8192  ;;  %p8576_p3 = scmp.lt.s32.totalorder %s8885_s27, %s8574_s22 }
  0x86   : > { %p8571_p10 = pnand %p8569_p8, %p8555_p0  ;;  %p8577_p7 = scmp.lt.s32.totalorder %s8575_s29, %s8568_s26 }
  0x88   : > { %p8572_p12 = pneg %p8571_p10  ;;  %p8578_p9 = por %p8577_p7, %p8576_p3 }
  0x8a   : > { %p8579_p13 = pnand %p8578_p9, %p8572_p12 }
  0x8c   : > { %8582 = shalt.err (!%p8579_p13)
}
  0x8d   : > { %7617 = dma.hbm_to_vmem [thread:$0]  (!%p8887_p11), %s8883_s19, 4096, %s8885_s27, %s8891_s16, %s10457_s30, %s10457_s30, %s8662_s23  }
  0x8e   : > { %p10461_p0 = scmp.ne.s32.totalorder %s10454_s17, 0 }
  0x90   : > { %352 = sbr.rel (%p10461_p0) target bundleno = 1962 (0x7aa), region = 56 }
  0x97   : > { %s8925_s20 = sand.u32 1, %s8649_s10   ;;  %p10462_p5 = scmp.ne.s32.totalorder %s10451_s15, 0 }
  0x98   : > { %s6334_s25 = sshll.u32 %s8925_s20, 8  ;;  %s355_s14 = scalar_lea.sflag [#allocation3], %s8925_s20 }
  0x99   : > { %s8931_s21 = scalar_lea.vmem [#allocation2], %s6334_s25 }
  0x9a   : > { %8628 = dma.done.wait (%p10462_p5), %s355_s14, 4096  }
  0x9b   : > { %8630 = vsyncadd (%p10462_p5), %s355_s14, 4294963200  ;;  %p10463_p11 = scmp.eq.s32.totalorder %s8743_s13, 0 }
  0x9d   : > { %8632 = dma.done.wait (%p10463_p11), [#allocation6], 20480   ;;  %p10464_p1 = pmov %p10463_p11 }
  0x9f   : > { %8634 = vsyncadd (%p10464_p1), [#allocation6], 4294946816  ;;  %p10465_p2 = pmov %p10464_p1 }
  0xa0   : > { %p10466_p4 = pmov %p10464_p1 }
  0xa1   : > { %8636 = dma.done.wait (%p10465_p2), [#allocation9], 20480  }
  0xa2   : > { %8638 = vsyncadd (%p10466_p4), [#allocation9], 4294946816  ;;  %v7675_v0 = vld [vmem:[#allocation5 + $0x4] ss:$16 sps:$4 sm:$0xff]   ;;  %v7677_v1 = vld [vmem:[#allocation5 + $0xc] ss:$16 sps:$4 sm:$0xff]  }
  0xa3   : > { %1392 = vmatprep.subr.bf16.mxu0 %v7675_v0  ;;  %v7679_v2 = vld [vmem:[#allocation5] ss:$16 sps:$4 sm:$0xff]   ;;  %v7680_v3 = vld [vmem:[#allocation5 + $0x8] ss:$16 sps:$4 sm:$0xff]   ;;  %1618 = vmatprep.subr.bf16.mxu1 %v7677_v1  ;;  %v7681_v4 = vld [vmem:[#allocation5 + $0x24] ss:$16 sps:$4 sm:$0xff]  }
  0xa4   : > { %1393 = vmatpush1.bf16.msra.mxu0 %v7679_v2  ;;  %1619 = vmatpush1.bf16.msra.mxu1 %v7680_v3  ;;  %v7683_v5 = vld [vmem:[#allocation5 + $0x2c] ss:$16 sps:$4 sm:$0xff]   ;;  %v7685_v6 = vld [vmem:[#allocation5 + $0x20] ss:$16 sps:$4 sm:$0xff]   ;;  %v7686_v7 = vld [vmem:[#allocation5 + $0x28] ss:$16 sps:$4 sm:$0xff]  }
  0xa5   : > { %1394 = vmatprep.subr.bf16.mxu0 %v7681_v4  ;;  %1620 = vmatprep.subr.bf16.mxu1 %v7683_v5  ;;  %v7687_v8 = vld [vmem:[#allocation5 + $0x44] ss:$16 sps:$4 sm:$0xff]   ;;  %v7689_v9 = vld [vmem:[#allocation5 + $0x4c] ss:$16 sps:$4 sm:$0xff]   ;;  %v7691_v10 = vld [vmem:[#allocation5 + $0x40] ss:$16 sps:$4 sm:$0xff]  }
  0xa6   : > { %v7692_v11 = vld [vmem:[#allocation5 + $0x48] ss:$16 sps:$4 sm:$0xff]   ;;  %v7693_v12 = vld [vmem:[#allocation5 + $0x64] ss:$16 sps:$4 sm:$0xff]   ;;  %v7695_v13 = vld [vmem:[#allocation5 + $0x6c] ss:$16 sps:$4 sm:$0xff]  }
  0xa7   : > { %v7697_v14 = vld [vmem:[#allocation5 + $0x60] ss:$16 sps:$4 sm:$0xff]   ;;  %v7698_v15 = vld [vmem:[#allocation5 + $0x68] ss:$16 sps:$4 sm:$0xff]   ;;  %v7699_v16 = vld [vmem:[#allocation5 + $0x84] ss:$16 sps:$4 sm:$0xff]  }
  0xa8   : > { %1395 = vmatpush1.bf16.msra.mxu0 %v7685_v6  ;;  %1621 = vmatpush1.bf16.msra.mxu1 %v7686_v7  ;;  %v7701_v17 = vld [vmem:[#allocation5 + $0x8c] ss:$16 sps:$4 sm:$0xff]   ;;  %v7703_v18 = vld [vmem:[#allocation5 + $0x80] ss:$16 sps:$4 sm:$0xff]   ;;  %v7704_v19 = vld [vmem:[#allocation5 + $0x88] ss:$16 sps:$4 sm:$0xff]  }
  0xa9   : > { %1396 = vmatprep.subr.bf16.mxu0 %v7687_v8  ;;  %1622 = vmatprep.subr.bf16.mxu1 %v7689_v9  ;;  %v7705_v20 = vld [vmem:[#allocation5 + $0xa4] ss:$16 sps:$4 sm:$0xff]   ;;  %v7707_v21 = vld [vmem:[#allocation5 + $0xac] ss:$16 sps:$4 sm:$0xff]   ;;  %v7709_v22 = vld [vmem:[#allocation5 + $0xa0] ss:$16 sps:$4 sm:$0xff]  }
  0xaa   : > { %v7710_v23 = vld [vmem:[#allocation5 + $0xa8] ss:$16 sps:$4 sm:$0xff]   ;;  %v7711_v24 = vld [vmem:[#allocation5 + $0xc4] ss:$16 sps:$4 sm:$0xff]   ;;  %v7713_v25 = vld [vmem:[#allocation5 + $0xcc] ss:$16 sps:$4 sm:$0xff]  }
  0xab   : > { %v7715_v26 = vld [vmem:[#allocation5 + $0xc0] ss:$16 sps:$4 sm:$0xff]   ;;  %v7716_v27 = vld [vmem:[#allocation5 + $0xc8] ss:$16 sps:$4 sm:$0xff]   ;;  %v7717_v28 = vld [vmem:[#allocation5 + $0xe4] ss:$16 sps:$4 sm:$0xff]  }
  0xac   : > { %1397 = vmatpush1.bf16.msra.mxu0 %v7691_v10  ;;  %1623 = vmatpush1.bf16.msra.mxu1 %v7692_v11  ;;  %v7719_v29 = vld [vmem:[#allocation5 + $0xec] ss:$16 sps:$4 sm:$0xff]   ;;  %v7721_v30 = vld [vmem:[#allocation5 + $0xe0] ss:$16 sps:$4 sm:$0xff]   ;;  %v7722_v31 = vld [vmem:[#allocation5 + $0xe8] ss:$16 sps:$4 sm:$0xff]  }
  0xad   : > { %1398 = vmatprep.subr.bf16.mxu0 %v7693_v12  ;;  %1624 = vmatprep.subr.bf16.mxu1 %v7695_v13  ;;  %v7723_v32 = vld [vmem:[#allocation5 + $0x104] ss:$16 sps:$4 sm:$0xff]   ;;  %v7725_v33 = vld [vmem:[#allocation5 + $0x10c] ss:$16 sps:$4 sm:$0xff]   ;;  %v7727_v34 = vld [vmem:[#allocation5 + $0x100] ss:$16 sps:$4 sm:$0xff]  }
  0xae   : > { %v7728_v35 = vld [vmem:[#allocation5 + $0x108] ss:$16 sps:$4 sm:$0xff]   ;;  %v7729_v36 = vld [vmem:[#allocation5 + $0x124] ss:$16 sps:$4 sm:$0xff]   ;;  %v7731_v37 = vld [vmem:[#allocation5 + $0x12c] ss:$16 sps:$4 sm:$0xff]  }
  0xaf   : > { %v7733_v38 = vld [vmem:[#allocation5 + $0x120] ss:$16 sps:$4 sm:$0xff]   ;;  %v7734_v39 = vld [vmem:[#allocation5 + $0x128] ss:$16 sps:$4 sm:$0xff]   ;;  %v7735_v40 = vld [vmem:[#allocation5 + $0x144] ss:$16 sps:$4 sm:$0xff]  }
  0xb0   : > { %1399 = vmatpush1.bf16.msra.mxu0 %v7697_v14  ;;  %1625 = vmatpush1.bf16.msra.mxu1 %v7698_v15  ;;  %v7737_v41 = vld [vmem:[#allocation5 + $0x14c] ss:$16 sps:$4 sm:$0xff]   ;;  %v7739_v42 = vld [vmem:[#allocation5 + $0x140] ss:$16 sps:$4 sm:$0xff]   ;;  %v7740_v43 = vld [vmem:[#allocation5 + $0x148] ss:$16 sps:$4 sm:$0xff]  }
  0xb1   : > { %1400 = vmatprep.subr.bf16.mxu0 %v7699_v16  ;;  %1626 = vmatprep.subr.bf16.mxu1 %v7701_v17  ;;  %v7741_v44 = vld [vmem:[#allocation5 + $0x164] ss:$16 sps:$4 sm:$0xff]   ;;  %v7743_v45 = vld [vmem:[#allocation5 + $0x16c] ss:$16 sps:$4 sm:$0xff]   ;;  %v7745_v46 = vld [vmem:[#allocation5 + $0x160] ss:$16 sps:$4 sm:$0xff]  }
  0xb2   : > { %v7746_v47 = vld [vmem:[#allocation5 + $0x168] ss:$16 sps:$4 sm:$0xff]   ;;  %v7771_v48 = vld [vmem:[%s8931_s21 + $0x4] ss:$16 sps:$4 sm:$0xff]   ;;  %v7749_v50 = vld [vmem:[#allocation5 + $0x18c] ss:$16 sps:$4 sm:$0xff]  }
  0xb3   : > { %v7747_v49 = vld [vmem:[#allocation5 + $0x184] ss:$16 sps:$4 sm:$0xff]   ;;  %1424 = vmatprep.mubr.bf16.mxu0 %v7771_v48  ;;  %1650 = vmatprep.mubr.bf16.mxu1 %v7771_v48  ;;  %v7751_v51 = vld [vmem:[#allocation5 + $0x180] ss:$16 sps:$4 sm:$0xff]   ;;  %v7752_v52 = vld [vmem:[#allocation5 + $0x188] ss:$16 sps:$4 sm:$0xff]  }
  0xb4   : > { %1401 = vmatpush1.bf16.msra.mxu0 %v7703_v18  ;;  %1627 = vmatpush1.bf16.msra.mxu1 %v7704_v19  ;;  %v7753_v53 = vld [vmem:[#allocation5 + $0x1a4] ss:$16 sps:$4 sm:$0xff]   ;;  %v7755_v54 = vld [vmem:[#allocation5 + $0x1ac] ss:$16 sps:$4 sm:$0xff]   ;;  %v7757_v55 = vld [vmem:[#allocation5 + $0x1a0] ss:$16 sps:$4 sm:$0xff]  }
  0xb5   : > { %1402 = vmatprep.subr.bf16.mxu0 %v7705_v20  ;;  %1628 = vmatprep.subr.bf16.mxu1 %v7707_v21  ;;  %v7758_v56 = vld [vmem:[#allocation5 + $0x1a8] ss:$16 sps:$4 sm:$0xff]   ;;  %v7759_v57 = vld [vmem:[#allocation5 + $0x1c4] ss:$16 sps:$4 sm:$0xff]   ;;  %v7761_v58 = vld [vmem:[#allocation5 + $0x1cc] ss:$16 sps:$4 sm:$0xff]  }
  0xb6   : > { %v7763_v59 = vld [vmem:[#allocation5 + $0x1c0] ss:$16 sps:$4 sm:$0xff]   ;;  %v7764_v60 = vld [vmem:[#allocation5 + $0x1c8] ss:$16 sps:$4 sm:$0xff]   ;;  %v7765_v61 = vld [vmem:[#allocation5 + $0x1e4] ss:$16 sps:$4 sm:$0xff]  }
  0xb7   : > { %v7767_v62 = vld [vmem:[#allocation5 + $0x1ec] ss:$16 sps:$4 sm:$0xff]   ;;  %v7769_v63 = vld [vmem:[#allocation5 + $0x1e0] ss:$16 sps:$4 sm:$0xff]   ;;  %v7770_v0 = vld [vmem:[#allocation5 + $0x1e8] ss:$16 sps:$4 sm:$0xff]  }
  0xb8   : > { %1403 = vmatpush1.bf16.msra.mxu0 %v7709_v22  ;;  %1629 = vmatpush1.bf16.msra.mxu1 %v7710_v23  ;;  %v7776_v1 = vld [vmem:[#allocation5 + $0x204] ss:$16 sps:$4 sm:$0xff]   ;;  %v7779_v2 = vld [vmem:[#allocation5 + $0x20c] ss:$16 sps:$4 sm:$0xff]   ;;  %v7773_v3 = vld [vmem:[%s8931_s21] ss:$16 sps:$4 sm:$0xff]  }
  0xb9   : > { %1404 = vmatprep.subr.bf16.mxu0 %v7711_v24  ;;  %1630 = vmatprep.subr.bf16.mxu1 %v7713_v25  ;;  %v7774_v4 = vld [vmem:[#allocation5 + $0x200] ss:$16 sps:$4 sm:$0xff]   ;;  %v7777_v5 = vld [vmem:[#allocation5 + $0x208] ss:$16 sps:$4 sm:$0xff]   ;;  %v7782_v6 = vld [vmem:[#allocation5 + $0x224] ss:$16 sps:$4 sm:$0xff]  }
  0xba   : > { %v7785_v7 = vld [vmem:[#allocation5 + $0x22c] ss:$16 sps:$4 sm:$0xff]   ;;  %v7786_v8 = vld [vmem:[%s8931_s21 + $0x24] ss:$16 sps:$4 sm:$0xff]   ;;  %v7780_v9 = vld [vmem:[#allocation5 + $0x220] ss:$16 sps:$4 sm:$0xff]  }
  0xbb   : > { %v7783_v10 = vld [vmem:[#allocation5 + $0x228] ss:$16 sps:$4 sm:$0xff]   ;;  %v7791_v11 = vld [vmem:[#allocation5 + $0x244] ss:$16 sps:$4 sm:$0xff]   ;;  %v7794_v12 = vld [vmem:[#allocation5 + $0x24c] ss:$16 sps:$4 sm:$0xff]  }
  0xbc   : > { %1405 = vmatpush1.bf16.msra.mxu0 %v7715_v26  ;;  %1631 = vmatpush1.bf16.msra.mxu1 %v7716_v27  ;;  %v7788_v13 = vld [vmem:[%s8931_s21 + $0x20] ss:$16 sps:$4 sm:$0xff]   ;;  %v7792_v15 = vld [vmem:[#allocation5 + $0x248] ss:$16 sps:$4 sm:$0xff]   ;;  %v7797_v16 = vld [vmem:[#allocation5 + $0x264] ss:$16 sps:$4 sm:$0xff]  }
  0xbd   : > { %1406 = vmatprep.subr.bf16.mxu0 %v7717_v28  ;;  %1632 = vmatprep.subr.bf16.mxu1 %v7719_v29  ;;  %v7789_v14 = vld [vmem:[#allocation5 + $0x240] ss:$16 sps:$4 sm:$0xff]   ;;  %v7800_v17 = vld [vmem:[#allocation5 + $0x26c] ss:$16 sps:$4 sm:$0xff]   ;;  %v7801_v18 = vld [vmem:[%s8931_s21 + $0x44] ss:$16 sps:$4 sm:$0xff]  }
  0xbe   : > { %v7795_v19 = vld [vmem:[#allocation5 + $0x260] ss:$16 sps:$4 sm:$0xff]   ;;  %v7798_v20 = vld [vmem:[#allocation5 + $0x268] ss:$16 sps:$4 sm:$0xff]   ;;  %v7806_v21 = vld [vmem:[#allocation5 + $0x284] ss:$16 sps:$4 sm:$0xff]  }
  0xbf   : > { %v7809_v22 = vld [vmem:[#allocation5 + $0x28c] ss:$16 sps:$4 sm:$0xff]   ;;  %v7803_v23 = vld [vmem:[%s8931_s21 + $0x40] ss:$16 sps:$4 sm:$0xff]   ;;  %v7807_v25 = vld [vmem:[#allocation5 + $0x288] ss:$16 sps:$4 sm:$0xff]  }
  0xc0   : > { %1407 = vmatpush1.bf16.msra.mxu0 %v7721_v30  ;;  %1633 = vmatpush1.bf16.msra.mxu1 %v7722_v31  ;;  %v7804_v24 = vld [vmem:[#allocation5 + $0x280] ss:$16 sps:$4 sm:$0xff]   ;;  %v7812_v26 = vld [vmem:[#allocation5 + $0x2a4] ss:$16 sps:$4 sm:$0xff]   ;;  %v7815_v27 = vld [vmem:[#allocation5 + $0x2ac] ss:$16 sps:$4 sm:$0xff]  }
  0xc1   : > { %1408 = vmatprep.subr.bf16.mxu0 %v7723_v32  ;;  %1634 = vmatprep.subr.bf16.mxu1 %v7725_v33  ;;  %v7816_v28 = vld [vmem:[%s8931_s21 + $0x64] ss:$16 sps:$4 sm:$0xff]   ;;  %v7810_v29 = vld [vmem:[#allocation5 + $0x2a0] ss:$16 sps:$4 sm:$0xff]   ;;  %v7813_v30 = vld [vmem:[#allocation5 + $0x2a8] ss:$16 sps:$4 sm:$0xff]  }
  0xc2   : > { %v7821_v31 = vld [vmem:[#allocation5 + $0x2c4] ss:$16 sps:$4 sm:$0xff]   ;;  %v7824_v32 = vld [vmem:[#allocation5 + $0x2cc] ss:$16 sps:$4 sm:$0xff]   ;;  %v7818_v33 = vld [vmem:[%s8931_s21 + $0x60] ss:$16 sps:$4 sm:$0xff]  }
  0xc3   : > { %v7840_v48 = vld [vmem:[#allocation5 + $0x320] ss:$16 sps:$4 sm:$0xff]   ;;  %s10591_s26 = sld [smem:[#allocation42_spill]]  ;;  %s10244_s8 = scalar_lea.vmem [#allocation11], %s6334_s25 }
  0xc4   : > { %1409 = vmatpush1.bf16.msra.mxu0 %v7727_v34  ;;  %1635 = vmatpush1.bf16.msra.mxu1 %v7728_v35  ;;  %v7819_v34 = vld [vmem:[#allocation5 + $0x2c0] ss:$16 sps:$4 sm:$0xff]   ;;  %v7822_v35 = vld [vmem:[#allocation5 + $0x2c8] ss:$16 sps:$4 sm:$0xff]   ;;  %s6764_s22 = sshll.u32 %s8743_s13, 12  ;;  %s6212_s29 = sshll.u32 %s10244_s8, 4  ;;  %s10337_s29 = int_to_ptr.vmem [resolvable:$true] %s6212_s29 }
  0xc5   : > { %1410 = vmatprep.subr.bf16.mxu0 %v7729_v36  ;;  %1636 = vmatprep.subr.bf16.mxu1 %v7731_v37  ;;  %v7827_v36 = vld [vmem:[#allocation5 + $0x2e4] ss:$16 sps:$4 sm:$0xff]   ;;  %v7830_v37 = vld [vmem:[#allocation5 + $0x2ec] ss:$16 sps:$4 sm:$0xff]   ;;  %s10597_s13 = sld [smem:[#allocation43_spill]]  ;;  %s6199_s15 = scalar_lea.sflag [#allocation4], %s8925_s20 }
  0xc6   : > { %s8583_s17 = scalar_lea.vmem %s10337_s29, 4096  ;;  %s8669_s23 = smov [#allocation11]  }
  0xc7   : > { %p8584_p8 = scmp.ne.s32.totalorder %s10337_s29, %s8583_s17  ;;  %s8587_s30 = sshll.u32 %s8669_s23, 4  ;;  %s8588_s30 = int_to_ptr.vmem [resolvable:$false] %s8587_s30 }
  0xc8   : > { %1411 = vmatpush1.bf16.msra.mxu0 %v7733_v38  ;;  %1637 = vmatpush1.bf16.msra.mxu1 %v7734_v39  ;;  %v7831_v38 = vld [vmem:[%s8931_s21 + $0x84] ss:$16 sps:$4 sm:$0xff]   ;;  %v7825_v39 = vld [vmem:[#allocation5 + $0x2e0] ss:$16 sps:$4 sm:$0xff]   ;;  %s8589_s19 = scalar_lea.vmem %s8588_s30, 8192  ;;  %p8590_p3 = scmp.lt.s32.totalorder %s10337_s29, %s8588_s30 }
  0xc9   : > { %1412 = vmatprep.subr.bf16.mxu0 %v7735_v40  ;;  %1638 = vmatprep.subr.bf16.mxu1 %v7737_v41  ;;  %v7828_v40 = vld [vmem:[#allocation5 + $0x2e8] ss:$16 sps:$4 sm:$0xff]   ;;  %v7836_v41 = vld [vmem:[#allocation5 + $0x304] ss:$16 sps:$4 sm:$0xff]   ;;  %p8585_p10 = pnand %p8584_p8, %p8870_p6  ;;  %p8591_p7 = scmp.lt.s32.totalorder %s8589_s19, %s8583_s17 }
  0xcb   : > { %p8586_p12 = pneg %p8585_p10  ;;  %p8592_p9 = por %p8591_p7, %p8590_p3 }
  0xcc   : > { %1413 = vmatpush1.bf16.msra.mxu0 %v7739_v42  ;;  %1639 = vmatpush1.bf16.msra.mxu1 %v7740_v43  ;;  %v7839_v42 = vld [vmem:[#allocation5 + $0x30c] ss:$16 sps:$4 sm:$0xff]   ;;  %v7833_v43 = vld [vmem:[%s8931_s21 + $0x80] ss:$16 sps:$4 sm:$0xff]  }
  0xcd   : > { %1414 = vmatprep.subr.bf16.mxu0 %v7741_v44  ;;  %1640 = vmatprep.subr.bf16.mxu1 %v7743_v45  ;;  %v7834_v44 = vld [vmem:[#allocation5 + $0x300] ss:$16 sps:$4 sm:$0xff]   ;;  %v7837_v45 = vld [vmem:[#allocation5 + $0x308] ss:$16 sps:$4 sm:$0xff]   ;;  %p8593_p13 = pnand %p8592_p9, %p8586_p12 }
  0xd0   : > { %1415 = vmatpush1.bf16.msra.mxu0 %v7745_v46  ;;  %1641 = vmatpush1.bf16.msra.mxu1 %v7746_v47  ;;  %v7842_v46 = vld [vmem:[#allocation5 + $0x324] ss:$16 sps:$4 sm:$0xff]   ;;  %v7845_v47 = vld [vmem:[#allocation5 + $0x32c] ss:$16 sps:$4 sm:$0xff]  }
  0xd1   : > { %1416 = vmatprep.subr.bf16.mxu0 %v7747_v49  ;;  %1642 = vmatprep.subr.bf16.mxu1 %v7749_v50  ;;  %v8956_v49 = vld [vmem:[%s8931_s21 + $0xa4] ss:$16 sps:$4 sm:$0xff]   ;;  %v7843_v50 = vld [vmem:[#allocation5 + $0x328] ss:$16 sps:$4 sm:$0xff]  }
  0xd4   : > { %1417 = vmatpush1.bf16.msra.mxu0 %v7751_v51  ;;  %1643 = vmatpush1.bf16.msra.mxu1 %v7752_v52  ;;  %v7851_v51 = vld [vmem:[#allocation5 + $0x344] ss:$16 sps:$4 sm:$0xff]   ;;  %v7854_v52 = vld [vmem:[#allocation5 + $0x34c] ss:$16 sps:$4 sm:$0xff]  }
  0xd5   : > { %1418 = vmatprep.subr.bf16.mxu0 %v7753_v53  ;;  %1644 = vmatprep.subr.bf16.mxu1 %v7755_v54  ;;  %v8961_v53 = vld [vmem:[%s8931_s21 + $0xa0] ss:$16 sps:$4 sm:$0xff]  }
  0xd6   : > { %v7849_v54 = vld [vmem:[#allocation5 + $0x340] ss:$16 sps:$4 sm:$0xff]  }
  0xd8   : > { %1419 = vmatpush1.bf16.msra.mxu0 %v7757_v55  ;;  %1645 = vmatpush1.bf16.msra.mxu1 %v7758_v56  ;;  %v7852_v55 = vld [vmem:[#allocation5 + $0x348] ss:$16 sps:$4 sm:$0xff]   ;;  %v7857_v56 = vld [vmem:[#allocation5 + $0x364] ss:$16 sps:$4 sm:$0xff]  }
  0xd9   : > { %1420 = vmatprep.subr.bf16.mxu0 %v7759_v57  ;;  %1646 = vmatprep.subr.bf16.mxu1 %v7761_v58  ;;  %v7860_v57 = vld [vmem:[#allocation5 + $0x36c] ss:$16 sps:$4 sm:$0xff]   ;;  %v8964_v58 = vld [vmem:[%s8931_s21 + $0xc4] ss:$16 sps:$4 sm:$0xff]  }
  0xdc   : > { %1421 = vmatpush1.bf16.msra.mxu0 %v7763_v59  ;;  %1647 = vmatpush1.bf16.msra.mxu1 %v7764_v60  ;;  %v7855_v59 = vld [vmem:[#allocation5 + $0x360] ss:$16 sps:$4 sm:$0xff]   ;;  %v7858_v60 = vld [vmem:[#allocation5 + $0x368] ss:$16 sps:$4 sm:$0xff]  }
  0xdd   : > { %1422 = vmatprep.subr.bf16.mxu0 %v7765_v61  ;;  %1648 = vmatprep.subr.bf16.mxu1 %v7767_v62  ;;  %v7866_v61 = vld [vmem:[#allocation5 + $0x384] ss:$16 sps:$4 sm:$0xff]   ;;  %v8969_v62 = vld [vmem:[%s8931_s21 + $0xc0] ss:$16 sps:$4 sm:$0xff]  }
  0xe0   : > { %1423 = vmatpush1.bf16.msra.mxu0 %v7769_v63  ;;  %1649 = vmatpush1.bf16.msra.mxu1 %v7770_v0  ;;  %v7869_v63 = vld [vmem:[#allocation5 + $0x38c] ss:$16 sps:$4 sm:$0xff]   ;;  %v7864_v0 = vld [vmem:[#allocation5 + $0x380] ss:$16 sps:$4 sm:$0xff]  }
  0xe1   : > { %1505 = vmatprep.subr.bf16.mxu0 %v7776_v1  ;;  %1731 = vmatprep.subr.bf16.mxu1 %v7779_v2  ;;  %v7867_v1 = vld [vmem:[#allocation5 + $0x388] ss:$16 sps:$4 sm:$0xff]   ;;  %v7872_v2 = vld [vmem:[#allocation5 + $0x3a4] ss:$16 sps:$4 sm:$0xff]  }
  0xe3   : > { %1425 = vmatmul.mubr.bf16.vlgmr.msra.gmra.mrb[0].mxu0 %v7773_v3  ;;  %1651 = vmatmul.mubr.bf16.vlgmr.msra.gmra.mrb[0].mxu1 %v7773_v3  ;;  %v7875_v3 = vld [vmem:[#allocation5 + $0x3ac] ss:$16 sps:$4 sm:$0xff]  }
  0xe4   : > { %1506 = vmatpush1.bf16.msra.mxu0 %v7774_v4  ;;  %1732 = vmatpush1.bf16.msra.mxu1 %v7777_v5  ;;  %v7870_v4 = vld [vmem:[#allocation5 + $0x3a0] ss:$16 sps:$4 sm:$0xff]   ;;  %v8974_v5 = vld [vmem:[%s8931_s21 + $0xe4] ss:$16 sps:$4 sm:$0xff]  }
  0xe5   : > { %1507 = vmatprep.subr.bf16.mxu0 %v7782_v6  ;;  %1733 = vmatprep.subr.bf16.mxu1 %v7785_v7  ;;  %v7873_v6 = vld [vmem:[#allocation5 + $0x3a8] ss:$16 sps:$4 sm:$0xff]   ;;  %v7881_v7 = vld [vmem:[#allocation5 + $0x3c4] ss:$16 sps:$4 sm:$0xff]  }
  0xe6   : > { %1434 = vmatprep.mubr.bf16.mxu0 %v7786_v8  ;;  %1660 = vmatprep.mubr.bf16.mxu1 %v7786_v8  ;;  %v7884_v8 = vld [vmem:[#allocation5 + $0x3cc] ss:$16 sps:$4 sm:$0xff]  }
  0xe8   : > { %1508 = vmatpush1.bf16.msra.mxu0 %v7780_v9  ;;  %1734 = vmatpush1.bf16.msra.mxu1 %v7783_v10  ;;  %v8981_v9 = vld [vmem:[%s8931_s21 + $0xe0] ss:$16 sps:$4 sm:$0xff]  }
  0xe9   : > { %1509 = vmatprep.subr.bf16.mxu0 %v7791_v11  ;;  %1735 = vmatprep.subr.bf16.mxu1 %v7794_v12  ;;  %v7879_v10 = vld [vmem:[#allocation5 + $0x3c0] ss:$16 sps:$4 sm:$0xff]   ;;  %v7882_v11 = vld [vmem:[#allocation5 + $0x3c8] ss:$16 sps:$4 sm:$0xff]   ;;  %v7887_v12 = vld [vmem:[#allocation5 + $0x3e4] ss:$16 sps:$4 sm:$0xff]  }
  0xeb   : > { %1435 = vmatmul.mubr.bf16.gmra.mrb[4].mxu0 %v7788_v13  ;;  %1661 = vmatmul.mubr.bf16.gmra.mrb[4].mxu1 %v7788_v13  ;;  %v7890_v13 = vld [vmem:[#allocation5 + $0x3ec] ss:$16 sps:$4 sm:$0xff]  }
  0xec   : > { %1510 = vmatpush1.bf16.msra.mxu0 %v7789_v14  ;;  %1736 = vmatpush1.bf16.msra.mxu1 %v7792_v15  ;;  %v8984_v14 = vld [vmem:[%s8931_s21 + $0xc] ss:$16 sps:$4 sm:$0xff]   ;;  %v7885_v15 = vld [vmem:[#allocation5 + $0x3e0] ss:$16 sps:$4 sm:$0xff]  }
  0xed   : > { %1511 = vmatprep.subr.bf16.mxu0 %v7797_v16  ;;  %1737 = vmatprep.subr.bf16.mxu1 %v7800_v17  ;;  %v7888_v16 = vld [vmem:[#allocation5 + $0x3e8] ss:$16 sps:$4 sm:$0xff]   ;;  %v7894_v17 = vld [vmem:[#allocation7 + $0x40] sm:$0xff]  }
  0xee   : > { %1444 = vmatprep.mubr.bf16.mxu0 %v7801_v18  ;;  %1670 = vmatprep.mubr.bf16.mxu1 %v7801_v18  ;;  %v8989_v18 = vld [vmem:[%s8931_s21 + $0x8] ss:$16 sps:$4 sm:$0xff]  }
  0xf0   : > { %1512 = vmatpush1.bf16.msra.mxu0 %v7795_v19  ;;  %1738 = vmatpush1.bf16.msra.mxu1 %v7798_v20  ;;  %v7896_v19 = vld [vmem:[#allocation7 + $0xc0] sm:$0xff]  }
  0xf1   : > { %1513 = vmatprep.subr.bf16.mxu0 %v7806_v21  ;;  %1739 = vmatprep.subr.bf16.mxu1 %v7809_v22  ;;  %v7895_v20 = vld [vmem:[#allocation7] sm:$0xff]   ;;  %v8994_v22 = vld [vmem:[%s8931_s21 + $0x2c] ss:$16 sps:$4 sm:$0xff]  }
  0xf2   : > { %v7897_v21 = vld [vmem:[#allocation7 + $0x80] sm:$0xff]  }
  0xf3   : > { %1445 = vmatmul.mubr.bf16.gmra.mrb[8].mxu0 %v7803_v23  ;;  %1671 = vmatmul.mubr.bf16.gmra.mrb[8].mxu1 %v7803_v23  ;;  %v7901_v23 = vld [vmem:[#allocation7 + $0x48] sm:$0xff]  }
  0xf4   : > { %1514 = vmatpush1.bf16.msra.mxu0 %v7804_v24  ;;  %1740 = vmatpush1.bf16.msra.mxu1 %v7807_v25  ;;  %v7902_v24 = vld [vmem:[#allocation7 + $0x8] sm:$0xff]  }
  0xf5   : > { %1515 = vmatprep.subr.bf16.mxu0 %v7812_v26  ;;  %1741 = vmatprep.subr.bf16.mxu1 %v7815_v27  ;;  %v7903_v25 = vld [vmem:[#allocation7 + $0xc8] sm:$0xff]   ;;  %v7908_v27 = vld [vmem:[#allocation7 + $0x50] sm:$0xff]  }
  0xf6   : > { %1454 = vmatprep.mubr.bf16.mxu0 %v7816_v28  ;;  %1680 = vmatprep.mubr.bf16.mxu1 %v7816_v28  ;;  %v7904_v26 = vld [vmem:[#allocation7 + $0x88] sm:$0xff]   ;;  %v7910_v28 = vld [vmem:[#allocation7 + $0xd0] sm:$0xff]  }
  0xf8   : > { %1516 = vmatpush1.bf16.msra.mxu0 %v7810_v29  ;;  %1742 = vmatpush1.bf16.msra.mxu1 %v7813_v30  ;;  %v9001_v29 = vld [vmem:[%s8931_s21 + $0x28] ss:$16 sps:$4 sm:$0xff]   ;;  %v9004_v30 = vld [vmem:[%s8931_s21 + $0x4c] ss:$16 sps:$4 sm:$0xff]  }
  0xf9   : > { %1517 = vmatprep.subr.bf16.mxu0 %v7821_v31  ;;  %1743 = vmatprep.subr.bf16.mxu1 %v7824_v32  ;;  %v7909_v31 = vld [vmem:[#allocation7 + $0x10] sm:$0xff]  }
  0xfa   : > { %v7911_v32 = vld [vmem:[#allocation7 + $0x90] sm:$0xff]  }
  0xfb   : > { %1455 = vmatmul.mubr.bf16.gmra.mrb[12].mxu0 %v7818_v33  ;;  %1681 = vmatmul.mubr.bf16.gmra.mrb[12].mxu1 %v7818_v33  ;;  %v7915_v33 = vld [vmem:[#allocation7 + $0x58] sm:$0xff]  }
  0xfc   : > { %1518 = vmatpush1.bf16.msra.mxu0 %v7819_v34  ;;  %1744 = vmatpush1.bf16.msra.mxu1 %v7822_v35  ;;  %v7917_v34 = vld [vmem:[#allocation7 + $0xd8] sm:$0xff]  }
  0xfd   : > { %1519 = vmatprep.subr.bf16.mxu0 %v7827_v36  ;;  %1745 = vmatprep.subr.bf16.mxu1 %v7830_v37  ;;  %v7916_v35 = vld [vmem:[#allocation7 + $0x18] sm:$0xff]  }
  0xfe   : > { %1464 = vmatprep.mubr.bf16.mxu0 %v7831_v38  ;;  %1690 = vmatprep.mubr.bf16.mxu1 %v7831_v38  ;;  %v7918_v36 = vld [vmem:[#allocation7 + $0x98] sm:$0xff]   ;;  %v7922_v38 = vld [vmem:[#allocation7 + $0x60] sm:$0xff]  }
  0xff   : > { %v9011_v37 = vld [vmem:[%s8931_s21 + $0x48] ss:$16 sps:$4 sm:$0xff]  }
 0x100   : > { %1520 = vmatpush1.bf16.msra.mxu0 %v7825_v39  ;;  %1746 = vmatpush1.bf16.msra.mxu1 %v7828_v40  ;;  %v9014_v39 = vld [vmem:[%s8931_s21 + $0x6c] ss:$16 sps:$4 sm:$0xff]   ;;  %v7924_v40 = vld [vmem:[#allocation7 + $0xe0] sm:$0xff]  }
 0x101   : > { %1521 = vmatprep.subr.bf16.mxu0 %v7836_v41  ;;  %1747 = vmatprep.subr.bf16.mxu1 %v7839_v42  ;;  %v7923_v41 = vld [vmem:[#allocation7 + $0x20] sm:$0xff]  }
 0x102   : > { %v7925_v42 = vld [vmem:[#allocation7 + $0xa0] sm:$0xff]  }
 0x103   : > { %1465 = vmatmul.mubr.bf16.gmra.mrb[16].mxu0 %v7833_v43  ;;  %1691 = vmatmul.mubr.bf16.gmra.mrb[16].mxu1 %v7833_v43  ;;  %v7929_v43 = vld [vmem:[#allocation7 + $0x68] sm:$0xff]  }
 0x104   : > { %1522 = vmatpush1.bf16.msra.mxu0 %v7834_v44  ;;  %1748 = vmatpush1.bf16.msra.mxu1 %v7837_v45  ;;  %v7931_v44 = vld [vmem:[#allocation7 + $0xe8] sm:$0xff]  }
 0x105   : > { %1523 = vmatprep.subr.bf16.mxu0 %v7842_v46  ;;  %1749 = vmatprep.subr.bf16.mxu1 %v7845_v47  ;;  %v7930_v45 = vld [vmem:[#allocation7 + $0x28] sm:$0xff]  }
 0x106   : > { %1474 = vmatprep.mubr.bf16.mxu0 %v8956_v49  ;;  %1700 = vmatprep.mubr.bf16.mxu1 %v8956_v49  ;;  %v7932_v46 = vld [vmem:[#allocation7 + $0xa8] sm:$0xff]  }
 0x107   : > { %v9021_v47 = vld [vmem:[%s8931_s21 + $0x68] ss:$16 sps:$4 sm:$0xff]  }
 0x108   : > { %1524 = vmatpush1.bf16.msra.mxu0 %v7840_v48  ;;  %1750 = vmatpush1.bf16.msra.mxu1 %v7843_v50  ;;  %v7936_v48 = vld [vmem:[#allocation7 + $0x70] sm:$0xff]   ;;  %v9024_v50 = vld [vmem:[%s8931_s21 + $0x8c] ss:$16 sps:$4 sm:$0xff]  }
 0x109   : > { %1525 = vmatprep.subr.bf16.mxu0 %v7851_v51  ;;  %1751 = vmatprep.subr.bf16.mxu1 %v7854_v52  ;;  %v7938_v51 = vld [vmem:[#allocation7 + $0xf0] sm:$0xff]  }
 0x10a   : > { %v7937_v52 = vld [vmem:[#allocation7 + $0x30] sm:$0xff]  }
 0x10b   : > { %1475 = vmatmul.mubr.bf16.gmra.mrb[20].mxu0 %v8961_v53  ;;  %1701 = vmatmul.mubr.bf16.gmra.mrb[20].mxu1 %v8961_v53 }
 0x10c   : > { %1526 = vmatpush1.bf16.msra.mxu0 %v7849_v54  ;;  %1752 = vmatpush1.bf16.msra.mxu1 %v7852_v55  ;;  %v7939_v54 = vld [vmem:[#allocation7 + $0xb0] sm:$0xff]   ;;  %v7943_v55 = vld [vmem:[#allocation7 + $0x78] sm:$0xff]  }
 0x10d   : > { %1527 = vmatprep.subr.bf16.mxu0 %v7857_v56  ;;  %1753 = vmatprep.subr.bf16.mxu1 %v7860_v57  ;;  %v7945_v56 = vld [vmem:[#allocation7 + $0xf8] sm:$0xff]  }
 0x10e   : > { %1484 = vmatprep.mubr.bf16.mxu0 %v8964_v58  ;;  %1710 = vmatprep.mubr.bf16.mxu1 %v8964_v58  ;;  %v7944_v57 = vld [vmem:[#allocation7 + $0x38] sm:$0xff]  }
 0x110   : > { %1528 = vmatpush1.bf16.msra.mxu0 %v7855_v59  ;;  %1754 = vmatpush1.bf16.msra.mxu1 %v7858_v60  ;;  %v7946_v59 = vld [vmem:[#allocation7 + $0xb8] sm:$0xff]   ;;  %v7947_v60 = vld [vmem:[#allocation8 + $0x40] sm:$0xff]  }
 0x111   : > { %1529 = vmatprep.subr.bf16.mxu0 %v7866_v61  ;;  %1755 = vmatprep.subr.bf16.mxu1 %v7869_v63  ;;  %v9031_v61 = vld [vmem:[%s8931_s21 + $0x88] ss:$16 sps:$4 sm:$0xff]   ;;  %v9034_v63 = vld [vmem:[%s8931_s21 + $0xac] ss:$16 sps:$4 sm:$0xff]  }
 0x113   : > { %1485 = vmatmul.mubr.bf16.gmra.mrb[24].mxu0 %v8969_v62  ;;  %1711 = vmatmul.mubr.bf16.gmra.mrb[24].mxu1 %v8969_v62 }
 0x114   : > { %1530 = vmatpush1.bf16.msra.mxu0 %v7864_v0  ;;  %1756 = vmatpush1.bf16.msra.mxu1 %v7867_v1  ;;  %v9041_v0 = vld [vmem:[%s8931_s21 + $0xa8] ss:$16 sps:$4 sm:$0xff]   ;;  %v9044_v1 = vld [vmem:[%s8931_s21 + $0xcc] ss:$16 sps:$4 sm:$0xff]  }
 0x115   : > { %1531 = vmatprep.subr.bf16.mxu0 %v7872_v2  ;;  %1757 = vmatprep.subr.bf16.mxu1 %v7875_v3  ;;  %v9051_v2 = vld [vmem:[%s8931_s21 + $0xc8] ss:$16 sps:$4 sm:$0xff]   ;;  %v9054_v3 = vld [vmem:[%s8931_s21 + $0xec] ss:$16 sps:$4 sm:$0xff]  }
 0x116   : > { %1494 = vmatprep.mubr.bf16.mxu0 %v8974_v5  ;;  %1720 = vmatprep.mubr.bf16.mxu1 %v8974_v5 }
 0x118   : > { %1532 = vmatpush1.bf16.msra.mxu0 %v7870_v4  ;;  %1758 = vmatpush1.bf16.msra.mxu1 %v7873_v6  ;;  %v9061_v4 = vld [vmem:[%s8931_s21 + $0xe8] ss:$16 sps:$4 sm:$0xff]   ;;  %v9066_v6 = vld [vmem:[%s8931_s21 + $0x4] ss:$16 sps:$4 sm:$0xff]  }
 0x119   : > { %1533 = vmatprep.subr.bf16.mxu0 %v7881_v7  ;;  %1759 = vmatprep.subr.bf16.mxu1 %v7884_v8  ;;  %v7948_v7 = vld [vmem:[#allocation8] sm:$0xff]   ;;  %v7949_v8 = vld [vmem:[#allocation8 + $0x48] sm:$0xff]  }
 0x11b   : > { %1495 = vmatmul.mubr.bf16.gmra.mrb[28].mxu0 %v8981_v9  ;;  %1721 = vmatmul.mubr.bf16.gmra.mrb[28].mxu1 %v8981_v9 }
 0x11c   : > { %1534 = vmatpush1.bf16.msra.mxu0 %v7879_v10  ;;  %1760 = vmatpush1.bf16.msra.mxu1 %v7882_v11  ;;  %v9071_v10 = vld [vmem:[%s8931_s21] ss:$16 sps:$4 sm:$0xff]   ;;  %v7950_v11 = vld [vmem:[#allocation8 + $0x8] sm:$0xff]  }
 0x11d   : > { %1535 = vmatprep.subr.bf16.mxu0 %v7887_v12  ;;  %1761 = vmatprep.subr.bf16.mxu1 %v7890_v13  ;;  %v9076_v12 = vld [vmem:[%s8931_s21 + $0x24] ss:$16 sps:$4 sm:$0xff]  }
 0x11e   : > { %1537 = vmatprep.mubr.bf16.mxu0 %v8984_v14  ;;  %1763 = vmatprep.mubr.bf16.mxu1 %v8984_v14  ;;  %v7951_v13 = vld [vmem:[#allocation8 + $0x50] sm:$0xff]  }
 0x120   : > { %1536 = vmatpush1.bf16.msra.mxu0 %v7885_v15  ;;  %1762 = vmatpush1.bf16.msra.mxu1 %v7888_v16  ;;  %v7952_v15 = vld [vmem:[#allocation8 + $0x10] sm:$0xff]   ;;  %v7953_v16 = vld [vmem:[#allocation8 + $0x58] sm:$0xff]  }
 0x121   : > { %6765 = vmatprep.subr.bf16.mxu0 %v7894_v17  ;;  %6829 = vmatprep.subr.bf16.mxu1 %v7896_v19  ;;  %v9081_v17 = vld [vmem:[%s8931_s21 + $0x20] ss:$16 sps:$4 sm:$0xff]   ;;  %v7954_v19 = vld [vmem:[#allocation8 + $0x18] sm:$0xff]  }
 0x123   : > { %1538 = vmatmul.mubr.bf16.vlgmr.msra.gmra.mrb[0].mxu0 %v8989_v18  ;;  %1764 = vmatmul.mubr.bf16.vlgmr.msra.gmra.mrb[0].mxu1 %v8989_v18 }
 0x124   : > { %6766 = vmatpush3.bf16.msra.mxu0 %v7895_v20  ;;  %6830 = vmatpush3.bf16.msra.mxu1 %v7897_v21  ;;  %v9086_v20 = vld [vmem:[%s8931_s21 + $0x44] ss:$16 sps:$4 sm:$0xff]  }
 0x125   : > { %1547 = vmatprep.mubr.bf16.mxu0 %v8994_v22  ;;  %1773 = vmatprep.mubr.bf16.mxu1 %v8994_v22  ;;  %v7955_v21 = vld [vmem:[#allocation8 + $0x60] sm:$0xff]  }
 0x126   : > { %6767 = vmatprep.subr.bf16.mxu0 %v7901_v23  ;;  %6831 = vmatprep.subr.bf16.mxu1 %v7903_v25  ;;  %v7956_v23 = vld [vmem:[#allocation8 + $0x20] sm:$0xff]  }
 0x127   : > { %v9091_v25 = vld [vmem:[%s8931_s21 + $0x40] ss:$16 sps:$4 sm:$0xff]  }
 0x128   : > { %6768 = vmatpush3.bf16.msra.mxu0 %v7902_v24  ;;  %6832 = vmatpush3.bf16.msra.mxu1 %v7904_v26  ;;  %v7957_v24 = vld [vmem:[#allocation8 + $0x68] sm:$0xff]   ;;  %v9096_v26 = vld [vmem:[%s8931_s21 + $0x64] ss:$16 sps:$4 sm:$0xff]  }
 0x129   : > { %6769 = vmatprep.subr.bf16.mxu0 %v7908_v27  ;;  %6833 = vmatprep.subr.bf16.mxu1 %v7910_v28  ;;  %v7958_v27 = vld [vmem:[#allocation8 + $0x28] sm:$0xff]   ;;  %v7959_v28 = vld [vmem:[#allocation8 + $0x70] sm:$0xff]  }
 0x12b   : > { %1548 = vmatmul.mubr.bf16.gmra.mrb[4].mxu0 %v9001_v29  ;;  %1774 = vmatmul.mubr.bf16.gmra.mrb[4].mxu1 %v9001_v29 }
 0x12c   : > { %1557 = vmatprep.mubr.bf16.mxu0 %v9004_v30  ;;  %1783 = vmatprep.mubr.bf16.mxu1 %v9004_v30 }
 0x12d   : > { %6770 = vmatpush3.bf16.msra.mxu0 %v7909_v31  ;;  %6834 = vmatpush3.bf16.msra.mxu1 %v7911_v32  ;;  %v7960_v31 = vld [vmem:[#allocation8 + $0x30] sm:$0xff]   ;;  %v7961_v32 = vld [vmem:[#allocation8 + $0x78] sm:$0xff]  }
 0x12e   : > { %6771 = vmatprep.subr.bf16.mxu0 %v7915_v33  ;;  %6835 = vmatprep.subr.bf16.mxu1 %v7917_v34  ;;  %v8434_v33 = vld [vmem:[%s8931_s21 + $0x60] ss:$16 sps:$4 sm:$0xff]   ;;  %v8435_v34 = vld [vmem:[%s8931_s21 + $0x84] ss:$16 sps:$4 sm:$0xff]  }
 0x131   : > { %6772 = vmatpush3.bf16.msra.mxu0 %v7916_v35  ;;  %6836 = vmatpush3.bf16.msra.mxu1 %v7918_v36  ;;  %v7962_v35 = vld [vmem:[#allocation8 + $0x38] sm:$0xff]   ;;  %v8436_v36 = vld [vmem:[%s8931_s21 + $0x80] ss:$16 sps:$4 sm:$0xff]  }
 0x132   : > { %6773 = vmatprep.subr.bf16.mxu0 %v7922_v38  ;;  %6837 = vmatprep.subr.bf16.mxu1 %v7924_v40  ;;  %v7967_v38 = vld [vmem:[#allocation8 + $0xd0] sm:$0xff]  }
 0x133   : > { %1558 = vmatmul.mubr.bf16.gmra.mrb[8].mxu0 %v9011_v37  ;;  %1784 = vmatmul.mubr.bf16.gmra.mrb[8].mxu1 %v9011_v37  ;;  %v7968_v40 = vld [vmem:[#allocation8 + $0x90] sm:$0xff]  }
 0x134   : > { %1567 = vmatprep.mubr.bf16.mxu0 %v9014_v39  ;;  %1793 = vmatprep.mubr.bf16.mxu1 %v9014_v39 }
 0x135   : > { %6774 = vmatpush3.bf16.msra.mxu0 %v7923_v41  ;;  %6838 = vmatpush3.bf16.msra.mxu1 %v7925_v42  ;;  %v7969_v41 = vld [vmem:[#allocation8 + $0xd8] sm:$0xff]   ;;  %v7971_v42 = vld [vmem:[#allocation8 + $0xe0] sm:$0xff]  }
 0x136   : > { %6775 = vmatprep.subr.bf16.mxu0 %v7929_v43  ;;  %6839 = vmatprep.subr.bf16.mxu1 %v7931_v44  ;;  %v7972_v43 = vld [vmem:[#allocation8 + $0xa0] sm:$0xff]   ;;  %v7973_v44 = vld [vmem:[#allocation8 + $0xe8] sm:$0xff]  }
 0x139   : > { %6776 = vmatpush3.bf16.msra.mxu0 %v7930_v45  ;;  %6840 = vmatpush3.bf16.msra.mxu1 %v7932_v46  ;;  %v7974_v45 = vld [vmem:[#allocation8 + $0xa8] sm:$0xff]   ;;  %v7975_v46 = vld [vmem:[#allocation8 + $0xf0] sm:$0xff]  }
 0x13a   : > { %6777 = vmatprep.subr.bf16.mxu0 %v7936_v48  ;;  %6841 = vmatprep.subr.bf16.mxu1 %v7938_v51  ;;  %v7976_v48 = vld [vmem:[#allocation8 + $0xb0] sm:$0xff]   ;;  %v7977_v51 = vld [vmem:[#allocation8 + $0xf8] sm:$0xff]  }
 0x13b   : > { %1568 = vmatmul.mubr.bf16.gmra.mrb[12].mxu0 %v9021_v47  ;;  %1794 = vmatmul.mubr.bf16.gmra.mrb[12].mxu1 %v9021_v47 }
 0x13c   : > { %1577 = vmatprep.mubr.bf16.mxu0 %v9024_v50  ;;  %1803 = vmatprep.mubr.bf16.mxu1 %v9024_v50 }
 0x13d   : > { %6778 = vmatpush3.bf16.msra.mxu0 %v7937_v52  ;;  %6842 = vmatpush3.bf16.msra.mxu1 %v7939_v54  ;;  %v7978_v52 = vld [vmem:[#allocation8 + $0xb8] sm:$0xff]   ;;  %v8437_v54 = vld [vmem:[%s8931_s21 + $0xa4] ss:$16 sps:$4 sm:$0xff]  }
 0x13e   : > { %6779 = vmatprep.subr.bf16.mxu0 %v7943_v55  ;;  %6843 = vmatprep.subr.bf16.mxu1 %v7945_v56  ;;  %v8438_v55 = vld [vmem:[%s8931_s21 + $0xa0] ss:$16 sps:$4 sm:$0xff]   ;;  %v8439_v56 = vld [vmem:[%s8931_s21 + $0xc4] ss:$16 sps:$4 sm:$0xff]  }
 0x141   : > { %6780 = vmatpush3.bf16.msra.mxu0 %v7944_v57  ;;  %6844 = vmatpush3.bf16.msra.mxu1 %v7946_v59  ;;  %v8440_v57 = vld [vmem:[%s8931_s21 + $0xc0] ss:$16 sps:$4 sm:$0xff]   ;;  %s10335_s21 = scalar_lea.hbm %s10597_s13, %s6764_s22 }
 0x142   : > { %6893 = vmatprep.subr.bf16.mxu0 %v7947_v60 }
 0x143   : > { %1578 = vmatmul.mubr.bf16.gmra.mrb[16].mxu0 %v9031_v61  ;;  %1804 = vmatmul.mubr.bf16.gmra.mrb[16].mxu1 %v9031_v61 }
 0x144   : > { %1587 = vmatprep.mubr.bf16.mxu0 %v9034_v63  ;;  %1813 = vmatprep.mubr.bf16.mxu1 %v9034_v63 }
 0x14b   : > { %1588 = vmatmul.mubr.bf16.gmra.mrb[20].mxu0 %v9041_v0  ;;  %1814 = vmatmul.mubr.bf16.gmra.mrb[20].mxu1 %v9041_v0 }
 0x14c   : > { %1597 = vmatprep.mubr.bf16.mxu0 %v9044_v1  ;;  %1823 = vmatprep.mubr.bf16.mxu1 %v9044_v1 }
 0x153   : > { %1598 = vmatmul.mubr.bf16.gmra.mrb[24].mxu0 %v9051_v2  ;;  %1824 = vmatmul.mubr.bf16.gmra.mrb[24].mxu1 %v9051_v2 }
 0x154   : > { %1607 = vmatprep.mubr.bf16.mxu0 %v9054_v3  ;;  %1833 = vmatprep.mubr.bf16.mxu1 %v9054_v3 }
 0x15b   : > { %1608 = vmatmul.mubr.bf16.gmra.mrb[28].mxu0 %v9061_v4  ;;  %1834 = vmatmul.mubr.bf16.gmra.mrb[28].mxu1 %v9061_v4 }
 0x15c   : > { %2139 = vmatprep.mubr.bf16.mxu0 %v9066_v6  ;;  %2236 = vmatprep.mubr.bf16.mxu1 %v8984_v14 }
 0x163   : > { %2140 = vmatmul.mubr.bf16.vlgmr.msra.gmra.mrb[32].mxu0 %v9071_v10  ;;  %2237 = vmatmul.mubr.bf16.vlgmr.msra.gmra.mrb[32].mxu1 %v8989_v18 }
 0x164   : > { %2147 = vmatprep.mubr.bf16.mxu0 %v9076_v12  ;;  %2244 = vmatprep.mubr.bf16.mxu1 %v8994_v22 }
 0x165   : > { %6894 = vmatpush3.bf16.msra.mxu0 %v7948_v7 }
 0x166   : > { %6895 = vmatprep.subr.bf16.mxu0 %v7949_v8 }
 0x169   : > { %6896 = vmatpush3.bf16.msra.mxu0 %v7950_v11 }
 0x16a   : > { %6897 = vmatprep.subr.bf16.mxu0 %v7951_v13 }
 0x16b   : > { %2148 = vmatmul.mubr.bf16.gmra.mrb[36].mxu0 %v9081_v17  ;;  %2245 = vmatmul.mubr.bf16.gmra.mrb[36].mxu1 %v9001_v29 }
 0x16c   : > { %2155 = vmatprep.mubr.bf16.mxu0 %v9086_v20  ;;  %2252 = vmatprep.mubr.bf16.mxu1 %v9004_v30 }
 0x16d   : > { %6898 = vmatpush3.bf16.msra.mxu0 %v7952_v15 }
 0x16e   : > { %6899 = vmatprep.subr.bf16.mxu0 %v7953_v16 }
 0x171   : > { %6900 = vmatpush3.bf16.msra.mxu0 %v7954_v19 }
 0x172   : > { %6901 = vmatprep.subr.bf16.mxu0 %v7955_v21 }
 0x173   : > { %2156 = vmatmul.mubr.bf16.gmra.mrb[40].mxu0 %v9091_v25  ;;  %2253 = vmatmul.mubr.bf16.gmra.mrb[40].mxu1 %v9011_v37 }
 0x174   : > { %2163 = vmatprep.mubr.bf16.mxu0 %v9096_v26  ;;  %2260 = vmatprep.mubr.bf16.mxu1 %v9014_v39 }
 0x175   : > { %6902 = vmatpush3.bf16.msra.mxu0 %v7956_v23 }
 0x176   : > { %6903 = vmatprep.subr.bf16.mxu0 %v7957_v24 }
 0x179   : > { %6904 = vmatpush3.bf16.msra.mxu0 %v7958_v27 }
 0x17a   : > { %6905 = vmatprep.subr.bf16.mxu0 %v7959_v28 }
 0x17b   : > { %2164 = vmatmul.mubr.bf16.gmra.mrb[44].mxu0 %v8434_v33  ;;  %2261 = vmatmul.mubr.bf16.gmra.mrb[44].mxu1 %v9021_v47 }
 0x17c   : > { %2171 = vmatprep.mubr.bf16.mxu0 %v8435_v34  ;;  %2268 = vmatprep.mubr.bf16.mxu1 %v9024_v50 }
 0x17d   : > { %6906 = vmatpush3.bf16.msra.mxu0 %v7960_v31 }
 0x17e   : > { %6907 = vmatprep.subr.bf16.mxu0 %v7961_v32 }
 0x181   : > { %6908 = vmatpush3.bf16.msra.mxu0 %v7962_v35 }
 0x183   : > { %2172 = vmatmul.mubr.bf16.gmra.mrb[48].mxu0 %v8436_v36  ;;  %2269 = vmatmul.mubr.bf16.gmra.mrb[48].mxu1 %v9031_v61 }
 0x184   : > { %2179 = vmatprep.mubr.bf16.mxu0 %v8956_v49  ;;  %2276 = vmatprep.mubr.bf16.mxu1 %v9034_v63  ;;  %v7963_v49 = vld [vmem:[#allocation8 + $0xc0] sm:$0xff]  }
 0x185   : > { %6957 = vmatprep.subr.bf16.mxu1 %v7963_v49 }
 0x18b   : > { %2180 = vmatmul.mubr.bf16.gmra.mrb[52].mxu0 %v8961_v53  ;;  %2277 = vmatmul.mubr.bf16.gmra.mrb[52].mxu1 %v9041_v0  ;;  %v7964_v53 = vld [vmem:[#allocation8 + $0x80] sm:$0xff]  }
 0x18c   : > { %2187 = vmatprep.mubr.bf16.mxu0 %v8964_v58  ;;  %2284 = vmatprep.mubr.bf16.mxu1 %v9044_v1  ;;  %v7965_v58 = vld [vmem:[#allocation8 + $0xc8] sm:$0xff]  }
 0x18d   : > { %6958 = vmatpush3.bf16.msra.mxu1 %v7964_v53 }
 0x18e   : > { %6959 = vmatprep.subr.bf16.mxu1 %v7965_v58 }
 0x193   : > { %2188 = vmatmul.mubr.bf16.gmra.mrb[56].mxu0 %v8969_v62  ;;  %2285 = vmatmul.mubr.bf16.gmra.mrb[56].mxu1 %v9051_v2  ;;  %v7966_v62 = vld [vmem:[#allocation8 + $0x88] sm:$0xff]  }
 0x194   : > { %2195 = vmatprep.mubr.bf16.mxu0 %v8974_v5  ;;  %2292 = vmatprep.mubr.bf16.mxu1 %v9054_v3 }
 0x195   : > { %6960 = vmatpush3.bf16.msra.mxu1 %v7966_v62 }
 0x196   : > { %6961 = vmatprep.subr.bf16.mxu1 %v7967_v38 }
 0x199   : > { %6962 = vmatpush3.bf16.msra.mxu1 %v7968_v40 }
 0x19a   : > { %6963 = vmatprep.subr.bf16.mxu1 %v7969_v41 }
 0x19b   : > { %2196 = vmatmul.mubr.bf16.gmra.mrb[60].mxu0 %v8981_v9  ;;  %2293 = vmatmul.mubr.bf16.gmra.mrb[60].mxu1 %v9061_v4 }
 0x19c   : > { %2596 = vmatprep.mubr.bf16.mxu0 %v9066_v6  ;;  %2693 = vmatprep.mubr.bf16.mxu1 %v8984_v14  ;;  %v7970_v14 = vld [vmem:[#allocation8 + $0x98] sm:$0xff]  }
 0x19d   : > { %6964 = vmatpush3.bf16.msra.mxu1 %v7970_v14 }
 0x19e   : > { %6965 = vmatprep.subr.bf16.mxu1 %v7971_v42 }
 0x1a1   : > { %6966 = vmatpush3.bf16.msra.mxu1 %v7972_v43 }
 0x1a2   : > { %6967 = vmatprep.subr.bf16.mxu1 %v7973_v44 }
 0x1a3   : > { %2597 = vmatmul.mubr.bf16.vlgmr.msra.gmra.mrb[64].mxu0 %v9071_v10 }
 0x1a4   : > { %2604 = vmatprep.mubr.bf16.mxu0 %v9076_v12 }
 0x1a5   : > { %6968 = vmatpush3.bf16.msra.mxu1 %v7974_v45 }
 0x1a6   : > { %6969 = vmatprep.subr.bf16.mxu1 %v7975_v46 }
 0x1a9   : > { %6970 = vmatpush3.bf16.msra.mxu1 %v7976_v48 }
 0x1aa   : > { %6971 = vmatprep.subr.bf16.mxu1 %v7977_v51 }
 0x1ab   : > { %2605 = vmatmul.mubr.bf16.gmra.mrb[68].mxu0 %v9081_v17 }
 0x1ac   : > { %2612 = vmatprep.mubr.bf16.mxu0 %v9086_v20 }
 0x1ad   : > { %6972 = vmatpush3.bf16.msra.mxu1 %v7978_v52 }
 0x1b0   : > { %2694 = vmatmul.mubr.bf16.vlgmr.msra.gmra.mrb[64].mxu1 %v8989_v18  ;;  %v572_v18 = vlaneseq }
 0x1b1   : > { %2701 = vmatprep.mubr.bf16.mxu1 %v8994_v22 }
 0x1b2   : > { %v9144_v22 = vshrl.u32 %v572_v18, 7 }
 0x1b3   : > { %2613 = vmatmul.mubr.bf16.gmra.mrb[72].mxu0 %v9091_v25 }
 0x1b4   : > { %2620 = vmatprep.mubr.bf16.mxu0 %v9096_v26  ;;  %10467 = vst [vmem:[#allocation18_spill] sm:$0xff] %v9144_v22 }
 0x1b8   : > { %2702 = vmatmul.mubr.bf16.gmra.mrb[68].mxu1 %v9001_v29  ;;  %v10406_v29 = vsub.s32 0, %v9144_v22 }
 0x1b9   : > { %2709 = vmatprep.mubr.bf16.mxu1 %v9004_v30  ;;  %v570_v30 = vld [vmem:[%s10387_s2] sm:$0xf] }
 0x1bb   : > { %2621 = vmatmul.mubr.bf16.gmra.mrb[76].mxu0 %v8434_v33 }
 0x1bc   : > { %2628 = vmatprep.mubr.bf16.mxu0 %v8435_v34 }
 0x1c0   : > { %2710 = vmatmul.mubr.bf16.gmra.mrb[72].mxu1 %v9011_v37  ;;  %v10403_v37 = vsub.s32 3, %v9144_v22 }
 0x1c1   : > { %2717 = vmatprep.mubr.bf16.mxu1 %v9014_v39  ;;  %v9157_v39 = vrot.slane %v570_v30, %v10406_v29 }
 0x1c2   : > { %v9169_v59 = vrot.slane %v570_v30, %v10403_v37 }
 0x1c3   : > { %2629 = vmatmul.mubr.bf16.gmra.mrb[80].mxu0 %v8436_v36 }
 0x1c4   : > { %2636 = vmatprep.mubr.bf16.mxu0 %v8437_v54 }
 0x1c8   : > { %2718 = vmatmul.mubr.bf16.gmra.mrb[76].mxu1 %v9021_v47 }
 0x1c9   : > { %2725 = vmatprep.mubr.bf16.mxu1 %v9024_v50 }
 0x1cb   : > { %2637 = vmatmul.mubr.bf16.gmra.mrb[84].mxu0 %v8438_v55 }
 0x1cc   : > { %2644 = vmatprep.mubr.bf16.mxu0 %v8439_v56 }
 0x1d0   : > { %2726 = vmatmul.mubr.bf16.gmra.mrb[80].mxu1 %v9031_v61 }
 0x1d1   : > { %2733 = vmatprep.mubr.bf16.mxu1 %v9034_v63 }
 0x1d3   : > { %2645 = vmatmul.mubr.bf16.gmra.mrb[88].mxu0 %v8440_v57 }
 0x1d4   : > { %2652 = vmatprep.mubr.bf16.mxu0 %v8974_v5  ;;  %v10405_v5 = vsub.s32 2, %v9144_v22 }
 0x1d6   : > { %v9161_v47 = vrot.slane %v570_v30, %v10405_v5 }
 0x1d8   : > { %2734 = vmatmul.mubr.bf16.gmra.mrb[84].mxu1 %v9041_v0 }
 0x1d9   : > { %2741 = vmatprep.mubr.bf16.mxu1 %v9044_v1 }
 0x1db   : > { %2653 = vmatmul.mubr.bf16.gmra.mrb[92].mxu0 %v8981_v9  ;;  %v10404_v9 = vsub.s32 1, %v9144_v22 }
 0x1dd   : > { %v9165_v50 = vrot.slane %v570_v30, %v10404_v9 }
 0x1e0   : > { %2742 = vmatmul.mubr.bf16.gmra.mrb[88].mxu1 %v9051_v2 }
 0x1e1   : > { %2749 = vmatprep.mubr.bf16.mxu1 %v9054_v3 }
 0x1e8   : > { %2750 = vmatmul.mubr.bf16.gmra.mrb[92].mxu1 %v9061_v4 }
 0x1f6   : > { %v1539_v60 = vpop.f32.mrb[0].mxu0  ;;  %v1765_v61 = vpop.f32.mrb[0].mxu1 }
 0x1f7   : > { %v7261_v63 = vadd.f32 %v1539_v60, %v9157_v39  ;;  %v7293_v0 = vadd.f32 %v1765_v61, %v9161_v47  ;;  %v1541_v1 = vpop.f32.mrb[1].mxu0  ;;  %v1767_v2 = vpop.f32.mrb[1].mxu1 }
 0x1f8   : > { %v7262_v3 = vadd.f32 %v1541_v1, %v9165_v50  ;;  %v7294_v6 = vadd.f32 %v1767_v2, %v9169_v59  ;;  %v1543_v7 = vpop.f32.mrb[2].mxu0  ;;  %v1769_v8 = vpop.f32.mrb[2].mxu1 }
 0x1f9   : > { %v7263_v10 = vadd.f32 %v1543_v7, %v9157_v39  ;;  %v7295_v11 = vadd.f32 %v1769_v8, %v9161_v47  ;;  %v1545_v12 = vpop.f32.mrb[3].mxu0  ;;  %v1771_v13 = vpop.f32.mrb[3].mxu1  ;;  %v2902_v15 = vmul.f32 0.088388346, %v7261_v63  ;;  %v9178_v16 = vmul.f32 0.088388346, %v7293_v0 }
 0x1fa   : > { %v7264_v17 = vadd.f32 %v1545_v12, %v9165_v50  ;;  %v7296_v19 = vadd.f32 %v1771_v13, %v9169_v59  ;;  %v9182_v20 = vmul.f32 0.088388346, %v7262_v3  ;;  %v9186_v24 = vmul.f32 0.088388346, %v7294_v6 }
 0x1fb   : > { %v2903_v21 = vmul.f32 0.088388346, %v7263_v10  ;;  %v9184_v23 = vmul.f32 0.088388346, %v7295_v11 }
 0x1fc   : > { %10468 = vst [vmem:[#allocation19_spill] sm:$0xff] %v9186_v24  ;;  %v9188_v4 = vmul.f32 0.088388346, %v7264_v17  ;;  %v9190_v25 = vmul.f32 0.088388346, %v7296_v19 }
 0x1fd   : > { %v2966_v26 = vpack.c.bf16 %v2903_v21, %v2902_v15 }
 0x1fe   : > { %10469 = vst [vmem:[#allocation20_spill] sm:$0xff] %v9190_v25  ;;  %v1549_v32 = vpop.f32.mrb[4].mxu0  ;;  %v1775_v33 = vpop.f32.mrb[4].mxu1 }
 0x1ff   : > { %v7265_v34 = vadd.f32 %v1549_v32, %v9157_v39  ;;  %v7297_v35 = vadd.f32 %v1775_v33, %v9161_v47  ;;  %v1551_v36 = vpop.f32.mrb[5].mxu0  ;;  %v1777_v49 = vpop.f32.mrb[5].mxu1  ;;  %7117 = vmatprep.mubr.bf16.mxu0 %v2966_v26 }
 0x200   : > { %v7266_v53 = vadd.f32 %v1551_v36, %v9165_v50  ;;  %v7298_v58 = vadd.f32 %v1777_v49, %v9169_v59  ;;  %v1553_v62 = vpop.f32.mrb[6].mxu0  ;;  %v1779_v38 = vpop.f32.mrb[6].mxu1 }
 0x201   : > { %v7267_v40 = vadd.f32 %v1553_v62, %v9157_v39  ;;  %v7299_v41 = vadd.f32 %v1779_v38, %v9161_v47  ;;  %v1555_v14 = vpop.f32.mrb[7].mxu0  ;;  %v1781_v42 = vpop.f32.mrb[7].mxu1  ;;  %v9204_v43 = vmul.f32 0.088388346, %v7265_v34  ;;  %v9206_v44 = vmul.f32 0.088388346, %v7297_v35 }
 0x202   : > { %v7268_v45 = vadd.f32 %v1555_v14, %v9165_v50  ;;  %v7300_v46 = vadd.f32 %v1781_v42, %v9169_v59  ;;  %v9210_v48 = vmul.f32 0.088388346, %v7266_v53  ;;  %v9216_v54 = vmul.f32 0.088388346, %v7298_v58 }
 0x203   : > { %v9212_v51 = vmul.f32 0.088388346, %v7267_v40  ;;  %v9214_v52 = vmul.f32 0.088388346, %v7299_v41 }
 0x204   : > { %10470 = vst [vmem:[#allocation21_spill] sm:$0xff] %v9216_v54  ;;  %v9218_v55 = vmul.f32 0.088388346, %v7268_v45  ;;  %v9220_v56 = vmul.f32 0.088388346, %v7300_v46 }
 0x206   : > { %10471 = vst [vmem:[#allocation22_spill] sm:$0xff] %v9220_v56  ;;  %v1559_v61 = vpop.f32.mrb[8].mxu0  ;;  %v1785_v63 = vpop.f32.mrb[8].mxu1 }
 0x207   : > { %v7269_v0 = vadd.f32 %v1559_v61, %v9157_v39  ;;  %v7301_v1 = vadd.f32 %v1785_v63, %v9161_v47  ;;  %v1561_v2 = vpop.f32.mrb[9].mxu0  ;;  %v1787_v3 = vpop.f32.mrb[9].mxu1 }
 0x208   : > { %v7270_v6 = vadd.f32 %v1561_v2, %v9165_v50  ;;  %v7302_v7 = vadd.f32 %v1787_v3, %v9169_v59  ;;  %v1563_v8 = vpop.f32.mrb[10].mxu0  ;;  %v1789_v10 = vpop.f32.mrb[10].mxu1 }
 0x209   : > { %v7271_v11 = vadd.f32 %v1563_v8, %v9157_v39  ;;  %v7303_v12 = vadd.f32 %v1789_v10, %v9161_v47  ;;  %v1565_v13 = vpop.f32.mrb[11].mxu0  ;;  %v1791_v15 = vpop.f32.mrb[11].mxu1  ;;  %v9236_v17 = vmul.f32 0.088388346, %v7269_v0  ;;  %v9238_v19 = vmul.f32 0.088388346, %v7301_v1 }
 0x20a   : > { %v7272_v21 = vadd.f32 %v1565_v13, %v9165_v50  ;;  %v7304_v26 = vadd.f32 %v1791_v15, %v9169_v59  ;;  %v9242_v32 = vmul.f32 0.088388346, %v7270_v6  ;;  %v9248_v35 = vmul.f32 0.088388346, %v7302_v7 }
 0x20b   : > { %v9244_v33 = vmul.f32 0.088388346, %v7271_v11  ;;  %v9246_v34 = vmul.f32 0.088388346, %v7303_v12 }
 0x20c   : > { %10472 = vst [vmem:[#allocation23_spill] sm:$0xff] %v9248_v35  ;;  %v9250_v36 = vmul.f32 0.088388346, %v7272_v21  ;;  %v9252_v49 = vmul.f32 0.088388346, %v7304_v26 }
 0x20e   : > { %10473 = vst [vmem:[#allocation24_spill] sm:$0xff] %v9252_v49  ;;  %v1569_v40 = vpop.f32.mrb[12].mxu0  ;;  %v1795_v41 = vpop.f32.mrb[12].mxu1 }
 0x20f   : > { %v7273_v14 = vadd.f32 %v1569_v40, %v9157_v39  ;;  %v7305_v42 = vadd.f32 %v1795_v41, %v9161_v47  ;;  %v1571_v45 = vpop.f32.mrb[13].mxu0  ;;  %v1797_v46 = vpop.f32.mrb[13].mxu1 }
 0x210   : > { %v7274_v61 = vadd.f32 %v1571_v45, %v9165_v50  ;;  %v7306_v63 = vadd.f32 %v1797_v46, %v9169_v59  ;;  %v1573_v0 = vpop.f32.mrb[14].mxu0  ;;  %v1799_v1 = vpop.f32.mrb[14].mxu1 }
 0x211   : > { %v7275_v2 = vadd.f32 %v1573_v0, %v9157_v39  ;;  %v7307_v3 = vadd.f32 %v1799_v1, %v9161_v47  ;;  %v1575_v6 = vpop.f32.mrb[15].mxu0  ;;  %v1801_v7 = vpop.f32.mrb[15].mxu1  ;;  %v9268_v8 = vmul.f32 0.088388346, %v7273_v14  ;;  %v9270_v10 = vmul.f32 0.088388346, %v7305_v42 }
 0x212   : > { %v7276_v11 = vadd.f32 %v1575_v6, %v9165_v50  ;;  %v7308_v12 = vadd.f32 %v1801_v7, %v9169_v59  ;;  %v9274_v13 = vmul.f32 0.088388346, %v7274_v61  ;;  %v9280_v26 = vmul.f32 0.088388346, %v7306_v63 }
 0x213   : > { %v9276_v15 = vmul.f32 0.088388346, %v7275_v2  ;;  %v9278_v21 = vmul.f32 0.088388346, %v7307_v3 }
 0x214   : > { %10474 = vst [vmem:[#allocation25_spill] sm:$0xff] %v9280_v26  ;;  %v9282_v40 = vmul.f32 0.088388346, %v7276_v11  ;;  %v9284_v41 = vmul.f32 0.088388346, %v7308_v12 }
 0x216   : > { %10475 = vst [vmem:[#allocation26_spill] sm:$0xff] %v9284_v41  ;;  %v1579_v61 = vpop.f32.mrb[16].mxu0  ;;  %v1805_v0 = vpop.f32.mrb[16].mxu1 }
 0x217   : > { %v7277_v63 = vadd.f32 %v1579_v61, %v9157_v39  ;;  %v7309_v1 = vadd.f32 %v1805_v0, %v9161_v47  ;;  %v1581_v2 = vpop.f32.mrb[17].mxu0  ;;  %v1807_v3 = vpop.f32.mrb[17].mxu1 }
 0x218   : > { %v7278_v6 = vadd.f32 %v1581_v2, %v9165_v50  ;;  %v7310_v7 = vadd.f32 %v1807_v3, %v9169_v59  ;;  %v1583_v11 = vpop.f32.mrb[18].mxu0  ;;  %v1809_v12 = vpop.f32.mrb[18].mxu1 }
 0x219   : > { %v7279_v37 = vadd.f32 %v1583_v11, %v9157_v39  ;;  %v7311_v9 = vadd.f32 %v1809_v12, %v9161_v47  ;;  %v1585_v5 = vpop.f32.mrb[19].mxu0  ;;  %v1811_v29 = vpop.f32.mrb[19].mxu1  ;;  %v9300_v46 = vmul.f32 0.088388346, %v7277_v63  ;;  %v9302_v38 = vmul.f32 0.088388346, %v7309_v1 }
 0x21a   : > { %v7280_v61 = vadd.f32 %v1585_v5, %v9165_v50  ;;  %v7312_v0 = vadd.f32 %v1811_v29, %v9169_v59  ;;  %v9306_v60 = vmul.f32 0.088388346, %v7278_v6  ;;  %v9312_v31 = vmul.f32 0.088388346, %v7310_v7 }
 0x21b   : > { %10476 = vst [vmem:[#allocation27_spill] sm:$0xff] %v9302_v38  ;;  %v9308_v2 = vmul.f32 0.088388346, %v7279_v37  ;;  %v9310_v3 = vmul.f32 0.088388346, %v7311_v9 }
 0x21c   : > { %10477 = vst [vmem:[#allocation28_spill] sm:$0xff] %v9312_v31  ;;  %v9314_v11 = vmul.f32 0.088388346, %v7280_v61  ;;  %v9316_v12 = vmul.f32 0.088388346, %v7312_v0 }
 0x21e   : > { %10478 = vst [vmem:[#allocation29_spill] sm:$0xff] %v9316_v12  ;;  %v1589_v9 = vpop.f32.mrb[20].mxu0  ;;  %v1815_v1 = vpop.f32.mrb[20].mxu1 }
 0x21f   : > { %v7281_v6 = vadd.f32 %v1589_v9, %v9157_v39  ;;  %v7313_v7 = vadd.f32 %v1815_v1, %v9161_v47  ;;  %v1591_v61 = vpop.f32.mrb[21].mxu0  ;;  %v1817_v0 = vpop.f32.mrb[21].mxu1 }
 0x220   : > { %v7282_v42 = vadd.f32 %v1591_v61, %v9165_v50  ;;  %v7314_v58 = vadd.f32 %v1817_v0, %v9169_v59  ;;  %v1593_v18 = vpop.f32.mrb[22].mxu0  ;;  %v1819_v5 = vpop.f32.mrb[22].mxu1 }
 0x221   : > { %v7283_v27 = vadd.f32 %v1593_v18, %v9157_v39  ;;  %v7315_v29 = vadd.f32 %v1819_v5, %v9161_v47  ;;  %v1595_v45 = vpop.f32.mrb[23].mxu0  ;;  %v1821_v37 = vpop.f32.mrb[23].mxu1  ;;  %v9332_v62 = vmul.f32 0.088388346, %v7281_v6  ;;  %v9334_v30 = vmul.f32 0.088388346, %v7313_v7 }
 0x222   : > { %v7284_v9 = vadd.f32 %v1595_v45, %v9165_v50  ;;  %v7316_v1 = vadd.f32 %v1821_v37, %v9169_v59  ;;  %v9338_v28 = vmul.f32 0.088388346, %v7282_v42  ;;  %v9344_v63 = vmul.f32 0.088388346, %v7314_v58 }
 0x223   : > { %10479 = vst [vmem:[#allocation30_spill] sm:$0xff] %v9334_v30  ;;  %v9340_v61 = vmul.f32 0.088388346, %v7283_v27  ;;  %v9342_v0 = vmul.f32 0.088388346, %v7315_v29 }
 0x224   : > { %10481 = vst [vmem:[#allocation32_spill] sm:$0xff] %v9344_v63  ;;  %v9346_v18 = vmul.f32 0.088388346, %v7284_v9  ;;  %v9348_v5 = vmul.f32 0.088388346, %v7316_v1 }
 0x225   : > { %10480 = vst [vmem:[#allocation31_spill] sm:$0xff] %v9342_v0 }
 0x226   : > { %10482 = vst [vmem:[#allocation33_spill] sm:$0xff] %v9348_v5  ;;  %v1599_v29 = vpop.f32.mrb[24].mxu0  ;;  %v1825_v37 = vpop.f32.mrb[24].mxu1 }
 0x227   : > { %v7285_v58 = vadd.f32 %v1599_v29, %v9157_v39  ;;  %v7317_v7 = vadd.f32 %v1825_v37, %v9161_v47  ;;  %v1601_v9 = vpop.f32.mrb[25].mxu0  ;;  %v1827_v1 = vpop.f32.mrb[25].mxu1 }
 0x228   : > { %v7286_v14 = vadd.f32 %v1601_v9, %v9165_v50  ;;  %v7318_v6 = vadd.f32 %v1827_v1, %v9169_v59  ;;  %v1603_v53 = vpop.f32.mrb[26].mxu0  ;;  %v1829_v45 = vpop.f32.mrb[26].mxu1 }
 0x229   : > { %v7287_v57 = vadd.f32 %v1603_v53, %v9157_v39  ;;  %v7319_v42 = vadd.f32 %v1829_v45, %v9161_v47  ;;  %v1605_v22 = vpop.f32.mrb[27].mxu0  ;;  %v1831_v27 = vpop.f32.mrb[27].mxu1  ;;  %v9364_v63 = vmul.f32 0.088388346, %v7285_v58  ;;  %v9366_v5 = vmul.f32 0.088388346, %v7317_v7 }
 0x22a   : > { %v7288_v29 = vadd.f32 %v1605_v22, %v9165_v50  ;;  %v7320_v37 = vadd.f32 %v1831_v27, %v9169_v59  ;;  %v9370_v31 = vmul.f32 0.088388346, %v7286_v14  ;;  %v9376_v12 = vmul.f32 0.088388346, %v7318_v6 }
 0x22b   : > { %10483 = vst [vmem:[#allocation34_spill] sm:$0xff] %v9366_v5  ;;  %v9372_v9 = vmul.f32 0.088388346, %v7287_v57  ;;  %v9374_v1 = vmul.f32 0.088388346, %v7319_v42 }
 0x22c   : > { %10485 = vst [vmem:[#allocation36_spill] sm:$0xff] %v9376_v12  ;;  %v9378_v53 = vmul.f32 0.088388346, %v7288_v29  ;;  %v9380_v45 = vmul.f32 0.088388346, %v7320_v37 }
 0x22d   : > { %10484 = vst [vmem:[#allocation35_spill] sm:$0xff] %v9374_v1 }
 0x22e   : > { %10486 = vst [vmem:[#allocation37_spill] sm:$0xff] %v9380_v45  ;;  %v1609_v42 = vpop.f32.mrb[28].mxu0  ;;  %v1835_v27 = vpop.f32.mrb[28].mxu1 }
 0x22f   : > { %v7289_v6 = vadd.f32 %v1609_v42, %v9157_v39  ;;  %v7321_v7 = vadd.f32 %v1835_v27, %v9161_v47  ;;  %v1611_v29 = vpop.f32.mrb[29].mxu0  ;;  %v1837_v37 = vpop.f32.mrb[29].mxu1 }
 0x230   : > { %v7290_v26 = vadd.f32 %v1611_v29, %v9165_v50  ;;  %v7322_v58 = vadd.f32 %v1837_v37, %v9169_v59  ;;  %v1613_v41 = vpop.f32.mrb[30].mxu0  ;;  %v1839_v22 = vpop.f32.mrb[30].mxu1 }
 0x231   : > { %v7291_v35 = vadd.f32 %v1613_v41, %v9157_v39  ;;  %v7323_v14 = vadd.f32 %v1839_v22, %v9161_v47  ;;  %v1615_v49 = vpop.f32.mrb[31].mxu0  ;;  %v1841_v57 = vpop.f32.mrb[31].mxu1  ;;  %v9396_v12 = vmul.f32 0.088388346, %v7289_v6  ;;  %v9398_v45 = vmul.f32 0.088388346, %v7321_v7 }
 0x232   : > { %v7292_v42 = vadd.f32 %v1615_v49, %v9165_v50  ;;  %v7324_v27 = vadd.f32 %v1841_v57, %v9169_v59  ;;  %v9402_v54 = vmul.f32 0.088388346, %v7290_v26  ;;  %v9408_v56 = vmul.f32 0.088388346, %v7322_v58  ;;  %v9425_v58 = vld [vmem:[%s10389_s4] ss:$0 sm:$0xff] }
 0x233   : > { %10487 = vst [vmem:[#allocation38_spill] sm:$0xff] %v9398_v45  ;;  %v9404_v29 = vmul.f32 0.088388346, %v7291_v35  ;;  %v9406_v37 = vmul.f32 0.088388346, %v7323_v14 }
 0x234   : > { %10489 = vst [vmem:[#allocation40_spill] sm:$0xff] %v9408_v56  ;;  %v9410_v39 = vmul.f32 0.088388346, %v7292_v42  ;;  %v9412_v47 = vmul.f32 0.088388346, %v7324_v27 }
 0x235   : > { %10488 = vst [vmem:[#allocation39_spill] sm:$0xff] %v9406_v37 }
 0x236   : > { %10490 = vst [vmem:[#allocation41_spill] sm:$0xff] %v9412_v47  ;;  %v6781_v49 = vpop.f32.mrb[32].mxu0  ;;  %v6845_v26 = vpop.f32.mrb[32].mxu1 }
 0x237   : > { %v6782_v22 = vpop.f32.mrb[33].mxu0  ;;  %v6846_v14 = vpop.f32.mrb[33].mxu1 }
 0x238   : > { %v6783_v57 = vadd.f32 %v6782_v22, %v6781_v49  ;;  %v6847_v6 = vadd.f32 %v6846_v14, %v6845_v26  ;;  %v6784_v7 = vpop.f32.mrb[34].mxu0  ;;  %v6848_v42 = vpop.f32.mrb[34].mxu1 }
 0x239   : > { %v6785_v27 = vpop.f32.mrb[35].mxu0  ;;  %v6849_v50 = vpop.f32.mrb[35].mxu1 }
 0x23a   : > { %v2142_v59 = vadd.f32 %v6783_v57, %v9425_v58  ;;  %v6786_v41 = vadd.f32 %v6785_v27, %v6784_v7  ;;  %v6850_v24 = vadd.f32 %v6849_v50, %v6848_v42 }
 0x23c   : > { %v2239_v35 = vadd.f32 %v6847_v6, %v2142_v59  ;;  %v2145_v56 = vadd.f32 %v6786_v41, %v9425_v58 }
 0x23e   : > { %v2242_v47 = vadd.f32 %v6850_v24, %v2145_v56  ;;  %v6787_v25 = vpop.f32.mrb[36].mxu0  ;;  %v6851_v45 = vpop.f32.mrb[36].mxu1 }
 0x23f   : > { %v6788_v37 = vpop.f32.mrb[37].mxu0  ;;  %v6852_v5 = vpop.f32.mrb[37].mxu1 }
 0x240   : > { %v6789_v1 = vadd.f32 %v6788_v37, %v6787_v25  ;;  %v6853_v30 = vadd.f32 %v6852_v5, %v6851_v45  ;;  %v6790_v49 = vpop.f32.mrb[38].mxu0  ;;  %v6854_v26 = vpop.f32.mrb[38].mxu1  ;;  %v2886_v22 = vpack.c.bf16 %v2242_v47, %v2239_v35 }
 0x241   : > { %v6791_v14 = vpop.f32.mrb[39].mxu0  ;;  %v6855_v0 = vpop.f32.mrb[39].mxu1 }
 0x242   : > { %v2150_v38 = vadd.f32 %v6789_v1, %v9425_v58  ;;  %v6792_v57 = vadd.f32 %v6791_v14, %v6790_v49  ;;  %v6856_v7 = vadd.f32 %v6855_v0, %v6854_v26  ;;  %7101 = vmatprep.subr.bf16.mxu0 %v2886_v22 }
 0x243   : > { %7102 = vmatpush3.bf16.xpose.msra.mxu0 %v2886_v22 }
 0x244   : > { %v2247_v50 = vadd.f32 %v6853_v30, %v2150_v38  ;;  %v2153_v24 = vadd.f32 %v6792_v57, %v9425_v58 }
 0x246   : > { %v2250_v56 = vadd.f32 %v6856_v7, %v2153_v24  ;;  %v6793_v41 = vpop.f32.mrb[40].mxu0  ;;  %v6857_v59 = vpop.f32.mrb[40].mxu1 }
 0x247   : > { %v6794_v6 = vpop.f32.mrb[41].mxu0  ;;  %v6858_v25 = vpop.f32.mrb[41].mxu1 }
 0x248   : > { %v6795_v5 = vadd.f32 %v6794_v6, %v6793_v41  ;;  %v6859_v45 = vadd.f32 %v6858_v25, %v6857_v59  ;;  %v6796_v37 = vpop.f32.mrb[42].mxu0  ;;  %v6860_v47 = vpop.f32.mrb[42].mxu1  ;;  %v2887_v35 = vpack.c.bf16 %v2250_v56, %v2247_v50 }
 0x249   : > { %v6797_v42 = vpop.f32.mrb[43].mxu0  ;;  %v6861_v27 = vpop.f32.mrb[43].mxu1 }
 0x24a   : > { %v2158_v1 = vadd.f32 %v6795_v5, %v9425_v58  ;;  %v6798_v0 = vadd.f32 %v6797_v42, %v6796_v37  ;;  %v6862_v49 = vadd.f32 %v6861_v27, %v6860_v47  ;;  %7103 = vmatprep.subr.bf16.mxu0 %v2887_v35 }
 0x24b   : > { %7104 = vmatpush3.bf16.xpose.msra.mxu0 %v2887_v35 }
 0x24c   : > { %v2255_v30 = vadd.f32 %v6859_v45, %v2158_v1  ;;  %v2161_v38 = vadd.f32 %v6798_v0, %v9425_v58 }
 0x24e   : > { %v2258_v26 = vadd.f32 %v6862_v49, %v2161_v38  ;;  %v6799_v22 = vpop.f32.mrb[44].mxu0  ;;  %v6863_v14 = vpop.f32.mrb[44].mxu1 }
 0x24f   : > { %v6800_v57 = vpop.f32.mrb[45].mxu0  ;;  %v6864_v7 = vpop.f32.mrb[45].mxu1 }
 0x250   : > { %v6801_v24 = vadd.f32 %v6800_v57, %v6799_v22  ;;  %v6865_v41 = vadd.f32 %v6864_v7, %v6863_v14  ;;  %v6802_v59 = vpop.f32.mrb[46].mxu0  ;;  %v6866_v50 = vpop.f32.mrb[46].mxu1  ;;  %v2888_v56 = vpack.c.bf16 %v2258_v26, %v2255_v30 }
 0x251   : > { %v6803_v6 = vpop.f32.mrb[47].mxu0  ;;  %v6867_v25 = vpop.f32.mrb[47].mxu1 }
 0x252   : > { %v2166_v5 = vadd.f32 %v6801_v24, %v9425_v58  ;;  %v6804_v37 = vadd.f32 %v6803_v6, %v6802_v59  ;;  %v6868_v47 = vadd.f32 %v6867_v25, %v6866_v50  ;;  %7105 = vmatprep.subr.bf16.mxu0 %v2888_v56 }
 0x253   : > { %7106 = vmatpush3.bf16.xpose.msra.mxu0 %v2888_v56 }
 0x254   : > { %v2263_v45 = vadd.f32 %v6865_v41, %v2166_v5  ;;  %v2169_v35 = vadd.f32 %v6804_v37, %v9425_v58 }
 0x256   : > { %v2266_v42 = vadd.f32 %v6868_v47, %v2169_v35  ;;  %v6805_v27 = vpop.f32.mrb[48].mxu0  ;;  %v6869_v1 = vpop.f32.mrb[48].mxu1 }
 0x257   : > { %v6806_v0 = vpop.f32.mrb[49].mxu0  ;;  %v6870_v49 = vpop.f32.mrb[49].mxu1 }
 0x258   : > { %v6807_v38 = vadd.f32 %v6806_v0, %v6805_v27  ;;  %v6871_v22 = vadd.f32 %v6870_v49, %v6869_v1  ;;  %v6808_v14 = vpop.f32.mrb[50].mxu0  ;;  %v6872_v30 = vpop.f32.mrb[50].mxu1  ;;  %v2889_v26 = vpack.c.bf16 %v2266_v42, %v2263_v45 }
 0x259   : > { %v6809_v57 = vpop.f32.mrb[51].mxu0  ;;  %v6873_v7 = vpop.f32.mrb[51].mxu1 }
 0x25a   : > { %v2174_v24 = vadd.f32 %v6807_v38, %v9425_v58  ;;  %v6810_v59 = vadd.f32 %v6809_v57, %v6808_v14  ;;  %v6874_v50 = vadd.f32 %v6873_v7, %v6872_v30  ;;  %7107 = vmatprep.subr.bf16.mxu0 %v2889_v26 }
 0x25b   : > { %7108 = vmatpush3.bf16.xpose.msra.mxu0 %v2889_v26 }
 0x25c   : > { %v2271_v41 = vadd.f32 %v6871_v22, %v2174_v24  ;;  %v2177_v56 = vadd.f32 %v6810_v59, %v9425_v58 }
 0x25e   : > { %v2274_v6 = vadd.f32 %v6874_v50, %v2177_v56  ;;  %v6811_v25 = vpop.f32.mrb[52].mxu0  ;;  %v6875_v5 = vpop.f32.mrb[52].mxu1 }
 0x25f   : > { %v6812_v37 = vpop.f32.mrb[53].mxu0  ;;  %v6876_v47 = vpop.f32.mrb[53].mxu1 }
 0x260   : > { %v6813_v35 = vadd.f32 %v6812_v37, %v6811_v25  ;;  %v6877_v27 = vadd.f32 %v6876_v47, %v6875_v5  ;;  %v6814_v1 = vpop.f32.mrb[54].mxu0  ;;  %v6878_v45 = vpop.f32.mrb[54].mxu1  ;;  %v2890_v42 = vpack.c.bf16 %v2274_v6, %v2271_v41 }
 0x261   : > { %v6815_v0 = vpop.f32.mrb[55].mxu0  ;;  %v6879_v49 = vpop.f32.mrb[55].mxu1 }
 0x262   : > { %v2182_v38 = vadd.f32 %v6813_v35, %v9425_v58  ;;  %v6816_v14 = vadd.f32 %v6815_v0, %v6814_v1  ;;  %v6880_v30 = vadd.f32 %v6879_v49, %v6878_v45  ;;  %7109 = vmatprep.subr.bf16.mxu0 %v2890_v42 }
 0x263   : > { %7110 = vmatpush3.bf16.xpose.msra.mxu0 %v2890_v42 }
 0x264   : > { %v2279_v22 = vadd.f32 %v6877_v27, %v2182_v38  ;;  %v2185_v26 = vadd.f32 %v6816_v14, %v9425_v58 }
 0x266   : > { %v2282_v57 = vadd.f32 %v6880_v30, %v2185_v26  ;;  %v6817_v7 = vpop.f32.mrb[56].mxu0  ;;  %v6881_v24 = vpop.f32.mrb[56].mxu1 }
 0x267   : > { %v6818_v59 = vpop.f32.mrb[57].mxu0  ;;  %v6882_v50 = vpop.f32.mrb[57].mxu1 }
 0x268   : > { %v6819_v56 = vadd.f32 %v6818_v59, %v6817_v7  ;;  %v6883_v25 = vadd.f32 %v6882_v50, %v6881_v24  ;;  %v6820_v5 = vpop.f32.mrb[58].mxu0  ;;  %v6884_v41 = vpop.f32.mrb[58].mxu1  ;;  %v2891_v6 = vpack.c.bf16 %v2282_v57, %v2279_v22 }
 0x269   : > { %v6821_v37 = vpop.f32.mrb[59].mxu0  ;;  %v6885_v47 = vpop.f32.mrb[59].mxu1 }
 0x26a   : > { %v2190_v35 = vadd.f32 %v6819_v56, %v9425_v58  ;;  %v6822_v1 = vadd.f32 %v6821_v37, %v6820_v5  ;;  %v6886_v45 = vadd.f32 %v6885_v47, %v6884_v41  ;;  %7111 = vmatprep.subr.bf16.mxu0 %v2891_v6 }
 0x26b   : > { %7112 = vmatpush3.bf16.xpose.msra.mxu0 %v2891_v6 }
 0x26c   : > { %v2287_v27 = vadd.f32 %v6883_v25, %v2190_v35  ;;  %v2193_v42 = vadd.f32 %v6822_v1, %v9425_v58 }
 0x26e   : > { %v2290_v0 = vadd.f32 %v6886_v45, %v2193_v42  ;;  %v6823_v49 = vpop.f32.mrb[60].mxu0  ;;  %v6887_v38 = vpop.f32.mrb[60].mxu1 }
 0x26f   : > { %v6824_v14 = vpop.f32.mrb[61].mxu0  ;;  %v6888_v30 = vpop.f32.mrb[61].mxu1 }
 0x270   : > { %v6825_v26 = vadd.f32 %v6824_v14, %v6823_v49  ;;  %v6889_v7 = vadd.f32 %v6888_v30, %v6887_v38  ;;  %v6826_v24 = vpop.f32.mrb[62].mxu0  ;;  %v6890_v22 = vpop.f32.mrb[62].mxu1  ;;  %v2892_v57 = vpack.c.bf16 %v2290_v0, %v2287_v27 }
 0x271   : > { %v6827_v59 = vpop.f32.mrb[63].mxu0  ;;  %v6891_v50 = vpop.f32.mrb[63].mxu1 }
 0x272   : > { %v2198_v56 = vadd.f32 %v6825_v26, %v9425_v58  ;;  %v6828_v5 = vadd.f32 %v6827_v59, %v6826_v24  ;;  %v6892_v41 = vadd.f32 %v6891_v50, %v6890_v22  ;;  %7113 = vmatprep.subr.bf16.mxu0 %v2892_v57  ;;  %v10492_v24 = vpack.c.bf16 %v9244_v33, %v9236_v17  ;;  %v9458_v17 = vld [vmem:[%s10391_s6] ss:$0 sm:$0xff] }
 0x273   : > { %7114 = vmatpush3.bf16.xpose.msra.mxu0 %v2892_v57 }
 0x274   : > { %v2295_v25 = vadd.f32 %v6889_v7, %v2198_v56  ;;  %v2201_v6 = vadd.f32 %v6828_v5, %v9425_v58  ;;  %v10491_v7 = vpack.c.bf16 %v9212_v51, %v9204_v43  ;;  %v10493_v5 = vpack.c.bf16 %v9276_v15, %v9268_v8 }
 0x275   : > { %v10495_v8 = vpack.c.bf16 %v9340_v61, %v9332_v62 }
 0x276   : > { %v2298_v37 = vadd.f32 %v6892_v41, %v2201_v6  ;;  %v6909_v35 = vpop.f32.mrb[64].mxu0 }
 0x277   : > { %v6910_v1 = vpop.f32.mrb[65].mxu0 }
 0x278   : > { %v2893_v47 = vpack.c.bf16 %v2298_v37, %v2295_v25  ;;  %v6911_v45 = vadd.f32 %v6910_v1, %v6909_v35  ;;  %v6912_v42 = vpop.f32.mrb[66].mxu0  ;;  %v10494_v25 = vpack.c.bf16 %v9308_v2, %v9300_v46  ;;  %v10496_v46 = vpack.c.bf16 %v9372_v9, %v9364_v63 }
 0x279   : > { %v6913_v27 = vpop.f32.mrb[67].mxu0  ;;  %v10497_v63 = vpack.c.bf16 %v9404_v29, %v9396_v12 }
 0x27a   : > { %7115 = vmatprep.subr.bf16.mxu0 %v2893_v47  ;;  %v6914_v0 = vadd.f32 %v6913_v27, %v6912_v42  ;;  %v2599_v2 = vadd.f32 %v6911_v45, %v9458_v17  ;;  %v10498_v45 = vpack.c.bf16 %v9188_v4, %v9182_v20 }
 0x27b   : > { %7116 = vmatpush3.bf16.xpose.msra.mxu0 %v2893_v47 }
 0x27c   : > { %v2602_v1 = vadd.f32 %v6914_v0, %v9458_v17 }
 0x27e   : > { %v6915_v49 = vpop.f32.mrb[68].mxu0 }
 0x27f   : > { %v6916_v38 = vpop.f32.mrb[69].mxu0 }
 0x280   : > { %v6917_v14 = vadd.f32 %v6916_v38, %v6915_v49  ;;  %v6918_v30 = vpop.f32.mrb[70].mxu0 }
 0x281   : > { %v6919_v26 = vpop.f32.mrb[71].mxu0 }
 0x282   : > { %7118 = vmatmul.mubr.bf16.vlgmr.msra.gmra.mrb[96].mxu0 %v10491_v7  ;;  %v6920_v58 = vadd.f32 %v6919_v26, %v6918_v30  ;;  %v2607_v0 = vadd.f32 %v6917_v14, %v9458_v17  ;;  %v10499_v14 = vpack.c.bf16 %v9218_v55, %v9210_v48 }
 0x283   : > { %7121 = vmatprep.mubr.bf16.mxu0 %v10492_v24  ;;  %v6973_v47 = vpop.f32.mrb[64].mxu1 }
 0x284   : > { %v6974_v35 = vpop.f32.mrb[65].mxu1 }
 0x285   : > { %v6975_v42 = vadd.f32 %v6974_v35, %v6973_v47  ;;  %v6976_v27 = vpop.f32.mrb[66].mxu1 }
 0x286   : > { %v6921_v22 = vpop.f32.mrb[72].mxu0  ;;  %v6977_v49 = vpop.f32.mrb[67].mxu1 }
 0x287   : > { %v6922_v57 = vpop.f32.mrb[73].mxu0  ;;  %v2696_v30 = vadd.f32 %v6975_v42, %v2599_v2  ;;  %v6978_v26 = vadd.f32 %v6977_v49, %v6976_v27 }
 0x288   : > { %v6923_v59 = vadd.f32 %v6922_v57, %v6921_v22  ;;  %v6924_v50 = vpop.f32.mrb[74].mxu0 }
 0x289   : > { %v6925_v56 = vpop.f32.mrb[75].mxu0  ;;  %v2699_v24 = vadd.f32 %v6978_v26, %v2602_v1 }
 0x28a   : > { %7122 = vmatmul.mubr.bf16.gmra.mrb[100].mxu0 %v10493_v5  ;;  %v6926_v41 = vadd.f32 %v6925_v56, %v6924_v50  ;;  %v2610_v5 = vadd.f32 %v6920_v58, %v9458_v17  ;;  %v10500_v58 = vpack.c.bf16 %v9250_v36, %v9242_v32  ;;  %v2615_v47 = vadd.f32 %v6923_v59, %v9458_v17 }
 0x28b   : > { %7125 = vmatprep.mubr.bf16.mxu0 %v10494_v25  ;;  %v6979_v57 = vpop.f32.mrb[68].mxu1  ;;  %v2894_v50 = vpack.c.bf16 %v2699_v24, %v2696_v30  ;;  %v10501_v59 = vpack.c.bf16 %v9282_v40, %v9274_v13 }
 0x28c   : > { %v6980_v56 = vpop.f32.mrb[69].mxu1  ;;  %v2618_v27 = vadd.f32 %v6926_v41, %v9458_v17  ;;  %v10502_v41 = vpack.c.bf16 %v9314_v11, %v9306_v60 }
 0x28d   : > { %v6981_v25 = vadd.f32 %v6980_v56, %v6979_v57  ;;  %7181 = vmatprep.subr.bf16.mxu1 %v2894_v50 }
 0x28e   : > { %v6927_v43 = vpop.f32.mrb[76].mxu0  ;;  %7182 = vmatpush3.bf16.msra.mxu1 %v2894_v50 }
 0x28f   : > { %v6928_v51 = vpop.f32.mrb[77].mxu0  ;;  %v2704_v29 = vadd.f32 %v6981_v25, %v2607_v0 }
 0x290   : > { %v9460_v33 = vadd.f32 %v6928_v51, %v6927_v43  ;;  %v6930_v6 = vpop.f32.mrb[78].mxu0  ;;  %v6982_v43 = vpop.f32.mrb[70].mxu1 }
 0x291   : > { %v6931_v37 = vpop.f32.mrb[79].mxu0  ;;  %v6983_v51 = vpop.f32.mrb[71].mxu1 }
 0x292   : > { %7126 = vmatmul.mubr.bf16.gmra.mrb[104].mxu0 %v10495_v8  ;;  %v9465_v15 = vadd.f32 %v6931_v37, %v6930_v6  ;;  %v6984_v6 = vadd.f32 %v6983_v51, %v6982_v43 }
 0x293   : > { %7129 = vmatprep.mubr.bf16.mxu0 %v10496_v46  ;;  %v6985_v35 = vpop.f32.mrb[72].mxu1 }
 0x294   : > { %v2707_v4 = vadd.f32 %v6984_v6, %v2610_v5  ;;  %v6986_v42 = vpop.f32.mrb[73].mxu1  ;;  %v2626_v50 = vadd.f32 %v9465_v15, %v9458_v17  ;;  %v10504_v15 = vpack.c.bf16 %v9378_v53, %v9370_v31  ;;  %v10505_v31 = vpack.c.bf16 %v9410_v39, %v9402_v54 }
 0x295   : > { %v6987_v49 = vadd.f32 %v6986_v42, %v6985_v35  ;;  %v10506_v53 = vpack.c.bf16 %v9184_v23, %v9178_v16  ;;  %v10507_v16 = vpack.c.bf16 %v9214_v52, %v9206_v44  ;;  %v10508_v23 = vpack.c.bf16 %v9246_v34, %v9238_v19  ;;  %v10510_v19 = vld [vmem:[#allocation27_spill] sm:$0xff] }
 0x296   : > { %v6933_v38 = vpop.f32.mrb[80].mxu0  ;;  %v2895_v1 = vpack.c.bf16 %v2707_v4, %v2704_v29  ;;  %v10509_v52 = vpack.c.bf16 %v9278_v21, %v9270_v10  ;;  %v10511_v34 = vpack.c.bf16 %v9310_v3, %v10510_v19  ;;  %v10512_v21 = vld [vmem:[#allocation31_spill] sm:$0xff] }
 0x297   : > { %v6934_v62 = vpop.f32.mrb[81].mxu0  ;;  %v2712_v55 = vadd.f32 %v6987_v49, %v2615_v47  ;;  %v10515_v3 = vld [vmem:[#allocation35_spill] sm:$0xff] }
 0x298   : > { %v9472_v61 = vadd.f32 %v6934_v62, %v6933_v38  ;;  %v6936_v7 = vpop.f32.mrb[82].mxu0  ;;  %v6988_v38 = vpop.f32.mrb[74].mxu1  ;;  %7183 = vmatprep.subr.bf16.mxu1 %v2895_v1 }
 0x299   : > { %v6937_v22 = vpop.f32.mrb[83].mxu0  ;;  %v6989_v30 = vpop.f32.mrb[75].mxu1  ;;  %7184 = vmatpush3.bf16.msra.mxu1 %v2895_v1 }
 0x29a   : > { %7130 = vmatmul.mubr.bf16.gmra.mrb[108].mxu0 %v10497_v63  ;;  %v9477_v9 = vadd.f32 %v6937_v22, %v6936_v7  ;;  %v6990_v26 = vadd.f32 %v6989_v30, %v6988_v38  ;;  %v2623_v63 = vadd.f32 %v9460_v33, %v9458_v17  ;;  %v10503_v33 = vpack.c.bf16 %v9346_v18, %v9338_v28 }
 0x29b   : > { %7133 = vmatprep.mubr.bf16.mxu0 %v10498_v45  ;;  %v6991_v45 = vpop.f32.mrb[76].mxu1 }
 0x29c   : > { %v2715_v32 = vadd.f32 %v6990_v26, %v2618_v27  ;;  %v6992_v57 = vpop.f32.mrb[77].mxu1 }
 0x29d   : > { %v6993_v56 = vadd.f32 %v6992_v57, %v6991_v45  ;;  %v6994_v5 = vpop.f32.mrb[78].mxu1 }
 0x29e   : > { %v6939_v12 = vpop.f32.mrb[84].mxu0  ;;  %v2896_v0 = vpack.c.bf16 %v2715_v32, %v2712_v55  ;;  %v6995_v25 = vpop.f32.mrb[79].mxu1 }
 0x29f   : > { %v6940_v37 = vpop.f32.mrb[85].mxu0  ;;  %v2720_v40 = vadd.f32 %v6993_v56, %v2623_v63  ;;  %v6996_v43 = vadd.f32 %v6995_v25, %v6994_v5 }
 0x2a0   : > { %v9484_v8 = vadd.f32 %v6940_v37, %v6939_v12  ;;  %v6942_v20 = vpop.f32.mrb[86].mxu0  ;;  %7185 = vmatprep.subr.bf16.mxu1 %v2896_v0  ;;  %v2631_v37 = vadd.f32 %v9472_v61, %v9458_v17 }
 0x2a1   : > { %v6943_v46 = vpop.f32.mrb[87].mxu0  ;;  %7186 = vmatpush3.bf16.msra.mxu1 %v2896_v0  ;;  %v2723_v12 = vadd.f32 %v6996_v43, %v2626_v50 }
 0x2a2   : > { %7134 = vmatmul.mubr.bf16.gmra.mrb[112].mxu0 %v10499_v14  ;;  %v9489_v2 = vadd.f32 %v6943_v46, %v6942_v20  ;;  %v2634_v14 = vadd.f32 %v9477_v9, %v9458_v17  ;;  %v2639_v61 = vadd.f32 %v9484_v8, %v9458_v17 }
 0x2a3   : > { %7137 = vmatprep.mubr.bf16.mxu0 %v10500_v58  ;;  %v6997_v20 = vpop.f32.mrb[80].mxu1  ;;  %v2897_v4 = vpack.c.bf16 %v2723_v12, %v2720_v40  ;;  %v10513_v40 = vld [vmem:[#allocation30_spill] sm:$0xff] }
 0x2a4   : > { %v6998_v46 = vpop.f32.mrb[81].mxu1  ;;  %v2642_v49 = vadd.f32 %v9489_v2, %v9458_v17  ;;  %v10514_v43 = vpack.c.bf16 %v10512_v21, %v10513_v40  ;;  %v10519_v12 = vld [vmem:[#allocation38_spill] sm:$0xff] }
 0x2a5   : > { %v6999_v58 = vadd.f32 %v6998_v46, %v6997_v20  ;;  %v7000_v47 = vpop.f32.mrb[82].mxu1  ;;  %7187 = vmatprep.subr.bf16.mxu1 %v2897_v4  ;;  %v10525_v20 = vld [vmem:[#allocation21_spill] sm:$0xff]  ;;  %v10527_v46 = vld [vmem:[#allocation24_spill] sm:$0xff] }
 0x2a6   : > { %v6945_v48 = vpop.f32.mrb[88].mxu0  ;;  %v7001_v35 = vpop.f32.mrb[83].mxu1  ;;  %7188 = vmatpush3.bf16.msra.mxu1 %v2897_v4 }
 0x2a7   : > { %v6946_v62 = vpop.f32.mrb[89].mxu0  ;;  %v2728_v28 = vadd.f32 %v6999_v58, %v2631_v37  ;;  %v7002_v18 = vadd.f32 %v7001_v35, %v7000_v47  ;;  %v10524_v37 = vld [vmem:[#allocation22_spill] sm:$0xff]  ;;  %v10531_v35 = vld [vmem:[#allocation25_spill] sm:$0xff] }
 0x2a8   : > { %v6947_v7 = vadd.f32 %v6946_v62, %v6945_v48  ;;  %v6948_v24 = vpop.f32.mrb[90].mxu0  ;;  %v10526_v4 = vpack.c.bf16 %v10524_v37, %v10525_v20  ;;  %v10530_v47 = vld [vmem:[#allocation26_spill] sm:$0xff] }
 0x2a9   : > { %v6949_v36 = vpop.f32.mrb[91].mxu0  ;;  %v2731_v1 = vadd.f32 %v7002_v18, %v2634_v14  ;;  %v10528_v14 = vld [vmem:[#allocation23_spill] sm:$0xff]  ;;  %v10533_v18 = vld [vmem:[#allocation29_spill] sm:$0xff] }
 0x2aa   : > { %7138 = vmatmul.mubr.bf16.gmra.mrb[116].mxu0 %v10501_v59  ;;  %v6950_v22 = vadd.f32 %v6949_v36, %v6948_v24  ;;  %v2647_v8 = vadd.f32 %v6947_v7, %v9458_v17  ;;  %v10529_v58 = vpack.c.bf16 %v10527_v46, %v10528_v14 }
 0x2ab   : > { %7141 = vmatprep.mubr.bf16.mxu0 %v10502_v41  ;;  %v7003_v9 = vpop.f32.mrb[84].mxu1  ;;  %v2898_v42 = vpack.c.bf16 %v2731_v1, %v2728_v28  ;;  %v10532_v28 = vpack.c.bf16 %v10530_v47, %v10531_v35  ;;  %v10534_v1 = vld [vmem:[#allocation28_spill] sm:$0xff] }
 0x2ac   : > { %v7004_v27 = vpop.f32.mrb[85].mxu1  ;;  %v2650_v24 = vadd.f32 %v6950_v22, %v9458_v17 }
 0x2ad   : > { %v7005_v38 = vadd.f32 %v7004_v27, %v7003_v9  ;;  %v7006_v30 = vpop.f32.mrb[86].mxu1  ;;  %7189 = vmatprep.subr.bf16.mxu1 %v2898_v42  ;;  %v10540_v27 = vld [vmem:[#allocation36_spill] sm:$0xff] }
 0x2ae   : > { %v6951_v13 = vpop.f32.mrb[92].mxu0  ;;  %v7007_v48 = vpop.f32.mrb[87].mxu1  ;;  %7190 = vmatpush3.bf16.msra.mxu1 %v2898_v42  ;;  %v10539_v42 = vld [vmem:[#allocation37_spill] sm:$0xff] }
 0x2af   : > { %v6952_v51 = vpop.f32.mrb[93].mxu0  ;;  %v2736_v54 = vadd.f32 %v7005_v38, %v2639_v61  ;;  %v7008_v39 = vadd.f32 %v7007_v48, %v7006_v30  ;;  %v10537_v61 = vld [vmem:[#allocation32_spill] sm:$0xff]  ;;  %v10542_v38 = vld [vmem:[#allocation41_spill] sm:$0xff] }
 0x2b0   : > { %v6953_v60 = vadd.f32 %v6952_v51, %v6951_v13  ;;  %v6954_v11 = vpop.f32.mrb[94].mxu0  ;;  %v10516_v51 = vld [vmem:[#allocation34_spill] sm:$0xff]  ;;  %v10543_v30 = vld [vmem:[#allocation40_spill] sm:$0xff] }
 0x2b1   : > { %v6955_v29 = vpop.f32.mrb[95].mxu0  ;;  %v2739_v55 = vadd.f32 %v7008_v39, %v2642_v49  ;;  %v10541_v49 = vpack.c.bf16 %v10539_v42, %v10540_v27  ;;  %v10544_v48 = vpack.c.bf16 %v10542_v38, %v10543_v30 }
 0x2b2   : > { %7142 = vmatmul.mubr.bf16.gmra.mrb[120].mxu0 %v10503_v33  ;;  %v6956_v6 = vadd.f32 %v6955_v29, %v6954_v11  ;;  %v2655_v7 = vadd.f32 %v6953_v60, %v9458_v17  ;;  %v10517_v60 = vpack.c.bf16 %v10515_v3, %v10516_v51  ;;  %v10521_v33 = vld [vmem:[#allocation20_spill] sm:$0xff] }
 0x2b3   : > { %7145 = vmatprep.mubr.bf16.mxu0 %v10504_v15  ;;  %v7009_v26 = vpop.f32.mrb[88].mxu1  ;;  %v2899_v2 = vpack.c.bf16 %v2739_v55, %v2736_v54 }
 0x2b4   : > { %v7010_v62 = vpop.f32.mrb[89].mxu1  ;;  %v2658_v57 = vadd.f32 %v6956_v6, %v9458_v17  ;;  %v10518_v17 = vld [vmem:[#allocation39_spill] sm:$0xff] }
 0x2b5   : > { %v7011_v32 = vadd.f32 %v7010_v62, %v7009_v26  ;;  %v7012_v36 = vpop.f32.mrb[90].mxu1  ;;  %7191 = vmatprep.subr.bf16.mxu1 %v2899_v2  ;;  %v10520_v29 = vpack.c.bf16 %v10518_v17, %v10519_v12  ;;  %v10522_v6 = vld [vmem:[#allocation19_spill] sm:$0xff] }
 0x2b6   : > { %v7013_v59 = vpop.f32.mrb[91].mxu1  ;;  %7192 = vmatpush3.bf16.msra.mxu1 %v2899_v2  ;;  %v10523_v15 = vpack.c.bf16 %v10521_v33, %v10522_v6 }
 0x2b7   : > { %v2744_v41 = vadd.f32 %v7011_v32, %v2647_v8  ;;  %v7014_v63 = vadd.f32 %v7013_v59, %v7012_v36 }
 0x2b9   : > { %v2747_v44 = vadd.f32 %v7014_v63, %v2650_v24 }
 0x2ba   : > { %7146 = vmatmul.mubr.bf16.gmra.mrb[124].mxu0 %v10505_v31  ;;  %v10535_v31 = vpack.c.bf16 %v10533_v18, %v10534_v1 }
 0x2bb   : > { %7149 = vmatprep.mubr.bf16.mxu0 %v10506_v53  ;;  %v7015_v45 = vpop.f32.mrb[92].mxu1  ;;  %v2900_v22 = vpack.c.bf16 %v2747_v44, %v2744_v41  ;;  %v10536_v53 = vld [vmem:[#allocation33_spill] sm:$0xff] }
 0x2bc   : > { %v7016_v0 = vpop.f32.mrb[93].mxu1  ;;  %v10538_v9 = vpack.c.bf16 %v10536_v53, %v10537_v61 }
 0x2bd   : > { %v7017_v50 = vadd.f32 %v7016_v0, %v7015_v45  ;;  %v7018_v56 = vpop.f32.mrb[94].mxu1  ;;  %7193 = vmatprep.subr.bf16.mxu1 %v2900_v22 }
 0x2be   : > { %v7019_v5 = vpop.f32.mrb[95].mxu1  ;;  %7194 = vmatpush3.bf16.msra.mxu1 %v2900_v22 }
 0x2bf   : > { %v2752_v25 = vadd.f32 %v7017_v50, %v2655_v7  ;;  %v7020_v13 = vadd.f32 %v7019_v5, %v7018_v56 }
 0x2c1   : > { %v2755_v10 = vadd.f32 %v7020_v13, %v2658_v57 }
 0x2c2   : > { %7150 = vmatmul.mubr.bf16.gmra.mrb[128].mxu0 %v10507_v16 }
 0x2c3   : > { %7153 = vmatprep.mubr.bf16.mxu0 %v10508_v23  ;;  %v2901_v11 = vpack.c.bf16 %v2755_v10, %v2752_v25 }
 0x2c5   : > { %7195 = vmatprep.subr.bf16.mxu1 %v2901_v11 }
 0x2c6   : > { %7196 = vmatpush3.bf16.msra.mxu1 %v2901_v11 }
 0x2ca   : > { %7154 = vmatmul.mubr.bf16.gmra.mrb[132].mxu0 %v10509_v52 }
 0x2cb   : > { %7157 = vmatprep.mubr.bf16.mxu0 %v10511_v34 }
 0x2d2   : > { %7158 = vmatmul.mubr.bf16.gmra.mrb[136].mxu0 %v10514_v43 }
 0x2d3   : > { %7161 = vmatprep.mubr.bf16.mxu0 %v10517_v60 }
 0x2da   : > { %7162 = vmatmul.mubr.bf16.gmra.mrb[140].mxu0 %v10520_v29 }
 0x2db   : > { %7165 = vmatprep.mubr.bf16.mxu0 %v10523_v15 }
 0x2e2   : > { %7166 = vmatmul.mubr.bf16.gmra.mrb[144].mxu0 %v10526_v4 }
 0x2e3   : > { %7169 = vmatprep.mubr.bf16.mxu0 %v10529_v58 }
 0x2ea   : > { %7170 = vmatmul.mubr.bf16.gmra.mrb[148].mxu0 %v10532_v28 }
 0x2eb   : > { %7173 = vmatprep.mubr.bf16.mxu0 %v10535_v31 }
 0x2f2   : > { %7174 = vmatmul.mubr.bf16.gmra.mrb[152].mxu0 %v10538_v9 }
 0x2f3   : > { %7177 = vmatprep.mubr.bf16.mxu0 %v10541_v49 }
 0x2fa   : > { %7178 = vmatmul.mubr.bf16.gmra.mrb[156].mxu0 %v10544_v48 }
 0x355   : > { %v9575_v54 = vpop.f32.mrb[96].mxu0 }
 0x356   : > { %3291 = vmax.xlane.f32.xlu1 %v9575_v54  ;;  %v9578_v39 = vpop.f32.mrb[97].mxu0 }
 0x357   : > { %3287 = vmax.xlane.f32.xlu0 %v9578_v39  ;;  %v9581_v55 = vpop.f32.mrb[98].mxu0 }
 0x358   : > { %v9583_v16 = vpop.f32.mrb[99].mxu0 }
 0x35a   : > { %3293 = vmax.xlane.f32.xlu1 %v9581_v55 }
 0x35b   : > { %3289 = vmax.xlane.f32.xlu0 %v9583_v16 }
 0x35d   : > { %v9587_v23 = vpop.f32.mrb[100].mxu0 }
 0x35e   : > { %v9589_v8 = vpop.f32.mrb[101].mxu0 }
 0x35f   : > { %3295 = vmax.xlane.f32.xlu0 %v9589_v8  ;;  %v9592_v26 = vpop.f32.mrb[102].mxu0 }
 0x360   : > { %v9594_v2 = vpop.f32.mrb[103].mxu0 }
 0x361   : > { %3297 = vmax.xlane.f32.xlu1 %v9594_v2 }
 0x363   : > { %3299 = vmax.xlane.f32.xlu0 %v9587_v23 }
 0x365   : > { %3301 = vmax.xlane.f32.xlu1 %v9592_v26  ;;  %v9599_v62 = vpop.f32.mrb[104].mxu0 }
 0x366   : > { %v9601_v24 = vpop.f32.mrb[105].mxu0 }
 0x367   : > { %3303 = vmax.xlane.f32.xlu0 %v9601_v24  ;;  %v9604_v32 = vpop.f32.mrb[106].mxu0 }
 0x368   : > { %v9606_v36 = vpop.f32.mrb[107].mxu0 }
 0x369   : > { %3305 = vmax.xlane.f32.xlu1 %v9606_v36 }
 0x36b   : > { %3307 = vmax.xlane.f32.xlu0 %v9599_v62 }
 0x36d   : > { %3309 = vmax.xlane.f32.xlu1 %v9604_v32  ;;  %v9611_v59 = vpop.f32.mrb[108].mxu0 }
 0x36e   : > { %v9613_v41 = vpop.f32.mrb[109].mxu0 }
 0x36f   : > { %3311 = vmax.xlane.f32.xlu0 %v9613_v41  ;;  %v9616_v63 = vpop.f32.mrb[110].mxu0 }
 0x370   : > { %v9618_v44 = vpop.f32.mrb[111].mxu0 }
 0x371   : > { %3313 = vmax.xlane.f32.xlu1 %v9618_v44 }
 0x373   : > { %3315 = vmax.xlane.f32.xlu0 %v9611_v59 }
 0x375   : > { %3317 = vmax.xlane.f32.xlu1 %v9616_v63  ;;  %v9623_v52 = vpop.f32.mrb[112].mxu0 }
 0x376   : > { %v9625_v19 = vpop.f32.mrb[113].mxu0 }
 0x377   : > { %3319 = vmax.xlane.f32.xlu0 %v9625_v19  ;;  %v9628_v34 = vpop.f32.mrb[114].mxu0 }
 0x378   : > { %v9630_v7 = vpop.f32.mrb[115].mxu0 }
 0x379   : > { %3321 = vmax.xlane.f32.xlu1 %v9630_v7 }
 0x37b   : > { %3323 = vmax.xlane.f32.xlu0 %v9623_v52 }
 0x37d   : > { %3325 = vmax.xlane.f32.xlu1 %v9628_v34  ;;  %v9635_v45 = vpop.f32.mrb[116].mxu0 }
 0x37e   : > { %v9637_v22 = vpop.f32.mrb[117].mxu0 }
 0x37f   : > { %3327 = vmax.xlane.f32.xlu0 %v9637_v22  ;;  %v9640_v0 = vpop.f32.mrb[118].mxu0 }
 0x380   : > { %v9642_v57 = vpop.f32.mrb[119].mxu0 }
 0x381   : > { %3329 = vmax.xlane.f32.xlu1 %v9642_v57 }
 0x383   : > { %3331 = vmax.xlane.f32.xlu0 %v9635_v45 }
 0x385   : > { %3333 = vmax.xlane.f32.xlu1 %v9640_v0  ;;  %v9647_v50 = vpop.f32.mrb[120].mxu0 }
 0x386   : > { %v9649_v56 = vpop.f32.mrb[121].mxu0 }
 0x387   : > { %3335 = vmax.xlane.f32.xlu0 %v9649_v56  ;;  %v9652_v5 = vpop.f32.mrb[122].mxu0 }
 0x388   : > { %v9654_v25 = vpop.f32.mrb[123].mxu0 }
 0x389   : > { %3337 = vmax.xlane.f32.xlu1 %v9654_v25 }
 0x38b   : > { %3339 = vmax.xlane.f32.xlu0 %v9647_v50 }
 0x38d   : > { %3341 = vmax.xlane.f32.xlu1 %v9652_v5  ;;  %v9659_v13 = vpop.f32.mrb[124].mxu0 }
 0x38e   : > { %v9661_v10 = vpop.f32.mrb[125].mxu0 }
 0x38f   : > { %3347 = vmax.xlane.f32.xlu0 %v9659_v13  ;;  %v9664_v21 = vpop.f32.mrb[126].mxu0 }
 0x390   : > { %v9666_v40 = vpop.f32.mrb[127].mxu0 }
 0x391   : > { %3349 = vmax.xlane.f32.xlu1 %v9664_v21 }
 0x393   : > { %3343 = vmax.xlane.f32.xlu0 %v9661_v10 }
 0x395   : > { %3345 = vmax.xlane.f32.xlu1 %v9666_v40  ;;  %v9671_v43 = vpop.f32.mrb[128].mxu0 }
 0x396   : > { %v9673_v3 = vpop.f32.mrb[129].mxu0 }
 0x397   : > { %v9675_v51 = vpop.f32.mrb[130].mxu0 }
 0x398   : > { %v9677_v60 = vpop.f32.mrb[131].mxu0 }
 0x39d   : > { %v9679_v11 = vpop.f32.mrb[132].mxu0 }
 0x39e   : > { %v9681_v17 = vpop.f32.mrb[133].mxu0 }
 0x39f   : > { %v9683_v12 = vpop.f32.mrb[134].mxu0 }
 0x3a0   : > { %v9685_v29 = vpop.f32.mrb[135].mxu0 }
 0x3a5   : > { %v9687_v33 = vpop.f32.mrb[136].mxu0 }
 0x3a6   : > { %v9689_v6 = vpop.f32.mrb[137].mxu0 }
 0x3a7   : > { %v9691_v15 = vpop.f32.mrb[138].mxu0 }
 0x3a8   : > { %v9693_v37 = vpop.f32.mrb[139].mxu0 }
 0x3ad   : > { %v9695_v20 = vpop.f32.mrb[140].mxu0 }
 0x3ae   : > { %v9697_v4 = vpop.f32.mrb[141].mxu0 }
 0x3af   : > { %v9699_v46 = vpop.f32.mrb[142].mxu0 }
 0x3b0   : > { %v9701_v14 = vpop.f32.mrb[143].mxu0 }
 0x3b5   : > { %v9703_v58 = vpop.f32.mrb[144].mxu0 }
 0x3b6   : > { %10545 = vst [vmem:[#allocation27_spill] sm:$0xff] %v9703_v58  ;;  %v9705_v47 = vpop.f32.mrb[145].mxu0 }
 0x3b7   : > { %10546 = vst [vmem:[#allocation31_spill] sm:$0xff] %v9705_v47  ;;  %v9707_v35 = vpop.f32.mrb[146].mxu0 }
 0x3b8   : > { %10547 = vst [vmem:[#allocation30_spill] sm:$0xff] %v9707_v35  ;;  %v9709_v28 = vpop.f32.mrb[147].mxu0 }
 0x3b9   : > { %10548 = vst [vmem:[#allocation35_spill] sm:$0xff] %v9709_v28 }
 0x3bd   : > { %v9711_v18 = vpop.f32.mrb[148].mxu0 }
 0x3be   : > { %10549 = vst [vmem:[#allocation34_spill] sm:$0xff] %v9711_v18  ;;  %v9713_v1 = vpop.f32.mrb[149].mxu0 }
 0x3bf   : > { %10550 = vst [vmem:[#allocation39_spill] sm:$0xff] %v9713_v1  ;;  %v9715_v31 = vpop.f32.mrb[150].mxu0 }
 0x3c0   : > { %10551 = vst [vmem:[#allocation38_spill] sm:$0xff] %v9715_v31  ;;  %v9717_v53 = vpop.f32.mrb[151].mxu0 }
 0x3c1   : > { %10552 = vst [vmem:[#allocation20_spill] sm:$0xff] %v9717_v53 }
 0x3c5   : > { %v9719_v61 = vpop.f32.mrb[152].mxu0 }
 0x3c6   : > { %10553 = vst [vmem:[#allocation19_spill] sm:$0xff] %v9719_v61  ;;  %v9721_v9 = vpop.f32.mrb[153].mxu0 }
 0x3c7   : > { %10554 = vst [vmem:[#allocation22_spill] sm:$0xff] %v9721_v9  ;;  %v9723_v42 = vpop.f32.mrb[154].mxu0 }
 0x3c8   : > { %10555 = vst [vmem:[#allocation21_spill] sm:$0xff] %v9723_v42  ;;  %v9725_v27 = vpop.f32.mrb[155].mxu0 }
 0x3c9   : > { %10556 = vst [vmem:[#allocation24_spill] sm:$0xff] %v9725_v27 }
 0x3cd   : > { %v9727_v49 = vpop.f32.mrb[156].mxu0 }
 0x3ce   : > { %10557 = vst [vmem:[#allocation23_spill] sm:$0xff] %v9727_v49  ;;  %v9729_v38 = vpop.f32.mrb[157].mxu0 }
 0x3cf   : > { %10558 = vst [vmem:[#allocation26_spill] sm:$0xff] %v9729_v38  ;;  %v9731_v30 = vpop.f32.mrb[158].mxu0 }
 0x3d0   : > { %10559 = vst [vmem:[#allocation25_spill] sm:$0xff] %v9731_v30  ;;  %v9733_v48 = vpop.f32.mrb[159].mxu0 }
 0x3d1   : > { %10560 = vst [vmem:[#allocation29_spill] sm:$0xff] %v9733_v48 }
 0x3e3   : > { %v3292_v18 = vpop.xlane.xlu1 %3291 }
 0x3e4   : > { %v3417_v31 = vsub.f32 %v9575_v54, %v3292_v18  ;;  %v3288_v53 = vpop.xlane.xlu0 %3287 }
 0x3e5   : > { %v3415_v61 = vsub.f32 %v9578_v39, %v3288_v53 }
 0x3e6   : > { %v3483_v35 = vmul.f32 1.442695, %v3417_v31 }
 0x3e7   : > { %v3479_v1 = vmul.f32 1.442695, %v3415_v61  ;;  %v3294_v9 = vpop.xlane.xlu1 %3293 }
 0x3e8   : > { %v3418_v42 = vsub.f32 %v9581_v55, %v3294_v9  ;;  %v3290_v27 = vpop.xlane.xlu0 %3289 }
 0x3e9   : > { %8171 = vpow2.f32 %v3479_v1  ;;  %v3416_v49 = vsub.f32 %v9583_v16, %v3290_v27 }
 0x3ea   : > { %8173 = vpow2.f32 %v3483_v35  ;;  %v3485_v30 = vmul.f32 1.442695, %v3418_v42 }
 0x3eb   : > { %v3481_v38 = vmul.f32 1.442695, %v3416_v49 }
 0x3ec   : > { %v3296_v28 = vpop.xlane.xlu0 %3295 }
 0x3ed   : > { %8175 = vpow2.f32 %v3481_v38  ;;  %v3419_v48 = vsub.f32 %v9589_v8, %v3296_v28 }
 0x3ee   : > { %v3298_v54 = vpop.xlane.xlu1 %3297  ;;  %8177 = vpow2.f32 %v3485_v30 }
 0x3ef   : > { %v3487_v18 = vmul.f32 1.442695, %v3419_v48  ;;  %v3420_v39 = vsub.f32 %v9594_v2, %v3298_v54 }
 0x3f0   : > { %v3300_v53 = vpop.xlane.xlu0 %3299 }
 0x3f1   : > { %8179 = vpow2.f32 %v3487_v18  ;;  %v3489_v31 = vmul.f32 1.442695, %v3420_v39  ;;  %v3421_v55 = vsub.f32 %v9587_v23, %v3300_v53 }
 0x3f2   : > { %v3302_v1 = vpop.xlane.xlu1 %3301 }
 0x3f3   : > { %v9742_v61 = vpop.eup %8171  ;;  %v3491_v16 = vmul.f32 1.442695, %v3421_v55  ;;  %v3422_v35 = vsub.f32 %v9592_v26, %v3302_v1  ;;  %8181 = vpow2.f32 %v3489_v31 }
 0x3f4   : > { %v3304_v9 = vpop.xlane.xlu0 %3303  ;;  %3607 = vadd.xlane.f32.xlu0 %v9742_v61  ;;  %v9747_v28 = vpop.eup %8173 }
 0x3f5   : > { %8183 = vpow2.f32 %v3491_v16  ;;  %v3493_v8 = vmul.f32 1.442695, %v3422_v35  ;;  %v3423_v2 = vsub.f32 %v9601_v24, %v3304_v9 }
 0x3f6   : > { %v3306_v42 = vpop.xlane.xlu1 %3305 }
 0x3f7   : > { %v9749_v27 = vpop.eup %8175  ;;  %v3495_v23 = vmul.f32 1.442695, %v3423_v2  ;;  %v3424_v49 = vsub.f32 %v9606_v36, %v3306_v42  ;;  %8185 = vpow2.f32 %v3493_v8 }
 0x3f8   : > { %v3308_v38 = vpop.xlane.xlu0 %3307  ;;  %3611 = vadd.xlane.f32.xlu0 %v9747_v28  ;;  %3609 = vadd.xlane.f32.xlu1 %v9749_v27  ;;  %v9755_v48 = vpop.eup %8177 }
 0x3f9   : > { %8187 = vpow2.f32 %v3495_v23  ;;  %v3497_v26 = vmul.f32 1.442695, %v3424_v49  ;;  %v3425_v30 = vsub.f32 %v9599_v62, %v3308_v38 }
 0x3fa   : > { %v3310_v24 = vpop.xlane.xlu1 %3309 }
 0x3fb   : > { %v9757_v54 = vpop.eup %8179  ;;  %v3499_v18 = vmul.f32 1.442695, %v3425_v30  ;;  %v3426_v39 = vsub.f32 %v9604_v32, %v3310_v24  ;;  %8189 = vpow2.f32 %v3497_v26 }
 0x3fc   : > { %v3312_v36 = vpop.xlane.xlu0 %3311  ;;  %3615 = vadd.xlane.f32.xlu0 %v9757_v54  ;;  %3613 = vadd.xlane.f32.xlu1 %v9755_v48 }
 0x3fd   : > { %8191 = vpow2.f32 %v3499_v18  ;;  %v3501_v53 = vmul.f32 1.442695, %v3426_v39  ;;  %v3427_v31 = vsub.f32 %v9613_v41, %v3312_v36  ;;  %v9763_v55 = vpop.eup %8181 }
 0x3fe   : > { %v3314_v62 = vpop.xlane.xlu1 %3313 }
 0x3ff   : > { %v9765_v1 = vpop.eup %8183  ;;  %v3503_v16 = vmul.f32 1.442695, %v3427_v31  ;;  %v3428_v35 = vsub.f32 %v9618_v44, %v3314_v62  ;;  %8193 = vpow2.f32 %v3501_v53 }
 0x400   : > { %v3316_v32 = vpop.xlane.xlu0 %3315  ;;  %3619 = vadd.xlane.f32.xlu0 %v9765_v1  ;;  %3617 = vadd.xlane.f32.xlu1 %v9763_v55 }
 0x401   : > { %8195 = vpow2.f32 %v3503_v16  ;;  %v3505_v9 = vmul.f32 1.442695, %v3428_v35  ;;  %v3429_v8 = vsub.f32 %v9611_v59, %v3316_v32  ;;  %v9771_v2 = vpop.eup %8185 }
 0x402   : > { %v3318_v41 = vpop.xlane.xlu1 %3317 }
 0x403   : > { %v9773_v42 = vpop.eup %8187  ;;  %v3507_v23 = vmul.f32 1.442695, %v3429_v8  ;;  %v3430_v49 = vsub.f32 %v9616_v63, %v3318_v41  ;;  %8197 = vpow2.f32 %v3505_v9 }
 0x404   : > { %v3320_v44 = vpop.xlane.xlu0 %3319  ;;  %3623 = vadd.xlane.f32.xlu0 %v9773_v42  ;;  %3621 = vadd.xlane.f32.xlu1 %v9771_v2 }
 0x405   : > { %8199 = vpow2.f32 %v3507_v23  ;;  %v3509_v38 = vmul.f32 1.442695, %v3430_v49  ;;  %v3431_v26 = vsub.f32 %v9625_v19, %v3320_v44  ;;  %v9779_v30 = vpop.eup %8189 }
 0x406   : > { %v3322_v59 = vpop.xlane.xlu1 %3321 }
 0x407   : > { %v9781_v24 = vpop.eup %8191  ;;  %v3511_v18 = vmul.f32 1.442695, %v3431_v26  ;;  %v3432_v39 = vsub.f32 %v9630_v7, %v3322_v59  ;;  %8201 = vpow2.f32 %v3509_v38 }
 0x408   : > { %v3324_v63 = vpop.xlane.xlu0 %3323  ;;  %3627 = vadd.xlane.f32.xlu0 %v9781_v24  ;;  %3625 = vadd.xlane.f32.xlu1 %v9779_v30 }
 0x409   : > { %8203 = vpow2.f32 %v3511_v18  ;;  %v3513_v36 = vmul.f32 1.442695, %v3432_v39  ;;  %v3433_v53 = vsub.f32 %v9623_v52, %v3324_v63  ;;  %v9787_v31 = vpop.eup %8193 }
 0x40a   : > { %v3326_v19 = vpop.xlane.xlu1 %3325 }
 0x40b   : > { %v9789_v62 = vpop.eup %8195  ;;  %v3515_v16 = vmul.f32 1.442695, %v3433_v53  ;;  %v3434_v35 = vsub.f32 %v9628_v34, %v3326_v19  ;;  %8205 = vpow2.f32 %v3513_v36 }
 0x40c   : > { %v3328_v7 = vpop.xlane.xlu0 %3327  ;;  %3631 = vadd.xlane.f32.xlu0 %v9789_v62  ;;  %3629 = vadd.xlane.f32.xlu1 %v9787_v31 }
 0x40d   : > { %8207 = vpow2.f32 %v3515_v16  ;;  %v3517_v32 = vmul.f32 1.442695, %v3434_v35  ;;  %v3435_v9 = vsub.f32 %v9637_v22, %v3328_v7  ;;  %v9795_v8 = vpop.eup %8197 }
 0x40e   : > { %v3330_v52 = vpop.xlane.xlu1 %3329 }
 0x40f   : > { %v9797_v41 = vpop.eup %8199  ;;  %v3519_v23 = vmul.f32 1.442695, %v3435_v9  ;;  %v3436_v49 = vsub.f32 %v9642_v57, %v3330_v52  ;;  %8209 = vpow2.f32 %v3517_v32 }
 0x410   : > { %v3332_v34 = vpop.xlane.xlu0 %3331  ;;  %3635 = vadd.xlane.f32.xlu0 %v9797_v41  ;;  %3633 = vadd.xlane.f32.xlu1 %v9795_v8 }
 0x411   : > { %8211 = vpow2.f32 %v3519_v23  ;;  %v3521_v44 = vmul.f32 1.442695, %v3436_v49  ;;  %v3437_v38 = vsub.f32 %v9635_v45, %v3332_v34  ;;  %v9803_v26 = vpop.eup %8201 }
 0x412   : > { %v3334_v22 = vpop.xlane.xlu1 %3333 }
 0x413   : > { %v9805_v59 = vpop.eup %8203  ;;  %v3523_v18 = vmul.f32 1.442695, %v3437_v38  ;;  %v3438_v39 = vsub.f32 %v9640_v0, %v3334_v22  ;;  %8213 = vpow2.f32 %v3521_v44 }
 0x414   : > { %v3336_v57 = vpop.xlane.xlu0 %3335  ;;  %3639 = vadd.xlane.f32.xlu0 %v9805_v59  ;;  %3637 = vadd.xlane.f32.xlu1 %v9803_v26 }
 0x415   : > { %8215 = vpow2.f32 %v3523_v18  ;;  %v3525_v63 = vmul.f32 1.442695, %v3438_v39  ;;  %v3439_v36 = vsub.f32 %v9649_v56, %v3336_v57  ;;  %v9811_v53 = vpop.eup %8205 }
 0x416   : > { %v3338_v45 = vpop.xlane.xlu1 %3337 }
 0x417   : > { %v9813_v19 = vpop.eup %8207  ;;  %v3527_v16 = vmul.f32 1.442695, %v3439_v36  ;;  %v3440_v35 = vsub.f32 %v9654_v25, %v3338_v45  ;;  %8217 = vpow2.f32 %v3525_v63 }
 0x418   : > { %v3340_v0 = vpop.xlane.xlu0 %3339  ;;  %3643 = vadd.xlane.f32.xlu0 %v9813_v19  ;;  %3641 = vadd.xlane.f32.xlu1 %v9811_v53 }
 0x419   : > { %8219 = vpow2.f32 %v3527_v16  ;;  %v3529_v7 = vmul.f32 1.442695, %v3440_v35  ;;  %v3441_v32 = vsub.f32 %v9647_v50, %v3340_v0  ;;  %v9819_v9 = vpop.eup %8209 }
 0x41a   : > { %v3342_v56 = vpop.xlane.xlu1 %3341 }
 0x41b   : > { %v9821_v52 = vpop.eup %8211  ;;  %v3531_v23 = vmul.f32 1.442695, %v3441_v32  ;;  %v3442_v49 = vsub.f32 %v9652_v5, %v3342_v56  ;;  %8221 = vpow2.f32 %v3529_v7 }
 0x41c   : > { %v3348_v25 = vpop.xlane.xlu0 %3347  ;;  %3647 = vadd.xlane.f32.xlu0 %v9821_v52  ;;  %3645 = vadd.xlane.f32.xlu1 %v9819_v9 }
 0x41d   : > { %8223 = vpow2.f32 %v3531_v23  ;;  %v3533_v34 = vmul.f32 1.442695, %v3442_v49  ;;  %v9826_v44 = vpop.eup %8213  ;;  %v3445_v63 = vsub.f32 %v9659_v13, %v3348_v25  ;;  %v10561_v49 = vld [vmem:[#allocation35_spill] sm:$0xff]  ;;  %v10562_v25 = vld [vmem:[#allocation30_spill] sm:$0xff] }
 0x41e   : > { %v3350_v38 = vpop.xlane.xlu1 %3349 }
 0x41f   : > { %v9828_v50 = vpop.eup %8215  ;;  %8225 = vpow2.f32 %v3533_v34  ;;  %v3539_v0 = vmul.f32 1.442695, %v3445_v63  ;;  %v10563_v34 = vld [vmem:[#allocation39_spill] sm:$0xff] }
 0x420   : > { %3651 = vadd.xlane.f32.xlu0 %v9828_v50  ;;  %v3344_v22 = vpop.xlane.xlu0 %3343  ;;  %3649 = vadd.xlane.f32.xlu1 %v9826_v44  ;;  %v10568_v63 = vld [vmem:[#allocation19_spill] sm:$0xff] }
 0x421   : > { %v3443_v5 = vsub.f32 %v9661_v10, %v3344_v22  ;;  %v9833_v18 = vpop.eup %8217  ;;  %v3446_v10 = vsub.f32 %v9664_v21, %v3350_v38  ;;  %v10564_v38 = vld [vmem:[#allocation34_spill] sm:$0xff]  ;;  %v10565_v22 = vld [vmem:[#allocation20_spill] sm:$0xff] }
 0x422   : > { %v3346_v39 = vpop.xlane.xlu1 %3345 }
 0x423   : > { %v9835_v57 = vpop.eup %8219  ;;  %v3535_v36 = vmul.f32 1.442695, %v3443_v5  ;;  %v3444_v45 = vsub.f32 %v9666_v40, %v3346_v39  ;;  %v3541_v40 = vmul.f32 1.442695, %v3446_v10  ;;  %v10566_v5 = vld [vmem:[#allocation38_spill] sm:$0xff]  ;;  %v10572_v10 = vld [vmem:[#allocation23_spill] sm:$0xff] }
 0x424   : > { %3655 = vadd.xlane.f32.xlu0 %v9835_v57  ;;  %3653 = vadd.xlane.f32.xlu1 %v9833_v18  ;;  %v10567_v39 = vld [vmem:[#allocation22_spill] sm:$0xff] }
 0x425   : > { %v9841_v16 = vpop.eup %8221  ;;  %8227 = vpow2.f32 %v3535_v36  ;;  %v3537_v13 = vmul.f32 1.442695, %v3444_v45  ;;  %v10569_v36 = vld [vmem:[#allocation24_spill] sm:$0xff]  ;;  %v10570_v45 = vld [vmem:[#allocation21_spill] sm:$0xff] }
 0x426   : > { %8229 = vpow2.f32 %v3539_v0  ;;  %v10571_v0 = vld [vmem:[#allocation26_spill] sm:$0xff] }
 0x427   : > { %v9843_v35 = vpop.eup %8223  ;;  %8231 = vpow2.f32 %v3537_v13  ;;  %v10573_v13 = vld [vmem:[#allocation29_spill] sm:$0xff] }
 0x428   : > { %3659 = vadd.xlane.f32.xlu0 %v9843_v35  ;;  %3657 = vadd.xlane.f32.xlu1 %v9841_v16  ;;  %8233 = vpow2.f32 %v3541_v40  ;;  %v10574_v40 = vld [vmem:[#allocation25_spill] sm:$0xff] }
 0x429   : > { %v9848_v7 = vpop.eup %8225 }
 0x42c   : > { %3661 = vadd.xlane.f32.xlu1 %v9848_v7  ;;  %3351 = vmax.xlane.f32.xlu0 %v9673_v3 }
 0x42f   : > { %v9854_v32 = vpop.eup %8227 }
 0x430   : > { %3355 = vmax.xlane.f32.xlu0 %v9671_v43  ;;  %3353 = vmax.xlane.f32.xlu1 %v9677_v60  ;;  %v9858_v21 = vpop.eup %8229 }
 0x431   : > { %v9860_v56 = vpop.eup %8231 }
 0x432   : > { %v9864_v23 = vpop.eup %8233 }
 0x434   : > { %3663 = vadd.xlane.f32.xlu0 %v9854_v32  ;;  %3357 = vmax.xlane.f32.xlu1 %v9675_v51 }
 0x438   : > { %3667 = vadd.xlane.f32.xlu0 %v9858_v21  ;;  %3665 = vadd.xlane.f32.xlu1 %v9860_v56 }
 0x43c   : > { %3669 = vadd.xlane.f32.xlu1 %v9864_v23  ;;  %3359 = vmax.xlane.f32.xlu0 %v9681_v17 }
 0x440   : > { %3363 = vmax.xlane.f32.xlu0 %v9679_v11  ;;  %3361 = vmax.xlane.f32.xlu1 %v9685_v29 }
 0x444   : > { %3365 = vmax.xlane.f32.xlu1 %v9683_v12  ;;  %3367 = vmax.xlane.f32.xlu0 %v9689_v6 }
 0x448   : > { %3371 = vmax.xlane.f32.xlu0 %v9687_v33  ;;  %3369 = vmax.xlane.f32.xlu1 %v9693_v37 }
 0x44c   : > { %3373 = vmax.xlane.f32.xlu1 %v9691_v15  ;;  %3375 = vmax.xlane.f32.xlu0 %v9697_v4 }
 0x450   : > { %3379 = vmax.xlane.f32.xlu0 %v9695_v20  ;;  %3377 = vmax.xlane.f32.xlu1 %v9701_v14 }
 0x454   : > { %3381 = vmax.xlane.f32.xlu1 %v9699_v46  ;;  %3383 = vmax.xlane.f32.xlu0 %v9705_v47 }
 0x458   : > { %3387 = vmax.xlane.f32.xlu0 %v9703_v58  ;;  %3385 = vmax.xlane.f32.xlu1 %v10561_v49  ;;  %v7981_v49 = vld [vmem:[#allocation10 + $0x104] ss:$16 sps:$4 sm:$0xff]  }
 0x459   : > { %4360 = vmatprep.subr.bf16.mxu0 %v7981_v49 }
 0x45c   : > { %3389 = vmax.xlane.f32.xlu1 %v10562_v25  ;;  %3391 = vmax.xlane.f32.xlu0 %v10563_v34  ;;  %v7979_v25 = vld [vmem:[#allocation10 + $0x100] ss:$16 sps:$4 sm:$0xff]  }
 0x45d   : > { %4361 = vmatpush1.bf16.msra.mxu0 %v7979_v25 }
 0x460   : > { %3395 = vmax.xlane.f32.xlu0 %v10564_v38  ;;  %3393 = vmax.xlane.f32.xlu1 %v10565_v22 }
 0x464   : > { %3397 = vmax.xlane.f32.xlu1 %v10566_v5  ;;  %3399 = vmax.xlane.f32.xlu0 %v10567_v39 }
 0x468   : > { %3403 = vmax.xlane.f32.xlu0 %v10568_v63  ;;  %3401 = vmax.xlane.f32.xlu1 %v10569_v36 }
 0x46c   : > { %3405 = vmax.xlane.f32.xlu1 %v10570_v45  ;;  %3407 = vmax.xlane.f32.xlu0 %v10571_v0 }
 0x470   : > { %3411 = vmax.xlane.f32.xlu0 %v10572_v10  ;;  %3409 = vmax.xlane.f32.xlu1 %v10573_v13 }
 0x474   : > { %3413 = vmax.xlane.f32.xlu1 %v10574_v40 }
 0x481   : > { %v3608_v38 = vpop.xlane.xlu0 %3607 }
 0x482   : > { %8235 = vrcp.f32 %v3608_v38 }
 0x485   : > { %v3612_v22 = vpop.xlane.xlu0 %3611  ;;  %v3610_v5 = vpop.xlane.xlu1 %3609 }
 0x486   : > { %8237 = vrcp.f32 %v3610_v5 }
 0x487   : > { %8239 = vrcp.f32 %v3612_v22  ;;  %v7984_v22 = vld [vmem:[#allocation10 + $0x10c] ss:$16 sps:$4 sm:$0xff]  }
 0x488   : > { %4473 = vmatprep.subr.bf16.mxu1 %v7984_v22 }
 0x489   : > { %v3616_v39 = vpop.xlane.xlu0 %3615  ;;  %v3614_v63 = vpop.xlane.xlu1 %3613 }
 0x48a   : > { %8241 = vrcp.f32 %v3614_v63 }
 0x48b   : > { %8243 = vrcp.f32 %v3616_v39 }
 0x48c   : > { %v8236_v34 = vpop.eup %8235 }
 0x48d   : > { %v3620_v36 = vpop.xlane.xlu0 %3619  ;;  %v3618_v45 = vpop.xlane.xlu1 %3617  ;;  %v3799_v40 = vmul.f32 %v8236_v34, %v9742_v61 }
 0x48e   : > { %8245 = vrcp.f32 %v3618_v45 }
 0x48f   : > { %8247 = vrcp.f32 %v3620_v36 }
 0x490   : > { %v8238_v0 = vpop.eup %8237 }
 0x491   : > { %v3624_v10 = vpop.xlane.xlu0 %3623  ;;  %v3622_v13 = vpop.xlane.xlu1 %3621  ;;  %v3800_v38 = vmul.f32 %v8238_v0, %v9749_v27  ;;  %v7982_v27 = vld [vmem:[#allocation10 + $0x108] ss:$16 sps:$4 sm:$0xff]  }
 0x492   : > { %v8240_v5 = vpop.eup %8239  ;;  %8249 = vrcp.f32 %v3622_v13 }
 0x493   : > { %v3863_v58 = vpack.c.bf16 %v3800_v38, %v3799_v40  ;;  %8251 = vrcp.f32 %v3624_v10  ;;  %v3801_v36 = vmul.f32 %v8240_v5, %v9747_v28 }
 0x494   : > { %v8242_v39 = vpop.eup %8241 }
 0x495   : > { %v3628_v63 = vpop.xlane.xlu0 %3627  ;;  %v3626_v47 = vpop.xlane.xlu1 %3625  ;;  %v3802_v45 = vmul.f32 %v8242_v39, %v9755_v48  ;;  %7197 = vmatprep.mubr.bf16.mxu1 %v3863_v58 }
 0x496   : > { %v8244_v61 = vpop.eup %8243  ;;  %8253 = vrcp.f32 %v3626_v47 }
 0x497   : > { %v3864_v34 = vpack.c.bf16 %v3802_v45, %v3801_v36  ;;  %8255 = vrcp.f32 %v3628_v63  ;;  %v3803_v49 = vmul.f32 %v8244_v61, %v9757_v54 }
 0x498   : > { %v8246_v0 = vpop.eup %8245 }
 0x499   : > { %v3632_v13 = vpop.xlane.xlu0 %3631  ;;  %v3630_v40 = vpop.xlane.xlu1 %3629  ;;  %7198 = vmatmul.mubr.bf16.vlgmr.msra.gmra.mrb[96].mxu1 %v3864_v34  ;;  %v3804_v10 = vmul.f32 %v8246_v0, %v9763_v55 }
 0x49a   : > { %v8248_v38 = vpop.eup %8247  ;;  %8257 = vrcp.f32 %v3630_v40  ;;  %4474 = vmatpush1.bf16.msra.mxu1 %v7982_v27 }
 0x49b   : > { %v3865_v28 = vpack.c.bf16 %v3804_v10, %v3803_v49  ;;  %8259 = vrcp.f32 %v3632_v13  ;;  %v3805_v47 = vmul.f32 %v8248_v38, %v9765_v1 }
 0x49c   : > { %v8250_v25 = vpop.eup %8249 }
 0x49d   : > { %v3636_v58 = vpop.xlane.xlu0 %3635  ;;  %v3634_v48 = vpop.xlane.xlu1 %3633  ;;  %7201 = vmatprep.mubr.bf16.mxu1 %v3865_v28  ;;  %v3806_v5 = vmul.f32 %v8250_v25, %v9771_v2 }
 0x49e   : > { %v8252_v22 = vpop.eup %8251  ;;  %8261 = vrcp.f32 %v3634_v48 }
 0x49f   : > { %v3866_v39 = vpack.c.bf16 %v3806_v5, %v3805_v47  ;;  %8263 = vrcp.f32 %v3636_v58  ;;  %v3807_v36 = vmul.f32 %v8252_v22, %v9773_v42 }
 0x4a0   : > { %v8254_v63 = vpop.eup %8253 }
 0x4a1   : > { %v3640_v54 = vpop.xlane.xlu0 %3639  ;;  %v3638_v55 = vpop.xlane.xlu1 %3637  ;;  %7202 = vmatmul.mubr.bf16.gmra.mrb[100].mxu1 %v3866_v39  ;;  %v3808_v45 = vmul.f32 %v8254_v63, %v9779_v30 }
 0x4a2   : > { %v8256_v61 = vpop.eup %8255  ;;  %8265 = vrcp.f32 %v3638_v55 }
 0x4a3   : > { %v3867_v27 = vpack.c.bf16 %v3808_v45, %v3807_v36  ;;  %8267 = vrcp.f32 %v3640_v54  ;;  %v3809_v2 = vmul.f32 %v8256_v61, %v9781_v24 }
 0x4a4   : > { %v8258_v34 = vpop.eup %8257 }
 0x4a5   : > { %v3644_v1 = vpop.xlane.xlu0 %3643  ;;  %v3642_v0 = vpop.xlane.xlu1 %3641  ;;  %7205 = vmatprep.mubr.bf16.mxu1 %v3867_v27  ;;  %v3810_v13 = vmul.f32 %v8258_v34, %v9787_v31 }
 0x4a6   : > { %v8260_v40 = vpop.eup %8259  ;;  %8269 = vrcp.f32 %v3642_v0 }
 0x4a7   : > { %v3868_v49 = vpack.c.bf16 %v3810_v13, %v3809_v2  ;;  %8271 = vrcp.f32 %v3644_v1  ;;  %v3811_v30 = vmul.f32 %v8260_v40, %v9789_v62 }
 0x4a8   : > { %v8262_v10 = vpop.eup %8261 }
 0x4a9   : > { %v3648_v42 = vpop.xlane.xlu0 %3647  ;;  %v3646_v38 = vpop.xlane.xlu1 %3645  ;;  %7206 = vmatmul.mubr.bf16.gmra.mrb[104].mxu1 %v3868_v49  ;;  %v3812_v28 = vmul.f32 %v8262_v10, %v9795_v8 }
 0x4aa   : > { %v8264_v25 = vpop.eup %8263  ;;  %8273 = vrcp.f32 %v3646_v38 }
 0x4ab   : > { %v3869_v58 = vpack.c.bf16 %v3812_v28, %v3811_v30  ;;  %8275 = vrcp.f32 %v3648_v42  ;;  %v3813_v31 = vmul.f32 %v8264_v25, %v9797_v41 }
 0x4ac   : > { %v8266_v48 = vpop.eup %8265 }
 0x4ad   : > { %v3652_v24 = vpop.xlane.xlu0 %3651  ;;  %v3650_v47 = vpop.xlane.xlu1 %3649  ;;  %7209 = vmatprep.mubr.bf16.mxu1 %v3869_v58  ;;  %v3814_v5 = vmul.f32 %v8266_v48, %v9803_v26 }
 0x4ae   : > { %v8268_v22 = vpop.eup %8267  ;;  %8277 = vrcp.f32 %v3650_v47 }
 0x4af   : > { %8279 = vrcp.f32 %v3652_v24  ;;  %v3870_v39 = vpack.c.bf16 %v3814_v5, %v3813_v31  ;;  %v3815_v8 = vmul.f32 %v8268_v22, %v9805_v59 }
 0x4b0   : > { %v8270_v63 = vpop.eup %8269 }
 0x4b1   : > { %v3656_v62 = vpop.xlane.xlu0 %3655  ;;  %v3654_v54 = vpop.xlane.xlu1 %3653  ;;  %7210 = vmatmul.mubr.bf16.gmra.mrb[108].mxu1 %v3870_v39  ;;  %v3816_v55 = vmul.f32 %v8270_v63, %v9811_v53 }
 0x4b2   : > { %v8272_v36 = vpop.eup %8271  ;;  %8281 = vrcp.f32 %v3654_v54 }
 0x4b3   : > { %v3871_v45 = vpack.c.bf16 %v3816_v55, %v3815_v8  ;;  %8283 = vrcp.f32 %v3656_v62  ;;  %v3817_v26 = vmul.f32 %v8272_v36, %v9813_v19 }
 0x4b4   : > { %v8274_v61 = vpop.eup %8273 }
 0x4b5   : > { %v3660_v41 = vpop.xlane.xlu0 %3659  ;;  %v3658_v27 = vpop.xlane.xlu1 %3657  ;;  %7213 = vmatprep.mubr.bf16.mxu1 %v3871_v45  ;;  %v3818_v34 = vmul.f32 %v8274_v61, %v9819_v9 }
 0x4b6   : > { %v8276_v1 = vpop.eup %8275  ;;  %8285 = vrcp.f32 %v3658_v27 }
 0x4b7   : > { %8287 = vrcp.f32 %v3660_v41  ;;  %v3872_v0 = vpack.c.bf16 %v3818_v34, %v3817_v26  ;;  %v3819_v49 = vmul.f32 %v8276_v1, %v9821_v52 }
 0x4b8   : > { %v8278_v2 = vpop.eup %8277 }
 0x4b9   : > { %v3662_v59 = vpop.xlane.xlu1 %3661  ;;  %v3352_v13 = vpop.xlane.xlu0 %3351  ;;  %7214 = vmatmul.mubr.bf16.gmra.mrb[112].mxu1 %v3872_v0  ;;  %v3820_v10 = vmul.f32 %v8278_v2, %v9826_v44 }
 0x4ba   : > { %v8280_v53 = vpop.eup %8279  ;;  %8289 = vrcp.f32 %v3662_v59  ;;  %v3447_v40 = vsub.f32 %v9673_v3, %v3352_v13 }
 0x4bb   : > { %v3873_v19 = vpack.c.bf16 %v3820_v10, %v3819_v49  ;;  %v3821_v28 = vmul.f32 %v8280_v53, %v9828_v50 }
 0x4bc   : > { %v3543_v42 = vmul.f32 1.442695, %v3447_v40  ;;  %v8282_v38 = vpop.eup %8281 }
 0x4bd   : > { %v3356_v9 = vpop.xlane.xlu0 %3355  ;;  %v3354_v30 = vpop.xlane.xlu1 %3353  ;;  %7217 = vmatprep.mubr.bf16.mxu1 %v3873_v19  ;;  %v3822_v48 = vmul.f32 %v8282_v38, %v9833_v18 }
 0x4be   : > { %8291 = vpow2.f32 %v3543_v42  ;;  %v3449_v25 = vsub.f32 %v9671_v43, %v3356_v9  ;;  %v3448_v58 = vsub.f32 %v9677_v60, %v3354_v30  ;;  %v8284_v3 = vpop.eup %8283 }
 0x4bf   : > { %v3874_v47 = vpack.c.bf16 %v3822_v48, %v3821_v28  ;;  %v3823_v39 = vmul.f32 %v8284_v3, %v9835_v57  ;;  %v7985_v48 = vld [vmem:[#allocation10 + $0x120] ss:$16 sps:$4 sm:$0xff]   ;;  %v7988_v3 = vld [vmem:[#allocation10 + $0x128] ss:$16 sps:$4 sm:$0xff]  }
 0x4c0   : > { %v3547_v24 = vmul.f32 1.442695, %v3449_v25  ;;  %v3545_v52 = vmul.f32 1.442695, %v3448_v58  ;;  %v8286_v44 = vpop.eup %8285 }
 0x4c1   : > { %v3664_v31 = vpop.xlane.xlu0 %3663  ;;  %v3358_v5 = vpop.xlane.xlu1 %3357  ;;  %7218 = vmatmul.mubr.bf16.gmra.mrb[116].mxu1 %v3874_v47  ;;  %v3824_v43 = vmul.f32 %v8286_v44, %v9841_v16  ;;  %v7990_v44 = vld [vmem:[#allocation10 + $0x12c] ss:$16 sps:$4 sm:$0xff]  }
 0x4c2   : > { %v8288_v22 = vpop.eup %8287  ;;  %8293 = vpow2.f32 %v3547_v24  ;;  %v3450_v50 = vsub.f32 %v9675_v51, %v3358_v5  ;;  %4475 = vmatprep.subr.bf16.mxu1 %v7990_v44 }
 0x4c3   : > { %8295 = vpow2.f32 %v3545_v52  ;;  %v3875_v18 = vpack.c.bf16 %v3824_v43, %v3823_v39  ;;  %v3825_v8 = vmul.f32 %v8288_v22, %v9843_v35  ;;  %4476 = vmatpush1.bf16.msra.mxu1 %v7988_v3 }
 0x4c4   : > { %v8290_v60 = vpop.eup %8289  ;;  %v3549_v63 = vmul.f32 1.442695, %v3450_v50  ;;  %8297 = vrcp.f32 %v3664_v31 }
 0x4c5   : > { %v3668_v62 = vpop.xlane.xlu0 %3667  ;;  %v3666_v54 = vpop.xlane.xlu1 %3665  ;;  %v3826_v55 = vmul.f32 %v8290_v60, %v9848_v7  ;;  %7221 = vmatprep.mubr.bf16.mxu1 %v3875_v18 }
 0x4c6   : > { %8299 = vpow2.f32 %v3549_v63 }
 0x4c7   : > { %8301 = vrcp.f32 %v3668_v62  ;;  %v3876_v36 = vpack.c.bf16 %v3826_v55, %v3825_v8 }
 0x4c8   : > { %v9927_v51 = vpop.eup %8291  ;;  %8303 = vrcp.f32 %v3666_v54 }
 0x4c9   : > { %v3670_v57 = vpop.xlane.xlu1 %3669  ;;  %v3360_v16 = vpop.xlane.xlu0 %3359  ;;  %3671 = vadd.xlane.f32.xlu0 %v9927_v51  ;;  %7222 = vmatmul.mubr.bf16.gmra.mrb[120].mxu1 %v3876_v36  ;;  %v10575_v36 = vld [vmem:[#allocation31_spill] sm:$0xff] }
 0x4ca   : > { %8305 = vrcp.f32 %v3670_v57  ;;  %v3451_v45 = vsub.f32 %v9681_v17, %v3360_v16 }
 0x4cc   : > { %v9931_v61 = vpop.eup %8293  ;;  %v3551_v35 = vmul.f32 1.442695, %v3451_v45 }
 0x4cd   : > { %v9933_v41 = vpop.eup %8295  ;;  %v3364_v7 = vpop.xlane.xlu0 %3363  ;;  %3675 = vadd.xlane.f32.xlu0 %v9931_v61 }
 0x4ce   : > { %v3362_v27 = vpop.xlane.xlu1 %3361  ;;  %8307 = vpow2.f32 %v3551_v35  ;;  %v3453_v26 = vsub.f32 %v9679_v11, %v3364_v7  ;;  %3673 = vadd.xlane.f32.xlu1 %v9933_v41  ;;  %v8298_v1 = vpop.eup %8297 }
 0x4cf   : > { %v3452_v34 = vsub.f32 %v9685_v29, %v3362_v27  ;;  %v3827_v11 = vmul.f32 %v8298_v1, %v9854_v32  ;;  %v10576_v27 = vld [vmem:[#allocation27_spill] sm:$0xff]  ;;  %v7991_v1 = vld [vmem:[#allocation10 + $0x140] ss:$16 sps:$4 sm:$0xff]  }
 0x4d0   : > { %v9939_v0 = vpop.eup %8299  ;;  %v3555_v17 = vmul.f32 1.442695, %v3453_v26 }
 0x4d1   : > { %v3553_v2 = vmul.f32 1.442695, %v3452_v34  ;;  %v8302_v59 = vpop.eup %8301  ;;  %v3368_v53 = vpop.xlane.xlu0 %3367  ;;  %v10577_v34 = vld [vmem:[#allocation35_spill] sm:$0xff] }
 0x4d2   : > { %v3366_v13 = vpop.xlane.xlu1 %3365  ;;  %v8304_v40 = vpop.eup %8303  ;;  %8309 = vpow2.f32 %v3555_v17  ;;  %v3455_v10 = vsub.f32 %v9689_v6, %v3368_v53  ;;  %3677 = vadd.xlane.f32.xlu1 %v9939_v0  ;;  %v3829_v25 = vmul.f32 %v8302_v59, %v9858_v21  ;;  %v7993_v17 = vld [vmem:[#allocation10 + $0x144] ss:$16 sps:$4 sm:$0xff]  }
 0x4d3   : > { %v3454_v49 = vsub.f32 %v9683_v12, %v3366_v13  ;;  %8311 = vpow2.f32 %v3553_v2  ;;  %v3828_v29 = vmul.f32 %v8304_v40, %v9860_v56  ;;  %v7987_v56 = vld [vmem:[#allocation10 + $0x124] ss:$16 sps:$4 sm:$0xff]   ;;  %v7994_v2 = vld [vmem:[#allocation10 + $0x148] ss:$16 sps:$4 sm:$0xff]   ;;  %v7996_v40 = vld [vmem:[#allocation10 + $0x14c] ss:$16 sps:$4 sm:$0xff]  }
 0x4d4   : > { %v8306_v42 = vpop.eup %8305  ;;  %v3559_v38 = vmul.f32 1.442695, %v3455_v10  ;;  %4362 = vmatprep.subr.bf16.mxu0 %v7987_v56  ;;  %4477 = vmatprep.subr.bf16.mxu1 %v7996_v40 }
 0x4d5   : > { %v3557_v19 = vmul.f32 1.442695, %v3454_v49  ;;  %v3877_v9 = vpack.c.bf16 %v3828_v29, %v3827_v11  ;;  %v3372_v30 = vpop.xlane.xlu0 %3371  ;;  %v3830_v58 = vmul.f32 %v8306_v42, %v9864_v23  ;;  %4363 = vmatpush1.bf16.msra.mxu0 %v7985_v48  ;;  %v10578_v29 = vld [vmem:[#allocation30_spill] sm:$0xff]  ;;  %4478 = vmatpush1.bf16.msra.mxu1 %v7994_v2  ;;  %v10581_v48 = vld [vmem:[#allocation20_spill] sm:$0xff] }
 0x4d6   : > { %v3370_v28 = vpop.xlane.xlu1 %3369  ;;  %v3457_v12 = vsub.f32 %v9687_v33, %v3372_v30  ;;  %4364 = vmatprep.subr.bf16.mxu0 %v7993_v17  ;;  %v10587_v2 = vld [vmem:[#allocation26_spill] sm:$0xff] }
 0x4d7   : > { %8313 = vpow2.f32 %v3557_v19  ;;  %v3456_v6 = vsub.f32 %v9693_v37, %v3370_v28  ;;  %7225 = vmatprep.mubr.bf16.mxu1 %v3877_v9  ;;  %v3878_v32 = vpack.c.bf16 %v3830_v58, %v3829_v25  ;;  %v10579_v19 = vld [vmem:[#allocation39_spill] sm:$0xff] }
 0x4d8   : > { %8315 = vpow2.f32 %v3559_v38  ;;  %v9950_v24 = vpop.eup %8307  ;;  %v3563_v52 = vmul.f32 1.442695, %v3457_v12 }
 0x4d9   : > { %v3561_v47 = vmul.f32 1.442695, %v3456_v6  ;;  %7226 = vmatmul.mubr.bf16.gmra.mrb[124].mxu1 %v3878_v32  ;;  %v3376_v31 = vpop.xlane.xlu0 %3375  ;;  %3679 = vadd.xlane.f32.xlu0 %v9950_v24  ;;  %v10580_v6 = vld [vmem:[#allocation34_spill] sm:$0xff] }
 0x4da   : > { %v3374_v21 = vpop.xlane.xlu1 %3373  ;;  %8317 = vpow2.f32 %v3563_v52  ;;  %v3459_v37 = vsub.f32 %v9697_v4, %v3376_v31  ;;  %4365 = vmatpush1.bf16.msra.mxu0 %v7991_v1  ;;  %v10586_v1 = vld [vmem:[#allocation21_spill] sm:$0xff] }
 0x4db   : > { %v3458_v33 = vsub.f32 %v9691_v15, %v3374_v21  ;;  %8319 = vpow2.f32 %v3561_v47 }
 0x4dc   : > { %v9955_v23 = vpop.eup %8309  ;;  %v3567_v22 = vmul.f32 1.442695, %v3459_v37 }
 0x4dd   : > { %v3565_v5 = vmul.f32 1.442695, %v3458_v33  ;;  %v9957_v50 = vpop.eup %8311  ;;  %v3380_v39 = vpop.xlane.xlu0 %3379  ;;  %3683 = vadd.xlane.f32.xlu0 %v9955_v23  ;;  %v10582_v33 = vld [vmem:[#allocation38_spill] sm:$0xff] }
 0x4de   : > { %v3378_v43 = vpop.xlane.xlu1 %3377  ;;  %v3461_v15 = vsub.f32 %v9695_v20, %v3380_v39  ;;  %3681 = vadd.xlane.f32.xlu1 %v9957_v50 }
 0x4df   : > { %8321 = vpow2.f32 %v3565_v5  ;;  %v3460_v4 = vsub.f32 %v9701_v14, %v3378_v43  ;;  %v10583_v5 = vld [vmem:[#allocation22_spill] sm:$0xff] }
 0x4e0   : > { %8323 = vpow2.f32 %v3567_v22  ;;  %v3571_v63 = vmul.f32 1.442695, %v3461_v15 }
 0x4e1   : > { %v9963_v60 = vpop.eup %8313  ;;  %v3569_v18 = vmul.f32 1.442695, %v3460_v4  ;;  %v3384_v8 = vpop.xlane.xlu0 %3383 }
 0x4e2   : > { %v9965_v62 = vpop.eup %8315  ;;  %v3382_v54 = vpop.xlane.xlu1 %3381  ;;  %8325 = vpow2.f32 %v3571_v63  ;;  %v3463_v57 = vsub.f32 %v10575_v36, %v3384_v8  ;;  %3685 = vadd.xlane.f32.xlu1 %v9963_v60 }
 0x4e3   : > { %v3462_v55 = vsub.f32 %v9699_v46, %v3382_v54  ;;  %3687 = vadd.xlane.f32.xlu0 %v9965_v62  ;;  %8327 = vpow2.f32 %v3569_v18  ;;  %v10584_v54 = vld [vmem:[#allocation19_spill] sm:$0xff] }
 0x4e4   : > { %v9971_v20 = vpop.eup %8317  ;;  %v3575_v16 = vmul.f32 1.442695, %v3463_v57 }
 0x4e5   : > { %v3573_v14 = vmul.f32 1.442695, %v3462_v55  ;;  %v9973_v45 = vpop.eup %8319  ;;  %v3388_v35 = vpop.xlane.xlu0 %3387  ;;  %v10585_v55 = vld [vmem:[#allocation24_spill] sm:$0xff] }
 0x4e6   : > { %v3386_v7 = vpop.xlane.xlu1 %3385  ;;  %v3465_v26 = vsub.f32 %v10576_v27, %v3388_v35  ;;  %3689 = vadd.xlane.f32.xlu1 %v9973_v45 }
 0x4e7   : > { %8329 = vpow2.f32 %v3573_v14  ;;  %v3464_v46 = vsub.f32 %v10577_v34, %v3386_v7  ;;  %3691 = vadd.xlane.f32.xlu0 %v9971_v20  ;;  %v7999_v34 = vld [vmem:[#allocation10 + $0x164] ss:$16 sps:$4 sm:$0xff]  }
 0x4e8   : > { %8331 = vpow2.f32 %v3575_v16  ;;  %v3579_v13 = vmul.f32 1.442695, %v3465_v26  ;;  %v7997_v26 = vld [vmem:[#allocation10 + $0x160] ss:$16 sps:$4 sm:$0xff]   ;;  %4366 = vmatprep.subr.bf16.mxu0 %v7999_v34  ;;  %v8018_v34 = vld [vmem:[#allocation10 + $0x1a8] ss:$16 sps:$4 sm:$0xff]  }
 0x4e9   : > { %v9979_v59 = vpop.eup %8321  ;;  %v3577_v53 = vmul.f32 1.442695, %v3464_v46  ;;  %v3392_v11 = vpop.xlane.xlu0 %3391  ;;  %v8000_v46 = vld [vmem:[#allocation10 + $0x168] ss:$16 sps:$4 sm:$0xff]   ;;  %4367 = vmatpush1.bf16.msra.mxu0 %v7997_v26  ;;  %v8668_v26 = vmov 0  }
 0x4ea   : > { %v9981_v49 = vpop.eup %8323  ;;  %v3390_v10 = vpop.xlane.xlu1 %3389  ;;  %8333 = vpow2.f32 %v3579_v13  ;;  %v3467_v38 = vsub.f32 %v10579_v19, %v3392_v11  ;;  %3693 = vadd.xlane.f32.xlu1 %v9979_v59  ;;  %4392 = vmatprep.mubr.bf16.mxu0 %v8668_v26 }
 0x4eb   : > { %v3466_v42 = vsub.f32 %v10578_v29, %v3390_v10  ;;  %3695 = vadd.xlane.f32.xlu0 %v9981_v49  ;;  %8335 = vpow2.f32 %v3577_v53  ;;  %v8002_v53 = vld [vmem:[#allocation10 + $0x16c] ss:$16 sps:$4 sm:$0xff]  }
 0x4ec   : > { %v9987_v9 = vpop.eup %8325  ;;  %v3583_v28 = vmul.f32 1.442695, %v3467_v38  ;;  %4479 = vmatprep.subr.bf16.mxu1 %v8002_v53  ;;  %v10588_v38 = vld [vmem:[#allocation23_spill] sm:$0xff] }
 0x4ed   : > { %v3581_v30 = vmul.f32 1.442695, %v3466_v42  ;;  %v9989_v25 = vpop.eup %8327  ;;  %v3396_v58 = vpop.xlane.xlu0 %3395  ;;  %4480 = vmatpush1.bf16.msra.mxu1 %v8000_v46  ;;  %v8020_v46 = vld [vmem:[#allocation10 + $0x1ac] ss:$16 sps:$4 sm:$0xff]   ;;  %v8024_v53 = vld [vmem:[#allocation10 + $0x1e8] ss:$16 sps:$4 sm:$0xff]  }
 0x4ee   : > { %v3394_v12 = vpop.xlane.xlu1 %3393  ;;  %v3469_v32 = vsub.f32 %v10580_v6, %v3396_v58  ;;  %3697 = vadd.xlane.f32.xlu1 %v9989_v25 }
 0x4ef   : > { %8337 = vpow2.f32 %v3581_v30  ;;  %v3468_v56 = vsub.f32 %v10581_v48, %v3394_v12  ;;  %3699 = vadd.xlane.f32.xlu0 %v9987_v9 }
 0x4f0   : > { %8339 = vpow2.f32 %v3583_v28  ;;  %v3587_v52 = vmul.f32 1.442695, %v3469_v32  ;;  %v10589_v28 = vld [vmem:[#allocation29_spill] sm:$0xff] }
 0x4f1   : > { %v9995_v3 = vpop.eup %8329  ;;  %v3585_v47 = vmul.f32 1.442695, %v3468_v56  ;;  %v3400_v31 = vpop.xlane.xlu0 %3399 }
 0x4f2   : > { %v9997_v44 = vpop.eup %8331  ;;  %v3398_v21 = vpop.xlane.xlu1 %3397  ;;  %8341 = vpow2.f32 %v3587_v52  ;;  %v3471_v22 = vsub.f32 %v10583_v5, %v3400_v31  ;;  %3701 = vadd.xlane.f32.xlu1 %v9995_v3  ;;  %v8003_v52 = vld [vmem:[#allocation10 + $0x180] ss:$16 sps:$4 sm:$0xff]  }
 0x4f3   : > { %v3470_v37 = vsub.f32 %v10582_v33, %v3398_v21  ;;  %3703 = vadd.xlane.f32.xlu0 %v9997_v44  ;;  %8343 = vpow2.f32 %v3585_v47  ;;  %v8005_v47 = vld [vmem:[#allocation10 + $0x184] ss:$16 sps:$4 sm:$0xff]   ;;  %v10590_v21 = vld [vmem:[#allocation25_spill] sm:$0xff] }
 0x4f4   : > { %v10003_v39 = vpop.eup %8333  ;;  %v3591_v15 = vmul.f32 1.442695, %v3471_v22  ;;  %4368 = vmatprep.subr.bf16.mxu0 %v8005_v47  ;;  %v8008_v22 = vld [vmem:[#allocation10 + $0x1a4] ss:$16 sps:$4 sm:$0xff]  }
 0x4f5   : > { %v3589_v43 = vmul.f32 1.442695, %v3470_v37  ;;  %v10005_v4 = vpop.eup %8335  ;;  %v3404_v63 = vpop.xlane.xlu0 %3403  ;;  %4369 = vmatpush1.bf16.msra.mxu0 %v8003_v52 }
 0x4f6   : > { %v3402_v18 = vpop.xlane.xlu1 %3401  ;;  %v3473_v8 = vsub.f32 %v10584_v54, %v3404_v63  ;;  %3705 = vadd.xlane.f32.xlu1 %v10005_v4  ;;  %4370 = vmatprep.subr.bf16.mxu0 %v8008_v22  ;;  %v8011_v54 = vld [vmem:[#allocation10 + $0x18c] ss:$16 sps:$4 sm:$0xff]  }
 0x4f7   : > { %8345 = vpow2.f32 %v3589_v43  ;;  %v3472_v36 = vsub.f32 %v10585_v55, %v3402_v18  ;;  %3707 = vadd.xlane.f32.xlu0 %v10003_v39  ;;  %v8006_v43 = vld [vmem:[#allocation10 + $0x1a0] ss:$16 sps:$4 sm:$0xff]   ;;  %v8009_v18 = vld [vmem:[#allocation10 + $0x188] ss:$16 sps:$4 sm:$0xff]   ;;  %v8014_v55 = vld [vmem:[#allocation10 + $0x1c4] ss:$16 sps:$4 sm:$0xff]   ;;  %4481 = vmatprep.subr.bf16.mxu1 %v8011_v54 }
 0x4f8   : > { %8347 = vpow2.f32 %v3591_v15  ;;  %v3595_v14 = vmul.f32 1.442695, %v3473_v8  ;;  %v8012_v8 = vld [vmem:[#allocation10 + $0x1c0] ss:$16 sps:$4 sm:$0xff]   ;;  %4482 = vmatpush1.bf16.msra.mxu1 %v8009_v18 }
 0x4f9   : > { %v10011_v57 = vpop.eup %8337  ;;  %v3593_v16 = vmul.f32 1.442695, %v3472_v36  ;;  %v3408_v27 = vpop.xlane.xlu0 %3407  ;;  %4371 = vmatpush1.bf16.msra.mxu0 %v8006_v43  ;;  %4483 = vmatprep.subr.bf16.mxu1 %v8020_v46 }
 0x4fa   : > { %v10013_v35 = vpop.eup %8339  ;;  %v3406_v7 = vpop.xlane.xlu1 %3405  ;;  %8349 = vpow2.f32 %v3595_v14  ;;  %v3475_v13 = vsub.f32 %v10587_v2, %v3408_v27  ;;  %3709 = vadd.xlane.f32.xlu1 %v10011_v57  ;;  %4372 = vmatprep.subr.bf16.mxu0 %v8014_v55  ;;  %v8026_v2 = vld [vmem:[#allocation10 + $0x1ec] ss:$16 sps:$4 sm:$0xff]  }
 0x4fb   : > { %v3474_v17 = vsub.f32 %v10586_v1, %v3406_v7  ;;  %3711 = vadd.xlane.f32.xlu0 %v10013_v35  ;;  %8351 = vpow2.f32 %v3593_v16  ;;  %v8017_v16 = vld [vmem:[#allocation10 + $0x1e4] ss:$16 sps:$4 sm:$0xff]   ;;  %v8015_v7 = vld [vmem:[#allocation10 + $0x1e0] ss:$16 sps:$4 sm:$0xff]   ;;  %v8021_v1 = vld [vmem:[#allocation10 + $0x1c8] ss:$16 sps:$4 sm:$0xff]  }
 0x4fc   : > { %v10019_v40 = vpop.eup %8341  ;;  %v3599_v11 = vmul.f32 1.442695, %v3475_v13  ;;  %4484 = vmatpush1.bf16.msra.mxu1 %v8018_v34  ;;  %v8029_v13 = vld [vmem:[#allocation10 + $0x4] ss:$16 sps:$4 sm:$0xff]  }
 0x4fd   : > { %v3597_v10 = vmul.f32 1.442695, %v3474_v17  ;;  %v10021_v29 = vpop.eup %8343  ;;  %v3412_v42 = vpop.xlane.xlu0 %3411  ;;  %4373 = vmatpush1.bf16.msra.mxu0 %v8012_v8  ;;  %v8023_v17 = vld [vmem:[#allocation10 + $0x1cc] ss:$16 sps:$4 sm:$0xff]  }
 0x4fe   : > { %v3410_v19 = vpop.xlane.xlu1 %3409  ;;  %v3477_v30 = vsub.f32 %v10588_v38, %v3412_v42  ;;  %3713 = vadd.xlane.f32.xlu1 %v10021_v29  ;;  %4374 = vmatprep.subr.bf16.mxu0 %v8017_v16 }
 0x4ff   : > { %8353 = vpow2.f32 %v3597_v10  ;;  %3715 = vadd.xlane.f32.xlu0 %v10019_v40  ;;  %v3476_v58 = vsub.f32 %v10589_v28, %v3410_v19  ;;  %4485 = vmatprep.subr.bf16.mxu1 %v8023_v17  ;;  %v8047_v10 = vld [vmem:[#allocation10 + $0xc] ss:$16 sps:$4 sm:$0xff]  }
 0x500   : > { %8355 = vpow2.f32 %v3599_v11  ;;  %v3603_v6 = vmul.f32 1.442695, %v3477_v30  ;;  %4486 = vmatpush1.bf16.msra.mxu1 %v8021_v1 }
 0x501   : > { %v10027_v12 = vpop.eup %8345  ;;  %v3601_v32 = vmul.f32 1.442695, %v3476_v58  ;;  %4375 = vmatpush1.bf16.msra.mxu0 %v8015_v7  ;;  %4487 = vmatprep.subr.bf16.mxu1 %v8026_v2 }
 0x502   : > { %v10029_v48 = vpop.eup %8347  ;;  %v3414_v56 = vpop.xlane.xlu1 %3413  ;;  %8357 = vpow2.f32 %v3603_v6  ;;  %3717 = vadd.xlane.f32.xlu1 %v10027_v12  ;;  %4746 = vmatprep.subr.bf16.mxu0 %v8029_v13 }
 0x503   : > { %3719 = vadd.xlane.f32.xlu0 %v10029_v48  ;;  %v3478_v31 = vsub.f32 %v10590_v21, %v3414_v56  ;;  %8359 = vpow2.f32 %v3601_v32 }
 0x504   : > { %v10034_v33 = vpop.eup %8349  ;;  %4488 = vmatpush1.bf16.msra.mxu1 %v8024_v53 }
 0x505   : > { %v3605_v37 = vmul.f32 1.442695, %v3478_v31  ;;  %v10036_v5 = vpop.eup %8351  ;;  %4859 = vmatprep.subr.bf16.mxu1 %v8047_v10 }
 0x506   : > { %3721 = vadd.xlane.f32.xlu1 %v10036_v5 }
 0x507   : > { %8361 = vpow2.f32 %v3605_v37  ;;  %3723 = vadd.xlane.f32.xlu0 %v10034_v33 }
 0x509   : > { %v10040_v15 = vpop.eup %8353 }
 0x50a   : > { %v10042_v63 = vpop.eup %8355  ;;  %3725 = vadd.xlane.f32.xlu1 %v10040_v15 }
 0x50b   : > { %3727 = vadd.xlane.f32.xlu0 %v10042_v63 }
 0x50c   : > { %v10046_v36 = vpop.eup %8357 }
 0x50d   : > { %v10048_v14 = vpop.eup %8359 }
 0x50e   : > { %3729 = vadd.xlane.f32.xlu1 %v10048_v14 }
 0x50f   : > { %3731 = vadd.xlane.f32.xlu0 %v10046_v36 }
 0x511   : > { %v10052_v27 = vpop.eup %8361 }
 0x512   : > { %3733 = vadd.xlane.f32.xlu1 %v10052_v27 }
 0x556   : > { %v3672_v11 = vpop.xlane.xlu0 %3671 }
 0x557   : > { %8363 = vrcp.f32 %v3672_v11 }
 0x55a   : > { %v3676_v42 = vpop.xlane.xlu0 %3675 }
 0x55b   : > { %v3674_v19 = vpop.xlane.xlu1 %3673 }
 0x55c   : > { %8365 = vrcp.f32 %v3674_v19 }
 0x55d   : > { %8367 = vrcp.f32 %v3676_v42 }
 0x55f   : > { %v3678_v38 = vpop.xlane.xlu1 %3677 }
 0x560   : > { %8369 = vrcp.f32 %v3678_v38 }
 0x561   : > { %v8364_v30 = vpop.eup %8363 }
 0x562   : > { %v3831_v6 = vmul.f32 %v8364_v30, %v9927_v51 }
 0x566   : > { %v8366_v28 = vpop.eup %8365  ;;  %v3680_v58 = vpop.xlane.xlu0 %3679 }
 0x567   : > { %v3832_v32 = vmul.f32 %v8366_v28, %v9933_v41  ;;  %v8368_v56 = vpop.eup %8367  ;;  %8371 = vrcp.f32 %v3680_v58 }
 0x568   : > { %v3833_v37 = vmul.f32 %v8368_v56, %v9931_v61 }
 0x569   : > { %v3879_v52 = vpack.c.bf16 %v3832_v32, %v3831_v6 }
 0x56a   : > { %v8370_v47 = vpop.eup %8369  ;;  %v3684_v21 = vpop.xlane.xlu0 %3683 }
 0x56b   : > { %7229 = vmatprep.mubr.bf16.mxu1 %v3879_v52  ;;  %v3682_v31 = vpop.xlane.xlu1 %3681  ;;  %v3834_v22 = vmul.f32 %v8370_v47, %v9939_v0 }
 0x56c   : > { %8373 = vrcp.f32 %v3682_v31  ;;  %v7199_v43 = vpop.f32.mrb[96].mxu1 }
 0x56d   : > { %v3880_v18 = vpack.c.bf16 %v3834_v22, %v3833_v37  ;;  %v3929_v54 = vpop.f32.mrb[97].mxu1  ;;  %8375 = vrcp.f32 %v3684_v21 }
 0x56e   : > { %v7200_v8 = vpop.f32.mrb[98].mxu1 }
 0x56f   : > { %7230 = vmatmul.mubr.bf16.gmra.mrb[128].mxu1 %v3880_v18  ;;  %v10060_v41 = vpack.c.bf16 %v7200_v8, %v7199_v43  ;;  %v3686_v55 = vpop.xlane.xlu1 %3685  ;;  %v3932_v16 = vpop.f32.mrb[99].mxu1 }
 0x570   : > { %v3688_v51 = vpop.xlane.xlu0 %3687  ;;  %8377 = vrcp.f32 %v3686_v55  ;;  %v10062_v7 = vpack.c.bf16 %v3932_v16, %v3929_v54 }
 0x571   : > { %8379 = vrcp.f32 %v3688_v51  ;;  %v8372_v61 = vpop.eup %8371 }
 0x572   : > { %v3835_v53 = vmul.f32 %v8372_v61, %v9950_v24 }
 0x573   : > { %v3690_v46 = vpop.xlane.xlu1 %3689 }
 0x574   : > { %v3692_v34 = vpop.xlane.xlu0 %3691  ;;  %8381 = vrcp.f32 %v3690_v46  ;;  %v7203_v0 = vpop.f32.mrb[100].mxu1 }
 0x575   : > { %v3945_v17 = vpop.f32.mrb[101].mxu1  ;;  %8383 = vrcp.f32 %v3692_v34 }
 0x576   : > { %v8374_v1 = vpop.eup %8373  ;;  %v7204_v2 = vpop.f32.mrb[102].mxu1 }
 0x577   : > { %v3836_v10 = vmul.f32 %v8374_v1, %v9957_v50  ;;  %v10066_v11 = vpack.c.bf16 %v7204_v2, %v7203_v0  ;;  %v3694_v42 = vpop.xlane.xlu1 %3693  ;;  %v3948_v19 = vpop.f32.mrb[103].mxu1 }
 0x578   : > { %v3696_v13 = vpop.xlane.xlu0 %3695  ;;  %v8376_v38 = vpop.eup %8375  ;;  %8385 = vrcp.f32 %v3694_v42  ;;  %v10068_v30 = vpack.c.bf16 %v3948_v19, %v3945_v17 }
 0x579   : > { %v3881_v28 = vpack.c.bf16 %v3836_v10, %v3835_v53  ;;  %8387 = vrcp.f32 %v3696_v13  ;;  %v3837_v56 = vmul.f32 %v8376_v38, %v9955_v23 }
 0x57a   : > { %v8378_v58 = vpop.eup %8377 }
 0x57b   : > { %7233 = vmatprep.mubr.bf16.mxu1 %v3881_v28  ;;  %v3698_v32 = vpop.xlane.xlu1 %3697  ;;  %v3838_v24 = vmul.f32 %v8378_v58, %v9963_v60  ;;  %v8380_v52 = vpop.eup %8379 }
 0x57c   : > { %v3700_v6 = vpop.xlane.xlu0 %3699  ;;  %8389 = vrcp.f32 %v3698_v32  ;;  %v7207_v50 = vpop.f32.mrb[104].mxu1  ;;  %v3839_v8 = vmul.f32 %v8380_v52, %v9965_v62 }
 0x57d   : > { %v3961_v47 = vpop.f32.mrb[105].mxu1  ;;  %v3882_v21 = vpack.c.bf16 %v3838_v24, %v3837_v56  ;;  %8391 = vrcp.f32 %v3700_v6 }
 0x57e   : > { %v8382_v31 = vpop.eup %8381  ;;  %v7208_v37 = vpop.f32.mrb[106].mxu1 }
 0x57f   : > { %v10072_v43 = vpack.c.bf16 %v7208_v37, %v7207_v50  ;;  %7234 = vmatmul.mubr.bf16.gmra.mrb[132].mxu1 %v3882_v21  ;;  %v3702_v18 = vpop.xlane.xlu1 %3701  ;;  %v3964_v54 = vpop.f32.mrb[107].mxu1  ;;  %v3840_v23 = vmul.f32 %v8382_v31, %v9973_v45 }
 0x580   : > { %v3704_v22 = vpop.xlane.xlu0 %3703  ;;  %v8384_v51 = vpop.eup %8383  ;;  %8393 = vrcp.f32 %v3702_v18  ;;  %v10076_v60 = vpack.c.bf16 %v3964_v54, %v3961_v47 }
 0x581   : > { %v3883_v55 = vpack.c.bf16 %v3840_v23, %v3839_v8  ;;  %8395 = vrcp.f32 %v3704_v22  ;;  %v3841_v46 = vmul.f32 %v8384_v51, %v9971_v20  ;;  %v8027_v51 = vld [vmem:[#allocation10] ss:$16 sps:$4 sm:$0xff]  }
 0x582   : > { %v8386_v16 = vpop.eup %8385 }
 0x583   : > { %7237 = vmatprep.mubr.bf16.mxu1 %v3883_v55  ;;  %v3706_v61 = vpop.xlane.xlu1 %3705  ;;  %v3842_v0 = vmul.f32 %v8386_v16, %v9979_v59  ;;  %v8388_v1 = vpop.eup %8387  ;;  %v8032_v16 = vld [vmem:[#allocation10 + $0x24] ss:$16 sps:$4 sm:$0xff]  }
 0x584   : > { %v3708_v34 = vpop.xlane.xlu0 %3707  ;;  %8397 = vrcp.f32 %v3706_v61  ;;  %v7211_v17 = vpop.f32.mrb[108].mxu1  ;;  %v3843_v38 = vmul.f32 %v8388_v1, %v9981_v49 }
 0x585   : > { %v3977_v62 = vpop.f32.mrb[109].mxu1  ;;  %v3884_v2 = vpack.c.bf16 %v3842_v0, %v3841_v46  ;;  %8399 = vrcp.f32 %v3708_v34 }
 0x586   : > { %v8390_v45 = vpop.eup %8389  ;;  %v7212_v13 = vpop.f32.mrb[110].mxu1 }
 0x587   : > { %v10080_v10 = vpack.c.bf16 %v7212_v13, %v7211_v17  ;;  %7238 = vmatmul.mubr.bf16.gmra.mrb[136].mxu1 %v3884_v2  ;;  %v3710_v42 = vpop.xlane.xlu1 %3709  ;;  %v3980_v19 = vpop.f32.mrb[111].mxu1  ;;  %v3844_v20 = vmul.f32 %v8390_v45, %v9989_v25  ;;  %v8030_v17 = vld [vmem:[#allocation10 + $0x20] ss:$16 sps:$4 sm:$0xff]   ;;  %v8035_v45 = vld [vmem:[#allocation10 + $0x44] ss:$16 sps:$4 sm:$0xff]  }
 0x588   : > { %v3712_v53 = vpop.xlane.xlu0 %3711  ;;  %v8392_v28 = vpop.eup %8391  ;;  %8401 = vrcp.f32 %v3710_v42  ;;  %v10084_v59 = vpack.c.bf16 %v3980_v19, %v3977_v62 }
 0x589   : > { %v3885_v58 = vpack.c.bf16 %v3844_v20, %v3843_v38  ;;  %8403 = vrcp.f32 %v3712_v53  ;;  %v3845_v24 = vmul.f32 %v8392_v28, %v9987_v9 }
 0x58a   : > { %v8394_v6 = vpop.eup %8393 }
 0x58b   : > { %7241 = vmatprep.mubr.bf16.mxu1 %v3885_v58  ;;  %v3714_v56 = vpop.xlane.xlu1 %3713  ;;  %v3846_v52 = vmul.f32 %v8394_v6, %v9995_v3  ;;  %v8396_v50 = vpop.eup %8395  ;;  %v8033_v6 = vld [vmem:[#allocation10 + $0x40] ss:$16 sps:$4 sm:$0xff]  }
 0x58c   : > { %v3716_v32 = vpop.xlane.xlu0 %3715  ;;  %8405 = vrcp.f32 %v3714_v56  ;;  %v7215_v47 = vpop.f32.mrb[112].mxu1  ;;  %v3847_v8 = vmul.f32 %v8396_v50, %v9997_v44  ;;  %v8038_v56 = vld [vmem:[#allocation10 + $0x64] ss:$16 sps:$4 sm:$0xff]  }
 0x58d   : > { %v3993_v49 = vpop.f32.mrb[113].mxu1  ;;  %v3886_v21 = vpack.c.bf16 %v3846_v52, %v3845_v24  ;;  %8407 = vrcp.f32 %v3716_v32 }
 0x58e   : > { %v8398_v25 = vpop.eup %8397  ;;  %v7216_v31 = vpop.f32.mrb[114].mxu1 }
 0x58f   : > { %v10088_v22 = vpack.c.bf16 %v7216_v31, %v7215_v47  ;;  %7242 = vmatmul.mubr.bf16.gmra.mrb[140].mxu1 %v3886_v21  ;;  %v3718_v18 = vpop.xlane.xlu1 %3717  ;;  %v3996_v54 = vpop.f32.mrb[115].mxu1  ;;  %v3848_v9 = vmul.f32 %v8398_v25, %v10005_v4  ;;  %v8036_v21 = vld [vmem:[#allocation10 + $0x60] ss:$16 sps:$4 sm:$0xff]  }
 0x590   : > { %v3720_v37 = vpop.xlane.xlu0 %3719  ;;  %v8400_v23 = vpop.eup %8399  ;;  %8409 = vrcp.f32 %v3718_v18  ;;  %v10092_v3 = vpack.c.bf16 %v3996_v54, %v3993_v49 }
 0x591   : > { %v3887_v55 = vpack.c.bf16 %v3848_v9, %v3847_v8  ;;  %8411 = vrcp.f32 %v3720_v37  ;;  %v3849_v0 = vmul.f32 %v8400_v23, %v10003_v39  ;;  %v8041_v37 = vld [vmem:[#allocation10 + $0x84] ss:$16 sps:$4 sm:$0xff]  }
 0x592   : > { %v8402_v34 = vpop.eup %8401  ;;  %4393 = vmatmul.mubr.bf16.vlgmr.msra.gmra.mrb[160].mxu0 %v10092_v3 }
 0x593   : > { %7245 = vmatprep.mubr.bf16.mxu1 %v3887_v55  ;;  %v3722_v46 = vpop.xlane.xlu1 %3721  ;;  %v3850_v44 = vmul.f32 %v8402_v34, %v10011_v57  ;;  %4402 = vmatprep.mubr.bf16.mxu0 %v8668_v26  ;;  %v8404_v4 = vpop.eup %8403 }
 0x594   : > { %v3724_v61 = vpop.xlane.xlu0 %3723  ;;  %8413 = vrcp.f32 %v3722_v46  ;;  %v7219_v1 = vpop.f32.mrb[116].mxu1  ;;  %4747 = vmatpush1.bf16.msra.mxu0 %v8027_v51  ;;  %v3851_v38 = vmul.f32 %v8404_v4, %v10013_v35 }
 0x595   : > { %v4009_v62 = vpop.f32.mrb[117].mxu1  ;;  %v3888_v2 = vpack.c.bf16 %v3850_v44, %v3849_v0  ;;  %4748 = vmatprep.subr.bf16.mxu0 %v8032_v16  ;;  %8415 = vrcp.f32 %v3724_v61  ;;  %v8039_v16 = vld [vmem:[#allocation10 + $0x80] ss:$16 sps:$4 sm:$0xff]   ;;  %v8044_v61 = vld [vmem:[#allocation10 + $0xa4] ss:$16 sps:$4 sm:$0xff]  }
 0x596   : > { %v8406_v13 = vpop.eup %8405  ;;  %v7220_v53 = vpop.f32.mrb[118].mxu1 }
 0x597   : > { %v10098_v19 = vpack.c.bf16 %v7220_v53, %v7219_v1  ;;  %7246 = vmatmul.mubr.bf16.gmra.mrb[144].mxu1 %v3888_v2  ;;  %v3726_v39 = vpop.xlane.xlu1 %3725  ;;  %v4012_v57 = vpop.f32.mrb[119].mxu1  ;;  %v3852_v20 = vmul.f32 %v8406_v13, %v10021_v29  ;;  %v8050_v1 = vld [vmem:[#allocation10 + $0xc4] ss:$16 sps:$4 sm:$0xff]   ;;  %v8048_v13 = vld [vmem:[#allocation10 + $0xc0] ss:$16 sps:$4 sm:$0xff]  }
 0x598   : > { %v3728_v42 = vpop.xlane.xlu0 %3727  ;;  %v8408_v28 = vpop.eup %8407  ;;  %8417 = vrcp.f32 %v3726_v39  ;;  %v10102_v58 = vpack.c.bf16 %v4012_v57, %v4009_v62  ;;  %4749 = vmatpush1.bf16.msra.mxu0 %v8030_v17 }
 0x599   : > { %v3889_v32 = vpack.c.bf16 %v3852_v20, %v3851_v38  ;;  %4750 = vmatprep.subr.bf16.mxu0 %v8035_v45  ;;  %8419 = vrcp.f32 %v3728_v42  ;;  %v3853_v35 = vmul.f32 %v8408_v28, %v10019_v40  ;;  %v8077_v28 = vld [vmem:[#allocation10 + $0x204] ss:$16 sps:$4 sm:$0xff]  }
 0x59a   : > { %v8410_v24 = vpop.eup %8409  ;;  %4403 = vmatmul.mubr.bf16.gmra.mrb[164].mxu0 %v10088_v22 }
 0x59b   : > { %7249 = vmatprep.mubr.bf16.mxu1 %v3889_v32  ;;  %v3730_v50 = vpop.xlane.xlu1 %3729  ;;  %v3854_v29 = vmul.f32 %v8410_v24, %v10027_v12  ;;  %4412 = vmatprep.mubr.bf16.mxu0 %v8668_v26  ;;  %v8412_v47 = vpop.eup %8411  ;;  %v8054_v24 = vld [vmem:[#allocation10 + $0x28] ss:$16 sps:$4 sm:$0xff]  }
 0x59c   : > { %v3732_v52 = vpop.xlane.xlu0 %3731  ;;  %8421 = vrcp.f32 %v3730_v50  ;;  %v7223_v49 = vpop.f32.mrb[120].mxu1  ;;  %4751 = vmatpush1.bf16.msra.mxu0 %v8033_v6  ;;  %v3855_v12 = vmul.f32 %v8412_v47, %v10029_v48  ;;  %v8057_v50 = vld [vmem:[#allocation10 + $0x48] ss:$16 sps:$4 sm:$0xff]  }
 0x59d   : > { %v4025_v25 = vpop.f32.mrb[121].mxu1  ;;  %v3890_v31 = vpack.c.bf16 %v3854_v29, %v3853_v35  ;;  %4752 = vmatprep.subr.bf16.mxu0 %v8038_v56  ;;  %8423 = vrcp.f32 %v3732_v52  ;;  %v8059_v52 = vld [vmem:[#allocation10 + $0x4c] ss:$16 sps:$4 sm:$0xff]   ;;  %v8063_v47 = vld [vmem:[#allocation10 + $0x88] ss:$16 sps:$4 sm:$0xff]  }
 0x59e   : > { %v8414_v18 = vpop.eup %8413  ;;  %v7224_v54 = vpop.f32.mrb[122].mxu1  ;;  %v8062_v35 = vld [vmem:[#allocation10 + $0x6c] ss:$16 sps:$4 sm:$0xff]  }
 0x59f   : > { %v10108_v8 = vpack.c.bf16 %v7224_v54, %v7223_v49  ;;  %7250 = vmatmul.mubr.bf16.gmra.mrb[148].mxu1 %v3890_v31  ;;  %v3734_v40 = vpop.xlane.xlu1 %3733  ;;  %v4028_v9 = vpop.f32.mrb[123].mxu1  ;;  %v3856_v23 = vmul.f32 %v8414_v18, %v10036_v5  ;;  %v8042_v5 = vld [vmem:[#allocation10 + $0xa0] ss:$16 sps:$4 sm:$0xff]   ;;  %v8065_v29 = vld [vmem:[#allocation10 + $0x8c] ss:$16 sps:$4 sm:$0xff]  }
 0x5a0   : > { %v8416_v51 = vpop.eup %8415  ;;  %8425 = vrcp.f32 %v3734_v40  ;;  %v10112_v55 = vpack.c.bf16 %v4028_v9, %v4025_v25  ;;  %4753 = vmatpush1.bf16.msra.mxu0 %v8036_v21  ;;  %v8068_v49 = vld [vmem:[#allocation10 + $0xac] ss:$16 sps:$4 sm:$0xff]   ;;  %v8069_v25 = vld [vmem:[#allocation10 + $0xc8] ss:$16 sps:$4 sm:$0xff]   ;;  %v8083_v18 = vld [vmem:[#allocation10 + $0x224] ss:$16 sps:$4 sm:$0xff]  }
 0x5a1   : > { %v3891_v34 = vpack.c.bf16 %v3856_v23, %v3855_v12  ;;  %4754 = vmatprep.subr.bf16.mxu0 %v8041_v37  ;;  %v3857_v0 = vmul.f32 %v8416_v51, %v10034_v33  ;;  %v8071_v21 = vld [vmem:[#allocation10 + $0xcc] ss:$16 sps:$4 sm:$0xff]   ;;  %v8075_v37 = vld [vmem:[#allocation10 + $0x200] ss:$16 sps:$4 sm:$0xff]   ;;  %v8089_v9 = vld [vmem:[#allocation10 + $0x244] ss:$16 sps:$4 sm:$0xff]  }
 0x5a2   : > { %v8418_v46 = vpop.eup %8417  ;;  %4413 = vmatmul.mubr.bf16.gmra.mrb[168].mxu0 %v10102_v58  ;;  %v8074_v31 = vld [vmem:[#allocation10 + $0xec] ss:$16 sps:$4 sm:$0xff]   ;;  %v8081_v40 = vld [vmem:[#allocation10 + $0x220] ss:$16 sps:$4 sm:$0xff]   ;;  %v8095_v12 = vld [vmem:[#allocation10 + $0x264] ss:$16 sps:$4 sm:$0xff]  }
 0x5a3   : > { %7253 = vmatprep.mubr.bf16.mxu1 %v3891_v34  ;;  %v3858_v44 = vmul.f32 %v8418_v46, %v10040_v15  ;;  %4422 = vmatprep.mubr.bf16.mxu0 %v8668_v26  ;;  %v8420_v48 = vpop.eup %8419  ;;  %v8053_v15 = vld [vmem:[#allocation10 + $0xe4] ss:$16 sps:$4 sm:$0xff]   ;;  %v8080_v54 = vld [vmem:[#allocation10 + $0x20c] ss:$16 sps:$4 sm:$0xff]   ;;  %v8093_v23 = vld [vmem:[#allocation10 + $0x260] ss:$16 sps:$4 sm:$0xff]  }
 0x5a4   : > { %4755 = vmatpush1.bf16.msra.mxu0 %v8039_v16  ;;  %v3859_v62 = vmul.f32 %v8420_v48, %v10042_v63  ;;  %v8101_v51 = vld [vmem:[#allocation10 + $0x284] ss:$16 sps:$4 sm:$0xff]   ;;  %v8099_v16 = vld [vmem:[#allocation10 + $0x280] ss:$16 sps:$4 sm:$0xff]   ;;  %v8078_v48 = vld [vmem:[#allocation10 + $0x208] ss:$16 sps:$4 sm:$0xff]  }
 0x5a5   : > { %v3892_v4 = vpack.c.bf16 %v3858_v44, %v3857_v0  ;;  %4756 = vmatprep.subr.bf16.mxu0 %v8044_v61  ;;  %v8105_v34 = vld [vmem:[#allocation10 + $0x2a0] ss:$16 sps:$4 sm:$0xff]   ;;  %v8113_v61 = vld [vmem:[#allocation10 + $0x2c4] ss:$16 sps:$4 sm:$0xff]  }
 0x5a6   : > { %v8422_v17 = vpop.eup %8421  ;;  %v8111_v46 = vld [vmem:[#allocation10 + $0x2c0] ss:$16 sps:$4 sm:$0xff]   ;;  %v8125_v44 = vld [vmem:[#allocation10 + $0x304] ss:$16 sps:$4 sm:$0xff]  }
 0x5a7   : > { %7254 = vmatmul.mubr.bf16.gmra.mrb[152].mxu1 %v3892_v4  ;;  %v3860_v2 = vmul.f32 %v8422_v17, %v10048_v14  ;;  %v8424_v45 = vpop.eup %8423  ;;  %v8051_v14 = vld [vmem:[#allocation10 + $0xe0] ss:$16 sps:$4 sm:$0xff]   ;;  %v8084_v4 = vld [vmem:[#allocation10 + $0x228] ss:$16 sps:$4 sm:$0xff]  }
 0x5a8   : > { %4757 = vmatpush1.bf16.msra.mxu0 %v8042_v5  ;;  %v3861_v39 = vmul.f32 %v8424_v45, %v10046_v36  ;;  %v8045_v36 = vld [vmem:[#allocation10 + $0x8] ss:$16 sps:$4 sm:$0xff]   ;;  %v8117_v0 = vld [vmem:[#allocation10 + $0x2e0] ss:$16 sps:$4 sm:$0xff]   ;;  %v8086_v5 = vld [vmem:[#allocation10 + $0x22c] ss:$16 sps:$4 sm:$0xff]  }
 0x5a9   : > { %v3893_v33 = vpack.c.bf16 %v3860_v2, %v3859_v62  ;;  %4758 = vmatprep.subr.bf16.mxu0 %v8050_v1  ;;  %v8092_v1 = vld [vmem:[#allocation10 + $0x24c] ss:$16 sps:$4 sm:$0xff]   ;;  %v8090_v17 = vld [vmem:[#allocation10 + $0x248] ss:$16 sps:$4 sm:$0xff]  }
 0x5aa   : > { %v8426_v53 = vpop.eup %8425  ;;  %4423 = vmatmul.mubr.bf16.gmra.mrb[172].mxu0 %v10098_v19  ;;  %v8098_v62 = vld [vmem:[#allocation10 + $0x26c] ss:$16 sps:$4 sm:$0xff]   ;;  %v8102_v45 = vld [vmem:[#allocation10 + $0x288] ss:$16 sps:$4 sm:$0xff]  }
 0x5ab   : > { %7257 = vmatprep.mubr.bf16.mxu1 %v3893_v33  ;;  %v3862_v57 = vmul.f32 %v8426_v53, %v10052_v27  ;;  %4432 = vmatprep.mubr.bf16.mxu0 %v8668_v26  ;;  %v8056_v27 = vld [vmem:[#allocation10 + $0x2c] ss:$16 sps:$4 sm:$0xff]  }
 0x5ac   : > { %v7227_v42 = vpop.f32.mrb[124].mxu1  ;;  %4759 = vmatpush1.bf16.msra.mxu0 %v8048_v13  ;;  %v8104_v2 = vld [vmem:[#allocation10 + $0x28c] ss:$16 sps:$4 sm:$0xff]  }
 0x5ad   : > { %v4041_v63 = vpop.f32.mrb[125].mxu1  ;;  %v3894_v20 = vpack.c.bf16 %v3862_v57, %v3861_v39  ;;  %4760 = vmatprep.subr.bf16.mxu0 %v8053_v15  ;;  %v8110_v13 = vld [vmem:[#allocation10 + $0x2ac] ss:$16 sps:$4 sm:$0xff]   ;;  %v8114_v15 = vld [vmem:[#allocation10 + $0x2c8] ss:$16 sps:$4 sm:$0xff]  }
 0x5ae   : > { %v7228_v38 = vpop.f32.mrb[126].mxu1  ;;  %v8116_v33 = vld [vmem:[#allocation10 + $0x2cc] ss:$16 sps:$4 sm:$0xff]  }
 0x5af   : > { %v10124_v6 = vpack.c.bf16 %v7228_v38, %v7227_v42  ;;  %v4044_v32 = vpop.f32.mrb[127].mxu1  ;;  %7258 = vmatmul.mubr.bf16.gmra.mrb[156].mxu1 %v3894_v20  ;;  %v8122_v53 = vld [vmem:[#allocation10 + $0x2ec] ss:$16 sps:$4 sm:$0xff]   ;;  %v8126_v38 = vld [vmem:[#allocation10 + $0x308] ss:$16 sps:$4 sm:$0xff]  }
 0x5b0   : > { %v10126_v56 = vpack.c.bf16 %v4044_v32, %v4041_v63  ;;  %4505 = vmatprep.mubr.bf16.mxu1 %v8668_v26  ;;  %4761 = vmatpush1.bf16.msra.mxu0 %v8051_v14  ;;  %v8128_v42 = vld [vmem:[#allocation10 + $0x30c] ss:$16 sps:$4 sm:$0xff]  }
 0x5b1   : > { %5140 = vmatprep.subr.bf16.mxu0 %v8077_v28  ;;  %v8131_v28 = vld [vmem:[#allocation10 + $0x324] ss:$16 sps:$4 sm:$0xff]   ;;  %v8140_v32 = vld [vmem:[#allocation10 + $0x34c] ss:$16 sps:$4 sm:$0xff]  }
 0x5b2   : > { %4433 = vmatmul.mubr.bf16.gmra.mrb[176].mxu0 %v10112_v55 }
 0x5b3   : > { %4442 = vmatprep.mubr.bf16.mxu0 %v8668_v26 }
 0x5b7   : > { %4506 = vmatmul.mubr.bf16.vlgmr.msra.gmra.mrb[160].mxu1 %v10092_v3  ;;  %v8060_v3 = vld [vmem:[#allocation10 + $0x68] ss:$16 sps:$4 sm:$0xff]  }
 0x5b8   : > { %4515 = vmatprep.mubr.bf16.mxu1 %v8668_v26  ;;  %4860 = vmatpush1.bf16.msra.mxu1 %v8045_v36  ;;  %v8138_v36 = vld [vmem:[#allocation10 + $0x348] ss:$16 sps:$4 sm:$0xff]  }
 0x5b9   : > { %4861 = vmatprep.subr.bf16.mxu1 %v8056_v27  ;;  %v8143_v27 = vld [vmem:[#allocation10 + $0x364] ss:$16 sps:$4 sm:$0xff]  }
 0x5ba   : > { %4443 = vmatmul.mubr.bf16.gmra.mrb[180].mxu0 %v10108_v8 }
 0x5bb   : > { %4452 = vmatprep.mubr.bf16.mxu0 %v8668_v26 }
 0x5bc   : > { %4862 = vmatpush1.bf16.msra.mxu1 %v8054_v24  ;;  %v8146_v24 = vld [vmem:[#allocation10 + $0x36c] ss:$16 sps:$4 sm:$0xff]  }
 0x5bd   : > { %4863 = vmatprep.subr.bf16.mxu1 %v8059_v52  ;;  %v8141_v52 = vld [vmem:[#allocation10 + $0x360] ss:$16 sps:$4 sm:$0xff]  }
 0x5bf   : > { %4516 = vmatmul.mubr.bf16.gmra.mrb[164].mxu1 %v10088_v22  ;;  %v8066_v22 = vld [vmem:[#allocation10 + $0xa8] ss:$16 sps:$4 sm:$0xff]  }
 0x5c0   : > { %4525 = vmatprep.mubr.bf16.mxu1 %v8668_v26  ;;  %4864 = vmatpush1.bf16.msra.mxu1 %v8057_v50  ;;  %v8144_v50 = vld [vmem:[#allocation10 + $0x368] ss:$16 sps:$4 sm:$0xff]  }
 0x5c1   : > { %4865 = vmatprep.subr.bf16.mxu1 %v8062_v35 }
 0x5c2   : > { %4453 = vmatmul.mubr.bf16.gmra.mrb[184].mxu0 %v10126_v56 }
 0x5c3   : > { %4462 = vmatprep.mubr.bf16.mxu0 %v8668_v26 }
 0x5c4   : > { %4866 = vmatpush1.bf16.msra.mxu1 %v8060_v3  ;;  %v8149_v3 = vld [vmem:[#allocation10 + $0x384] ss:$16 sps:$4 sm:$0xff]  }
 0x5c5   : > { %4867 = vmatprep.subr.bf16.mxu1 %v8065_v29  ;;  %v8152_v29 = vld [vmem:[#allocation10 + $0x38c] ss:$16 sps:$4 sm:$0xff]  }
 0x5c7   : > { %4526 = vmatmul.mubr.bf16.gmra.mrb[168].mxu1 %v10102_v58  ;;  %v8072_v58 = vld [vmem:[#allocation10 + $0xe8] ss:$16 sps:$4 sm:$0xff]  }
 0x5c8   : > { %4535 = vmatprep.mubr.bf16.mxu1 %v8668_v26  ;;  %4868 = vmatpush1.bf16.msra.mxu1 %v8063_v47 }
 0x5c9   : > { %4869 = vmatprep.subr.bf16.mxu1 %v8068_v49 }
 0x5ca   : > { %4463 = vmatmul.mubr.bf16.gmra.mrb[188].mxu0 %v10124_v6 }
 0x5cb   : > { %4778 = vmatprep.mubr.bf16.mxu0 %v8668_v26 }
 0x5cc   : > { %4870 = vmatpush1.bf16.msra.mxu1 %v8066_v22 }
 0x5cd   : > { %4871 = vmatprep.subr.bf16.mxu1 %v8071_v21 }
 0x5cf   : > { %4536 = vmatmul.mubr.bf16.gmra.mrb[172].mxu1 %v10098_v19  ;;  %v8087_v19 = vld [vmem:[#allocation10 + $0x240] ss:$16 sps:$4 sm:$0xff]  }
 0x5d0   : > { %4545 = vmatprep.mubr.bf16.mxu1 %v8668_v26  ;;  %4872 = vmatpush1.bf16.msra.mxu1 %v8069_v25 }
 0x5d1   : > { %4873 = vmatprep.subr.bf16.mxu1 %v8074_v31  ;;  %v8147_v31 = vld [vmem:[#allocation10 + $0x380] ss:$16 sps:$4 sm:$0xff]  }
 0x5d2   : > { %4779 = vmatmul.mubr.bf16.vlgmr.msra.gmra.mrb[160].mxu0 %v10062_v7 }
 0x5d3   : > { %4788 = vmatprep.mubr.bf16.mxu0 %v8668_v26  ;;  %5141 = vmatpush1.bf16.msra.mxu0 %v8075_v37  ;;  %v8150_v37 = vld [vmem:[#allocation10 + $0x388] ss:$16 sps:$4 sm:$0xff]  }
 0x5d4   : > { %4874 = vmatpush1.bf16.msra.mxu1 %v8072_v58  ;;  %5142 = vmatprep.subr.bf16.mxu0 %v8083_v18  ;;  %v8155_v58 = vld [vmem:[#allocation10 + $0x3a4] ss:$16 sps:$4 sm:$0xff]   ;;  %v8158_v18 = vld [vmem:[#allocation10 + $0x3ac] ss:$16 sps:$4 sm:$0xff]  }
 0x5d5   : > { %5253 = vmatprep.subr.bf16.mxu1 %v8080_v54 }
 0x5d7   : > { %4546 = vmatmul.mubr.bf16.gmra.mrb[176].mxu1 %v10112_v55  ;;  %5143 = vmatpush1.bf16.msra.mxu0 %v8081_v40  ;;  %v8107_v55 = vld [vmem:[#allocation10 + $0x2a4] ss:$16 sps:$4 sm:$0xff]   ;;  %v8153_v40 = vld [vmem:[#allocation10 + $0x3a0] ss:$16 sps:$4 sm:$0xff]  }
 0x5d8   : > { %4555 = vmatprep.mubr.bf16.mxu1 %v8668_v26  ;;  %5144 = vmatprep.subr.bf16.mxu0 %v8089_v9  ;;  %v8156_v9 = vld [vmem:[#allocation10 + $0x3a8] ss:$16 sps:$4 sm:$0xff]  }
 0x5da   : > { %4789 = vmatmul.mubr.bf16.gmra.mrb[164].mxu0 %v10060_v41 }
 0x5db   : > { %4798 = vmatprep.mubr.bf16.mxu0 %v8668_v26  ;;  %5145 = vmatpush1.bf16.msra.mxu0 %v8087_v19 }
 0x5dc   : > { %5146 = vmatprep.subr.bf16.mxu0 %v8095_v12  ;;  %v8161_v12 = vld [vmem:[#allocation10 + $0x3c4] ss:$16 sps:$4 sm:$0xff]  }
 0x5df   : > { %4556 = vmatmul.mubr.bf16.gmra.mrb[180].mxu1 %v10108_v8  ;;  %5147 = vmatpush1.bf16.msra.mxu0 %v8093_v23  ;;  %v8119_v8 = vld [vmem:[#allocation10 + $0x2e4] ss:$16 sps:$4 sm:$0xff]   ;;  %v8164_v23 = vld [vmem:[#allocation10 + $0x3cc] ss:$16 sps:$4 sm:$0xff]  }
 0x5e0   : > { %4565 = vmatprep.mubr.bf16.mxu1 %v8668_v26  ;;  %5148 = vmatprep.subr.bf16.mxu0 %v8101_v51 }
 0x5e2   : > { %4799 = vmatmul.mubr.bf16.gmra.mrb[168].mxu0 %v10068_v30 }
 0x5e3   : > { %4808 = vmatprep.mubr.bf16.mxu0 %v8668_v26  ;;  %5149 = vmatpush1.bf16.msra.mxu0 %v8099_v16 }
 0x5e4   : > { %5150 = vmatprep.subr.bf16.mxu0 %v8107_v55 }
 0x5e7   : > { %4566 = vmatmul.mubr.bf16.gmra.mrb[184].mxu1 %v10126_v56  ;;  %5151 = vmatpush1.bf16.msra.mxu0 %v8105_v34  ;;  %v8135_v56 = vld [vmem:[#allocation10 + $0x340] ss:$16 sps:$4 sm:$0xff]  }
 0x5e8   : > { %4575 = vmatprep.mubr.bf16.mxu1 %v8668_v26  ;;  %5152 = vmatprep.subr.bf16.mxu0 %v8113_v61  ;;  %v8159_v61 = vld [vmem:[#allocation10 + $0x3c0] ss:$16 sps:$4 sm:$0xff]  }
 0x5ea   : > { %4809 = vmatmul.mubr.bf16.gmra.mrb[172].mxu0 %v10066_v11 }
 0x5eb   : > { %4818 = vmatprep.mubr.bf16.mxu0 %v8668_v26  ;;  %5153 = vmatpush1.bf16.msra.mxu0 %v8111_v46  ;;  %v8162_v46 = vld [vmem:[#allocation10 + $0x3c8] ss:$16 sps:$4 sm:$0xff]  }
 0x5ec   : > { %5154 = vmatprep.subr.bf16.mxu0 %v8119_v8  ;;  %v8167_v8 = vld [vmem:[#allocation10 + $0x3e4] ss:$16 sps:$4 sm:$0xff]  }
 0x5ef   : > { %4576 = vmatmul.mubr.bf16.gmra.mrb[188].mxu1 %v10124_v6  ;;  %5155 = vmatpush1.bf16.msra.mxu0 %v8117_v0  ;;  %v8132_v6 = vld [vmem:[#allocation10 + $0x328] ss:$16 sps:$4 sm:$0xff]   ;;  %v8170_v0 = vld [vmem:[#allocation10 + $0x3ec] ss:$16 sps:$4 sm:$0xff]  }
 0x5f0   : > { %4891 = vmatprep.mubr.bf16.mxu1 %v8668_v26  ;;  %5598 = vmatprep.subr.bf16.mxu0 %v8125_v44 }
 0x5f2   : > { %4819 = vmatmul.mubr.bf16.gmra.mrb[176].mxu0 %v10076_v60 }
 0x5f3   : > { %4828 = vmatprep.mubr.bf16.mxu0 %v8668_v26 }
 0x5f7   : > { %4892 = vmatmul.mubr.bf16.vlgmr.msra.gmra.mrb[160].mxu1 %v10062_v7  ;;  %v8096_v7 = vld [vmem:[#allocation10 + $0x268] ss:$16 sps:$4 sm:$0xff]  }
 0x5f8   : > { %4901 = vmatprep.mubr.bf16.mxu1 %v8668_v26  ;;  %5254 = vmatpush1.bf16.msra.mxu1 %v8078_v48  ;;  %v8165_v48 = vld [vmem:[#allocation10 + $0x3e0] ss:$16 sps:$4 sm:$0xff]  }
 0x5f9   : > { %5255 = vmatprep.subr.bf16.mxu1 %v8086_v5  ;;  %v8168_v5 = vld [vmem:[#allocation10 + $0x3e8] ss:$16 sps:$4 sm:$0xff]  }
 0x5fa   : > { %4829 = vmatmul.mubr.bf16.gmra.mrb[180].mxu0 %v10072_v43 }
 0x5fb   : > { %4838 = vmatprep.mubr.bf16.mxu0 %v8668_v26 }
 0x5fc   : > { %5256 = vmatpush1.bf16.msra.mxu1 %v8084_v4 }
 0x5fd   : > { %5257 = vmatprep.subr.bf16.mxu1 %v8092_v1 }
 0x5ff   : > { %4902 = vmatmul.mubr.bf16.gmra.mrb[164].mxu1 %v10060_v41  ;;  %v8108_v41 = vld [vmem:[#allocation10 + $0x2a8] ss:$16 sps:$4 sm:$0xff]  }
 0x600   : > { %4911 = vmatprep.mubr.bf16.mxu1 %v8668_v26  ;;  %5258 = vmatpush1.bf16.msra.mxu1 %v8090_v17 }
 0x601   : > { %5259 = vmatprep.subr.bf16.mxu1 %v8098_v62 }
 0x602   : > { %4839 = vmatmul.mubr.bf16.gmra.mrb[184].mxu0 %v10084_v59 }
 0x603   : > { %4848 = vmatprep.mubr.bf16.mxu0 %v8668_v26 }
 0x604   : > { %5260 = vmatpush1.bf16.msra.mxu1 %v8096_v7 }
 0x605   : > { %5261 = vmatprep.subr.bf16.mxu1 %v8104_v2 }
 0x607   : > { %4912 = vmatmul.mubr.bf16.gmra.mrb[168].mxu1 %v10068_v30  ;;  %v8120_v30 = vld [vmem:[#allocation10 + $0x2e8] ss:$16 sps:$4 sm:$0xff]  }
 0x608   : > { %4921 = vmatprep.mubr.bf16.mxu1 %v8668_v26  ;;  %5262 = vmatpush1.bf16.msra.mxu1 %v8102_v45 }
 0x609   : > { %5263 = vmatprep.subr.bf16.mxu1 %v8110_v13 }
 0x60a   : > { %4849 = vmatmul.mubr.bf16.gmra.mrb[188].mxu0 %v10080_v10 }
 0x60b   : > { %5172 = vmatprep.mubr.bf16.mxu0 %v8668_v26 }
 0x60c   : > { %5264 = vmatpush1.bf16.msra.mxu1 %v8108_v41 }
 0x60d   : > { %5265 = vmatprep.subr.bf16.mxu1 %v8116_v33 }
 0x60f   : > { %4922 = vmatmul.mubr.bf16.gmra.mrb[172].mxu1 %v10066_v11 }
 0x610   : > { %4931 = vmatprep.mubr.bf16.mxu1 %v8668_v26  ;;  %5266 = vmatpush1.bf16.msra.mxu1 %v8114_v15 }
 0x611   : > { %5267 = vmatprep.subr.bf16.mxu1 %v8122_v53 }
 0x614   : > { %5268 = vmatpush1.bf16.msra.mxu1 %v8120_v30 }
 0x615   : > { %5711 = vmatprep.subr.bf16.mxu1 %v8128_v42 }
 0x617   : > { %4932 = vmatmul.mubr.bf16.gmra.mrb[176].mxu1 %v10076_v60  ;;  %v8123_v60 = vld [vmem:[#allocation10 + $0x300] ss:$16 sps:$4 sm:$0xff]  }
 0x618   : > { %4941 = vmatprep.mubr.bf16.mxu1 %v8668_v26 }
 0x61f   : > { %4942 = vmatmul.mubr.bf16.gmra.mrb[180].mxu1 %v10072_v43  ;;  %v8134_v43 = vld [vmem:[#allocation10 + $0x32c] ss:$16 sps:$4 sm:$0xff]  }
 0x620   : > { %4951 = vmatprep.mubr.bf16.mxu1 %v8668_v26 }
 0x627   : > { %4952 = vmatmul.mubr.bf16.gmra.mrb[184].mxu1 %v10084_v59  ;;  %v8129_v59 = vld [vmem:[#allocation10 + $0x320] ss:$16 sps:$4 sm:$0xff]  }
 0x628   : > { %4961 = vmatprep.mubr.bf16.mxu1 %v8668_v26 }
 0x62f   : > { %4962 = vmatmul.mubr.bf16.gmra.mrb[188].mxu1 %v10080_v10  ;;  %v8137_v10 = vld [vmem:[#allocation10 + $0x344] ss:$16 sps:$4 sm:$0xff]  }
 0x630   : > { %5285 = vmatprep.mubr.bf16.mxu1 %v8668_v26 }
 0x642   : > { %v7231_v11 = vpop.f32.mrb[128].mxu1 }
 0x643   : > { %v4057_v39 = vpop.f32.mrb[129].mxu1 }
 0x644   : > { %v7232_v57 = vpop.f32.mrb[130].mxu1 }
 0x645   : > { %v4973_v63 = vpack.c.bf16 %v7232_v57, %v7231_v11  ;;  %v4060_v14 = vpop.f32.mrb[131].mxu1 }
 0x646   : > { %v4972_v20 = vpack.c.bf16 %v4060_v14, %v4057_v39 }
 0x648   : > { %5173 = vmatmul.mubr.bf16.vlgmr.msra.gmra.mrb[160].mxu0 %v4972_v20  ;;  %5286 = vmatmul.mubr.bf16.vlgmr.msra.gmra.mrb[160].mxu1 %v4972_v20 }
 0x649   : > { %5599 = vmatpush1.bf16.msra.mxu0 %v8123_v60  ;;  %5712 = vmatpush1.bf16.msra.mxu1 %v8126_v38 }
 0x64a   : > { %5182 = vmatprep.mubr.bf16.mxu0 %v8668_v26  ;;  %5295 = vmatprep.mubr.bf16.mxu1 %v8668_v26 }
 0x64b   : > { %5600 = vmatprep.subr.bf16.mxu0 %v8131_v28  ;;  %5713 = vmatprep.subr.bf16.mxu1 %v8134_v43 }
 0x64d   : > { %5601 = vmatpush1.bf16.msra.mxu0 %v8129_v59  ;;  %5714 = vmatpush1.bf16.msra.mxu1 %v8132_v6 }
 0x64e   : > { %5602 = vmatprep.subr.bf16.mxu0 %v8137_v10  ;;  %5715 = vmatprep.subr.bf16.mxu1 %v8140_v32 }
 0x650   : > { %5183 = vmatmul.mubr.bf16.gmra.mrb[164].mxu0 %v4973_v63  ;;  %5296 = vmatmul.mubr.bf16.gmra.mrb[164].mxu1 %v4973_v63 }
 0x651   : > { %5192 = vmatprep.mubr.bf16.mxu0 %v8668_v26  ;;  %5305 = vmatprep.mubr.bf16.mxu1 %v8668_v26 }
 0x652   : > { %5603 = vmatpush1.bf16.msra.mxu0 %v8135_v56  ;;  %5716 = vmatpush1.bf16.msra.mxu1 %v8138_v36  ;;  %v7235_v35 = vpop.f32.mrb[132].mxu1  ;;  %v5888_v36 = vld [vmem:[%s10591_s26] sm:$0xf] }
 0x653   : > { %5604 = vmatprep.subr.bf16.mxu0 %v8143_v27  ;;  %5717 = vmatprep.subr.bf16.mxu1 %v8146_v24  ;;  %v4073_v47 = vpop.f32.mrb[133].mxu1  ;;  %v10592_v27 = vld [vmem:[#allocation18_spill] sm:$0xff] }
 0x654   : > { %v7236_v49 = vpop.f32.mrb[134].mxu1  ;;  %v10593_v24 = vsub.s32 0, %v10592_v27 }
 0x655   : > { %v4975_v22 = vpack.c.bf16 %v7236_v49, %v7235_v35  ;;  %v4076_v21 = vpop.f32.mrb[135].mxu1 }
 0x656   : > { %5605 = vmatpush1.bf16.msra.mxu0 %v8141_v52  ;;  %5718 = vmatpush1.bf16.msra.mxu1 %v8144_v50  ;;  %v4974_v25 = vpack.c.bf16 %v4076_v21, %v4073_v47  ;;  %v10220_v52 = vrot.slane %v5888_v36, %v10593_v24  ;;  %v10594_v50 = vsub.s32 2, %v10592_v27 }
 0x657   : > { %5606 = vmatprep.subr.bf16.mxu0 %v8149_v3  ;;  %5719 = vmatprep.subr.bf16.mxu1 %v8152_v29  ;;  %v10595_v3 = vsub.s32 1, %v10592_v27 }
 0x658   : > { %5193 = vmatmul.mubr.bf16.gmra.mrb[168].mxu0 %v4974_v25  ;;  %5306 = vmatmul.mubr.bf16.gmra.mrb[168].mxu1 %v4974_v25  ;;  %v10224_v35 = vrot.slane %v5888_v36, %v10594_v50 }
 0x659   : > { %5202 = vmatprep.mubr.bf16.mxu0 %v8668_v26  ;;  %5315 = vmatprep.mubr.bf16.mxu1 %v8668_v26  ;;  %v10228_v29 = vrot.slane %v5888_v36, %v10595_v3 }
 0x65a   : > { %v7239_v54 = vpop.f32.mrb[136].mxu1  ;;  %5607 = vmatpush1.bf16.msra.mxu0 %v8147_v31  ;;  %5720 = vmatpush1.bf16.msra.mxu1 %v8150_v37 }
 0x65b   : > { %v4089_v19 = vpop.f32.mrb[137].mxu1  ;;  %5608 = vmatprep.subr.bf16.mxu0 %v8155_v58  ;;  %5721 = vmatprep.subr.bf16.mxu1 %v8158_v18 }
 0x65c   : > { %v7240_v51 = vpop.f32.mrb[138].mxu1 }
 0x65d   : > { %v4977_v16 = vpack.c.bf16 %v7240_v51, %v7239_v54  ;;  %v4092_v55 = vpop.f32.mrb[139].mxu1 }
 0x65e   : > { %v4976_v34 = vpack.c.bf16 %v4092_v55, %v4089_v19  ;;  %5609 = vmatpush1.bf16.msra.mxu0 %v8153_v40  ;;  %5722 = vmatpush1.bf16.msra.mxu1 %v8156_v9 }
 0x65f   : > { %5610 = vmatprep.subr.bf16.mxu0 %v8161_v12  ;;  %5723 = vmatprep.subr.bf16.mxu1 %v8164_v23 }
 0x660   : > { %5203 = vmatmul.mubr.bf16.gmra.mrb[172].mxu0 %v4975_v22  ;;  %5316 = vmatmul.mubr.bf16.gmra.mrb[172].mxu1 %v4975_v22 }
 0x661   : > { %5212 = vmatprep.mubr.bf16.mxu0 %v8668_v26  ;;  %5325 = vmatprep.mubr.bf16.mxu1 %v8668_v26 }
 0x662   : > { %v7243_v44 = vpop.f32.mrb[140].mxu1  ;;  %5611 = vmatpush1.bf16.msra.mxu0 %v8159_v61  ;;  %5724 = vmatpush1.bf16.msra.mxu1 %v8162_v46 }
 0x663   : > { %v4105_v4 = vpop.f32.mrb[141].mxu1  ;;  %5612 = vmatprep.subr.bf16.mxu0 %v8167_v8  ;;  %5725 = vmatprep.subr.bf16.mxu1 %v8170_v0 }
 0x664   : > { %v7244_v1 = vpop.f32.mrb[142].mxu1 }
 0x665   : > { %v4979_v17 = vpack.c.bf16 %v7244_v1, %v7243_v44  ;;  %v4108_v62 = vpop.f32.mrb[143].mxu1 }
 0x666   : > { %v4978_v7 = vpack.c.bf16 %v4108_v62, %v4105_v4  ;;  %5613 = vmatpush1.bf16.msra.mxu0 %v8165_v48  ;;  %5726 = vmatpush1.bf16.msra.mxu1 %v8168_v5 }
 0x668   : > { %5213 = vmatmul.mubr.bf16.gmra.mrb[176].mxu0 %v4976_v34  ;;  %5326 = vmatmul.mubr.bf16.gmra.mrb[176].mxu1 %v4976_v34 }
 0x669   : > { %5222 = vmatprep.mubr.bf16.mxu0 %v8668_v26  ;;  %5335 = vmatprep.mubr.bf16.mxu1 %v8668_v26 }
 0x66a   : > { %v7247_v2 = vpop.f32.mrb[144].mxu1 }
 0x66b   : > { %v4121_v45 = vpop.f32.mrb[145].mxu1 }
 0x66c   : > { %v7248_v13 = vpop.f32.mrb[146].mxu1 }
 0x66d   : > { %v5431_v41 = vpack.c.bf16 %v7248_v13, %v7247_v2  ;;  %v4124_v33 = vpop.f32.mrb[147].mxu1 }
 0x66e   : > { %v5430_v15 = vpack.c.bf16 %v4124_v33, %v4121_v45 }
 0x670   : > { %5223 = vmatmul.mubr.bf16.gmra.mrb[180].mxu0 %v4977_v16  ;;  %5336 = vmatmul.mubr.bf16.gmra.mrb[180].mxu1 %v4977_v16 }
 0x671   : > { %5232 = vmatprep.mubr.bf16.mxu0 %v8668_v26  ;;  %5345 = vmatprep.mubr.bf16.mxu1 %v8668_v26 }
 0x672   : > { %v7251_v53 = vpop.f32.mrb[148].mxu1 }
 0x673   : > { %v4137_v30 = vpop.f32.mrb[149].mxu1 }
 0x674   : > { %v7252_v42 = vpop.f32.mrb[150].mxu1 }
 0x675   : > { %v5433_v11 = vpack.c.bf16 %v7252_v42, %v7251_v53  ;;  %v4140_v39 = vpop.f32.mrb[151].mxu1 }
 0x676   : > { %v5432_v57 = vpack.c.bf16 %v4140_v39, %v4137_v30 }
 0x678   : > { %5233 = vmatmul.mubr.bf16.gmra.mrb[184].mxu0 %v4978_v7  ;;  %5346 = vmatmul.mubr.bf16.gmra.mrb[184].mxu1 %v4978_v7 }
 0x679   : > { %5242 = vmatprep.mubr.bf16.mxu0 %v8668_v26  ;;  %5355 = vmatprep.mubr.bf16.mxu1 %v8668_v26 }
 0x67a   : > { %v7255_v63 = vpop.f32.mrb[152].mxu1 }
 0x67b   : > { %v4153_v14 = vpop.f32.mrb[153].mxu1 }
 0x67c   : > { %v7256_v60 = vpop.f32.mrb[154].mxu1 }
 0x67d   : > { %v5435_v38 = vpack.c.bf16 %v7256_v60, %v7255_v63  ;;  %v4156_v20 = vpop.f32.mrb[155].mxu1 }
 0x67e   : > { %v5434_v28 = vpack.c.bf16 %v4156_v20, %v4153_v14 }
 0x680   : > { %5243 = vmatmul.mubr.bf16.gmra.mrb[188].mxu0 %v4979_v17  ;;  %5356 = vmatmul.mubr.bf16.gmra.mrb[188].mxu1 %v4979_v17 }
 0x681   : > { %5630 = vmatprep.mubr.bf16.mxu0 %v8668_v26  ;;  %5743 = vmatprep.mubr.bf16.mxu1 %v8668_v26 }
 0x682   : > { %v7259_v43 = vpop.f32.mrb[156].mxu1 }
 0x683   : > { %v4169_v59 = vpop.f32.mrb[157].mxu1 }
 0x684   : > { %v7260_v6 = vpop.f32.mrb[158].mxu1 }
 0x685   : > { %v5437_v10 = vpack.c.bf16 %v7260_v6, %v7259_v43  ;;  %v4172_v32 = vpop.f32.mrb[159].mxu1 }
 0x686   : > { %v5436_v56 = vpack.c.bf16 %v4172_v32, %v4169_v59 }
 0x688   : > { %5631 = vmatmul.mubr.bf16.vlgmr.msra.gmra.mrb[160].mxu0 %v5430_v15  ;;  %5744 = vmatmul.mubr.bf16.vlgmr.msra.gmra.mrb[160].mxu1 %v5430_v15 }
 0x689   : > { %5640 = vmatprep.mubr.bf16.mxu0 %v8668_v26  ;;  %5753 = vmatprep.mubr.bf16.mxu1 %v8668_v26 }
 0x690   : > { %5641 = vmatmul.mubr.bf16.gmra.mrb[164].mxu0 %v5431_v41  ;;  %5754 = vmatmul.mubr.bf16.gmra.mrb[164].mxu1 %v5431_v41 }
 0x691   : > { %5650 = vmatprep.mubr.bf16.mxu0 %v8668_v26  ;;  %5763 = vmatprep.mubr.bf16.mxu1 %v8668_v26 }
 0x698   : > { %5651 = vmatmul.mubr.bf16.gmra.mrb[168].mxu0 %v5432_v57  ;;  %5764 = vmatmul.mubr.bf16.gmra.mrb[168].mxu1 %v5432_v57 }
 0x699   : > { %5660 = vmatprep.mubr.bf16.mxu0 %v8668_v26  ;;  %5773 = vmatprep.mubr.bf16.mxu1 %v8668_v26 }
 0x6a0   : > { %5661 = vmatmul.mubr.bf16.gmra.mrb[172].mxu0 %v5433_v11  ;;  %5774 = vmatmul.mubr.bf16.gmra.mrb[172].mxu1 %v5433_v11 }
 0x6a1   : > { %5670 = vmatprep.mubr.bf16.mxu0 %v8668_v26  ;;  %5783 = vmatprep.mubr.bf16.mxu1 %v8668_v26 }
 0x6a8   : > { %5671 = vmatmul.mubr.bf16.gmra.mrb[176].mxu0 %v5434_v28  ;;  %5784 = vmatmul.mubr.bf16.gmra.mrb[176].mxu1 %v5434_v28 }
 0x6a9   : > { %5680 = vmatprep.mubr.bf16.mxu0 %v8668_v26  ;;  %5793 = vmatprep.mubr.bf16.mxu1 %v8668_v26 }
 0x6b0   : > { %5681 = vmatmul.mubr.bf16.gmra.mrb[180].mxu0 %v5435_v38  ;;  %5794 = vmatmul.mubr.bf16.gmra.mrb[180].mxu1 %v5435_v38 }
 0x6b1   : > { %5690 = vmatprep.mubr.bf16.mxu0 %v8668_v26  ;;  %5803 = vmatprep.mubr.bf16.mxu1 %v8668_v26 }
 0x6b8   : > { %5691 = vmatmul.mubr.bf16.gmra.mrb[184].mxu0 %v5436_v56  ;;  %5804 = vmatmul.mubr.bf16.gmra.mrb[184].mxu1 %v5436_v56 }
 0x6b9   : > { %5700 = vmatprep.mubr.bf16.mxu0 %v8668_v26  ;;  %5813 = vmatprep.mubr.bf16.mxu1 %v8668_v26  ;;  %v10596_v26 = vsub.s32 3, %v10592_v27 }
 0x6bb   : > { %v10232_v47 = vrot.slane %v5888_v36, %v10596_v26 }
 0x6c0   : > { %5701 = vmatmul.mubr.bf16.gmra.mrb[188].mxu0 %v5437_v10  ;;  %5814 = vmatmul.mubr.bf16.gmra.mrb[188].mxu1 %v5437_v10 }
 0x75b   : > { %v5632_v49 = vpop.f32.mrb[160].mxu0  ;;  %v5745_v22 = vpop.f32.mrb[160].mxu1 }
 0x75c   : > { %v5910_v21 = vadd.f32 %v10220_v52, %v5632_v49  ;;  %v5912_v25 = vadd.f32 %v10224_v35, %v5745_v22  ;;  %v5634_v31 = vpop.f32.mrb[161].mxu0  ;;  %v5747_v37 = vpop.f32.mrb[161].mxu1 }
 0x75d   : > { %v5911_v58 = vadd.f32 %v10228_v29, %v5634_v31  ;;  %v5913_v18 = vadd.f32 %v10232_v47, %v5747_v37  ;;  %v5636_v54 = vpop.f32.mrb[162].mxu0  ;;  %v5749_v40 = vpop.f32.mrb[162].mxu1 }
 0x75e   : > { %v5914_v9 = vadd.f32 %v10220_v52, %v5636_v54  ;;  %v5916_v19 = vadd.f32 %v10224_v35, %v5749_v40  ;;  %v5638_v12 = vpop.f32.mrb[163].mxu0  ;;  %v5751_v23 = vpop.f32.mrb[163].mxu1 }
 0x75f   : > { %v6732_v51 = vpack.c.bf16 %v5911_v58, %v5910_v21  ;;  %v6733_v16 = vpack.c.bf16 %v5913_v18, %v5912_v25  ;;  %v5915_v55 = vadd.f32 %v10228_v29, %v5638_v12  ;;  %v5917_v34 = vadd.f32 %v10232_v47, %v5751_v23 }
 0x761   : > { %6166 = vst [vmem:[%s10244_s8] sm:$0xff] %v6732_v51  ;;  %6167 = vst [vmem:[%s10244_s8 + $0x8] sm:$0xff] %v6733_v16  ;;  %v6734_v61 = vpack.c.bf16 %v5915_v55, %v5914_v9  ;;  %v6735_v46 = vpack.c.bf16 %v5917_v34, %v5916_v19 }
 0x763   : > { %6168 = vst [vmem:[%s10244_s8 + $0x10] sm:$0xff] %v6734_v61  ;;  %6169 = vst [vmem:[%s10244_s8 + $0x18] sm:$0xff] %v6735_v46  ;;  %v5642_v8 = vpop.f32.mrb[164].mxu0  ;;  %v5755_v0 = vpop.f32.mrb[164].mxu1 }
 0x764   : > { %v5918_v44 = vadd.f32 %v10220_v52, %v5642_v8  ;;  %v5920_v48 = vadd.f32 %v10224_v35, %v5755_v0  ;;  %v5644_v5 = vpop.f32.mrb[165].mxu0  ;;  %v5757_v4 = vpop.f32.mrb[165].mxu1 }
 0x765   : > { %v5919_v1 = vadd.f32 %v10228_v29, %v5644_v5  ;;  %v5921_v17 = vadd.f32 %v10232_v47, %v5757_v4  ;;  %v5646_v62 = vpop.f32.mrb[166].mxu0  ;;  %v5759_v7 = vpop.f32.mrb[166].mxu1 }
 0x766   : > { %v5922_v2 = vadd.f32 %v10220_v52, %v5646_v62  ;;  %v5924_v45 = vadd.f32 %v10224_v35, %v5759_v7  ;;  %v5648_v13 = vpop.f32.mrb[167].mxu0  ;;  %v5761_v41 = vpop.f32.mrb[167].mxu1 }
 0x767   : > { %v6736_v33 = vpack.c.bf16 %v5919_v1, %v5918_v44  ;;  %v6737_v15 = vpack.c.bf16 %v5921_v17, %v5920_v48  ;;  %v5923_v53 = vadd.f32 %v10228_v29, %v5648_v13  ;;  %v5925_v30 = vadd.f32 %v10232_v47, %v5761_v41 }
 0x769   : > { %6170 = vst [vmem:[%s10244_s8 + $0x20] sm:$0xff] %v6736_v33  ;;  %6171 = vst [vmem:[%s10244_s8 + $0x28] sm:$0xff] %v6737_v15  ;;  %v6738_v42 = vpack.c.bf16 %v5923_v53, %v5922_v2  ;;  %v6739_v11 = vpack.c.bf16 %v5925_v30, %v5924_v45 }
 0x76b   : > { %6172 = vst [vmem:[%s10244_s8 + $0x30] sm:$0xff] %v6738_v42  ;;  %6173 = vst [vmem:[%s10244_s8 + $0x38] sm:$0xff] %v6739_v11  ;;  %v5652_v39 = vpop.f32.mrb[168].mxu0  ;;  %v5765_v57 = vpop.f32.mrb[168].mxu1 }
 0x76c   : > { %v5926_v63 = vadd.f32 %v10220_v52, %v5652_v39  ;;  %v5928_v14 = vadd.f32 %v10224_v35, %v5765_v57  ;;  %v5654_v60 = vpop.f32.mrb[169].mxu0  ;;  %v5767_v38 = vpop.f32.mrb[169].mxu1 }
 0x76d   : > { %v5927_v20 = vadd.f32 %v10228_v29, %v5654_v60  ;;  %v5929_v28 = vadd.f32 %v10232_v47, %v5767_v38  ;;  %v5656_v43 = vpop.f32.mrb[170].mxu0  ;;  %v5769_v59 = vpop.f32.mrb[170].mxu1 }
 0x76e   : > { %v5930_v6 = vadd.f32 %v10220_v52, %v5656_v43  ;;  %v5932_v10 = vadd.f32 %v10224_v35, %v5769_v59  ;;  %v5658_v32 = vpop.f32.mrb[171].mxu0  ;;  %v5771_v56 = vpop.f32.mrb[171].mxu1 }
 0x76f   : > { %v6740_v36 = vpack.c.bf16 %v5927_v20, %v5926_v63  ;;  %v6741_v27 = vpack.c.bf16 %v5929_v28, %v5928_v14  ;;  %v5931_v24 = vadd.f32 %v10228_v29, %v5658_v32  ;;  %v5933_v50 = vadd.f32 %v10232_v47, %v5771_v56 }
 0x771   : > { %6174 = vst [vmem:[%s10244_s8 + $0x40] sm:$0xff] %v6740_v36  ;;  %6175 = vst [vmem:[%s10244_s8 + $0x48] sm:$0xff] %v6741_v27  ;;  %v6742_v3 = vpack.c.bf16 %v5931_v24, %v5930_v6  ;;  %v6743_v26 = vpack.c.bf16 %v5933_v50, %v5932_v10 }
 0x773   : > { %6176 = vst [vmem:[%s10244_s8 + $0x50] sm:$0xff] %v6742_v3  ;;  %6177 = vst [vmem:[%s10244_s8 + $0x58] sm:$0xff] %v6743_v26  ;;  %v5662_v49 = vpop.f32.mrb[172].mxu0  ;;  %v5775_v22 = vpop.f32.mrb[172].mxu1 }
 0x774   : > { %v5934_v21 = vadd.f32 %v10220_v52, %v5662_v49  ;;  %v5936_v25 = vadd.f32 %v10224_v35, %v5775_v22  ;;  %v5664_v31 = vpop.f32.mrb[173].mxu0  ;;  %v5777_v37 = vpop.f32.mrb[173].mxu1 }
 0x775   : > { %v5935_v58 = vadd.f32 %v10228_v29, %v5664_v31  ;;  %v5937_v18 = vadd.f32 %v10232_v47, %v5777_v37  ;;  %v5666_v54 = vpop.f32.mrb[174].mxu0  ;;  %v5779_v40 = vpop.f32.mrb[174].mxu1 }
 0x776   : > { %v5938_v9 = vadd.f32 %v10220_v52, %v5666_v54  ;;  %v5940_v19 = vadd.f32 %v10224_v35, %v5779_v40  ;;  %v5668_v12 = vpop.f32.mrb[175].mxu0  ;;  %v5781_v23 = vpop.f32.mrb[175].mxu1 }
 0x777   : > { %v6744_v51 = vpack.c.bf16 %v5935_v58, %v5934_v21  ;;  %v6745_v16 = vpack.c.bf16 %v5937_v18, %v5936_v25  ;;  %v5939_v55 = vadd.f32 %v10228_v29, %v5668_v12  ;;  %v5941_v34 = vadd.f32 %v10232_v47, %v5781_v23 }
 0x779   : > { %6178 = vst [vmem:[%s10244_s8 + $0x60] sm:$0xff] %v6744_v51  ;;  %6179 = vst [vmem:[%s10244_s8 + $0x68] sm:$0xff] %v6745_v16  ;;  %v6746_v61 = vpack.c.bf16 %v5939_v55, %v5938_v9  ;;  %v6747_v46 = vpack.c.bf16 %v5941_v34, %v5940_v19 }
 0x77b   : > { %6180 = vst [vmem:[%s10244_s8 + $0x70] sm:$0xff] %v6746_v61  ;;  %6181 = vst [vmem:[%s10244_s8 + $0x78] sm:$0xff] %v6747_v46  ;;  %v5672_v8 = vpop.f32.mrb[176].mxu0  ;;  %v5785_v0 = vpop.f32.mrb[176].mxu1 }
 0x77c   : > { %v5942_v44 = vadd.f32 %v10220_v52, %v5672_v8  ;;  %v5944_v48 = vadd.f32 %v10224_v35, %v5785_v0  ;;  %v5674_v5 = vpop.f32.mrb[177].mxu0  ;;  %v5787_v4 = vpop.f32.mrb[177].mxu1 }
 0x77d   : > { %v5943_v1 = vadd.f32 %v10228_v29, %v5674_v5  ;;  %v5945_v17 = vadd.f32 %v10232_v47, %v5787_v4  ;;  %v5676_v62 = vpop.f32.mrb[178].mxu0  ;;  %v5789_v7 = vpop.f32.mrb[178].mxu1 }
 0x77e   : > { %v5946_v2 = vadd.f32 %v10220_v52, %v5676_v62  ;;  %v5948_v45 = vadd.f32 %v10224_v35, %v5789_v7  ;;  %v5678_v13 = vpop.f32.mrb[179].mxu0  ;;  %v5791_v41 = vpop.f32.mrb[179].mxu1 }
 0x77f   : > { %v6748_v33 = vpack.c.bf16 %v5943_v1, %v5942_v44  ;;  %v6749_v15 = vpack.c.bf16 %v5945_v17, %v5944_v48  ;;  %v5947_v53 = vadd.f32 %v10228_v29, %v5678_v13  ;;  %v5949_v30 = vadd.f32 %v10232_v47, %v5791_v41 }
 0x781   : > { %6182 = vst [vmem:[%s10244_s8 + $0x80] sm:$0xff] %v6748_v33  ;;  %6183 = vst [vmem:[%s10244_s8 + $0x88] sm:$0xff] %v6749_v15  ;;  %v6750_v42 = vpack.c.bf16 %v5947_v53, %v5946_v2  ;;  %v6751_v11 = vpack.c.bf16 %v5949_v30, %v5948_v45 }
 0x783   : > { %6184 = vst [vmem:[%s10244_s8 + $0x90] sm:$0xff] %v6750_v42  ;;  %6185 = vst [vmem:[%s10244_s8 + $0x98] sm:$0xff] %v6751_v11  ;;  %v5682_v39 = vpop.f32.mrb[180].mxu0  ;;  %v5795_v57 = vpop.f32.mrb[180].mxu1 }
 0x784   : > { %v5950_v63 = vadd.f32 %v10220_v52, %v5682_v39  ;;  %v5952_v14 = vadd.f32 %v10224_v35, %v5795_v57  ;;  %v5684_v60 = vpop.f32.mrb[181].mxu0  ;;  %v5797_v38 = vpop.f32.mrb[181].mxu1 }
 0x785   : > { %v5951_v20 = vadd.f32 %v10228_v29, %v5684_v60  ;;  %v5953_v28 = vadd.f32 %v10232_v47, %v5797_v38  ;;  %v5686_v43 = vpop.f32.mrb[182].mxu0  ;;  %v5799_v59 = vpop.f32.mrb[182].mxu1 }
 0x786   : > { %v5954_v6 = vadd.f32 %v10220_v52, %v5686_v43  ;;  %v5956_v10 = vadd.f32 %v10224_v35, %v5799_v59  ;;  %v5688_v32 = vpop.f32.mrb[183].mxu0  ;;  %v5801_v56 = vpop.f32.mrb[183].mxu1 }
 0x787   : > { %v6752_v36 = vpack.c.bf16 %v5951_v20, %v5950_v63  ;;  %v6753_v27 = vpack.c.bf16 %v5953_v28, %v5952_v14  ;;  %v5955_v24 = vadd.f32 %v10228_v29, %v5688_v32  ;;  %v5957_v50 = vadd.f32 %v10232_v47, %v5801_v56 }
 0x789   : > { %6186 = vst [vmem:[%s10244_s8 + $0xa0] sm:$0xff] %v6752_v36  ;;  %6187 = vst [vmem:[%s10244_s8 + $0xa8] sm:$0xff] %v6753_v27  ;;  %v6754_v3 = vpack.c.bf16 %v5955_v24, %v5954_v6  ;;  %v6755_v26 = vpack.c.bf16 %v5957_v50, %v5956_v10 }
 0x78b   : > { %6188 = vst [vmem:[%s10244_s8 + $0xb0] sm:$0xff] %v6754_v3  ;;  %6189 = vst [vmem:[%s10244_s8 + $0xb8] sm:$0xff] %v6755_v26  ;;  %v5692_v49 = vpop.f32.mrb[184].mxu0  ;;  %v5805_v22 = vpop.f32.mrb[184].mxu1 }
 0x78c   : > { %v5958_v21 = vadd.f32 %v10220_v52, %v5692_v49  ;;  %v5960_v25 = vadd.f32 %v10224_v35, %v5805_v22  ;;  %v5694_v31 = vpop.f32.mrb[185].mxu0  ;;  %v5807_v37 = vpop.f32.mrb[185].mxu1 }
 0x78d   : > { %v5959_v58 = vadd.f32 %v10228_v29, %v5694_v31  ;;  %v5961_v18 = vadd.f32 %v10232_v47, %v5807_v37  ;;  %v5696_v54 = vpop.f32.mrb[186].mxu0  ;;  %v5809_v40 = vpop.f32.mrb[186].mxu1 }
 0x78e   : > { %v5962_v9 = vadd.f32 %v10220_v52, %v5696_v54  ;;  %v5964_v19 = vadd.f32 %v10224_v35, %v5809_v40  ;;  %v5698_v12 = vpop.f32.mrb[187].mxu0  ;;  %v5811_v23 = vpop.f32.mrb[187].mxu1 }
 0x78f   : > { %v6756_v51 = vpack.c.bf16 %v5959_v58, %v5958_v21  ;;  %v6757_v16 = vpack.c.bf16 %v5961_v18, %v5960_v25  ;;  %v5963_v55 = vadd.f32 %v10228_v29, %v5698_v12  ;;  %v5965_v34 = vadd.f32 %v10232_v47, %v5811_v23 }
 0x791   : > { %6190 = vst [vmem:[%s10244_s8 + $0xc0] sm:$0xff] %v6756_v51  ;;  %6191 = vst [vmem:[%s10244_s8 + $0xc8] sm:$0xff] %v6757_v16  ;;  %v6758_v61 = vpack.c.bf16 %v5963_v55, %v5962_v9  ;;  %v6759_v46 = vpack.c.bf16 %v5965_v34, %v5964_v19 }
 0x793   : > { %6192 = vst [vmem:[%s10244_s8 + $0xd0] sm:$0xff] %v6758_v61  ;;  %6193 = vst [vmem:[%s10244_s8 + $0xd8] sm:$0xff] %v6759_v46  ;;  %v5702_v8 = vpop.f32.mrb[188].mxu0  ;;  %v5815_v0 = vpop.f32.mrb[188].mxu1 }
 0x794   : > { %v5966_v44 = vadd.f32 %v10220_v52, %v5702_v8  ;;  %v5968_v48 = vadd.f32 %v10224_v35, %v5815_v0  ;;  %v5704_v5 = vpop.f32.mrb[189].mxu0  ;;  %v5817_v4 = vpop.f32.mrb[189].mxu1 }
 0x795   : > { %v5967_v1 = vadd.f32 %v10228_v29, %v5704_v5  ;;  %v5969_v17 = vadd.f32 %v10232_v47, %v5817_v4  ;;  %v5706_v62 = vpop.f32.mrb[190].mxu0  ;;  %v5819_v7 = vpop.f32.mrb[190].mxu1 }
 0x796   : > { %v5970_v2 = vadd.f32 %v10220_v52, %v5706_v62  ;;  %v5972_v45 = vadd.f32 %v10224_v35, %v5819_v7  ;;  %v5708_v13 = vpop.f32.mrb[191].mxu0  ;;  %v5821_v41 = vpop.f32.mrb[191].mxu1 }
 0x797   : > { %v6760_v33 = vpack.c.bf16 %v5967_v1, %v5966_v44  ;;  %v6761_v15 = vpack.c.bf16 %v5969_v17, %v5968_v48  ;;  %v5971_v53 = vadd.f32 %v10228_v29, %v5708_v13  ;;  %v5973_v30 = vadd.f32 %v10232_v47, %v5821_v41 }
 0x799   : > { %6194 = vst [vmem:[%s10244_s8 + $0xe0] sm:$0xff] %v6760_v33  ;;  %6195 = vst [vmem:[%s10244_s8 + $0xe8] sm:$0xff] %v6761_v15  ;;  %v6762_v52 = vpack.c.bf16 %v5971_v53, %v5970_v2  ;;  %v6763_v35 = vpack.c.bf16 %v5973_v30, %v5972_v45 }
 0x79b   : > { %6196 = vst [vmem:[%s10244_s8 + $0xf0] sm:$0xff] %v6762_v52  ;;  %6197 = vst [vmem:[%s10244_s8 + $0xf8] sm:$0xff] %v6763_v35 }
 0x79c   : > { %8596 = shalt.err (!%p8593_p13)
}
 0x79d   : > { %s8597_s27 = scalar_lea.hbm %s10335_s21, 4096  ;;  %s8601_s26 = scalar_lea.hbm %s10597_s13, 8192 }
 0x79e   : > { %p8598_p0 = scmp.ne.s32.totalorder %s10335_s21, %s8597_s27  ;;  %p8602_p1 = scmp.lt.u32.totalorder %s10335_s21, %s10597_s13 }
 0x79f   : > { %p8603_p2 = scmp.lt.u32.totalorder %s8601_s26, %s8597_s27  ;;  %p8605_p8 = scmp.lt.u32.totalorder %s8597_s27, %s10335_s21 }
 0x7a0   : > { %p8599_p5 = pnand %p8598_p0, %p8870_p6 }
 0x7a1   : > { %p8604_p4 = por %p8603_p2, %p8602_p1 }
 0x7a2   : > { %p8600_p11 = pneg %p8599_p5 }
 0x7a3   : > { %p8606_p10 = por %p8605_p8, %p8604_p4 }
 0x7a5   : > { %p8607_p12 = pnand %p8606_p10, %p8600_p11 }
 0x7a7   : > { %8610 = shalt.err (!%p8607_p12)
}
 0x7a8   : > { %s8670_s25 = smov 256   ;;  %s8671_s14 = smov 16  }
 0x7a9   : > { %7599 = dma.vmem_to_hbm [thread:$0]  (%p8870_p6), %s10337_s29, 4096, %s10335_s21, %s6199_s15, %s8670_s25, %s8670_s25, %s8671_s14  }
 0x7aa PF: > { %s10598_s17 = sld [smem:[#allocation16_spill]]  ;;  %s10599_s23 = sld [smem:[#allocation17_spill]] }
 0x7ab   : > { %p10601_p7 = scmp.ge.s32.totalorder %s8657_s12, 2 }
 0x7b0   : > { %s6227_s30 = sand.u32 1, %s10598_s17   ;;  %p10600_p3 = scmp.ne.s32.totalorder %s10599_s23, 0 }
 0x7b1   : > { %s6228_s19 = scalar_lea.sflag [#allocation4], %s6227_s30 }
 0x7b2   : > { %p7619_p9 = pnand %p10601_p7, %p10600_p3 }
 0x7b4   : > { %8640 = dma.done.wait (!%p7619_p9), %s6228_s19, 4096  }
 0x7b5   : > { %8642 = vsyncadd (!%p7619_p9), %s6228_s19, 4294963200  ;;  %p24_p13 = scmp.ge.s32.totalorder %s8860_s28, 4   ;;  %s10602_s30 = smov %s8649_s10 }
 0x7b6   : > { %s10603_s10 = smov %s8653_s11  ;;  %s10604_s11 = smov %s8876_s24 }
 0x7b7   : > { %s10605_s12 = smov %s8860_s28  ;;  %26 = sbr.rel (!%p24_p13) target bundleno = 10 (0xa), region = 117 }
 0x7be   :  { %6233 = vsyncpa [#allocation3], 1 }
 0x7bf   :  { %6235 = vsyncpa [#allocation3 + $0x1], 1 }
 0x7c0   :  { %6236 = vsyncpa [#allocation6], 1 }
 0x7c1   :  { %6237 = vsyncpa [#allocation9], 1 }
 0x7c2   :  { %6238 = vsyncpa [#allocation4], 1 }
 0x7c3   :  { %6240 = vsyncpa [#allocation4 + $0x1], 1 }

</bundles_post_ra>
